<compile_context>
chip_gen: v7x
topology: tpu7x:2x2x1
jax: 0.10.0
libtpu: 0.0.40
codegen_flags: <defaults>
</compile_context>

<pallas_src>
import jax
import jax.numpy as jnp
from jax.experimental import pallas as pl
from jax.experimental.pallas import tpu as pltpu

CIN = 200    # conv1x1 in channels  (fixed by the module)
COUT = 512   # conv1x1 out channels (fixed by the module)
NBINS = 4    # AdaptiveAvgPool2d target size along H (and along W, which is 1)


def _round_up(v, m):
    return ((v + m - 1) // m) * m


def modify_graph_kernel(x_ref, w_ref, b_ref, o_ref):
    # x_ref: (TB, CIN, H)      native NCH layout block
    # w_ref: (CIN, COUT)       resident conv weight^T, pre-scaled by 1/binsize
    # b_ref: (1, COUT)         bias
    # o_ref: (NBINS, TB, COUT) bin-major output block (lane-dense 512 stores)
    x = x_ref[...]
    tb = x.shape[0]
    h = x.shape[2]
    binsz = h // NBINS

    # Adaptive average pool over H BEFORE the conv (exact by linearity).
    # The 1/binsz scale is folded into w_ref, so each bin is a plain sum.
    pooled = [jnp.sum(x[:, :, f * binsz:(f + 1) * binsz], axis=2)
              for f in range(NBINS)]
    lhs = jnp.concatenate(pooled, axis=0)                 # (NBINS*TB, CIN), bin-major

    # One well-shaped MXU matmul with M = NBINS*TB rows.
    y = jnp.dot(lhs, w_ref[...],
                preferred_element_type=jnp.float32) + b_ref[...]  # (NBINS*TB, COUT)

    # Bin-major rows -> (NBINS, TB, COUT): free regrouping (TB multiple of 8),
    # stored as full-width unmasked vst (no sublane scatter).
    o_ref[...] = y.reshape(NBINS, tb, COUT).astype(o_ref.dtype)


@jax.jit
def modify_graph_output(x_nch, w, b):
    """x_nch: (N, 200, H) float32 (PyTorch input before unsqueeze(-1)).
       w: (512, 200) conv1x1 weight (kernel dims squeezed), b: (512,).
       Returns (N, 512, 4, 4) matching the PyTorch module output."""
    N, C, H = x_nch.shape
    assert C == CIN
    # TODO(synk): non-uniform adaptive-pool bins (H % 4 != 0) not implemented;
    # for H % 4 == 0 the PyTorch bins are uniform and this is exact.
    assert H % NBINS == 0
    binsz = H // NBINS

    x = x_nch.astype(jnp.float32)                                  # native (N, CIN, H)
    wt = (jnp.transpose(w, (1, 0)) * (1.0 / binsz)).astype(jnp.float32)  # (CIN, COUT)
    b2 = b.reshape(1, COUT).astype(jnp.float32)

    # ---- batch-block (tb) selection, from lane-PADDED VMEM bytes -------------
    # x block last two dims (CIN, H) tile as (8, 128) in VMEM.
    x_row_bytes = _round_up(CIN, 8) * _round_up(H, 128) * 4        # per-batch padded
    X_BLOCK_BUDGET = 6 * 1024 * 1024                               # per buffer
    tb = max(8, (X_BLOCK_BUDGET // x_row_bytes) // 8 * 8)
    tb = min(tb, 256)                         # M = 4*tb = 1024 already fills the MXU
    tb = min(tb, _round_up(N, 8))             # never larger than (padded) batch

    # v7x: prefer >= 2 grid steps so the "parallel" axis spans both TensorCores.
    if pl.cdiv(N, tb) < 2:
        tb_half = _round_up(pl.cdiv(N, 2), 8)
        if tb_half < tb and pl.cdiv(N, tb_half) >= 2:
            tb = tb_half

    grid = pl.cdiv(N, tb)
    n_pad = grid * tb
    if n_pad != N:
        x = jnp.pad(x, ((0, n_pad - N), (0, 0), (0, 0)))

    # ---- explicit VMEM budget (padded, double-buffered) -----------------------
    x_block_bytes = tb * x_row_bytes
    out_block_bytes = NBINS * _round_up(tb, 8) * _round_up(COUT, 128) * 4
    w_bytes = _round_up(CIN, 8) * _round_up(COUT, 128) * 4
    b_bytes = 8 * _round_up(COUT, 128) * 4
    est = 2 * (x_block_bytes + out_block_bytes + w_bytes + b_bytes)
    vmem_limit = int(min(max(2 * est + (6 << 20), 16 << 20), 40 << 20))

    out_bins = pl.pallas_call(
        modify_graph_kernel,
        out_shape=jax.ShapeDtypeStruct((NBINS, n_pad, COUT), jnp.float32),
        grid_spec=pltpu.PrefetchScalarGridSpec(
            num_scalar_prefetch=0,
            grid=(grid,),
            in_specs=[
                pl.BlockSpec((tb, CIN, H), lambda n: (n, 0, 0)),    # x (TB batches)
                pl.BlockSpec((CIN, COUT), lambda n: (0, 0)),        # W^T/binsz (resident)
                pl.BlockSpec((1, COUT), lambda n: (0, 0)),          # bias
            ],
            out_specs=pl.BlockSpec((NBINS, tb, COUT), lambda n: (0, n, 0)),
        ),
        compiler_params=pltpu.CompilerParams(
            dimension_semantics=("parallel",),
            vmem_limit_bytes=vmem_limit),
    )(x, wt, b2)

    # Tiny epilogue (fused under jit): (NBINS, N, COUT) -> (N, COUT, 4, 4).
    out = out_bins[:, :N, :]
    out = jnp.transpose(out, (1, 2, 0))                              # (N, COUT, NBINS)
    # W axis of the adaptive pool (input width 1) is pure replication.
    return jnp.broadcast_to(out[..., None], (N, COUT, NBINS, NBINS))


def _reference(x_nch, w, b):
    # Pure-JAX reference of the PyTorch forward (conv1x1 then pool), H % 4 == 0.
    N, C, H = x_nch.shape
    y = jnp.einsum("nch,oc->noh", x_nch, w) + b[None, :, None]       # (N, 512, H)
    y = y.reshape(N, COUT, NBINS, H // NBINS).mean(axis=-1)          # (N, 512, 4)
    return jnp.broadcast_to(y[..., None], (N, COUT, NBINS, NBINS))


if __name__ == "__main__":
    key = jax.random.PRNGKey(0)
    kx, kw, kb = jax.random.split(key, 3)

    N, H = 2, 16
    x = jax.random.normal(kx, (N, CIN, H), dtype=jnp.float32)          # (2, 200, 16)
    # Deterministic synthetic conv1x1 params: weight (512, 200, 1, 1) -> (512, 200)
    w = 0.02 * jax.random.normal(kw, (COUT, CIN), dtype=jnp.float32)
    b = 0.01 * jax.random.normal(kb, (COUT,), dtype=jnp.float32)

    out = jax.block_until_ready(modify_graph_output(x, w, b))
    ref = jax.block_until_ready(_reference(x, w, b))

    assert out.shape == (N, COUT, 4, 4), out.shape
    assert jnp.allclose(out, ref, atol=1e-4, rtol=1e-4), \
        float(jnp.max(jnp.abs(out - ref)))

    print("KERNEL_OK")
</pallas_src>

<mosaic_0001>
module attributes {stable_mosaic.version = 11 : i64} {
  func.func @modify_graph_kernel(%arg0: i32, %arg1: memref<8x200x16xf32, #tpu.memory_space<vmem>>, %arg2: memref<200x512xf32, #tpu.memory_space<vmem>>, %arg3: memref<1x512xf32, #tpu.memory_space<vmem>>, %arg4: memref<4x8x512xf32, #tpu.memory_space<vmem>>) attributes {dimension_semantics = [#tpu.dimension_semantics<parallel>], iteration_bounds = array<i64: 1>, scalar_prefetch = 0 : i64, scratch_operands = 0 : i64, tpu.core_type = #tpu.core_type<tc>, window_params = [{transform_indices = @transform_0, window_bounds = array<i64: 8, 200, 16>}, {pipeline_mode = #tpu.pipeline_mode<synchronous>, transform_indices = @transform_1, window_bounds = array<i64: 200, 512>}, {pipeline_mode = #tpu.pipeline_mode<synchronous>, transform_indices = @transform_2, window_bounds = array<i64: 1, 512>}, {transform_indices = @transform_3, window_bounds = array<i64: 4, 8, 512>}]} {
    %c0 = arith.constant 0 : index
    %c0_0 = arith.constant 0 : index
    %c0_1 = arith.constant 0 : index
    %0 = vector.load %arg1[%c0, %c0_0, %c0_1] : memref<8x200x16xf32, #tpu.memory_space<vmem>>, vector<8x200x16xf32>
    %1 = vector.extract_strided_slice %0 {offsets = [0, 0, 0], sizes = [8, 200, 4], strides = [1, 1, 1]} : vector<8x200x16xf32> to vector<8x200x4xf32>
    %cst = arith.constant dense<0.000000e+00> : vector<8x200xf32>
    %2 = vector.multi_reduction <add>, %1, %cst [2] : vector<8x200x4xf32> to vector<8x200xf32>
    %3 = vector.extract_strided_slice %0 {offsets = [0, 0, 4], sizes = [8, 200, 4], strides = [1, 1, 1]} : vector<8x200x16xf32> to vector<8x200x4xf32>
    %cst_2 = arith.constant dense<0.000000e+00> : vector<8x200xf32>
    %4 = vector.multi_reduction <add>, %3, %cst_2 [2] : vector<8x200x4xf32> to vector<8x200xf32>
    %5 = vector.extract_strided_slice %0 {offsets = [0, 0, 8], sizes = [8, 200, 4], strides = [1, 1, 1]} : vector<8x200x16xf32> to vector<8x200x4xf32>
    %cst_3 = arith.constant dense<0.000000e+00> : vector<8x200xf32>
    %6 = vector.multi_reduction <add>, %5, %cst_3 [2] : vector<8x200x4xf32> to vector<8x200xf32>
    %7 = vector.extract_strided_slice %0 {offsets = [0, 0, 12], sizes = [8, 200, 4], strides = [1, 1, 1]} : vector<8x200x16xf32> to vector<8x200x4xf32>
    %cst_4 = arith.constant dense<0.000000e+00> : vector<8x200xf32>
    %8 = vector.multi_reduction <add>, %7, %cst_4 [2] : vector<8x200x4xf32> to vector<8x200xf32>
    %9 = tpu.concatenate %2, %4, %6, %8 in 0 : vector<8x200xf32>, vector<8x200xf32>, vector<8x200xf32>, vector<8x200xf32> -> vector<32x200xf32>
    %c0_5 = arith.constant 0 : index
    %c0_6 = arith.constant 0 : index
    %10 = vector.load %arg2[%c0_5, %c0_6] : memref<200x512xf32, #tpu.memory_space<vmem>>, vector<200x512xf32>
    %cst_7 = arith.constant dense<0.000000e+00> : vector<32x512xf32>
    %11 = tpu.matmul %9, %10, %cst_7 {dimension_numbers = #tpu.dot_dimension_numbers<[1], [0], [0], [1], [0, 0, 1, 1], [], []>} : vector<32x200xf32>, vector<200x512xf32>, vector<32x512xf32> -> vector<32x512xf32>
    %c0_8 = arith.constant 0 : index
    %c0_9 = arith.constant 0 : index
    %12 = vector.load %arg3[%c0_8, %c0_9] : memref<1x512xf32, #tpu.memory_space<vmem>>, vector<1x512xf32>
    %13 = vector.broadcast %12 : vector<1x512xf32> to vector<32x512xf32>
    %14 = arith.addf %11, %13 : vector<32x512xf32>
    %15 = vector.shape_cast %14 : vector<32x512xf32> to vector<4x8x512xf32>
    %c0_10 = arith.constant 0 : index
    %c0_11 = arith.constant 0 : index
    %c0_12 = arith.constant 0 : index
    %16 = vector.load %arg4[%c0_10, %c0_11, %c0_12] : memref<4x8x512xf32, #tpu.memory_space<vmem>>, vector<4x8x512xf32>
    tpu.vector_store %arg4[%c0_10, %c0_11, %c0_12], %15 {strides = array<i32>} : memref<4x8x512xf32, #tpu.memory_space<vmem>>, vector<4x8x512xf32>,
    return
  }
  func.func @transform_0(%arg0: i32) -> (i32, i32, i32) {
    %c0_i32 = arith.constant 0 : i32
    %c0_i32_0 = arith.constant 0 : i32
    %c0_i32_1 = arith.constant 0 : i32
    return %arg0, %c0_i32, %c0_i32_0 : i32, i32, i32
  }
  func.func @transform_1(%arg0: i32) -> (i32, i32) {
    %c0_i32 = arith.constant 0 : i32
    %c0_i32_0 = arith.constant 0 : i32
    %c0_i32_1 = arith.constant 0 : i32
    return %c0_i32, %c0_i32_0 : i32, i32
  }
  func.func @transform_2(%arg0: i32) -> (i32, i32) {
    %c0_i32 = arith.constant 0 : i32
    %c0_i32_0 = arith.constant 0 : i32
    %c0_i32_1 = arith.constant 0 : i32
    return %c0_i32, %c0_i32_0 : i32, i32
  }
  func.func @transform_3(%arg0: i32) -> (i32, i32, i32) {
    %c0_i32 = arith.constant 0 : i32
    %c0_i32_0 = arith.constant 0 : i32
    %c0_i32_1 = arith.constant 0 : i32
    return %c0_i32, %arg0, %c0_i32_0 : i32, i32, i32
  }
}

</mosaic_0001>

<bundles_post_ra>
// kernel: modify_graph_output.1
= control target key start
LH: loop header
LB: loop body
LE: loop exit
PB: predicated region body
PF: predicated region fallthrough
CT: control target
= control target key end

     0   :  { %vm19021_vm0 = vcmask 31744   ;;  %vm4826_vm1 = vcmask 130112   ;;  %vm4833_vm2 = vcmask 195712   ;;  %vm4840_vm3 = vcmask 261312   ;;  %s10486_s12 = smov 124   ;;  %s10487_s22 = smov 120   ;;  %s19005_s0 = inlined_call_operand.vmem [shape: f32[8,200,16], index: 0, kind: input, shape index: {}]   ;;  %s19006_s1 = inlined_call_operand.vmem [shape: f32[200,512], index: 1, kind: input, shape index: {}]   ;;  %s19007_s2 = inlined_call_operand.vmem [shape: f32[1,512], index: 2, kind: input, shape index: {}]   ;;  %s19008_s3 = inlined_call_operand.vmem [shape: f32[4,8,512], index: 3, kind: output, shape index: {}]  }
   0x1   :  { %v16_v0 = vld [vmem:[%s19005_s0 + $0x10] sm:$0xff]  ;;  %v14_v1 = vld [vmem:[%s19005_s0] sm:$0xff]  ;;  %v17_v2 = vld [vmem:[%s19005_s0 + $0x18] sm:$0xff]  ;;  %vm4847_vm4 = vcmask 326912   ;;  %vm4854_vm5 = vcmask 392512   ;;  %vm4861_vm6 = vcmask 458112  }
   0x2   :  { %v221_v3 = vsel %vm19021_vm0, %v16_v0, 0.0  ;;  %v215_v4 = vsel %vm19021_vm0, %v14_v1, 0.0  ;;  %v15_v5 = vld [vmem:[%s19005_s0 + $0x8] sm:$0xff]  ;;  %v224_v6 = vsel %vm19021_vm0, %v17_v2, 0.0  ;;  %v18_v9 = vld [vmem:[%s19005_s0 + $0x20] sm:$0xff]  ;;  %v21_v12 = vld [vmem:[%s19005_s0 + $0x38] sm:$0xff] }
   0x3   :  { %222 = vadd.xlane.f32.xlu1 %v221_v3  ;;  %216 = vadd.xlane.f32.xlu0 %v215_v4  ;;  %v218_v7 = vsel %vm19021_vm0, %v15_v5, 0.0  ;;  %v19_v8 = vld [vmem:[%s19005_s0 + $0x28] sm:$0xff]  ;;  %v227_v11 = vsel %vm19021_vm0, %v18_v9, 0.0  ;;  %v20_v13 = vld [vmem:[%s19005_s0 + $0x30] sm:$0xff]  ;;  %v236_v14 = vsel %vm19021_vm0, %v21_v12, 0.0  ;;  %v22_v17 = vld [vmem:[%s19005_s0 + $0x40] sm:$0xff] }
   0x4   :  { %v230_v10 = vsel %vm19021_vm0, %v19_v8, 0.0  ;;  %v233_v15 = vsel %vm19021_vm0, %v20_v13, 0.0  ;;  %v23_v16 = vld [vmem:[%s19005_s0 + $0x48] sm:$0xff]  ;;  %v239_v19 = vsel %vm19021_vm0, %v22_v17, 0.0  ;;  %v25_v20 = vld [vmem:[%s19005_s0 + $0x58] sm:$0xff]  ;;  %v24_v21 = vld [vmem:[%s19005_s0 + $0x50] sm:$0xff] }
   0x5   :  { %v242_v18 = vsel %vm19021_vm0, %v23_v16, 0.0  ;;  %v248_v22 = vsel %vm19021_vm0, %v25_v20, 0.0  ;;  %v245_v23 = vsel %vm19021_vm0, %v24_v21, 0.0  ;;  %v27_v24 = vld [vmem:[%s19005_s0 + $0x68] sm:$0xff]  ;;  %v26_v25 = vld [vmem:[%s19005_s0 + $0x60] sm:$0xff]  ;;  %v29_v28 = vld [vmem:[%s19005_s0 + $0x78] sm:$0xff] }
   0x6   :  { %v254_v26 = vsel %vm19021_vm0, %v27_v24, 0.0  ;;  %v251_v27 = vsel %vm19021_vm0, %v26_v25, 0.0  ;;  %v28_v29 = vld [vmem:[%s19005_s0 + $0x70] sm:$0xff]  ;;  %v260_v30 = vsel %vm19021_vm0, %v29_v28, 0.0  ;;  %v31_v32 = vld [vmem:[%s19005_s0 + $0x88] sm:$0xff]  ;;  %v30_v33 = vld [vmem:[%s19005_s0 + $0x80] sm:$0xff] }
   0x7   :  { %225 = vadd.xlane.f32.xlu1 %v224_v6  ;;  %219 = vadd.xlane.f32.xlu0 %v218_v7  ;;  %v257_v31 = vsel %vm19021_vm0, %v28_v29, 0.0  ;;  %v266_v34 = vsel %vm19021_vm0, %v31_v32, 0.0  ;;  %v263_v35 = vsel %vm19021_vm0, %v30_v33, 0.0  ;;  %v33_v36 = vld [vmem:[%s19005_s0 + $0x98] sm:$0xff]  ;;  %v32_v37 = vld [vmem:[%s19005_s0 + $0x90] sm:$0xff]  ;;  %v35_v40 = vld [vmem:[%s19005_s0 + $0xa8] sm:$0xff] }
   0x8   :  { %v272_v38 = vsel %vm19021_vm0, %v33_v36, 0.0  ;;  %v269_v39 = vsel %vm19021_vm0, %v32_v37, 0.0  ;;  %v34_v41 = vld [vmem:[%s19005_s0 + $0xa0] sm:$0xff]  ;;  %v278_v42 = vsel %vm19021_vm0, %v35_v40, 0.0  ;;  %v37_v44 = vld [vmem:[%s19005_s0 + $0xb8] sm:$0xff]  ;;  %v36_v45 = vld [vmem:[%s19005_s0 + $0xb0] sm:$0xff] }
   0x9   :  { %v275_v43 = vsel %vm19021_vm0, %v34_v41, 0.0  ;;  %v284_v46 = vsel %vm19021_vm0, %v37_v44, 0.0  ;;  %v281_v47 = vsel %vm19021_vm0, %v36_v45, 0.0  ;;  %v39_v48 = vld [vmem:[%s19005_s0 + $0xc8] sm:$0xff]  ;;  %v38_v49 = vld [vmem:[%s19005_s0 + $0xc0] sm:$0xff]  ;;  %v41_v52 = vld [vmem:[%s19005_s0 + $0xd8] sm:$0xff] }
   0xa   :  { %v290_v50 = vsel %vm19021_vm0, %v39_v48, 0.0  ;;  %v287_v51 = vsel %vm19021_vm0, %v38_v49, 0.0  ;;  %v40_v53 = vld [vmem:[%s19005_s0 + $0xd0] sm:$0xff]  ;;  %v296_v54 = vsel %vm19021_vm0, %v41_v52, 0.0  ;;  %v43_v56 = vld [vmem:[%s19005_s0 + $0xe8] sm:$0xff]  ;;  %v42_v57 = vld [vmem:[%s19005_s0 + $0xe0] sm:$0xff] }
   0xb   :  { %231 = vadd.xlane.f32.xlu1 %v230_v10  ;;  %228 = vadd.xlane.f32.xlu0 %v227_v11  ;;  %v293_v55 = vsel %vm19021_vm0, %v40_v53, 0.0  ;;  %v302_v58 = vsel %vm19021_vm0, %v43_v56, 0.0  ;;  %v299_v59 = vsel %vm19021_vm0, %v42_v57, 0.0  ;;  %v45_v60 = vld [vmem:[%s19005_s0 + $0xf8] sm:$0xff]  ;;  %v44_v61 = vld [vmem:[%s19005_s0 + $0xf0] sm:$0xff]  ;;  %v47_v0 = vld [vmem:[%s19005_s0 + $0x108] sm:$0xff] }
   0xc   :  { %v308_v62 = vsel %vm19021_vm0, %v45_v60, 0.0  ;;  %v305_v63 = vsel %vm19021_vm0, %v44_v61, 0.0  ;;  %v46_v1 = vld [vmem:[%s19005_s0 + $0x100] sm:$0xff]  ;;  %v314_v2 = vsel %vm19021_vm0, %v47_v0, 0.0  ;;  %v49_v4 = vld [vmem:[%s19005_s0 + $0x118] sm:$0xff]  ;;  %v48_v5 = vld [vmem:[%s19005_s0 + $0x110] sm:$0xff] }
   0xd   :  { %v311_v3 = vsel %vm19021_vm0, %v46_v1, 0.0  ;;  %v320_v6 = vsel %vm19021_vm0, %v49_v4, 0.0  ;;  %v317_v7 = vsel %vm19021_vm0, %v48_v5, 0.0  ;;  %v51_v8 = vld [vmem:[%s19005_s0 + $0x128] sm:$0xff]  ;;  %v50_v9 = vld [vmem:[%s19005_s0 + $0x120] sm:$0xff]  ;;  %v53_v12 = vld [vmem:[%s19005_s0 + $0x138] sm:$0xff] }
   0xe   :  { %v326_v10 = vsel %vm19021_vm0, %v51_v8, 0.0  ;;  %v323_v11 = vsel %vm19021_vm0, %v50_v9, 0.0  ;;  %v52_v13 = vld [vmem:[%s19005_s0 + $0x130] sm:$0xff]  ;;  %v55_v16 = vld [vmem:[%s19005_s0 + $0x148] sm:$0xff]  ;;  %v54_v17 = vld [vmem:[%s19005_s0 + $0x140] sm:$0xff]  ;;  %vm4868_vm7 = vcmask 523712  }
   0xf   :  { %237 = vadd.xlane.f32.xlu1 %v236_v14  ;;  %234 = vadd.xlane.f32.xlu0 %v233_v15  ;;  %v332_v14 = vsel %vm19021_vm0, %v53_v12, 0.0  ;;  %v329_v15 = vsel %vm19021_vm0, %v52_v13, 0.0  ;;  %v57_v20 = vld [vmem:[%s19005_s0 + $0x158] sm:$0xff]  ;;  %v56_v21 = vld [vmem:[%s19005_s0 + $0x150] sm:$0xff]  ;;  %v59_v24 = vld [vmem:[%s19005_s0 + $0x168] sm:$0xff]  ;;  %vm4875_vm8 = vcmask 589312  }
  0x10   :  { %v58_v25 = vld [vmem:[%s19005_s0 + $0x160] sm:$0xff]  ;;  %v61_v28 = vld [vmem:[%s19005_s0 + $0x178] sm:$0xff]  ;;  %v60_v29 = vld [vmem:[%s19005_s0 + $0x170] sm:$0xff]  ;;  %vm19022_vm9 = vcmask 654912   ;;  %vm4889_vm10 = vcmask 720512   ;;  %vm19023_vm11 = vcmask 786112  }
  0x11   :  { %v63_v32 = vld [vmem:[%s19005_s0 + $0x188] sm:$0xff]  ;;  %v62_v33 = vld [vmem:[%s19005_s0 + $0x180] sm:$0xff]  ;;  %v65_v36 = vld [vmem:[%s19005_s0 + $0x198] sm:$0xff]  ;;  %vm19009_vm12 = vcmask 851712   ;;  %vm19073_vm13 = vcmask 917312   ;;  %vm19072_vm14 = vcmask 982912  }
  0x12   :  { %v64_v37 = vld [vmem:[%s19005_s0 + $0x190] sm:$0xff]  ;;  %v67_v40 = vld [vmem:[%s19005_s0 + $0x1a8] sm:$0xff]  ;;  %v66_v41 = vld [vmem:[%s19005_s0 + $0x1a0] sm:$0xff]  ;;  %vm19067_vm15 = vcmask 1048512   ;;  %s10488_s9 = smov 116  }
  0x13   :  { %243 = vadd.xlane.f32.xlu1 %v242_v18  ;;  %240 = vadd.xlane.f32.xlu0 %v239_v19  ;;  %v338_v18 = vsel %vm19021_vm0, %v55_v16, 0.0  ;;  %v335_v19 = vsel %vm19021_vm0, %v54_v17, 0.0  ;;  %v69_v44 = vld [vmem:[%s19005_s0 + $0x1b8] sm:$0xff]  ;;  %v68_v45 = vld [vmem:[%s19005_s0 + $0x1b0] sm:$0xff]  ;;  %v71_v48 = vld [vmem:[%s19005_s0 + $0x1c8] sm:$0xff] }
  0x14   :  { %v70_v49 = vld [vmem:[%s19005_s0 + $0x1c0] sm:$0xff]  ;;  %v73_v52 = vld [vmem:[%s19005_s0 + $0x1d8] sm:$0xff]  ;;  %v72_v53 = vld [vmem:[%s19005_s0 + $0x1d0] sm:$0xff] }
  0x15   :  { %v75_v56 = vld [vmem:[%s19005_s0 + $0x1e8] sm:$0xff]  ;;  %v74_v57 = vld [vmem:[%s19005_s0 + $0x1e0] sm:$0xff]  ;;  %v77_v60 = vld [vmem:[%s19005_s0 + $0x1f8] sm:$0xff] }
  0x16   :  { %v76_v61 = vld [vmem:[%s19005_s0 + $0x1f0] sm:$0xff]  ;;  %v79_v0 = vld [vmem:[%s19005_s0 + $0x208] sm:$0xff]  ;;  %v78_v1 = vld [vmem:[%s19005_s0 + $0x200] sm:$0xff] }
  0x17   :  { %249 = vadd.xlane.f32.xlu1 %v248_v22  ;;  %246 = vadd.xlane.f32.xlu0 %v245_v23  ;;  %v344_v22 = vsel %vm19021_vm0, %v57_v20, 0.0  ;;  %v341_v23 = vsel %vm19021_vm0, %v56_v21, 0.0  ;;  %v81_v4 = vld [vmem:[%s19005_s0 + $0x218] sm:$0xff]  ;;  %v80_v5 = vld [vmem:[%s19005_s0 + $0x210] sm:$0xff]  ;;  %v83_v8 = vld [vmem:[%s19005_s0 + $0x228] sm:$0xff] }
  0x18   :  { %v82_v9 = vld [vmem:[%s19005_s0 + $0x220] sm:$0xff]  ;;  %v85_v13 = vld [vmem:[%s19005_s0 + $0x238] sm:$0xff] }
  0x19   :  { %v419_v12 = vsel %vm19021_vm0, %v82_v9, 0.0  ;;  %v428_v16 = vsel %vm19021_vm0, %v85_v13, 0.0  ;;  %v86_v20 = vld [vmem:[%s19005_s0 + $0x240] sm:$0xff] }
  0x1a   :  { %v94_v9 = vld [vmem:[%s19005_s0 + $0x280] sm:$0xff] }
  0x1b   :  { %255 = vadd.xlane.f32.xlu1 %v254_v26  ;;  %252 = vadd.xlane.f32.xlu0 %v251_v27  ;;  %v350_v26 = vsel %vm19021_vm0, %v59_v24, 0.0  ;;  %v347_v27 = vsel %vm19021_vm0, %v58_v25, 0.0 }
  0x1f   :  { %261 = vadd.xlane.f32.xlu1 %v260_v30  ;;  %258 = vadd.xlane.f32.xlu0 %v257_v31  ;;  %v356_v30 = vsel %vm19021_vm0, %v61_v28, 0.0  ;;  %v353_v31 = vsel %vm19021_vm0, %v60_v29, 0.0  ;;  %v89_v28 = vld [vmem:[%s19005_s0 + $0x258] sm:$0xff] }
  0x23   :  { %267 = vadd.xlane.f32.xlu1 %v266_v34  ;;  %264 = vadd.xlane.f32.xlu0 %v263_v35  ;;  %v362_v34 = vsel %vm19021_vm0, %v63_v32, 0.0  ;;  %v359_v35 = vsel %vm19021_vm0, %v62_v33, 0.0  ;;  %v88_v33 = vld [vmem:[%s19005_s0 + $0x250] sm:$0xff] }
  0x27   :  { %273 = vadd.xlane.f32.xlu1 %v272_v38  ;;  %270 = vadd.xlane.f32.xlu0 %v269_v39  ;;  %v368_v38 = vsel %vm19021_vm0, %v65_v36, 0.0  ;;  %v365_v39 = vsel %vm19021_vm0, %v64_v37, 0.0  ;;  %v440_v36 = vsel %vm19021_vm0, %v89_v28, 0.0 }
  0x2b   :  { %279 = vadd.xlane.f32.xlu1 %v278_v42  ;;  %276 = vadd.xlane.f32.xlu0 %v275_v43  ;;  %v374_v42 = vsel %vm19021_vm0, %v67_v40, 0.0  ;;  %v371_v43 = vsel %vm19021_vm0, %v66_v41, 0.0  ;;  %v91_v41 = vld [vmem:[%s19005_s0 + $0x268] sm:$0xff] }
  0x2f   :  { %285 = vadd.xlane.f32.xlu1 %v284_v46  ;;  %282 = vadd.xlane.f32.xlu0 %v281_v47  ;;  %v380_v46 = vsel %vm19021_vm0, %v69_v44, 0.0  ;;  %v377_v47 = vsel %vm19021_vm0, %v68_v45, 0.0 }
  0x33   :  { %291 = vadd.xlane.f32.xlu1 %v290_v50  ;;  %288 = vadd.xlane.f32.xlu0 %v287_v51  ;;  %v386_v50 = vsel %vm19021_vm0, %v71_v48, 0.0  ;;  %v383_v51 = vsel %vm19021_vm0, %v70_v49, 0.0 }
  0x37   :  { %297 = vadd.xlane.f32.xlu1 %v296_v54  ;;  %294 = vadd.xlane.f32.xlu0 %v293_v55  ;;  %v392_v54 = vsel %vm19021_vm0, %v73_v52, 0.0  ;;  %v389_v55 = vsel %vm19021_vm0, %v72_v53, 0.0 }
  0x3b   :  { %303 = vadd.xlane.f32.xlu1 %v302_v58  ;;  %300 = vadd.xlane.f32.xlu0 %v299_v59  ;;  %v398_v58 = vsel %vm19021_vm0, %v75_v56, 0.0  ;;  %v395_v59 = vsel %vm19021_vm0, %v74_v57, 0.0 }
  0x3f   :  { %309 = vadd.xlane.f32.xlu1 %v308_v62  ;;  %306 = vadd.xlane.f32.xlu0 %v305_v63  ;;  %v404_v62 = vsel %vm19021_vm0, %v77_v60, 0.0  ;;  %v401_v63 = vsel %vm19021_vm0, %v76_v61, 0.0 }
  0x43   :  { %315 = vadd.xlane.f32.xlu1 %v314_v2  ;;  %312 = vadd.xlane.f32.xlu0 %v311_v3  ;;  %v410_v2 = vsel %vm19021_vm0, %v79_v0, 0.0  ;;  %v407_v3 = vsel %vm19021_vm0, %v78_v1, 0.0 }
  0x47   :  { %321 = vadd.xlane.f32.xlu1 %v320_v6  ;;  %318 = vadd.xlane.f32.xlu0 %v317_v7  ;;  %v416_v6 = vsel %vm19021_vm0, %v81_v4, 0.0  ;;  %v413_v7 = vsel %vm19021_vm0, %v80_v5, 0.0 }
  0x4b   :  { %327 = vadd.xlane.f32.xlu1 %v326_v10  ;;  %324 = vadd.xlane.f32.xlu0 %v323_v11  ;;  %v4815_v10 = vlaneseq  ;;  %v422_v11 = vsel %vm19021_vm0, %v83_v8, 0.0  ;;  %v95_v8 = vld [vmem:[%s19005_s0 + $0x288] sm:$0xff] }
  0x4f   :  { %333 = vadd.xlane.f32.xlu1 %v332_v14  ;;  %330 = vadd.xlane.f32.xlu0 %v329_v15  ;;  %v84_v14 = vld [vmem:[%s19005_s0 + $0x230] sm:$0xff]  ;;  %v10795_v15 = vand.u32 127, %v4815_v10 }
  0x50   :  { %v425_v17 = vsel %vm19021_vm0, %v84_v14, 0.0 }
  0x51   :  { %v4835_v21 = vadd.s32 4294967272, %v10795_v15  ;;  %v4849_v29 = vadd.s32 4294967256, %v10795_v15  ;;  %v4856_v44 = vadd.s32 4294967248, %v10795_v15  ;;  %v4877_v60 = vadd.s32 4294967224, %v10795_v15 }
  0x52   :  { %v4870_v0 = vadd.s32 4294967232, %v10795_v15  ;;  %v4884_v14 = vadd.s32 4294967216, %v10795_v15 }
  0x53   :  { %339 = vadd.xlane.f32.xlu1 %v338_v18  ;;  %336 = vadd.xlane.f32.xlu0 %v335_v19  ;;  %v10799_v18 = vshrl.u32 %v4815_v10, 7  ;;  %v87_v19 = vld [vmem:[%s19005_s0 + $0x248] sm:$0xff]  ;;  %v4891_v10 = vadd.s32 4294967208, %v10795_v15 }
  0x55   :  { %19110 = vst [vmem:[#allocation2_spill] sm:$0xff] %v10799_v18  ;;  %v10836_v40 = vsub.s32 %v4849_v29, %v10799_v18  ;;  %v10861_v57 = vsub.s32 %v4856_v44, %v10799_v18  ;;  %v10891_v13 = vsub.s32 %v4870_v0, %v10799_v18  ;;  %v10909_v29 = vsub.s32 %v4891_v10, %v10799_v18  ;;  %v102_v10 = vld [vmem:[%s19005_s0 + $0x2c0] sm:$0xff] }
  0x57   :  { %345 = vadd.xlane.f32.xlu1 %v344_v22  ;;  %342 = vadd.xlane.f32.xlu0 %v341_v23  ;;  %v4821_v22 = vadd.s32 4294967288, %v10795_v15  ;;  %v4828_v23 = vadd.s32 4294967280, %v10795_v15  ;;  %19115 = vst [vmem:[#allocation7_spill] sm:$0xff] %v10836_v40  ;;  %19118 = vst [vmem:[#allocation10_spill] sm:$0xff] %v10861_v57 }
  0x58   :  { %19120 = vst [vmem:[#allocation12_spill] sm:$0xff] %v10891_v13  ;;  %19121 = vst [vmem:[#allocation13_spill] sm:$0xff] %v10909_v29 }
  0x59   :  { %v10824_v32 = vsub.s32 %v4821_v22, %v10799_v18 }
  0x5b   :  { %351 = vadd.xlane.f32.xlu1 %v350_v26  ;;  %348 = vadd.xlane.f32.xlu0 %v347_v27  ;;  %v434_v26 = vsel %vm19021_vm0, %v87_v19, 0.0  ;;  %v431_v27 = vsel %vm19021_vm0, %v86_v20, 0.0  ;;  %19113 = vst [vmem:[#allocation5_spill] sm:$0xff] %v10824_v32  ;;  %v455_v19 = vsel %vm19021_vm0, %v94_v9, 0.0  ;;  %v103_v9 = vld [vmem:[%s19005_s0 + $0x2c8] sm:$0xff] }
  0x5f   :  { %357 = vadd.xlane.f32.xlu1 %v356_v30  ;;  %354 = vadd.xlane.f32.xlu0 %v353_v31  ;;  %v10818_v30 = vsub.s32 %v10795_v15, %v10799_v18  ;;  %v10821_v31 = vsub.s32 %v4835_v21, %v10799_v18 }
  0x61   :  { %19111 = vst [vmem:[#allocation3_spill] sm:$0xff] %v10818_v30  ;;  %19112 = vst [vmem:[#allocation4_spill] sm:$0xff] %v10821_v31 }
  0x63   :  { %363 = vadd.xlane.f32.xlu1 %v362_v34  ;;  %360 = vadd.xlane.f32.xlu0 %v359_v35  ;;  %v4842_v34 = vadd.s32 4294967264, %v10795_v15  ;;  %v10831_v35 = vsub.s32 %v4828_v23, %v10799_v18  ;;  %v97_v23 = vld [vmem:[%s19005_s0 + $0x298] sm:$0xff] }
  0x65   :  { %19114 = vst [vmem:[#allocation6_spill] sm:$0xff] %v10831_v35  ;;  %v10850_v48 = vsub.s32 %v4842_v34, %v10799_v18 }
  0x67   :  { %369 = vadd.xlane.f32.xlu1 %v368_v38  ;;  %366 = vadd.xlane.f32.xlu0 %v365_v39  ;;  %v437_v39 = vsel %vm19021_vm0, %v88_v33, 0.0  ;;  %19116 = vst [vmem:[#allocation8_spill] sm:$0xff] %v10850_v48  ;;  %v10912_v33 = vsub.s32 %v4884_v14, %v10799_v18 }
  0x69   :  { %19122 = vst [vmem:[#allocation14_spill] sm:$0xff] %v10912_v33 }
  0x6b   :  { %375 = vadd.xlane.f32.xlu1 %v374_v42  ;;  %372 = vadd.xlane.f32.xlu0 %v371_v43  ;;  %v90_v42 = vld [vmem:[%s19005_s0 + $0x260] sm:$0xff]  ;;  %v4863_v43 = vadd.s32 4294967240, %v10795_v15 }
  0x6c   :  { %v443_v52 = vsel %vm19021_vm0, %v90_v42, 0.0 }
  0x6d   :  { %v10858_v56 = vsub.s32 %v4863_v43, %v10799_v18 }
  0x6f   :  { %381 = vadd.xlane.f32.xlu1 %v380_v46  ;;  %378 = vadd.xlane.f32.xlu0 %v377_v47  ;;  %19117 = vst [vmem:[#allocation9_spill] sm:$0xff] %v10858_v56 }
  0x73   :  { %387 = vadd.xlane.f32.xlu1 %v386_v50  ;;  %384 = vadd.xlane.f32.xlu0 %v383_v51  ;;  %v446_v51 = vsel %vm19021_vm0, %v91_v41, 0.0 }
  0x77   :  { %393 = vadd.xlane.f32.xlu1 %v392_v54  ;;  %390 = vadd.xlane.f32.xlu0 %v389_v55 }
  0x7b   :  { %399 = vadd.xlane.f32.xlu1 %v398_v58  ;;  %396 = vadd.xlane.f32.xlu0 %v395_v59  ;;  %v93_v58 = vld [vmem:[%s19005_s0 + $0x278] sm:$0xff]  ;;  %v92_v59 = vld [vmem:[%s19005_s0 + $0x270] sm:$0xff] }
  0x7f   :  { %405 = vadd.xlane.f32.xlu1 %v404_v62  ;;  %402 = vadd.xlane.f32.xlu0 %v401_v63 }
  0x83   :  { %411 = vadd.xlane.f32.xlu1 %v410_v2  ;;  %408 = vadd.xlane.f32.xlu0 %v407_v3  ;;  %v452_v2 = vsel %vm19021_vm0, %v93_v58, 0.0  ;;  %v449_v3 = vsel %vm19021_vm0, %v92_v59, 0.0 }
  0x87   :  { %417 = vadd.xlane.f32.xlu1 %v416_v6  ;;  %414 = vadd.xlane.f32.xlu0 %v413_v7  ;;  %v10879_v7 = vsub.s32 %v4877_v60, %v10799_v18 }
  0x89   :  { %19119 = vst [vmem:[#allocation11_spill] sm:$0xff] %v10879_v7 }
  0x8b   :  { %423 = vadd.xlane.f32.xlu1 %v422_v11  ;;  %420 = vadd.xlane.f32.xlu0 %v419_v12 }
  0x8f   :  { %429 = vadd.xlane.f32.xlu1 %v428_v16  ;;  %426 = vadd.xlane.f32.xlu0 %v425_v17  ;;  %v458_v17 = vsel %vm19021_vm0, %v95_v8, 0.0 }
  0x90   :  { %v223_v24 = vpop.xlane.xlu1 %222  ;;  %v217_v25 = vpop.xlane.xlu0 %216 }
  0x91   :  { %v4820_v45 = vrot.slane %v217_v25, %v10818_v30  ;;  %v4832_v49 = vrot.slane %v223_v24, %v10831_v35  ;;  %v96_v24 = vld [vmem:[%s19005_s0 + $0x290] sm:$0xff]  ;;  %v4905_v25 = vadd.s32 4294967192, %v10795_v15 }
  0x93   :  { %435 = vadd.xlane.f32.xlu1 %v434_v26  ;;  %432 = vadd.xlane.f32.xlu0 %v431_v27  ;;  %v4898_v26 = vadd.s32 4294967200, %v10795_v15  ;;  %v10919_v42 = vsub.s32 %v4905_v25, %v10799_v18 }
  0x94   :  { %v226_v37 = vpop.xlane.xlu1 %225  ;;  %v220_v38 = vpop.xlane.xlu0 %219 }
  0x95   :  { %v4839_v46 = vrot.slane %v226_v37, %v10821_v31  ;;  %v4825_v47 = vrot.slane %v220_v38, %v10824_v32  ;;  %v461_v37 = vsel %vm19021_vm0, %v96_v24, 0.0  ;;  %19123 = vst [vmem:[#allocation15_spill] sm:$0xff] %v10919_v42  ;;  %v10922_v43 = vsub.s32 %v4898_v26, %v10799_v18 }
  0x97   :  { %v4827_v50 = vsel %vm4826_vm1, %v4825_v47, %v4820_v45  ;;  %441 = vadd.xlane.f32.xlu1 %v440_v36  ;;  %438 = vadd.xlane.f32.xlu0 %v437_v39  ;;  %v464_v36 = vsel %vm19021_vm0, %v97_v23, 0.0  ;;  %19124 = vst [vmem:[#allocation16_spill] sm:$0xff] %v10922_v43  ;;  %v98_v47 = vld [vmem:[%s19005_s0 + $0x2a0] sm:$0xff]  ;;  %v104_v23 = vld [vmem:[%s19005_s0 + $0x2d0] sm:$0xff] }
  0x98   :  { %v4834_v53 = vsel %vm4833_vm2, %v4832_v49, %v4827_v50  ;;  %v232_v54 = vpop.xlane.xlu1 %231  ;;  %v229_v55 = vpop.xlane.xlu0 %228  ;;  %v4919_v49 = vadd.s32 4294967176, %v10795_v15  ;;  %v4912_v50 = vadd.s32 4294967184, %v10795_v15  ;;  %v467_v58 = vsel %vm19021_vm0, %v98_v47, 0.0 }
  0x99   :  { %v4853_v61 = vrot.slane %v232_v54, %v10836_v40  ;;  %v4841_v62 = vsel %vm4840_vm3, %v4839_v46, %v4834_v53  ;;  %v4846_v63 = vrot.slane %v229_v55, %v10850_v48  ;;  %v99_v46 = vld [vmem:[%s19005_s0 + $0x2a8] sm:$0xff] }
  0x9a   :  { %v470_v55 = vsel %vm19021_vm0, %v99_v46, 0.0  ;;  %v10941_v15 = vsub.s32 %v4919_v49, %v10799_v18 }
  0x9b   :  { %v4848_v1 = vsel %vm4847_vm4, %v4846_v63, %v4841_v62  ;;  %447 = vadd.xlane.f32.xlu1 %v446_v51  ;;  %444 = vadd.xlane.f32.xlu0 %v443_v52  ;;  %v101_v62 = vld [vmem:[%s19005_s0 + $0x2b8] sm:$0xff]  ;;  %v100_v63 = vld [vmem:[%s19005_s0 + $0x2b0] sm:$0xff] }
  0x9c   :  { %v238_v4 = vpop.xlane.xlu1 %237  ;;  %v4855_v5 = vsel %vm4854_vm5, %v4853_v61, %v4848_v1  ;;  %v235_v6 = vpop.xlane.xlu0 %234  ;;  %19125 = vst [vmem:[#allocation17_spill] sm:$0xff] %v10941_v15  ;;  %v10944_v61 = vsub.s32 %v4912_v50, %v10799_v18 }
  0x9d   :  { %v4867_v11 = vrot.slane %v238_v4, %v10858_v56  ;;  %v4860_v12 = vrot.slane %v235_v6, %v10861_v57  ;;  %v476_v4 = vsel %vm19021_vm0, %v101_v62, 0.0 }
  0x9e   :  { %19126 = vst [vmem:[#allocation18_spill] sm:$0xff] %v10944_v61 }
  0x9f   :  { %v4862_v16 = vsel %vm4861_vm6, %v4860_v12, %v4855_v5  ;;  %453 = vadd.xlane.f32.xlu1 %v452_v2  ;;  %450 = vadd.xlane.f32.xlu0 %v449_v3  ;;  %v473_v5 = vsel %vm19021_vm0, %v100_v63, 0.0 }
  0xa0   :  { %v244_v20 = vpop.xlane.xlu1 %243  ;;  %v4869_v21 = vsel %vm4868_vm7, %v4867_v11, %v4862_v16  ;;  %v241_v22 = vpop.xlane.xlu0 %240 }
  0xa1   :  { %v4881_v27 = vrot.slane %v244_v20, %v10879_v7  ;;  %v4874_v28 = vrot.slane %v241_v22, %v10891_v13  ;;  %v105_v22 = vld [vmem:[%s19005_s0 + $0x2d8] sm:$0xff] }
  0xa3   :  { %v4876_v34 = vsel %vm4875_vm8, %v4874_v28, %v4869_v21  ;;  %459 = vadd.xlane.f32.xlu1 %v458_v17  ;;  %456 = vadd.xlane.f32.xlu0 %v455_v19  ;;  %v482_v17 = vsel %vm19021_vm0, %v103_v9, 0.0  ;;  %v479_v19 = vsel %vm19021_vm0, %v102_v10, 0.0  ;;  %v485_v28 = vsel %vm19021_vm0, %v104_v23, 0.0  ;;  %v113_v10 = vld [vmem:[%s19005_s0 + $0x318] sm:$0xff] }
  0xa4   :  { %v250_v38 = vpop.xlane.xlu1 %249  ;;  %v4883_v39 = vsel %vm19022_vm9, %v4881_v27, %v4876_v34  ;;  %v247_v41 = vpop.xlane.xlu0 %246  ;;  %v488_v27 = vsel %vm19021_vm0, %v105_v22, 0.0 }
  0xa5   :  { %v4895_v44 = vrot.slane %v250_v38, %v10909_v29  ;;  %v4888_v45 = vrot.slane %v247_v41, %v10912_v33  ;;  %v106_v38 = vld [vmem:[%s19005_s0 + $0x2e0] sm:$0xff] }
  0xa6   :  { %v491_v47 = vsel %vm19021_vm0, %v106_v38, 0.0 }
  0xa7   :  { %v4890_v51 = vsel %vm4889_vm10, %v4888_v45, %v4883_v39  ;;  %465 = vadd.xlane.f32.xlu1 %v464_v36  ;;  %462 = vadd.xlane.f32.xlu0 %v461_v37  ;;  %v107_v37 = vld [vmem:[%s19005_s0 + $0x2e8] sm:$0xff] }
  0xa8   :  { %v256_v52 = vpop.xlane.xlu1 %255  ;;  %v4897_v53 = vsel %vm19023_vm11, %v4895_v44, %v4890_v51  ;;  %v253_v54 = vpop.xlane.xlu0 %252  ;;  %v494_v46 = vsel %vm19021_vm0, %v107_v37, 0.0  ;;  %v109_v51 = vld [vmem:[%s19005_s0 + $0x2f8] sm:$0xff] }
  0xa9   :  { %v4909_v59 = vrot.slane %v256_v52, %v10919_v42  ;;  %v4902_v60 = vrot.slane %v253_v54, %v10922_v43  ;;  %v108_v52 = vld [vmem:[%s19005_s0 + $0x2f0] sm:$0xff] }
  0xab   :  { %v4904_v0 = vsel %vm19009_vm12, %v4902_v60, %v4897_v53  ;;  %471 = vadd.xlane.f32.xlu1 %v470_v55  ;;  %468 = vadd.xlane.f32.xlu0 %v467_v58  ;;  %v497_v60 = vsel %vm19021_vm0, %v108_v52, 0.0 }
  0xac   :  { %v262_v1 = vpop.xlane.xlu1 %261  ;;  %v4911_v2 = vsel %vm19073_vm13, %v4909_v59, %v4904_v0  ;;  %v259_v3 = vpop.xlane.xlu0 %258  ;;  %v500_v59 = vsel %vm19021_vm0, %v109_v51, 0.0  ;;  %v111_v0 = vld [vmem:[%s19005_s0 + $0x308] sm:$0xff] }
  0xad   :  { %v4923_v6 = vrot.slane %v262_v1, %v10941_v15  ;;  %v4916_v8 = vrot.slane %v259_v3, %v10944_v61  ;;  %v110_v1 = vld [vmem:[%s19005_s0 + $0x300] sm:$0xff] }
  0xaf   :  { %v4918_v11 = vsel %vm19072_vm14, %v4916_v8, %v4911_v2  ;;  %477 = vadd.xlane.f32.xlu1 %v476_v4  ;;  %474 = vadd.xlane.f32.xlu0 %v473_v5  ;;  %v503_v8 = vsel %vm19021_vm0, %v110_v1, 0.0 }
  0xb0   :  { %v10966_v12 = vsel %vm19067_vm15, %v4923_v6, %v4918_v11  ;;  %v268_v14 = vpop.xlane.xlu1 %267  ;;  %v265_v16 = vpop.xlane.xlu0 %264  ;;  %v506_v6 = vsel %vm19021_vm0, %v111_v0, 0.0  ;;  %v112_v11 = vld [vmem:[%s19005_s0 + $0x310] sm:$0xff] }
  0xb1   :  { %v4933_v20 = vrot.slane %v268_v14, %v10824_v32  ;;  %v4929_v21 = vrot.slane %v265_v16, %v10818_v30 }
  0xb3   :  { %v4934_v24 = vsel %vm4826_vm1, %v4933_v20, %v4929_v21  ;;  %483 = vadd.xlane.f32.xlu1 %v482_v17  ;;  %480 = vadd.xlane.f32.xlu0 %v479_v19  ;;  %v512_v19 = vsel %vm19021_vm0, %v113_v10, 0.0  ;;  %v509_v20 = vsel %vm19021_vm0, %v112_v11, 0.0 }
  0xb4   :  { %v274_v25 = vpop.xlane.xlu1 %273  ;;  %v271_v26 = vpop.xlane.xlu0 %270 }
  0xb5   :  { %v4943_v34 = vrot.slane %v274_v25, %v10821_v31  ;;  %v4938_v36 = vrot.slane %v271_v26, %v10831_v35  ;;  %v114_v25 = vld [vmem:[%s19005_s0 + $0x320] sm:$0xff] }
  0xb6   :  { %v515_v37 = vsel %vm19021_vm0, %v114_v25, 0.0 }
  0xb7   :  { %v4939_v39 = vsel %vm4833_vm2, %v4938_v36, %v4934_v24  ;;  %489 = vadd.xlane.f32.xlu1 %v488_v27  ;;  %486 = vadd.xlane.f32.xlu0 %v485_v28  ;;  %v115_v24 = vld [vmem:[%s19005_s0 + $0x328] sm:$0xff] }
  0xb8   :  { %v280_v41 = vpop.xlane.xlu1 %279  ;;  %v4944_v44 = vsel %vm4840_vm3, %v4943_v34, %v4939_v39  ;;  %v277_v45 = vpop.xlane.xlu0 %276  ;;  %v518_v36 = vsel %vm19021_vm0, %v115_v24, 0.0 }
  0xb9   :  { %v4953_v49 = vrot.slane %v280_v41, %v10836_v40  ;;  %v4948_v50 = vrot.slane %v277_v45, %v10850_v48  ;;  %v117_v41 = vld [vmem:[%s19005_s0 + $0x338] sm:$0xff] }
  0xbb   :  { %v4949_v53 = vsel %vm4847_vm4, %v4948_v50, %v4944_v44  ;;  %495 = vadd.xlane.f32.xlu1 %v494_v46  ;;  %492 = vadd.xlane.f32.xlu0 %v491_v47  ;;  %v116_v44 = vld [vmem:[%s19005_s0 + $0x330] sm:$0xff]  ;;  %v524_v50 = vsel %vm19021_vm0, %v117_v41, 0.0 }
  0xbc   :  { %v286_v54 = vpop.xlane.xlu1 %285  ;;  %v4954_v55 = vsel %vm4854_vm5, %v4953_v49, %v4949_v53  ;;  %v283_v58 = vpop.xlane.xlu0 %282  ;;  %v521_v51 = vsel %vm19021_vm0, %v116_v44, 0.0 }
  0xbd   :  { %v4963_v62 = vrot.slane %v286_v54, %v10858_v56  ;;  %v4958_v63 = vrot.slane %v283_v58, %v10861_v57  ;;  %v119_v54 = vld [vmem:[%s19005_s0 + $0x348] sm:$0xff] }
  0xbf   :  { %v4959_v2 = vsel %vm4861_vm6, %v4958_v63, %v4954_v55  ;;  %501 = vadd.xlane.f32.xlu1 %v500_v59  ;;  %498 = vadd.xlane.f32.xlu0 %v497_v60  ;;  %v118_v55 = vld [vmem:[%s19005_s0 + $0x340] sm:$0xff]  ;;  %v530_v63 = vsel %vm19021_vm0, %v119_v54, 0.0 }
  0xc0   :  { %v292_v3 = vpop.xlane.xlu1 %291  ;;  %v4964_v4 = vsel %vm4868_vm7, %v4963_v62, %v4959_v2  ;;  %v289_v5 = vpop.xlane.xlu0 %288  ;;  %v527_v0 = vsel %vm19021_vm0, %v118_v55, 0.0 }
  0xc1   :  { %v4968_v9 = vrot.slane %v289_v5, %v10891_v13  ;;  %v4973_v21 = vrot.slane %v292_v3, %v10818_v30  ;;  %v121_v3 = vld [vmem:[%s19005_s0 + $0x358] sm:$0xff] }
  0xc2   :  { %v536_v10 = vsel %vm19021_vm0, %v121_v3, 0.0 }
  0xc3   :  { %v11025_v14 = vsel %vm4875_vm8, %v4968_v9, %v4964_v4  ;;  %507 = vadd.xlane.f32.xlu1 %v506_v6  ;;  %504 = vadd.xlane.f32.xlu0 %v503_v8  ;;  %v120_v4 = vld [vmem:[%s19005_s0 + $0x350] sm:$0xff] }
  0xc4   :  { %v298_v16 = vpop.xlane.xlu1 %297  ;;  %v295_v17 = vpop.xlane.xlu0 %294  ;;  %v533_v11 = vsel %vm19021_vm0, %v120_v4, 0.0 }
  0xc5   :  { %v4982_v22 = vrot.slane %v298_v16, %v10831_v35  ;;  %v4977_v23 = vrot.slane %v295_v17, %v10824_v32 }
  0xc7   :  { %v4978_v26 = vsel %vm4826_vm1, %v4977_v23, %v4973_v21  ;;  %513 = vadd.xlane.f32.xlu1 %v512_v19  ;;  %510 = vadd.xlane.f32.xlu0 %v509_v20  ;;  %v123_v19 = vld [vmem:[%s19005_s0 + $0x368] sm:$0xff]  ;;  %v122_v20 = vld [vmem:[%s19005_s0 + $0x360] sm:$0xff] }
  0xc8   :  { %v304_v27 = vpop.xlane.xlu1 %303  ;;  %v4983_v28 = vsel %vm4833_vm2, %v4982_v22, %v4978_v26  ;;  %v301_v34 = vpop.xlane.xlu0 %300  ;;  %v542_v25 = vsel %vm19021_vm0, %v123_v19, 0.0  ;;  %v539_v26 = vsel %vm19021_vm0, %v122_v20, 0.0 }
  0xc9   :  { %v4992_v38 = vrot.slane %v304_v27, %v10850_v48  ;;  %v4987_v39 = vrot.slane %v301_v34, %v10821_v31  ;;  %v125_v34 = vld [vmem:[%s19005_s0 + $0x378] sm:$0xff] }
  0xca   :  { %v548_v44 = vsel %vm19021_vm0, %v125_v34, 0.0 }
  0xcb   :  { %v4988_v45 = vsel %vm4840_vm3, %v4987_v39, %v4983_v28  ;;  %519 = vadd.xlane.f32.xlu1 %v518_v36  ;;  %516 = vadd.xlane.f32.xlu0 %v515_v37  ;;  %v124_v36 = vld [vmem:[%s19005_s0 + $0x370] sm:$0xff] }
  0xcc   :  { %v310_v46 = vpop.xlane.xlu1 %309  ;;  %v4993_v47 = vsel %vm4847_vm4, %v4992_v38, %v4988_v45  ;;  %v307_v49 = vpop.xlane.xlu0 %306  ;;  %v545_v45 = vsel %vm19021_vm0, %v124_v36, 0.0 }
  0xcd   :  { %v5002_v52 = vrot.slane %v310_v46, %v10861_v57  ;;  %v4997_v53 = vrot.slane %v307_v49, %v10836_v40  ;;  %v127_v49 = vld [vmem:[%s19005_s0 + $0x388] sm:$0xff] }
  0xce   :  { %v554_v55 = vsel %vm19021_vm0, %v127_v49, 0.0 }
  0xcf   :  { %v4998_v58 = vsel %vm4854_vm5, %v4997_v53, %v4993_v47  ;;  %525 = vadd.xlane.f32.xlu1 %v524_v50  ;;  %522 = vadd.xlane.f32.xlu0 %v521_v51  ;;  %v126_v50 = vld [vmem:[%s19005_s0 + $0x380] sm:$0xff] }
  0xd0   :  { %v316_v59 = vpop.xlane.xlu1 %315  ;;  %v5003_v60 = vsel %vm4861_vm6, %v5002_v52, %v4998_v58  ;;  %v313_v62 = vpop.xlane.xlu0 %312  ;;  %v551_v58 = vsel %vm19021_vm0, %v126_v50, 0.0 }
  0xd1   :  { %v5012_v1 = vrot.slane %v316_v59, %v10891_v13  ;;  %v5007_v2 = vrot.slane %v313_v62, %v10858_v56  ;;  %v128_v62 = vld [vmem:[%s19005_s0 + $0x390] sm:$0xff] }
  0xd2   :  { %v557_v4 = vsel %vm19021_vm0, %v128_v62, 0.0 }
  0xd3   :  { %v5008_v5 = vsel %vm4868_vm7, %v5007_v2, %v5003_v60  ;;  %531 = vadd.xlane.f32.xlu1 %v530_v63  ;;  %528 = vadd.xlane.f32.xlu0 %v527_v0  ;;  %v129_v60 = vld [vmem:[%s19005_s0 + $0x398] sm:$0xff] }
  0xd4   :  { %v322_v6 = vpop.xlane.xlu1 %321  ;;  %v5013_v8 = vsel %vm4875_vm8, %v5012_v1, %v5008_v5  ;;  %v319_v9 = vpop.xlane.xlu0 %318  ;;  %v560_v3 = vsel %vm19021_vm0, %v129_v60, 0.0 }
  0xd5   :  { %v5022_v16 = vrot.slane %v322_v6, %v10912_v33  ;;  %v5017_v17 = vrot.slane %v319_v9, %v10879_v7  ;;  %v131_v9 = vld [vmem:[%s19005_s0 + $0x3a8] sm:$0xff] }
  0xd6   :  { %v566_v19 = vsel %vm19021_vm0, %v131_v9, 0.0 }
  0xd7   :  { %v5018_v21 = vsel %vm19022_vm9, %v5017_v17, %v5013_v8  ;;  %537 = vadd.xlane.f32.xlu1 %v536_v10  ;;  %534 = vadd.xlane.f32.xlu0 %v533_v11 }
  0xd8   :  { %v328_v22 = vpop.xlane.xlu1 %327  ;;  %v5023_v23 = vsel %vm4889_vm10, %v5022_v16, %v5018_v21  ;;  %v325_v24 = vpop.xlane.xlu0 %324 }
  0xd9   :  { %v5032_v27 = vrot.slane %v328_v22, %v10922_v43  ;;  %v5027_v28 = vrot.slane %v325_v24, %v10909_v29  ;;  %v132_v24 = vld [vmem:[%s19005_s0 + $0x3b0] sm:$0xff] }
  0xda   :  { %v569_v36 = vsel %vm19021_vm0, %v132_v24, 0.0 }
  0xdb   :  { %v5028_v37 = vsel %vm19023_vm11, %v5027_v28, %v5023_v23  ;;  %543 = vadd.xlane.f32.xlu1 %v542_v25  ;;  %540 = vadd.xlane.f32.xlu0 %v539_v26  ;;  %v133_v23 = vld [vmem:[%s19005_s0 + $0x3b8] sm:$0xff] }
  0xdc   :  { %v334_v38 = vpop.xlane.xlu1 %333  ;;  %v5033_v39 = vsel %vm19009_vm12, %v5032_v27, %v5028_v37  ;;  %v331_v41 = vpop.xlane.xlu0 %330  ;;  %vm19010_vm12 = vcmask 1041409   ;;  %v572_v34 = vsel %vm19021_vm0, %v133_v23, 0.0 }
  0xdd   :  { %v5042_v46 = vrot.slane %v334_v38, %v10944_v61  ;;  %v5037_v47 = vrot.slane %v331_v41, %v10919_v42  ;;  %v134_v41 = vld [vmem:[%s19005_s0 + $0x3c0] sm:$0xff] }
  0xde   :  { %v575_v50 = vsel %vm19021_vm0, %v134_v41, 0.0 }
  0xdf   :  { %v5038_v51 = vsel %vm19073_vm13, %v5037_v47, %v5033_v39  ;;  %549 = vadd.xlane.f32.xlu1 %v548_v44  ;;  %546 = vadd.xlane.f32.xlu0 %v545_v45  ;;  %v135_v39 = vld [vmem:[%s19005_s0 + $0x3c8] sm:$0xff] }
  0xe0   :  { %v340_v52 = vpop.xlane.xlu1 %339  ;;  %v5043_v53 = vsel %vm19072_vm14, %v5042_v46, %v5038_v51  ;;  %v337_v54 = vpop.xlane.xlu0 %336  ;;  %v578_v49 = vsel %vm19021_vm0, %v135_v39, 0.0 }
  0xe1   :  { %v5047_v59 = vrot.slane %v337_v54, %v10941_v15  ;;  %v5052_v5 = vrot.slane %v340_v52, %v10818_v30  ;;  %v136_v54 = vld [vmem:[%s19005_s0 + $0x3d0] sm:$0xff] }
  0xe3   :  { %v5048_v63 = vsel %vm19067_vm15, %v5047_v59, %v5043_v53  ;;  %555 = vadd.xlane.f32.xlu1 %v554_v55  ;;  %552 = vadd.xlane.f32.xlu0 %v551_v58  ;;  %v137_v53 = vld [vmem:[%s19005_s0 + $0x3d8] sm:$0xff] }
  0xe4   :  { %v11124_v0 = vsel %vm19010_vm12, %v5048_v63, %v10966_v12  ;;  %v346_v1 = vpop.xlane.xlu1 %345  ;;  %v343_v2 = vpop.xlane.xlu0 %342  ;;  %v130_v12 = vld [vmem:[%s19005_s0 + $0x3a0] sm:$0xff]  ;;  %v584_v62 = vsel %vm19021_vm0, %v137_v53, 0.0  ;;  %v581_v63 = vsel %vm19021_vm0, %v136_v54, 0.0 }
  0xe5   :  { %v5061_v6 = vrot.slane %v346_v1, %v10831_v35  ;;  %v5056_v8 = vrot.slane %v343_v2, %v10824_v32  ;;  %v563_v20 = vsel %vm19021_vm0, %v130_v12, 0.0 }
  0xe7   :  { %v5057_v10 = vsel %vm4826_vm1, %v5056_v8, %v5052_v5  ;;  %561 = vadd.xlane.f32.xlu1 %v560_v3  ;;  %558 = vadd.xlane.f32.xlu0 %v557_v4  ;;  %v139_v3 = vld [vmem:[%s19005_s0 + $0x3e8] sm:$0xff]  ;;  %v138_v4 = vld [vmem:[%s19005_s0 + $0x3e0] sm:$0xff] }
  0xe8   :  { %v352_v11 = vpop.xlane.xlu1 %351  ;;  %v5062_v16 = vsel %vm4833_vm2, %v5061_v6, %v5057_v10  ;;  %v349_v17 = vpop.xlane.xlu0 %348  ;;  %v590_v12 = vsel %vm19021_vm0, %v139_v3, 0.0  ;;  %v587_v10 = vsel %vm19021_vm0, %v138_v4, 0.0 }
  0xe9   :  { %v5071_v21 = vrot.slane %v352_v11, %v10850_v48  ;;  %v5066_v22 = vrot.slane %v349_v17, %v10821_v31  ;;  %v141_v17 = vld [vmem:[%s19005_s0 + $0x3f8] sm:$0xff] }
  0xea   :  { %v596_v23 = vsel %vm19021_vm0, %v141_v17, 0.0 }
  0xeb   :  { %v5067_v25 = vsel %vm4840_vm3, %v5066_v22, %v5062_v16  ;;  %567 = vadd.xlane.f32.xlu1 %v566_v19  ;;  %564 = vadd.xlane.f32.xlu0 %v563_v20 }
  0xec   :  { %v358_v26 = vpop.xlane.xlu1 %357  ;;  %v5072_v27 = vsel %vm4847_vm4, %v5071_v21, %v5067_v25  ;;  %v355_v28 = vpop.xlane.xlu0 %354 }
  0xed   :  { %v5081_v37 = vrot.slane %v358_v26, %v10861_v57  ;;  %v5076_v38 = vrot.slane %v355_v28, %v10836_v40  ;;  %v142_v28 = vld [vmem:[%s19005_s0 + $0x400] sm:$0xff] }
  0xee   :  { %v599_v41 = vsel %vm19021_vm0, %v142_v28, 0.0 }
  0xef   :  { %v5077_v44 = vsel %vm4854_vm5, %v5076_v38, %v5072_v27  ;;  %573 = vadd.xlane.f32.xlu1 %v572_v34  ;;  %570 = vadd.xlane.f32.xlu0 %v569_v36  ;;  %v143_v27 = vld [vmem:[%s19005_s0 + $0x408] sm:$0xff] }
  0xf0   :  { %v364_v45 = vpop.xlane.xlu1 %363  ;;  %v5082_v46 = vsel %vm4861_vm6, %v5081_v37, %v5077_v44  ;;  %v361_v47 = vpop.xlane.xlu0 %360  ;;  %v602_v39 = vsel %vm19021_vm0, %v143_v27, 0.0 }
  0xf1   :  { %v5091_v51 = vrot.slane %v364_v45, %v10891_v13  ;;  %v5086_v52 = vrot.slane %v361_v47, %v10858_v56  ;;  %v144_v47 = vld [vmem:[%s19005_s0 + $0x410] sm:$0xff] }
  0xf2   :  { %v605_v54 = vsel %vm19021_vm0, %v144_v47, 0.0 }
  0xf3   :  { %v5087_v55 = vsel %vm4868_vm7, %v5086_v52, %v5082_v46  ;;  %579 = vadd.xlane.f32.xlu1 %v578_v49  ;;  %576 = vadd.xlane.f32.xlu0 %v575_v50  ;;  %v145_v46 = vld [vmem:[%s19005_s0 + $0x418] sm:$0xff] }
  0xf4   :  { %v5092_v58 = vsel %vm4875_vm8, %v5091_v51, %v5087_v55  ;;  %v370_v59 = vpop.xlane.xlu1 %369  ;;  %v367_v60 = vpop.xlane.xlu0 %366  ;;  %v608_v53 = vsel %vm19021_vm0, %v145_v46, 0.0 }
  0xf5   :  { %v5100_v1 = vrot.slane %v370_v59, %v10824_v32  ;;  %v5096_v2 = vrot.slane %v367_v60, %v10818_v30  ;;  %v11187_v5 = vsel %vm19010_vm12, %v5092_v58, %v11025_v14  ;;  %v140_v14 = vld [vmem:[%s19005_s0 + $0x3f0] sm:$0xff]  ;;  %v147_v59 = vld [vmem:[%s19005_s0 + $0x428] sm:$0xff]  ;;  %v146_v60 = vld [vmem:[%s19005_s0 + $0x420] sm:$0xff]  ;;  %vm19127_vm12 = vcmask 851712  }
  0xf6   :  { %v593_v24 = vsel %vm19021_vm0, %v140_v14, 0.0  ;;  %v614_v3 = vsel %vm19021_vm0, %v147_v59, 0.0  ;;  %v611_v4 = vsel %vm19021_vm0, %v146_v60, 0.0 }
  0xf7   :  { %v5101_v6 = vsel %vm4826_vm1, %v5100_v1, %v5096_v2  ;;  %585 = vadd.xlane.f32.xlu1 %v584_v62  ;;  %582 = vadd.xlane.f32.xlu0 %v581_v63 }
  0xf8   :  { %v376_v8 = vpop.xlane.xlu1 %375  ;;  %v373_v9 = vpop.xlane.xlu0 %372 }
  0xf9   :  { %v5110_v11 = vrot.slane %v376_v8, %v10821_v31  ;;  %v5105_v16 = vrot.slane %v373_v9, %v10831_v35  ;;  %v149_v9 = vld [vmem:[%s19005_s0 + $0x438] sm:$0xff] }
  0xfa   :  { %v620_v14 = vsel %vm19021_vm0, %v149_v9, 0.0 }
  0xfb   :  { %v5106_v19 = vsel %vm4833_vm2, %v5105_v16, %v5101_v6  ;;  %591 = vadd.xlane.f32.xlu1 %v590_v12  ;;  %588 = vadd.xlane.f32.xlu0 %v587_v10  ;;  %v148_v12 = vld [vmem:[%s19005_s0 + $0x430] sm:$0xff] }
  0xfc   :  { %v382_v20 = vpop.xlane.xlu1 %381  ;;  %v5111_v21 = vsel %vm4840_vm3, %v5110_v11, %v5106_v19  ;;  %v379_v22 = vpop.xlane.xlu0 %378  ;;  %v617_v19 = vsel %vm19021_vm0, %v148_v12, 0.0 }
  0xfd   :  { %v5120_v25 = vrot.slane %v382_v20, %v10836_v40  ;;  %v5115_v26 = vrot.slane %v379_v22, %v10850_v48  ;;  %v151_v22 = vld [vmem:[%s19005_s0 + $0x448] sm:$0xff] }
  0xfe   :  { %v626_v28 = vsel %vm19021_vm0, %v151_v22, 0.0 }
  0xff   :  { %v5116_v34 = vsel %vm4847_vm4, %v5115_v26, %v5111_v21  ;;  %597 = vadd.xlane.f32.xlu1 %v596_v23  ;;  %594 = vadd.xlane.f32.xlu0 %v593_v24  ;;  %v150_v23 = vld [vmem:[%s19005_s0 + $0x440] sm:$0xff] }
 0x100   :  { %v388_v36 = vpop.xlane.xlu1 %387  ;;  %v5121_v37 = vsel %vm4854_vm5, %v5120_v25, %v5116_v34  ;;  %v385_v38 = vpop.xlane.xlu0 %384  ;;  %v623_v34 = vsel %vm19021_vm0, %v150_v23, 0.0 }
 0x101   :  { %v5130_v44 = vrot.slane %v388_v36, %v10858_v56  ;;  %v5125_v45 = vrot.slane %v385_v38, %v10861_v57  ;;  %v153_v38 = vld [vmem:[%s19005_s0 + $0x458] sm:$0xff] }
 0x102   :  { %v632_v47 = vsel %vm19021_vm0, %v153_v38, 0.0 }
 0x103   :  { %v5126_v49 = vsel %vm4861_vm6, %v5125_v45, %v5121_v37  ;;  %603 = vadd.xlane.f32.xlu1 %v602_v39  ;;  %600 = vadd.xlane.f32.xlu0 %v599_v41  ;;  %v152_v39 = vld [vmem:[%s19005_s0 + $0x450] sm:$0xff] }
 0x104   :  { %v394_v50 = vpop.xlane.xlu1 %393  ;;  %v5131_v51 = vsel %vm4868_vm7, %v5130_v44, %v5126_v49  ;;  %v391_v52 = vpop.xlane.xlu0 %390  ;;  %v629_v49 = vsel %vm19021_vm0, %v152_v39, 0.0 }
 0x105   :  { %v5140_v55 = vrot.slane %v394_v50, %v10879_v7  ;;  %v5135_v58 = vrot.slane %v391_v52, %v10891_v13  ;;  %v155_v52 = vld [vmem:[%s19005_s0 + $0x468] sm:$0xff] }
 0x106   :  { %v638_v60 = vsel %vm19021_vm0, %v155_v52, 0.0 }
 0x107   :  { %v5136_v62 = vsel %vm4875_vm8, %v5135_v58, %v5131_v51  ;;  %609 = vadd.xlane.f32.xlu1 %v608_v53  ;;  %606 = vadd.xlane.f32.xlu0 %v605_v54  ;;  %v154_v53 = vld [vmem:[%s19005_s0 + $0x460] sm:$0xff] }
 0x108   :  { %v400_v63 = vpop.xlane.xlu1 %399  ;;  %v5141_v1 = vsel %vm19022_vm9, %v5140_v55, %v5136_v62  ;;  %v397_v2 = vpop.xlane.xlu0 %396  ;;  %v635_v62 = vsel %vm19021_vm0, %v154_v53, 0.0 }
 0x109   :  { %v5150_v6 = vrot.slane %v400_v63, %v10909_v29  ;;  %v5145_v8 = vrot.slane %v397_v2, %v10912_v33  ;;  %v157_v2 = vld [vmem:[%s19005_s0 + $0x478] sm:$0xff] }
 0x10a   :  { %v644_v9 = vsel %vm19021_vm0, %v157_v2, 0.0 }
 0x10b   :  { %v5146_v10 = vsel %vm4889_vm10, %v5145_v8, %v5141_v1  ;;  %615 = vadd.xlane.f32.xlu1 %v614_v3  ;;  %612 = vadd.xlane.f32.xlu0 %v611_v4 }
 0x10c   :  { %v406_v11 = vpop.xlane.xlu1 %405  ;;  %v5151_v16 = vsel %vm19023_vm11, %v5150_v6, %v5146_v10  ;;  %v403_v17 = vpop.xlane.xlu0 %402 }
 0x10d   :  { %v5160_v20 = vrot.slane %v406_v11, %v10919_v42  ;;  %v5155_v21 = vrot.slane %v403_v17, %v10922_v43  ;;  %v158_v17 = vld [vmem:[%s19005_s0 + $0x480] sm:$0xff] }
 0x10e   :  { %v647_v23 = vsel %vm19021_vm0, %v158_v17, 0.0 }
 0x10f   :  { %v5156_v24 = vsel %vm19127_vm12, %v5155_v21, %v5151_v16  ;;  %621 = vadd.xlane.f32.xlu1 %v620_v14  ;;  %618 = vadd.xlane.f32.xlu0 %v617_v19  ;;  %vm19011_vm12 = vcmask 1042434   ;;  %v159_v16 = vld [vmem:[%s19005_s0 + $0x488] sm:$0xff] }
 0x110   :  { %v412_v25 = vpop.xlane.xlu1 %411  ;;  %v5161_v26 = vsel %vm19073_vm13, %v5160_v20, %v5156_v24  ;;  %v409_v27 = vpop.xlane.xlu0 %408  ;;  %v650_v22 = vsel %vm19021_vm0, %v159_v16, 0.0 }
 0x111   :  { %v5170_v36 = vrot.slane %v412_v25, %v10941_v15  ;;  %v5165_v37 = vrot.slane %v409_v27, %v10944_v61  ;;  %v160_v27 = vld [vmem:[%s19005_s0 + $0x490] sm:$0xff] }
 0x112   :  { %v653_v39 = vsel %vm19021_vm0, %v160_v27, 0.0 }
 0x113   :  { %v5166_v41 = vsel %vm19072_vm14, %v5165_v37, %v5161_v26  ;;  %627 = vadd.xlane.f32.xlu1 %v626_v28  ;;  %624 = vadd.xlane.f32.xlu0 %v623_v34  ;;  %v161_v26 = vld [vmem:[%s19005_s0 + $0x498] sm:$0xff] }
 0x114   :  { %v5171_v44 = vsel %vm19067_vm15, %v5170_v36, %v5166_v41  ;;  %v418_v45 = vpop.xlane.xlu1 %417  ;;  %v415_v46 = vpop.xlane.xlu0 %414  ;;  %v656_v38 = vsel %vm19021_vm0, %v161_v26, 0.0 }
 0x115   :  { %v5179_v50 = vrot.slane %v418_v45, %v10824_v32  ;;  %v5175_v51 = vrot.slane %v415_v46, %v10818_v30  ;;  %v11286_v54 = vsel %vm19011_vm12, %v5171_v44, %v11124_v0  ;;  %v156_v0 = vld [vmem:[%s19005_s0 + $0x470] sm:$0xff]  ;;  %v163_v44 = vld [vmem:[%s19005_s0 + $0x4a8] sm:$0xff]  ;;  %v162_v45 = vld [vmem:[%s19005_s0 + $0x4a0] sm:$0xff] }
 0x116   :  { %v641_v12 = vsel %vm19021_vm0, %v156_v0, 0.0  ;;  %v659_v52 = vsel %vm19021_vm0, %v162_v45, 0.0 }
 0x117   :  { %v5180_v55 = vsel %vm4826_vm1, %v5179_v50, %v5175_v51  ;;  %633 = vadd.xlane.f32.xlu1 %v632_v47  ;;  %630 = vadd.xlane.f32.xlu0 %v629_v49  ;;  %v662_v51 = vsel %vm19021_vm0, %v163_v44, 0.0 }
 0x118   :  { %v424_v58 = vpop.xlane.xlu1 %423  ;;  %v421_v59 = vpop.xlane.xlu0 %420 }
 0x119   :  { %v5189_v63 = vrot.slane %v424_v58, %v10821_v31  ;;  %v5184_v1 = vrot.slane %v421_v59, %v10831_v35  ;;  %v165_v59 = vld [vmem:[%s19005_s0 + $0x4b8] sm:$0xff] }
 0x11a   :  { %v668_v2 = vsel %vm19021_vm0, %v165_v59, 0.0 }
 0x11b   :  { %v5185_v3 = vsel %vm4833_vm2, %v5184_v1, %v5180_v55  ;;  %639 = vadd.xlane.f32.xlu1 %v638_v60  ;;  %636 = vadd.xlane.f32.xlu0 %v635_v62 }
 0x11c   :  { %v430_v4 = vpop.xlane.xlu1 %429  ;;  %v5190_v6 = vsel %vm4840_vm3, %v5189_v63, %v5185_v3  ;;  %v427_v8 = vpop.xlane.xlu0 %426 }
 0x11d   :  { %v5199_v10 = vrot.slane %v430_v4, %v10836_v40  ;;  %v5194_v11 = vrot.slane %v427_v8, %v10850_v48  ;;  %v166_v8 = vld [vmem:[%s19005_s0 + $0x4c0] sm:$0xff] }
 0x11e   :  { %v671_v17 = vsel %vm19021_vm0, %v166_v8, 0.0 }
 0x11f   :  { %v5195_v14 = vsel %vm4847_vm4, %v5194_v11, %v5190_v6  ;;  %645 = vadd.xlane.f32.xlu1 %v644_v9  ;;  %642 = vadd.xlane.f32.xlu0 %v641_v12  ;;  %v167_v6 = vld [vmem:[%s19005_s0 + $0x4c8] sm:$0xff] }
 0x120   :  { %v436_v19 = vpop.xlane.xlu1 %435  ;;  %v5200_v20 = vsel %vm4854_vm5, %v5199_v10, %v5195_v14  ;;  %v433_v21 = vpop.xlane.xlu0 %432  ;;  %v674_v16 = vsel %vm19021_vm0, %v167_v6, 0.0 }
 0x121   :  { %v5209_v24 = vrot.slane %v436_v19, %v10858_v56  ;;  %v5204_v25 = vrot.slane %v433_v21, %v10861_v57  ;;  %v168_v21 = vld [vmem:[%s19005_s0 + $0x4d0] sm:$0xff] }
 0x122   :  { %v677_v27 = vsel %vm19021_vm0, %v168_v21, 0.0 }
 0x123   :  { %v5205_v28 = vsel %vm4861_vm6, %v5204_v25, %v5200_v20  ;;  %651 = vadd.xlane.f32.xlu1 %v650_v22  ;;  %648 = vadd.xlane.f32.xlu0 %v647_v23  ;;  %v169_v20 = vld [vmem:[%s19005_s0 + $0x4d8] sm:$0xff] }
 0x124   :  { %v442_v34 = vpop.xlane.xlu1 %441  ;;  %v5210_v36 = vsel %vm4868_vm7, %v5209_v24, %v5205_v28  ;;  %v439_v37 = vpop.xlane.xlu0 %438  ;;  %v680_v26 = vsel %vm19021_vm0, %v169_v20, 0.0 }
 0x125   :  { %v5214_v41 = vrot.slane %v439_v37, %v10891_v13  ;;  %v5219_v53 = vrot.slane %v442_v34, %v10818_v30  ;;  %v170_v37 = vld [vmem:[%s19005_s0 + $0x4e0] sm:$0xff] }
 0x127   :  { %v5215_v46 = vsel %vm4875_vm8, %v5214_v41, %v5210_v36  ;;  %657 = vadd.xlane.f32.xlu1 %v656_v38  ;;  %654 = vadd.xlane.f32.xlu0 %v653_v39  ;;  %v171_v36 = vld [vmem:[%s19005_s0 + $0x4e8] sm:$0xff] }
 0x128   :  { %v11337_v47 = vsel %vm19011_vm12, %v5215_v46, %v11187_v5  ;;  %v448_v49 = vpop.xlane.xlu1 %447  ;;  %v445_v50 = vpop.xlane.xlu0 %444  ;;  %v164_v5 = vld [vmem:[%s19005_s0 + $0x4b0] sm:$0xff]  ;;  %v686_v45 = vsel %vm19021_vm0, %v171_v36, 0.0  ;;  %v683_v46 = vsel %vm19021_vm0, %v170_v37, 0.0  ;;  %vm19128_vm12 = vcmask 851712  }
 0x129   :  { %v5228_v55 = vrot.slane %v448_v49, %v10831_v35  ;;  %v5223_v58 = vrot.slane %v445_v50, %v10824_v32  ;;  %v665_v0 = vsel %vm19021_vm0, %v164_v5, 0.0 }
 0x12b   :  { %v5224_v60 = vsel %vm4826_vm1, %v5223_v58, %v5219_v53  ;;  %663 = vadd.xlane.f32.xlu1 %v662_v51  ;;  %660 = vadd.xlane.f32.xlu0 %v659_v52  ;;  %v173_v51 = vld [vmem:[%s19005_s0 + $0x4f8] sm:$0xff]  ;;  %v172_v52 = vld [vmem:[%s19005_s0 + $0x4f0] sm:$0xff] }
 0x12c   :  { %v454_v62 = vpop.xlane.xlu1 %453  ;;  %v5229_v63 = vsel %vm4833_vm2, %v5228_v55, %v5224_v60  ;;  %v451_v1 = vpop.xlane.xlu0 %450  ;;  %v692_v5 = vsel %vm19021_vm0, %v173_v51, 0.0  ;;  %v689_v60 = vsel %vm19021_vm0, %v172_v52, 0.0 }
 0x12d   :  { %v5238_v3 = vrot.slane %v454_v62, %v10850_v48  ;;  %v5233_v4 = vrot.slane %v451_v1, %v10821_v31  ;;  %v175_v1 = vld [vmem:[%s19005_s0 + $0x508] sm:$0xff] }
 0x12e   :  { %v698_v8 = vsel %vm19021_vm0, %v175_v1, 0.0 }
 0x12f   :  { %v5234_v9 = vsel %vm4840_vm3, %v5233_v4, %v5229_v63  ;;  %669 = vadd.xlane.f32.xlu1 %v668_v2  ;;  %666 = vadd.xlane.f32.xlu0 %v665_v0  ;;  %v174_v2 = vld [vmem:[%s19005_s0 + $0x500] sm:$0xff] }
 0x130   :  { %v460_v12 = vpop.xlane.xlu1 %459  ;;  %v5239_v10 = vsel %vm4847_vm4, %v5238_v3, %v5234_v9  ;;  %v457_v11 = vpop.xlane.xlu0 %456  ;;  %v695_v9 = vsel %vm19021_vm0, %v174_v2, 0.0 }
 0x131   :  { %v5248_v14 = vrot.slane %v460_v12, %v10861_v57  ;;  %v5243_v19 = vrot.slane %v457_v11, %v10836_v40  ;;  %v177_v11 = vld [vmem:[%s19005_s0 + $0x518] sm:$0xff] }
 0x132   :  { %v704_v21 = vsel %vm19021_vm0, %v177_v11, 0.0 }
 0x133   :  { %v5244_v22 = vsel %vm4854_vm5, %v5243_v19, %v5239_v10  ;;  %675 = vadd.xlane.f32.xlu1 %v674_v16  ;;  %672 = vadd.xlane.f32.xlu0 %v671_v17  ;;  %v176_v16 = vld [vmem:[%s19005_s0 + $0x510] sm:$0xff] }
 0x134   :  { %v466_v23 = vpop.xlane.xlu1 %465  ;;  %v5249_v24 = vsel %vm4861_vm6, %v5248_v14, %v5244_v22  ;;  %v463_v25 = vpop.xlane.xlu0 %462  ;;  %v701_v22 = vsel %vm19021_vm0, %v176_v16, 0.0 }
 0x135   :  { %v5258_v28 = vrot.slane %v466_v23, %v10891_v13  ;;  %v5253_v34 = vrot.slane %v463_v25, %v10858_v56  ;;  %v178_v25 = vld [vmem:[%s19005_s0 + $0x520] sm:$0xff] }
 0x136   :  { %v707_v37 = vsel %vm19021_vm0, %v178_v25, 0.0 }
 0x137   :  { %v5254_v38 = vsel %vm4868_vm7, %v5253_v34, %v5249_v24  ;;  %681 = vadd.xlane.f32.xlu1 %v680_v26  ;;  %678 = vadd.xlane.f32.xlu0 %v677_v27  ;;  %v179_v24 = vld [vmem:[%s19005_s0 + $0x528] sm:$0xff] }
 0x138   :  { %v472_v39 = vpop.xlane.xlu1 %471  ;;  %v5259_v41 = vsel %vm4875_vm8, %v5258_v28, %v5254_v38  ;;  %v469_v44 = vpop.xlane.xlu0 %468  ;;  %v710_v36 = vsel %vm19021_vm0, %v179_v24, 0.0 }
 0x139   :  { %v5268_v49 = vrot.slane %v472_v39, %v10912_v33  ;;  %v5263_v50 = vrot.slane %v469_v44, %v10879_v7  ;;  %v181_v44 = vld [vmem:[%s19005_s0 + $0x538] sm:$0xff] }
 0x13a   :  { %v716_v51 = vsel %vm19021_vm0, %v181_v44, 0.0 }
 0x13b   :  { %v5264_v53 = vsel %vm19022_vm9, %v5263_v50, %v5259_v41  ;;  %687 = vadd.xlane.f32.xlu1 %v686_v45  ;;  %684 = vadd.xlane.f32.xlu0 %v683_v46 }
 0x13c   :  { %v478_v55 = vpop.xlane.xlu1 %477  ;;  %v5269_v58 = vsel %vm4889_vm10, %v5268_v49, %v5264_v53  ;;  %v475_v59 = vpop.xlane.xlu0 %474 }
 0x13d   :  { %v5278_v62 = vrot.slane %v478_v55, %v10922_v43  ;;  %v5273_v63 = vrot.slane %v475_v59, %v10909_v29  ;;  %v182_v59 = vld [vmem:[%s19005_s0 + $0x540] sm:$0xff] }
 0x13e   :  { %v719_v2 = vsel %vm19021_vm0, %v182_v59, 0.0 }
 0x13f   :  { %v5274_v0 = vsel %vm19023_vm11, %v5273_v63, %v5269_v58  ;;  %693 = vadd.xlane.f32.xlu1 %v692_v5  ;;  %690 = vadd.xlane.f32.xlu0 %v689_v60  ;;  %v183_v58 = vld [vmem:[%s19005_s0 + $0x548] sm:$0xff] }
 0x140   :  { %v484_v3 = vpop.xlane.xlu1 %483  ;;  %v5279_v4 = vsel %vm19128_vm12, %v5278_v62, %v5274_v0  ;;  %v481_v6 = vpop.xlane.xlu0 %480  ;;  %vm19012_vm12 = vcmask 1043459   ;;  %v722_v1 = vsel %vm19021_vm0, %v183_v58, 0.0 }
 0x141   :  { %v5288_v12 = vrot.slane %v484_v3, %v10944_v61  ;;  %v5283_v10 = vrot.slane %v481_v6, %v10919_v42  ;;  %v184_v6 = vld [vmem:[%s19005_s0 + $0x550] sm:$0xff] }
 0x142   :  { %v725_v16 = vsel %vm19021_vm0, %v184_v6, 0.0 }
 0x143   :  { %v5284_v17 = vsel %vm19073_vm13, %v5283_v10, %v5279_v4  ;;  %699 = vadd.xlane.f32.xlu1 %v698_v8  ;;  %696 = vadd.xlane.f32.xlu0 %v695_v9  ;;  %v185_v4 = vld [vmem:[%s19005_s0 + $0x558] sm:$0xff] }
 0x144   :  { %v490_v14 = vpop.xlane.xlu1 %489  ;;  %v5289_v19 = vsel %vm19072_vm14, %v5288_v12, %v5284_v17  ;;  %v487_v20 = vpop.xlane.xlu0 %486  ;;  %v728_v11 = vsel %vm19021_vm0, %v185_v4, 0.0 }
 0x145   :  { %v5293_v23 = vrot.slane %v487_v20, %v10941_v15  ;;  %v5298_v38 = vrot.slane %v490_v14, %v10818_v30  ;;  %v186_v20 = vld [vmem:[%s19005_s0 + $0x560] sm:$0xff] }
 0x147   :  { %v5294_v26 = vsel %vm19067_vm15, %v5293_v23, %v5289_v19  ;;  %705 = vadd.xlane.f32.xlu1 %v704_v21  ;;  %702 = vadd.xlane.f32.xlu0 %v701_v22  ;;  %v187_v19 = vld [vmem:[%s19005_s0 + $0x568] sm:$0xff] }
 0x148   :  { %v11436_v27 = vsel %vm19012_vm12, %v5294_v26, %v11286_v54  ;;  %v496_v28 = vpop.xlane.xlu1 %495  ;;  %v493_v34 = vpop.xlane.xlu0 %492  ;;  %v180_v54 = vld [vmem:[%s19005_s0 + $0x530] sm:$0xff]  ;;  %v734_v25 = vsel %vm19021_vm0, %v187_v19, 0.0  ;;  %v731_v26 = vsel %vm19021_vm0, %v186_v20, 0.0 }
 0x149   :  { %v5307_v39 = vrot.slane %v496_v28, %v10831_v35  ;;  %v5302_v41 = vrot.slane %v493_v34, %v10824_v32  ;;  %v713_v52 = vsel %vm19021_vm0, %v180_v54, 0.0 }
 0x14b   :  { %v5303_v45 = vsel %vm4826_vm1, %v5302_v41, %v5298_v38  ;;  %711 = vadd.xlane.f32.xlu1 %v710_v36  ;;  %708 = vadd.xlane.f32.xlu0 %v707_v37  ;;  %v189_v36 = vld [vmem:[%s19005_s0 + $0x578] sm:$0xff]  ;;  %v188_v37 = vld [vmem:[%s19005_s0 + $0x570] sm:$0xff] }
 0x14c   :  { %v502_v46 = vpop.xlane.xlu1 %501  ;;  %v5308_v49 = vsel %vm4833_vm2, %v5307_v39, %v5303_v45  ;;  %v499_v50 = vpop.xlane.xlu0 %498  ;;  %v740_v54 = vsel %vm19021_vm0, %v189_v36, 0.0  ;;  %v737_v45 = vsel %vm19021_vm0, %v188_v37, 0.0 }
 0x14d   :  { %v5317_v53 = vrot.slane %v502_v46, %v10850_v48  ;;  %v5312_v55 = vrot.slane %v499_v50, %v10821_v31 }
 0x14f   :  { %v5313_v5 = vsel %vm4840_vm3, %v5312_v55, %v5308_v49  ;;  %717 = vadd.xlane.f32.xlu1 %v716_v51  ;;  %714 = vadd.xlane.f32.xlu0 %v713_v52  ;;  %v191_v49 = vld [vmem:[%s19005_s0 + $0x588] sm:$0xff] }
 0x150   :  { %v508_v60 = vpop.xlane.xlu1 %507  ;;  %v5318_v62 = vsel %vm4847_vm4, %v5317_v53, %v5313_v5  ;;  %v505_v63 = vpop.xlane.xlu0 %504  ;;  %v746_v55 = vsel %vm19021_vm0, %v191_v49, 0.0  ;;  %v193_v5 = vld [vmem:[%s19005_s0 + $0x598] sm:$0xff] }
 0x151   :  { %v5327_v0 = vrot.slane %v508_v60, %v10861_v57  ;;  %v5322_v3 = vrot.slane %v505_v63, %v10836_v40  ;;  %v192_v60 = vld [vmem:[%s19005_s0 + $0x590] sm:$0xff]  ;;  %v9453_v49 = vld [vmem:[%s19006_s1 + $0x18] sm:$0xff] }
 0x152   :  { %v749_v4 = vsel %vm19021_vm0, %v192_v60, 0.0 }
 0x153   :  { %v5323_v8 = vsel %vm4854_vm5, %v5322_v3, %v5318_v62  ;;  %723 = vadd.xlane.f32.xlu1 %v722_v1  ;;  %720 = vadd.xlane.f32.xlu0 %v719_v2  ;;  %v752_v3 = vsel %vm19021_vm0, %v193_v5, 0.0 }
 0x154   :  { %v514_v9 = vpop.xlane.xlu1 %513  ;;  %v5328_v12 = vsel %vm4861_vm6, %v5327_v0, %v5323_v8  ;;  %v511_v10 = vpop.xlane.xlu0 %510  ;;  %v195_v8 = vld [vmem:[%s19005_s0 + $0x5a8] sm:$0xff] }
 0x155   :  { %v5337_v17 = vrot.slane %v514_v9, %v10891_v13  ;;  %v5332_v14 = vrot.slane %v511_v10, %v10858_v56  ;;  %v194_v9 = vld [vmem:[%s19005_s0 + $0x5a0] sm:$0xff] }
 0x156   :  { %v755_v19 = vsel %vm19021_vm0, %v194_v9, 0.0  ;;  %v9459_v9 = vld [vmem:[%s19006_s1 + $0x48] sm:$0xff] }
 0x157   :  { %v5333_v21 = vsel %vm4868_vm7, %v5332_v14, %v5328_v12  ;;  %729 = vadd.xlane.f32.xlu1 %v728_v11  ;;  %726 = vadd.xlane.f32.xlu0 %v725_v16  ;;  %v758_v14 = vsel %vm19021_vm0, %v195_v8, 0.0 }
 0x158   :  { %v5338_v22 = vsel %vm4875_vm8, %v5337_v17, %v5333_v21  ;;  %v520_v23 = vpop.xlane.xlu1 %519  ;;  %v517_v24 = vpop.xlane.xlu0 %516  ;;  %v197_v21 = vld [vmem:[%s19005_s0 + $0x5b8] sm:$0xff] }
 0x159   :  { %v5346_v28 = vrot.slane %v520_v23, %v10824_v32  ;;  %v5342_v34 = vrot.slane %v517_v24, %v10818_v30  ;;  %v11499_v38 = vsel %vm19012_vm12, %v5338_v22, %v11337_v47  ;;  %v190_v47 = vld [vmem:[%s19005_s0 + $0x580] sm:$0xff]  ;;  %v196_v22 = vld [vmem:[%s19005_s0 + $0x5b0] sm:$0xff]  ;;  %vm19130_vm12 = vcmask 851712  }
 0x15a   :  { %19129 = vst [vmem:[#allocation19_spill] sm:$0xff] %v11499_v38  ;;  %v743_v58 = vsel %vm19021_vm0, %v190_v47, 0.0  ;;  %v761_v36 = vsel %vm19021_vm0, %v196_v22, 0.0 }
 0x15b   :  { %v5347_v39 = vsel %vm4826_vm1, %v5346_v28, %v5342_v34  ;;  %735 = vadd.xlane.f32.xlu1 %v734_v25  ;;  %732 = vadd.xlane.f32.xlu0 %v731_v26  ;;  %v764_v34 = vsel %vm19021_vm0, %v197_v21, 0.0 }
 0x15c   :  { %v526_v41 = vpop.xlane.xlu1 %525  ;;  %v523_v44 = vpop.xlane.xlu0 %522 }
 0x15d   :  { %v5351_v46 = vrot.slane %v523_v44, %v10831_v35  ;;  %v5356_v50 = vrot.slane %v526_v41, %v10821_v31  ;;  %v198_v41 = vld [vmem:[%s19005_s0 + $0x5c0] sm:$0xff] }
 0x15e   :  { %v767_v5 = vsel %vm19021_vm0, %v198_v41, 0.0 }
 0x15f   :  { %v5352_v51 = vsel %vm4833_vm2, %v5351_v46, %v5347_v39  ;;  %741 = vadd.xlane.f32.xlu1 %v740_v54  ;;  %738 = vadd.xlane.f32.xlu0 %v737_v45  ;;  %v199_v39 = vld [vmem:[%s19005_s0 + $0x5c8] sm:$0xff] }
 0x160   :  { %v532_v52 = vpop.xlane.xlu1 %531  ;;  %v529_v53 = vpop.xlane.xlu0 %528  ;;  %v5357_v63 = vsel %vm4840_vm3, %v5356_v50, %v5352_v51  ;;  %v9451_v45 = vld [vmem:[%s19006_s1 + $0x8] sm:$0xff]  ;;  %v9457_v51 = vld [vmem:[%s19006_s1 + $0x38] sm:$0xff] }
 0x161   :  { %v5361_v59 = vrot.slane %v529_v53, %v10850_v48  ;;  %v5366_v62 = vrot.slane %v532_v52, %v10836_v40  ;;  %v9455_v46 = vld [vmem:[%s19006_s1 + $0x28] sm:$0xff]  ;;  %v9450_v52 = vld [vmem:[%s19006_s1] sm:$0xff]  ;;  %v9835_v60 = vpack.c.bf16 %v9457_v51, %v9453_v49  ;;  %v9473_v51 = vld [vmem:[%s19006_s1 + $0xb8] sm:$0xff] }
 0x162   :  { %v9787_v50 = vpack.c.bf16 %v9455_v46, %v9451_v45  ;;  %v9454_v53 = vld [vmem:[%s19006_s1 + $0x20] sm:$0xff]  ;;  %v9471_v45 = vld [vmem:[%s19006_s1 + $0xa8] sm:$0xff]  ;;  %v9469_v46 = vld [vmem:[%s19006_s1 + $0x98] sm:$0xff] }
 0x163   :  { %v5362_v1 = vsel %vm4847_vm4, %v5361_v59, %v5357_v63  ;;  %747 = vadd.xlane.f32.xlu1 %v746_v55  ;;  %744 = vadd.xlane.f32.xlu0 %v743_v58  ;;  %v770_v59 = vsel %vm19021_vm0, %v199_v39, 0.0  ;;  %v9452_v63 = vld [vmem:[%s19006_s1 + $0x10] sm:$0xff]  ;;  %v202_v39 = vld [vmem:[%s19005_s0 + $0x5e0] sm:$0xff] }
 0x164   :  { %v538_v2 = vpop.xlane.xlu1 %537  ;;  %v535_v0 = vpop.xlane.xlu0 %534  ;;  %v5367_v10 = vsel %vm4854_vm5, %v5366_v62, %v5362_v1  ;;  %v9789_v62 = vpack.c.bf16 %v9454_v53, %v9450_v52  ;;  %v9456_v1 = vld [vmem:[%s19006_s1 + $0x30] sm:$0xff]  ;;  %9788 = vmatprep.subr.bf16.mxu0 %v9787_v50  ;;  %9836 = vmatprep.subr.bf16.mxu1 %v9835_v60  ;;  %v9466_v52 = vld [vmem:[%s19006_s1 + $0x80] sm:$0xff]  ;;  %v9843_v60 = vpack.c.bf16 %v9473_v51, %v9469_v46 }
 0x165   :  { %v5371_v6 = vrot.slane %v535_v0, %v10861_v57  ;;  %v5376_v12 = vrot.slane %v538_v2, %v10858_v56  ;;  %v201_v0 = vld [vmem:[%s19005_s0 + $0x5d8] sm:$0xff]  ;;  %v9470_v53 = vld [vmem:[%s19006_s1 + $0xa0] sm:$0xff]  ;;  %v9484_v51 = vld [vmem:[%s19006_s1 + $0x110] sm:$0xff] }
 0x166   :  { %9790 = vmatpush1.bf16.msra.mxu0 %v9789_v62  ;;  %v776_v22 = vsel %vm19021_vm0, %v201_v0, 0.0  ;;  %v9797_v62 = vpack.c.bf16 %v9470_v53, %v9466_v52  ;;  %v204_v0 = vld [vmem:[%s19005_s0 + $0x5f0] sm:$0xff]  ;;  %v209_v53 = vld [vmem:[%s19005_s0 + $0x618] sm:$0xff] }
 0x167   :  { %v5372_v11 = vsel %vm4861_vm6, %v5371_v6, %v5367_v10  ;;  %753 = vadd.xlane.f32.xlu1 %v752_v3  ;;  %750 = vadd.xlane.f32.xlu0 %v749_v4  ;;  %v200_v3 = vld [vmem:[%s19005_s0 + $0x5d0] sm:$0xff]  ;;  %v9837_v4 = vpack.c.bf16 %v9456_v1, %v9452_v63  ;;  %v9461_v10 = vld [vmem:[%s19006_s1 + $0x58] sm:$0xff] }
 0x168   :  { %v544_v16 = vpop.xlane.xlu1 %543  ;;  %v541_v17 = vpop.xlane.xlu0 %540  ;;  %v5377_v24 = vsel %vm4868_vm7, %v5376_v12, %v5372_v11  ;;  %v9463_v12 = vld [vmem:[%s19006_s1 + $0x68] sm:$0xff]  ;;  %v9468_v63 = vld [vmem:[%s19006_s1 + $0x90] sm:$0xff] }
 0x169   :  { %v5381_v20 = vrot.slane %v541_v17, %v10891_v13  ;;  %v5386_v23 = vrot.slane %v544_v16, %v10879_v7  ;;  %v9791_v16 = vpack.c.bf16 %v9463_v12, %v9459_v9  ;;  %v9465_v17 = vld [vmem:[%s19006_s1 + $0x78] sm:$0xff]  ;;  %9838 = vmatpush1.bf16.msra.mxu1 %v9837_v4  ;;  %v9472_v1 = vld [vmem:[%s19006_s1 + $0xb0] sm:$0xff] }
 0x16a   :  { %v9477_v9 = vld [vmem:[%s19006_s1 + $0xd8] sm:$0xff]  ;;  %v9488_v52 = vld [vmem:[%s19006_s1 + $0x130] sm:$0xff] }
 0x16b   :  { %v5382_v25 = vsel %vm4875_vm8, %v5381_v20, %v5377_v24  ;;  %759 = vadd.xlane.f32.xlu1 %v758_v14  ;;  %756 = vadd.xlane.f32.xlu0 %v755_v19  ;;  %v9458_v14 = vld [vmem:[%s19006_s1 + $0x40] sm:$0xff]  ;;  %v203_v24 = vld [vmem:[%s19005_s0 + $0x5e8] sm:$0xff] }
 0x16c   :  { %v550_v26 = vpop.xlane.xlu1 %549  ;;  %v547_v28 = vpop.xlane.xlu0 %546  ;;  %v5387_v54 = vsel %vm19022_vm9, %v5386_v23, %v5382_v25  ;;  %v9462_v19 = vld [vmem:[%s19006_s1 + $0x60] sm:$0xff]  ;;  %v773_v23 = vsel %vm19021_vm0, %v200_v3, 0.0  ;;  %v9839_v25 = vpack.c.bf16 %v9465_v17, %v9461_v10  ;;  %9792 = vmatprep.subr.bf16.mxu0 %v9791_v16  ;;  %v9845_v3 = vpack.c.bf16 %v9472_v1, %v9468_v63  ;;  %v9493_v63 = vld [vmem:[%s19006_s1 + $0x158] sm:$0xff] }
 0x16d   :  { %v5391_v37 = vrot.slane %v547_v28, %v10912_v33  ;;  %v5396_v44 = vrot.slane %v550_v26, %v10909_v29  ;;  %v9793_v26 = vpack.c.bf16 %v9462_v19, %v9458_v14  ;;  %v9460_v28 = vld [vmem:[%s19006_s1 + $0x50] sm:$0xff]  ;;  %v9474_v10 = vld [vmem:[%s19006_s1 + $0xc0] sm:$0xff]  ;;  %v785_v19 = vsel %vm19021_vm0, %v204_v0, 0.0 }
 0x16e   :  { %9840 = vmatprep.subr.bf16.mxu1 %v9839_v25  ;;  %v206_v25 = vld [vmem:[%s19005_s0 + $0x600] sm:$0xff] }
 0x16f   :  { %v5392_v47 = vsel %vm4889_vm10, %v5391_v37, %v5387_v54  ;;  %765 = vadd.xlane.f32.xlu1 %v764_v34  ;;  %762 = vadd.xlane.f32.xlu0 %v761_v36  ;;  %v9464_v34 = vld [vmem:[%s19006_s1 + $0x70] sm:$0xff]  ;;  %v9467_v54 = vld [vmem:[%s19006_s1 + $0x88] sm:$0xff]  ;;  %v9490_v0 = vld [vmem:[%s19006_s1 + $0x140] sm:$0xff] }
 0x170   :  { %v556_v55 = vpop.xlane.xlu1 %555  ;;  %v553_v58 = vpop.xlane.xlu0 %552  ;;  %v5397_v8 = vsel %vm19023_vm11, %v5396_v44, %v5392_v47  ;;  %v9841_v41 = vpack.c.bf16 %v9464_v34, %v9460_v28  ;;  %9794 = vmatpush1.bf16.msra.mxu0 %v9793_v26  ;;  %v782_v47 = vsel %vm19021_vm0, %v203_v24, 0.0  ;;  %v9795_v50 = vpack.c.bf16 %v9471_v45, %v9467_v54  ;;  %v207_v24 = vld [vmem:[%s19005_s0 + $0x608] sm:$0xff] }
 0x171   :  { %v5401_v2 = vrot.slane %v553_v58, %v10922_v43  ;;  %v5406_v6 = vrot.slane %v556_v55, %v10919_v42  ;;  %v9483_v28 = vld [vmem:[%s19006_s1 + $0x108] sm:$0xff]  ;;  %v794_v46 = vsel %vm19021_vm0, %v207_v24, 0.0  ;;  %v9501_v24 = vld [vmem:[%s19006_s1 + $0x198] sm:$0xff] }
 0x172   :  { %9842 = vmatpush1.bf16.msra.mxu1 %v9841_v41  ;;  %9796 = vmatprep.subr.bf16.mxu0 %v9795_v50  ;;  %v9487_v34 = vld [vmem:[%s19006_s1 + $0x128] sm:$0xff]  ;;  %v9482_v41 = vld [vmem:[%s19006_s1 + $0x100] sm:$0xff] }
 0x173   :  { %v5402_v11 = vsel %vm19130_vm12, %v5401_v2, %v5397_v8  ;;  %771 = vadd.xlane.f32.xlu1 %v770_v59  ;;  %768 = vadd.xlane.f32.xlu0 %v767_v5  ;;  %vm19024_vm12 = vcmask 1044484   ;;  %v779_v5 = vsel %vm19021_vm0, %v202_v39, 0.0  ;;  %v205_v2 = vld [vmem:[%s19005_s0 + $0x5f8] sm:$0xff]  ;;  %v9479_v8 = vld [vmem:[%s19006_s1 + $0xe8] sm:$0xff] }
 0x174   :  { %v562_v20 = vpop.xlane.xlu1 %561  ;;  %v559_v21 = vpop.xlane.xlu0 %558  ;;  %v5407_v44 = vsel %vm19073_vm13, %v5406_v6, %v5402_v11  ;;  %9844 = vmatprep.subr.bf16.mxu1 %v9843_v60  ;;  %9798 = vmatpush1.bf16.msra.mxu0 %v9797_v62  ;;  %v9475_v6 = vld [vmem:[%s19006_s1 + $0xc8] sm:$0xff]  ;;  %v9478_v11 = vld [vmem:[%s19006_s1 + $0xe0] sm:$0xff]  ;;  %v788_v14 = vsel %vm19021_vm0, %v205_v2, 0.0  ;;  %v9489_v39 = vld [vmem:[%s19006_s1 + $0x138] sm:$0xff] }
 0x175   :  { %v5416_v36 = vrot.slane %v562_v20, %v10941_v15  ;;  %v5411_v37 = vrot.slane %v559_v21, %v10944_v61  ;;  %v9799_v12 = vpack.c.bf16 %v9479_v8, %v9475_v6  ;;  %v9801_v21 = vpack.c.bf16 %v9478_v11, %v9474_v10  ;;  %v9491_v60 = vld [vmem:[%s19006_s1 + $0x148] sm:$0xff]  ;;  %v9497_v2 = vld [vmem:[%s19006_s1 + $0x178] sm:$0xff]  ;;  %v9492_v11 = vld [vmem:[%s19006_s1 + $0x150] sm:$0xff] }
 0x176   :  { %9846 = vmatpush1.bf16.msra.mxu1 %v9845_v3  ;;  %v9495_v62 = vld [vmem:[%s19006_s1 + $0x168] sm:$0xff]  ;;  %v9494_v3 = vld [vmem:[%s19006_s1 + $0x160] sm:$0xff] }
 0x177   :  { %v5412_v49 = vsel %vm19072_vm14, %v5411_v37, %v5407_v44  ;;  %777 = vadd.xlane.f32.xlu1 %v776_v22  ;;  %774 = vadd.xlane.f32.xlu0 %v773_v23  ;;  %v9476_v22 = vld [vmem:[%s19006_s1 + $0xd0] sm:$0xff]  ;;  %v9803_v37 = vpack.c.bf16 %v9487_v34, %v9483_v28  ;;  %v9486_v44 = vld [vmem:[%s19006_s1 + $0x120] sm:$0xff]  ;;  %v9807_v1 = vpack.c.bf16 %v9495_v62, %v9491_v60  ;;  %v9513_v62 = vld [vmem:[%s19006_s1 + $0x1f8] sm:$0xff] }
 0x178   :  { %v5417_v55 = vsel %vm19067_vm15, %v5416_v36, %v5412_v49  ;;  %v11653_v58 = vpop.xlane.xlu1 %567  ;;  %v11655_v59 = vpop.xlane.xlu0 %564  ;;  %v9480_v23 = vld [vmem:[%s19006_s1 + $0xf0] sm:$0xff]  ;;  %9800 = vmatprep.subr.bf16.mxu0 %v9799_v12  ;;  %v9485_v36 = vld [vmem:[%s19006_s1 + $0x118] sm:$0xff]  ;;  %v791_v49 = vsel %vm19021_vm0, %v206_v25, 0.0  ;;  %v9805_v50 = vpack.c.bf16 %v9486_v44, %v9482_v41  ;;  %v9809_v10 = vpack.c.bf16 %v9494_v3, %v9490_v0  ;;  %v9498_v28 = vld [vmem:[%s19006_s1 + $0x180] sm:$0xff] }
 0x179   :  { %v11672_v4 = vsel %vm19024_vm12, %v5417_v55, %v11436_v27  ;;  %v9481_v27 = vld [vmem:[%s19006_s1 + $0xf8] sm:$0xff]  ;;  %v9849_v26 = vpack.c.bf16 %v9480_v23, %v9476_v22  ;;  %9802 = vmatpush1.bf16.msra.mxu0 %v9801_v21  ;;  %v208_v55 = vld [vmem:[%s19005_s0 + $0x610] sm:$0xff]  ;;  %v9499_v22 = vld [vmem:[%s19006_s1 + $0x188] sm:$0xff] }
 0x17a   :  { %19131 = vst [vmem:[#allocation20_spill] sm:$0xff] %v11672_v4  ;;  %v9847_v20 = vpack.c.bf16 %v9481_v27, %v9477_v9  ;;  %9804 = vmatprep.subr.bf16.mxu0 %v9803_v37  ;;  %v800_v9 = vsel %vm19021_vm0, %v209_v53, 0.0  ;;  %v797_v12 = vsel %vm19021_vm0, %v208_v55, 0.0  ;;  %v9855_v27 = vpack.c.bf16 %v9497_v2, %v9493_v63  ;;  %v9503_v23 = vld [vmem:[%s19006_s1 + $0x1a8] sm:$0xff]  ;;  %v9502_v34 = vld [vmem:[%s19006_s1 + $0x1a0] sm:$0xff] }
 0x17b   :  { %783 = vadd.xlane.f32.xlu1 %v782_v47  ;;  %780 = vadd.xlane.f32.xlu0 %v779_v5  ;;  %v9851_v47 = vpack.c.bf16 %v9489_v39, %v9485_v36  ;;  %v9853_v5 = vpack.c.bf16 %v9488_v52, %v9484_v51  ;;  %v9811_v25 = vpack.c.bf16 %v9503_v23, %v9499_v22  ;;  %v212_v51 = vld [vmem:[%s19005_s0 + $0x630] sm:$0xff]  ;;  %v9507_v53 = vld [vmem:[%s19006_s1 + $0x1c8] sm:$0xff]  ;;  %v9506_v63 = vld [vmem:[%s19006_s1 + $0x1c0] sm:$0xff] }
 0x17c   :  { %v11692_v16 = vpop.xlane.xlu1 %573  ;;  %v11694_v17 = vpop.xlane.xlu0 %570  ;;  %9848 = vmatprep.subr.bf16.mxu1 %v9847_v20  ;;  %v210_v20 = vld [vmem:[%s19005_s0 + $0x620] sm:$0xff]  ;;  %v9511_v55 = vld [vmem:[%s19006_s1 + $0x1e8] sm:$0xff]  ;;  %v9521_v23 = vld [vmem:[%s19006_s1 + $0x238] sm:$0xff] }
 0x17d   :  { %9850 = vmatpush1.bf16.msra.mxu1 %v9849_v26  ;;  %9806 = vmatpush1.bf16.msra.mxu0 %v9805_v50  ;;  %v9505_v26 = vld [vmem:[%s19006_s1 + $0x1b8] sm:$0xff]  ;;  %v803_v41 = vsel %vm19021_vm0, %v210_v20, 0.0  ;;  %v9815_v60 = vpack.c.bf16 %v9511_v55, %v9507_v53  ;;  %v9519_v20 = vld [vmem:[%s19006_s1 + $0x228] sm:$0xff]  ;;  %v9522_v53 = vld [vmem:[%s19006_s1 + $0x240] sm:$0xff] }
 0x17e   :  { %9852 = vmatprep.subr.bf16.mxu1 %v9851_v47  ;;  %9808 = vmatprep.subr.bf16.mxu0 %v9807_v1  ;;  %v9859_v44 = vpack.c.bf16 %v9505_v26, %v9501_v24  ;;  %v9504_v47 = vld [vmem:[%s19006_s1 + $0x1b0] sm:$0xff]  ;;  %v213_v50 = vld [vmem:[%s19005_s0 + $0x638] sm:$0xff]  ;;  %v9510_v1 = vld [vmem:[%s19006_s1 + $0x1e0] sm:$0xff] }
 0x17f   :  { %789 = vadd.xlane.f32.xlu1 %v788_v14  ;;  %786 = vadd.xlane.f32.xlu0 %v785_v19  ;;  %v9496_v14 = vld [vmem:[%s19006_s1 + $0x170] sm:$0xff]  ;;  %v211_v19 = vld [vmem:[%s19005_s0 + $0x628] sm:$0xff]  ;;  %v812_v3 = vsel %vm19021_vm0, %v213_v50, 0.0  ;;  %v9514_v24 = vld [vmem:[%s19006_s1 + $0x200] sm:$0xff] }
 0x180   :  { %v11728_v54 = vpop.xlane.xlu1 %579  ;;  %v11730_v45 = vpop.xlane.xlu0 %576  ;;  %v9857_v21 = vpack.c.bf16 %v9496_v14, %v9492_v11  ;;  %v806_v39 = vsel %vm19021_vm0, %v211_v19, 0.0  ;;  %v9512_v11 = vld [vmem:[%s19006_s1 + $0x1f0] sm:$0xff]  ;;  %v9515_v19 = vld [vmem:[%s19006_s1 + $0x208] sm:$0xff]  ;;  %v9525_v50 = vld [vmem:[%s19006_s1 + $0x258] sm:$0xff] }
 0x181   :  { %9854 = vmatpush1.bf16.msra.mxu1 %v9853_v5  ;;  %9810 = vmatpush1.bf16.msra.mxu0 %v9809_v10  ;;  %v9509_v5 = vld [vmem:[%s19006_s1 + $0x1d8] sm:$0xff]  ;;  %v9508_v10 = vld [vmem:[%s19006_s1 + $0x1d0] sm:$0xff]  ;;  %v9819_v22 = vpack.c.bf16 %v9519_v20, %v9515_v19  ;;  %v9526_v55 = vld [vmem:[%s19006_s1 + $0x260] sm:$0xff] }
 0x182   :  { %9856 = vmatprep.subr.bf16.mxu1 %v9855_v27  ;;  %9812 = vmatprep.subr.bf16.mxu0 %v9811_v25  ;;  %v9817_v27 = vpack.c.bf16 %v9510_v1, %v9506_v63  ;;  %v9865_v14 = vpack.c.bf16 %v9512_v11, %v9508_v10  ;;  %v9518_v25 = vld [vmem:[%s19006_s1 + $0x220] sm:$0xff]  ;;  %v9825_v63 = vpack.c.bf16 %v9526_v55, %v9522_v53  ;;  %v9524_v1 = vld [vmem:[%s19006_s1 + $0x250] sm:$0xff]  ;;  %v9533_v10 = vld [vmem:[%s19006_s1 + $0x298] sm:$0xff] }
 0x183   :  { %795 = vadd.xlane.f32.xlu1 %v794_v46  ;;  %792 = vadd.xlane.f32.xlu0 %v791_v49  ;;  %v9813_v46 = vpack.c.bf16 %v9502_v34, %v9498_v28  ;;  %v9500_v49 = vld [vmem:[%s19006_s1 + $0x190] sm:$0xff]  ;;  %v9530_v19 = vld [vmem:[%s19006_s1 + $0x280] sm:$0xff] }
 0x184   :  { %v11764_v6 = vpop.xlane.xlu1 %585  ;;  %v11766_v8 = vpop.xlane.xlu0 %582  ;;  %v9861_v52 = vpack.c.bf16 %v9504_v47, %v9500_v49  ;;  %v9523_v49 = vld [vmem:[%s19006_s1 + $0x248] sm:$0xff]  ;;  %v9534_v20 = vld [vmem:[%s19006_s1 + $0x2a0] sm:$0xff] }
 0x185   :  { %9858 = vmatpush1.bf16.msra.mxu1 %v9857_v21  ;;  %9814 = vmatpush1.bf16.msra.mxu0 %v9813_v46  ;;  %v9517_v21 = vld [vmem:[%s19006_s1 + $0x218] sm:$0xff]  ;;  %v9527_v47 = vld [vmem:[%s19006_s1 + $0x268] sm:$0xff] }
 0x186   :  { %9860 = vmatprep.subr.bf16.mxu1 %v9859_v44  ;;  %9816 = vmatprep.subr.bf16.mxu0 %v9815_v60  ;;  %v9867_v34 = vpack.c.bf16 %v9521_v23, %v9517_v21  ;;  %v9520_v44 = vld [vmem:[%s19006_s1 + $0x230] sm:$0xff] }
 0x187   :  { %801 = vadd.xlane.f32.xlu1 %v800_v9  ;;  %798 = vadd.xlane.f32.xlu0 %v797_v12  ;;  %v809_v9 = vsel %vm19021_vm0, %v212_v51, 0.0  ;;  %v9863_v12 = vpack.c.bf16 %v9513_v62, %v9509_v5  ;;  %v9823_v51 = vpack.c.bf16 %v9527_v47, %v9523_v49  ;;  %v9545_v47 = vld [vmem:[%s19006_s1 + $0x2f8] sm:$0xff]  ;;  %vm19151_vm0 = vcmask 851712  }
 0x188   :  { %v11800_v36 = vpop.xlane.xlu1 %591  ;;  %v11802_v37 = vpop.xlane.xlu0 %588 }
 0x189   :  { %9862 = vmatpush1.bf16.msra.mxu1 %v9861_v52  ;;  %9818 = vmatpush1.bf16.msra.mxu0 %v9817_v27  ;;  %v9529_v52 = vld [vmem:[%s19006_s1 + $0x278] sm:$0xff]  ;;  %v9535_v27 = vld [vmem:[%s19006_s1 + $0x2a8] sm:$0xff] }
 0x18a   :  { %9864 = vmatprep.subr.bf16.mxu1 %v9863_v12  ;;  %9820 = vmatprep.subr.bf16.mxu0 %v9819_v22  ;;  %v9871_v62 = vpack.c.bf16 %v9529_v52, %v9525_v50  ;;  %v9531_v12 = vld [vmem:[%s19006_s1 + $0x288] sm:$0xff]  ;;  %v9538_v50 = vld [vmem:[%s19006_s1 + $0x2c0] sm:$0xff] }
 0x18b   :  { %807 = vadd.xlane.f32.xlu1 %v806_v39  ;;  %804 = vadd.xlane.f32.xlu0 %v803_v41  ;;  %v9821_v39 = vpack.c.bf16 %v9518_v25, %v9514_v24  ;;  %v9516_v41 = vld [vmem:[%s19006_s1 + $0x210] sm:$0xff]  ;;  %v9827_v11 = vpack.c.bf16 %v9535_v27, %v9531_v12  ;;  %v9829_v24 = vpack.c.bf16 %v9534_v20, %v9530_v19  ;;  %v9886_v12 = vld [vmem:[%s19005_s0 + $0x8] sm:$0xff] }
 0x18c   :  { %v11836_v2 = vpop.xlane.xlu1 %597  ;;  %v11838_v0 = vpop.xlane.xlu0 %594  ;;  %v9869_v46 = vpack.c.bf16 %v9520_v44, %v9516_v41  ;;  %v9532_v25 = vld [vmem:[%s19006_s1 + $0x290] sm:$0xff]  ;;  %v9539_v41 = vld [vmem:[%s19006_s1 + $0x2c8] sm:$0xff] }
 0x18d   :  { %9866 = vmatpush1.bf16.msra.mxu1 %v9865_v14  ;;  %9822 = vmatpush1.bf16.msra.mxu0 %v9821_v39  ;;  %v9537_v14 = vld [vmem:[%s19006_s1 + $0x2b8] sm:$0xff]  ;;  %v9543_v44 = vld [vmem:[%s19006_s1 + $0x2e8] sm:$0xff]  ;;  %v9548_v19 = vld [vmem:[%s19006_s1 + $0x310] sm:$0xff] }
 0x18e   :  { %9868 = vmatprep.subr.bf16.mxu1 %v9867_v34  ;;  %9824 = vmatprep.subr.bf16.mxu0 %v9823_v51  ;;  %v9875_v23 = vpack.c.bf16 %v9537_v14, %v9533_v10  ;;  %v9536_v34 = vld [vmem:[%s19006_s1 + $0x2b0] sm:$0xff]  ;;  %v9831_v49 = vpack.c.bf16 %v9543_v44, %v9539_v41  ;;  %v9542_v51 = vld [vmem:[%s19006_s1 + $0x2e0] sm:$0xff]  ;;  %v9547_v10 = vld [vmem:[%s19006_s1 + $0x308] sm:$0xff] }
 0x18f   :  { %813 = vadd.xlane.f32.xlu1 %v812_v3  ;;  %810 = vadd.xlane.f32.xlu0 %v809_v9  ;;  %v9528_v3 = vld [vmem:[%s19006_s1 + $0x270] sm:$0xff]  ;;  %v9877_v39 = vpack.c.bf16 %v9536_v34, %v9532_v25  ;;  %v9546_v14 = vld [vmem:[%s19006_s1 + $0x300] sm:$0xff] }
 0x190   :  { %v11866_v26 = vpop.xlane.xlu1 %603  ;;  %v11868_v28 = vpop.xlane.xlu0 %600  ;;  %v9873_v9 = vpack.c.bf16 %v9528_v3, %v9524_v1  ;;  %v9544_v1 = vld [vmem:[%s19006_s1 + $0x2f0] sm:$0xff]  ;;  %v9888_v25 = vld [vmem:[%s19005_s0] sm:$0xff] }
 0x191   :  { %9870 = vmatpush1.bf16.msra.mxu1 %v9869_v46  ;;  %9826 = vmatpush1.bf16.msra.mxu0 %v9825_v63  ;;  %v9541_v46 = vld [vmem:[%s19006_s1 + $0x2d8] sm:$0xff]  ;;  %v9540_v63 = vld [vmem:[%s19006_s1 + $0x2d0] sm:$0xff]  ;;  %v9890_v44 = vld [vmem:[%s19005_s0 + $0x20] sm:$0xff] }
 0x192   :  { %9872 = vmatprep.subr.bf16.mxu1 %v9871_v62  ;;  %9828 = vmatprep.subr.bf16.mxu0 %v9827_v11  ;;  %v9879_v55 = vpack.c.bf16 %v9545_v47, %v9541_v46  ;;  %v9833_v62 = vpack.c.bf16 %v9542_v51, %v9538_v50  ;;  %v9881_v3 = vpack.c.bf16 %v9544_v1, %v9540_v63  ;;  %v9549_v11 = vld [vmem:[%s19006_s1 + $0x318] sm:$0xff]  ;;  %v9892_v50 = vld [vmem:[%s19005_s0 + $0x30] sm:$0xff]  ;;  %v9894_v63 = vld [vmem:[%s19005_s0 + $0x40] sm:$0xff] }
 0x194   :  { %v11894_v5 = vpop.xlane.xlu1 %609  ;;  %v11896_v60 = vpop.xlane.xlu0 %606 }
 0x195   :  { %9874 = vmatpush1.bf16.msra.mxu1 %v9873_v9  ;;  %9830 = vmatpush1.bf16.msra.mxu0 %v9829_v24 }
 0x196   :  { %9876 = vmatprep.subr.bf16.mxu1 %v9875_v23  ;;  %9832 = vmatprep.subr.bf16.mxu0 %v9831_v49  ;;  %v9887_v23 = vld [vmem:[%s19005_s0 + $0x10] sm:$0xff]  ;;  %v9891_v49 = vld [vmem:[%s19005_s0 + $0x28] sm:$0xff] }
 0x198   :  { %v11922_v21 = vpop.xlane.xlu1 %615  ;;  %v11924_v22 = vpop.xlane.xlu0 %612 }
 0x199   :  { %9878 = vmatpush1.bf16.msra.mxu1 %v9877_v39  ;;  %9834 = vmatpush1.bf16.msra.mxu0 %v9833_v62  ;;  %v9889_v39 = vld [vmem:[%s19005_s0 + $0x18] sm:$0xff] }
 0x19a   :  { %9880 = vmatprep.subr.bf16.mxu1 %v9879_v55  ;;  %9629 = vmatprep.subr.mxu0 %v9547_v10  ;;  %v9893_v55 = vld [vmem:[%s19005_s0 + $0x38] sm:$0xff]  ;;  %v9896_v10 = vld [vmem:[%s19005_s0 + $0x50] sm:$0xff] }
 0x19c   :  { %v11950_v52 = vpop.xlane.xlu1 %621  ;;  %v11952_v53 = vpop.xlane.xlu0 %618 }
 0x19d   :  { %9882 = vmatpush1.bf16.msra.mxu1 %v9881_v3  ;;  %9630 = vmatpush1.msra.mxu0 %v9546_v14  ;;  %v9895_v3 = vld [vmem:[%s19005_s0 + $0x48] sm:$0xff]  ;;  %v9897_v14 = vld [vmem:[%s19005_s0 + $0x58] sm:$0xff] }
 0x19e   :  { %9718 = vmatprep.subr.mxu1 %v9549_v11 }
 0x1a0   :  { %v11960_v9 = vpop.xlane.xlu1 %627  ;;  %1017 = vrot.lane.b32.xlu1 %v9886_v12, %s10486_s12  ;;  %v11966_v27 = vpop.xlane.xlu0 %624 }
 0x1a1   :  { %9719 = vmatpush1.msra.mxu1 %v9548_v19 }
 0x1a4   :  { %v11980_v20 = vpop.xlane.xlu1 %633  ;;  %1019 = vrot.lane.b32.xlu1 %v9887_v23, %s10486_s12  ;;  %v11986_v24 = vpop.xlane.xlu0 %630  ;;  %v9898_v23 = vld [vmem:[%s19005_s0 + $0x60] sm:$0xff] }
 0x1a5   :  { %19132 = vst [vmem:[#allocation21_spill] sm:$0xff] %v11980_v20  ;;  %1015 = vrot.lane.b32.xlu0 %v9888_v25, %s10486_s12 }
 0x1a8   :  { %v11992_v34 = vpop.xlane.xlu1 %639  ;;  %1021 = vrot.lane.b32.xlu1 %v9889_v39, %s10486_s12  ;;  %v11998_v41 = vpop.xlane.xlu0 %636  ;;  %v9899_v39 = vld [vmem:[%s19005_s0 + $0x68] sm:$0xff] }
 0x1a9   :  { %19133 = vst [vmem:[#allocation22_spill] sm:$0xff] %v11998_v41  ;;  %1023 = vrot.lane.b32.xlu0 %v9890_v44, %s10486_s12 }
 0x1ac   :  { %v12004_v46 = vpop.xlane.xlu1 %645  ;;  %1025 = vrot.lane.b32.xlu1 %v9891_v49, %s10486_s12  ;;  %v12010_v47 = vpop.xlane.xlu0 %642  ;;  %v9900_v49 = vld [vmem:[%s19005_s0 + $0x70] sm:$0xff] }
 0x1ad   :  { %1027 = vrot.lane.b32.xlu0 %v9892_v50, %s10486_s12 }
 0x1b0   :  { %v12016_v51 = vpop.xlane.xlu1 %651  ;;  %1029 = vrot.lane.b32.xlu1 %v9893_v55, %s10486_s12  ;;  %v12022_v62 = vpop.xlane.xlu0 %648  ;;  %v9901_v55 = vld [vmem:[%s19005_s0 + $0x78] sm:$0xff] }
 0x1b1   :  { %1031 = vrot.lane.b32.xlu0 %v9894_v63, %s10486_s12 }
 0x1b4   :  { %v12028_v1 = vpop.xlane.xlu1 %657  ;;  %1033 = vrot.lane.b32.xlu1 %v9895_v3, %s10486_s12  ;;  %v12034_v12 = vpop.xlane.xlu0 %654  ;;  %v9902_v3 = vld [vmem:[%s19005_s0 + $0x80] sm:$0xff] }
 0x1b5   :  { %1035 = vrot.lane.b32.xlu0 %v9896_v10, %s10486_s12 }
 0x1b8   :  { %v12040_v11 = vpop.xlane.xlu1 %663  ;;  %1037 = vrot.lane.b32.xlu1 %v9897_v14, %s10486_s12  ;;  %v12046_v19 = vpop.xlane.xlu0 %660  ;;  %v9903_v14 = vld [vmem:[%s19005_s0 + $0x88] sm:$0xff] }
 0x1b9   :  { %19134 = vst [vmem:[#allocation23_spill] sm:$0xff] %v12040_v11  ;;  %19135 = vst [vmem:[#allocation24_spill] sm:$0xff] %v12046_v19  ;;  %1039 = vrot.lane.b32.xlu0 %v9898_v23, %s10486_s12 }
 0x1bc   :  { %v12052_v25 = vpop.xlane.xlu1 %669  ;;  %1041 = vrot.lane.b32.xlu1 %v9899_v39, %s10486_s12  ;;  %v12058_v44 = vpop.xlane.xlu0 %666  ;;  %v9904_v39 = vld [vmem:[%s19005_s0 + $0x90] sm:$0xff] }
 0x1bd   :  { %1043 = vrot.lane.b32.xlu0 %v9900_v49, %s10486_s12 }
 0x1c0   :  { %v12064_v50 = vpop.xlane.xlu1 %675  ;;  %1045 = vrot.lane.b32.xlu1 %v9901_v55, %s10486_s12  ;;  %v12070_v63 = vpop.xlane.xlu0 %672  ;;  %v9905_v55 = vld [vmem:[%s19005_s0 + $0x98] sm:$0xff] }
 0x1c1   :  { %1047 = vrot.lane.b32.xlu0 %v9902_v3, %s10486_s12 }
 0x1c4   :  { %v12076_v10 = vpop.xlane.xlu1 %681  ;;  %1049 = vrot.lane.b32.xlu1 %v9903_v14, %s10486_s12  ;;  %v12082_v23 = vpop.xlane.xlu0 %678  ;;  %v9906_v14 = vld [vmem:[%s19005_s0 + $0xa0] sm:$0xff] }
 0x1c5   :  { %1051 = vrot.lane.b32.xlu0 %v9904_v39, %s10486_s12  ;;  %v9907_v39 = vld [vmem:[%s19005_s0 + $0xa8] sm:$0xff] }
 0x1c8   :  { %v12088_v49 = vpop.xlane.xlu1 %687  ;;  %1053 = vrot.lane.b32.xlu1 %v9905_v55, %s10486_s12  ;;  %v12094_v3 = vpop.xlane.xlu0 %684  ;;  %v9908_v55 = vld [vmem:[%s19005_s0 + $0xb0] sm:$0xff] }
 0x1c9   :  { %1055 = vrot.lane.b32.xlu0 %v9906_v14, %s10486_s12  ;;  %v9909_v14 = vld [vmem:[%s19005_s0 + $0xb8] sm:$0xff] }
 0x1cc   :  { %v12100_v18 = vpop.xlane.xlu1 %693  ;;  %1057 = vrot.lane.b32.xlu1 %v9907_v39, %s10486_s12  ;;  %v12106_v4 = vpop.xlane.xlu0 %690  ;;  %v9910_v39 = vld [vmem:[%s19005_s0 + $0xc0] sm:$0xff] }
 0x1cd   :  { %1059 = vrot.lane.b32.xlu0 %v9908_v55, %s10486_s12  ;;  %v9911_v55 = vld [vmem:[%s19005_s0 + $0xc8] sm:$0xff] }
 0x1d0   :  { %v12112_v38 = vpop.xlane.xlu1 %699  ;;  %1061 = vrot.lane.b32.xlu1 %v9909_v14, %s10486_s12  ;;  %v12118_v19 = vpop.xlane.xlu0 %696  ;;  %v9912_v14 = vld [vmem:[%s19005_s0 + $0xd0] sm:$0xff] }
 0x1d1   :  { %19136 = vst [vmem:[#allocation25_spill] sm:$0xff] %v12112_v38  ;;  %19137 = vst [vmem:[#allocation26_spill] sm:$0xff] %v12118_v19  ;;  %1063 = vrot.lane.b32.xlu0 %v9910_v39, %s10486_s12  ;;  %v9913_v39 = vld [vmem:[%s19005_s0 + $0xd8] sm:$0xff]  ;;  %v9927_v19 = vld [vmem:[%s19005_s0 + $0x148] sm:$0xff] }
 0x1d4   :  { %v12124_v11 = vpop.xlane.xlu1 %705  ;;  %1065 = vrot.lane.b32.xlu1 %v9911_v55, %s10486_s12  ;;  %v12130_v38 = vpop.xlane.xlu0 %702  ;;  %v9914_v55 = vld [vmem:[%s19005_s0 + $0xe0] sm:$0xff] }
 0x1d5   :  { %19138 = vst [vmem:[#allocation27_spill] sm:$0xff] %v12124_v11  ;;  %19139 = vst [vmem:[#allocation28_spill] sm:$0xff] %v12130_v38  ;;  %1067 = vrot.lane.b32.xlu0 %v9912_v14, %s10486_s12  ;;  %v9915_v14 = vld [vmem:[%s19005_s0 + $0xe8] sm:$0xff] }
 0x1d8   :  { %v12136_v41 = vpop.xlane.xlu1 %711  ;;  %1069 = vrot.lane.b32.xlu1 %v9913_v39, %s10486_s12  ;;  %v12142_v11 = vpop.xlane.xlu0 %708  ;;  %v9916_v39 = vld [vmem:[%s19005_s0 + $0xf0] sm:$0xff] }
 0x1d9   :  { %19140 = vst [vmem:[#allocation29_spill] sm:$0xff] %v12136_v41  ;;  %19141 = vst [vmem:[#allocation30_spill] sm:$0xff] %v12142_v11  ;;  %1071 = vrot.lane.b32.xlu0 %v9914_v55, %s10486_s12  ;;  %v9917_v55 = vld [vmem:[%s19005_s0 + $0xf8] sm:$0xff] }
 0x1dc   :  { %v12148_v38 = vpop.xlane.xlu1 %717  ;;  %1073 = vrot.lane.b32.xlu1 %v9915_v14, %s10486_s12  ;;  %v12154_v41 = vpop.xlane.xlu0 %714  ;;  %v9918_v14 = vld [vmem:[%s19005_s0 + $0x100] sm:$0xff] }
 0x1dd   :  { %19142 = vst [vmem:[#allocation31_spill] sm:$0xff] %v12148_v38  ;;  %19143 = vst [vmem:[#allocation32_spill] sm:$0xff] %v12154_v41  ;;  %1075 = vrot.lane.b32.xlu0 %v9916_v39, %s10486_s12  ;;  %v9919_v39 = vld [vmem:[%s19005_s0 + $0x108] sm:$0xff]  ;;  %v5479_v41 = vrot.slane %v11868_v28, %v10821_v31  ;;  %v9926_v28 = vld [vmem:[%s19005_s0 + $0x140] sm:$0xff] }
 0x1e0   :  { %v12160_v11 = vpop.xlane.xlu1 %723  ;;  %1077 = vrot.lane.b32.xlu1 %v9917_v55, %s10486_s12  ;;  %v12166_v15 = vpop.xlane.xlu0 %720  ;;  %v9920_v55 = vld [vmem:[%s19005_s0 + $0x110] sm:$0xff] }
 0x1e1   :  { %19144 = vst [vmem:[#allocation33_spill] sm:$0xff] %v12160_v11  ;;  %19145 = vst [vmem:[#allocation34_spill] sm:$0xff] %v12166_v15  ;;  %1079 = vrot.lane.b32.xlu0 %v9918_v14, %s10486_s12  ;;  %v9921_v14 = vld [vmem:[%s19005_s0 + $0x118] sm:$0xff] }
 0x1e4   :  { %v12172_v20 = vpop.xlane.xlu1 %729  ;;  %1081 = vrot.lane.b32.xlu1 %v9919_v39, %s10486_s12  ;;  %v12178_v11 = vpop.xlane.xlu0 %726  ;;  %v9922_v39 = vld [vmem:[%s19005_s0 + $0x120] sm:$0xff] }
 0x1e5   :  { %19146 = vst [vmem:[#allocation35_spill] sm:$0xff] %v12172_v20  ;;  %19147 = vst [vmem:[#allocation36_spill] sm:$0xff] %v12178_v11  ;;  %1083 = vrot.lane.b32.xlu0 %v9920_v55, %s10486_s12  ;;  %v5469_v11 = vrot.slane %v11838_v0, %v10824_v32  ;;  %v5474_v0 = vrot.slane %v11836_v2, %v10831_v35  ;;  %v5421_v2 = vrot.slane %v11655_v59, %v10818_v30 }
 0x1e8   :  { %v12184_v15 = vpop.xlane.xlu1 %735  ;;  %1085 = vrot.lane.b32.xlu1 %v9921_v14, %s10486_s12  ;;  %v12190_v20 = vpop.xlane.xlu0 %732 }
 0x1e9   :  { %19148 = vst [vmem:[#allocation37_spill] sm:$0xff] %v12184_v15  ;;  %19149 = vst [vmem:[#allocation38_spill] sm:$0xff] %v12190_v20  ;;  %1087 = vrot.lane.b32.xlu0 %v9922_v39, %s10486_s12  ;;  %v9923_v15 = vld [vmem:[%s19005_s0 + $0x128] sm:$0xff]  ;;  %v9924_v20 = vld [vmem:[%s19005_s0 + $0x130] sm:$0xff]  ;;  %v5465_v39 = vrot.slane %v11800_v36, %v10818_v30  ;;  %v5425_v36 = vrot.slane %v11653_v58, %v10824_v32  ;;  %v5489_v58 = vrot.slane %v11896_v60, %v10836_v40 }
 0x1eb   :  { %v5470_v61 = vsel %vm4826_vm1, %v5469_v11, %v5465_v39  ;;  %v5430_v11 = vrot.slane %v11694_v17, %v10831_v35  ;;  %v5426_v17 = vsel %vm4826_vm1, %v5425_v36, %v5421_v2 }
 0x1ec   :  { %v12198_v55 = vpop.xlane.xlu1 %741  ;;  %1089 = vrot.lane.b32.xlu1 %v9923_v15, %s10486_s12  ;;  %v12204_v14 = vpop.xlane.xlu0 %738  ;;  %v5475_v39 = vsel %vm4833_vm2, %v5474_v0, %v5470_v61  ;;  %v5435_v61 = vrot.slane %v11692_v16, %v10821_v31  ;;  %v5499_v16 = vrot.slane %v11924_v22, %v10858_v56 }
 0x1ed   :  { %19150 = vst [vmem:[#allocation39_spill] sm:$0xff] %v12204_v14  ;;  %1091 = vrot.lane.b32.xlu0 %v9924_v20, %s10486_s12  ;;  %v9925_v14 = vld [vmem:[%s19005_s0 + $0x138] sm:$0xff]  ;;  %v5480_v38 = vsel %vm4840_vm3, %v5479_v41, %v5475_v39  ;;  %v5431_v60 = vsel %vm4833_vm2, %v5430_v11, %v5426_v17  ;;  %v5440_v41 = vrot.slane %v11730_v45, %v10850_v48 }
 0x1ee   :  { %v9929_v39 = vld [vmem:[%s19005_s0 + $0x158] sm:$0xff]  ;;  %v5436_v45 = vsel %vm4840_vm3, %v5435_v61, %v5431_v60  ;;  %v5592_v17 = vrot.slane %v12052_v25, %v10824_v32  ;;  %v5588_v61 = vrot.slane %v12058_v44, %v10818_v30  ;;  %v5597_v60 = vrot.slane %v12070_v63, %v10831_v35  ;;  %v9932_v44 = vld [vmem:[%s19005_s0 + $0x170] sm:$0xff] }
 0x1ef   :  { %v5441_v22 = vsel %vm4847_vm4, %v5440_v41, %v5436_v45  ;;  %v5509_v25 = vrot.slane %v11952_v53, %v10879_v7  ;;  %v5450_v41 = vrot.slane %v11766_v8, %v10861_v57  ;;  %v5602_v53 = vrot.slane %v12064_v50, %v10821_v31  ;;  %v9933_v50 = vld [vmem:[%s19005_s0 + $0x178] sm:$0xff] }
 0x1f0   :  { %v12217_v15 = vpop.xlane.xlu1 %747  ;;  %1093 = vrot.lane.b32.xlu1 %v9925_v14, %s10486_s12  ;;  %v12223_v20 = vpop.xlane.xlu0 %744  ;;  %v5484_v14 = vrot.slane %v11866_v26, %v10850_v48  ;;  %v9928_v26 = vld [vmem:[%s19005_s0 + $0x150] sm:$0xff]  ;;  %v5514_v45 = vrot.slane %v11950_v52, %v10912_v33 }
 0x1f1   :  { %1095 = vrot.lane.b32.xlu0 %v9926_v28, %s10486_s12 }
 0x1f2   :  { %v5485_v0 = vsel %vm4847_vm4, %v5484_v14, %v5480_v38  ;;  %v9930_v38 = vld [vmem:[%s19005_s0 + $0x160] sm:$0xff]  ;;  %v5504_v14 = vrot.slane %v11922_v21, %v10891_v13 }
 0x1f3   :  { %v5490_v36 = vsel %vm4854_vm5, %v5489_v58, %v5485_v0 }
 0x1f4   :  { %v12241_v59 = vpop.xlane.xlu1 %753  ;;  %1097 = vrot.lane.b32.xlu1 %v9927_v19, %s10486_s12  ;;  %v12247_v28 = vpop.xlane.xlu0 %750  ;;  %v5494_v19 = vrot.slane %v11894_v5, %v10861_v57  ;;  %v5445_v5 = vrot.slane %v11728_v54, %v10836_v40  ;;  %v9931_v54 = vld [vmem:[%s19005_s0 + $0x168] sm:$0xff] }
 0x1f5   :  { %1099 = vrot.lane.b32.xlu0 %v9928_v26, %s10486_s12 }
 0x1f6   :  { %v5495_v58 = vsel %vm4861_vm6, %v5494_v19, %v5490_v36  ;;  %v5446_v63 = vsel %vm4854_vm5, %v5445_v5, %v5441_v22  ;;  %v5548_v19 = vrot.slane %v12010_v47, %v10824_v32  ;;  %v5607_v47 = vrot.slane %v12082_v23, %v10850_v48 }
 0x1f7   :  { %v5500_v26 = vsel %vm4868_vm7, %v5499_v16, %v5495_v58  ;;  %v5593_v16 = vsel %vm4826_vm1, %v5592_v17, %v5588_v61  ;;  %v5553_v22 = vrot.slane %v12004_v46, %v10831_v35  ;;  %v5711_v23 = vrot.slane %v12198_v55, %v10818_v30 }
 0x1f8   :  { %v12265_v2 = vpop.xlane.xlu1 %759  ;;  %1101 = vrot.lane.b32.xlu1 %v9929_v39, %s10486_s12  ;;  %v12271_v11 = vpop.xlane.xlu0 %756  ;;  %v5505_v36 = vsel %vm4875_vm8, %v5504_v14, %v5500_v26  ;;  %v5715_v39 = vrot.slane %v12223_v20, %v10824_v32  ;;  %v5598_v8 = vsel %vm4833_vm2, %v5597_v60, %v5593_v16  ;;  %v9934_v14 = vld [vmem:[%s19005_s0 + $0x180] sm:$0xff]  ;;  %v5455_v58 = vrot.slane %v11764_v6, %v10858_v56 }
 0x1f9   :  { %1103 = vrot.lane.b32.xlu0 %v9930_v38, %s10486_s12  ;;  %v5544_v38 = vrot.slane %v11992_v34, %v10818_v30  ;;  %v5510_v52 = vsel %vm19022_vm9, %v5509_v25, %v5505_v36  ;;  %v5519_v34 = vrot.slane %v11966_v27, %v10909_v29  ;;  %v5558_v27 = vrot.slane %v12022_v62, %v10821_v31 }
 0x1fa   :  { %v5720_v46 = vrot.slane %v12217_v15, %v10831_v35  ;;  %v5612_v55 = vrot.slane %v12076_v10, %v10836_v40  ;;  %v5603_v61 = vsel %vm4840_vm3, %v5602_v53, %v5598_v8  ;;  %v5716_v26 = vsel %vm4826_vm1, %v5715_v39, %v5711_v23  ;;  %v9935_v10 = vld [vmem:[%s19005_s0 + $0x188] sm:$0xff] }
 0x1fb   :  { %v5549_v17 = vsel %vm4826_vm1, %v5548_v19, %v5544_v38  ;;  %v5725_v60 = vrot.slane %v12247_v28, %v10821_v31  ;;  %v5451_v6 = vsel %vm4861_vm6, %v5450_v41, %v5446_v63  ;;  %v5608_v25 = vsel %vm4847_vm4, %v5607_v47, %v5603_v61  ;;  %v9936_v19 = vld [vmem:[%s19005_s0 + $0x190] sm:$0xff] }
 0x1fc   :  { %v12291_v0 = vpop.xlane.xlu1 %765  ;;  %1105 = vrot.lane.b32.xlu1 %v9931_v54, %s10486_s12  ;;  %v12297_v21 = vpop.xlane.xlu0 %762  ;;  %v5515_v54 = vsel %vm4889_vm10, %v5514_v45, %v5510_v52  ;;  %v5617_v62 = vrot.slane %v12094_v3, %v10861_v57  ;;  %v5524_v28 = vrot.slane %v11960_v9, %v10922_v43  ;;  %v5563_v41 = vrot.slane %v12016_v51, %v10850_v48 }
 0x1fd   :  { %1107 = vrot.lane.b32.xlu0 %v9932_v44, %s10486_s12  ;;  %v5520_v63 = vsel %vm19023_vm11, %v5519_v34, %v5515_v54  ;;  %v5554_v3 = vsel %vm4833_vm2, %v5553_v22, %v5549_v17  ;;  %v5568_v16 = vrot.slane %v12034_v12, %v10836_v40  ;;  %v5730_v9 = vrot.slane %v12241_v59, %v10850_v48  ;;  %v9938_v22 = vld [vmem:[%s19005_s0 + $0x1a0] sm:$0xff] }
 0x1fe   :  { %v5559_v36 = vsel %vm4840_vm3, %v5558_v27, %v5554_v3  ;;  %v5721_v53 = vsel %vm4833_vm2, %v5720_v46, %v5716_v26  ;;  %v5622_v51 = vrot.slane %v12088_v49, %v10858_v56  ;;  %v5613_v39 = vsel %vm4854_vm5, %v5612_v55, %v5608_v25  ;;  %v9937_v49 = vld [vmem:[%s19005_s0 + $0x198] sm:$0xff]  ;;  %v19153_v26 = vld [vmem:[#allocation31_spill] sm:$0xff] }
 0x1ff   :  { %v5726_v45 = vsel %vm4840_vm3, %v5725_v60, %v5721_v53  ;;  %v5735_v38 = vrot.slane %v12271_v11, %v10836_v40  ;;  %v5456_v8 = vsel %vm4868_vm7, %v5455_v58, %v5451_v6  ;;  %v5618_v47 = vsel %vm4861_vm6, %v5617_v62, %v5613_v39  ;;  %v19154_v60 = vld [vmem:[#allocation32_spill] sm:$0xff]  ;;  %v19155_v62 = vld [vmem:[#allocation18_spill] sm:$0xff] }
 0x200   :  { %v12323_v5 = vpop.xlane.xlu1 %771  ;;  %1109 = vrot.lane.b32.xlu1 %v9933_v50, %s10486_s12  ;;  %v12329_v20 = vpop.xlane.xlu0 %768  ;;  %v5627_v12 = vrot.slane %v12106_v4, %v10891_v13  ;;  %v5460_v11 = vrot.slane %v11802_v37, %v10891_v13  ;;  %v5525_v52 = vsel %vm19151_vm0, %v5524_v28, %v5520_v63  ;;  %v5529_v34 = vrot.slane %v11986_v24, %v10919_v42 }
 0x201   :  { %1111 = vrot.lane.b32.xlu0 %v9934_v14, %s10486_s12  ;;  %v5564_v4 = vsel %vm4847_vm4, %v5563_v41, %v5559_v36  ;;  %v5573_v23 = vrot.slane %v12028_v1, %v10861_v57  ;;  %v5740_v37 = vrot.slane %v12265_v2, %v10861_v57  ;;  %v5731_v58 = vsel %vm4847_vm4, %v5730_v9, %v5726_v45  ;;  %v19152_v1 = vld [vmem:[#allocation26_spill] sm:$0xff]  ;;  %v19158_v36 = vld [vmem:[#allocation17_spill] sm:$0xff] }
 0x202   :  { %v5569_v14 = vsel %vm4854_vm5, %v5568_v16, %v5564_v4  ;;  %v5632_v24 = vrot.slane %v12100_v18, %v10879_v7  ;;  %v5623_v17 = vsel %vm4868_vm7, %v5622_v51, %v5618_v47  ;;  %v5736_v27 = vsel %vm4854_vm5, %v5735_v38, %v5731_v58  ;;  %v9939_v18 = vld [vmem:[%s19005_s0 + $0x1a8] sm:$0xff]  ;;  %v19157_v41 = vld [vmem:[#allocation34_spill] sm:$0xff]  ;;  %v19160_v45 = vld [vmem:[#allocation25_spill] sm:$0xff] }
 0x203   :  { %v5745_v46 = vrot.slane %v12297_v21, %v10858_v56  ;;  %v5628_v55 = vsel %vm4875_vm8, %v5627_v12, %v5623_v17  ;;  %v5637_v61 = vrot.slane %v19152_v1, %v10912_v33  ;;  %v5671_v2 = vrot.slane %v19153_v26, %v10824_v32  ;;  %v19159_v16 = vld [vmem:[#allocation22_spill] sm:$0xff] }
 0x204   :  { %v12360_v15 = vpop.xlane.xlu1 %777  ;;  %1113 = vrot.lane.b32.xlu1 %v9935_v10, %s10486_s12  ;;  %v12366_v44 = vpop.xlane.xlu0 %774  ;;  %v5667_v6 = vrot.slane %v19154_v60, %v10818_v30  ;;  %v12438_v21 = vsel %vm4875_vm8, %v5460_v11, %v5456_v8  ;;  %v19156_v10 = vld [vmem:[#allocation21_spill] sm:$0xff]  ;;  %v12443_v63 = vsel %vm19073_vm13, %v5529_v34, %v5525_v52  ;;  %v5676_v3 = vrot.slane %v19157_v41, %v10831_v35  ;;  %v19161_v11 = vld [vmem:[#allocation28_spill] sm:$0xff]  ;;  %v19166_v41 = vld [vmem:[#allocation27_spill] sm:$0xff] }
 0x205   :  { %1115 = vrot.lane.b32.xlu0 %v9936_v19, %s10486_s12  ;;  %v5534_v28 = vrot.slane %v19156_v10, %v19155_v62  ;;  %v9940_v19 = vld [vmem:[%s19005_s0 + $0x1b0] sm:$0xff]  ;;  %v5539_v9 = vrot.slane %v19159_v16, %v19158_v36  ;;  %v5574_v53 = vsel %vm4861_vm6, %v5573_v23, %v5569_v14  ;;  %v5750_v51 = vrot.slane %v12291_v0, %v10891_v13  ;;  %v19162_v0 = vld [vmem:[#allocation33_spill] sm:$0xff] }
 0x206   :  { %v5741_v39 = vsel %vm4861_vm6, %v5740_v37, %v5736_v27  ;;  %v5642_v38 = vrot.slane %v19160_v45, %v10909_v29  ;;  %v5633_v8 = vsel %vm19022_vm9, %v5632_v24, %v5628_v55  ;;  %v5755_v12 = vrot.slane %v12329_v20, %v10879_v7  ;;  %v9941_v23 = vld [vmem:[%s19005_s0 + $0x1b8] sm:$0xff]  ;;  %v19163_v37 = vld [vmem:[#allocation36_spill] sm:$0xff]  ;;  %v9942_v27 = vld [vmem:[%s19005_s0 + $0x1c0] sm:$0xff] }
 0x207   :  { %v5746_v47 = vsel %vm4868_vm7, %v5745_v46, %v5741_v39  ;;  %v5647_v52 = vrot.slane %v19161_v11, %v10922_v43  ;;  %v5672_v34 = vsel %vm4826_vm1, %v5671_v2, %v5667_v6  ;;  %v5681_v4 = vrot.slane %v19162_v0, %v10821_v31  ;;  %v19164_v46 = vld [vmem:[#allocation23_spill] sm:$0xff]  ;;  %v19165_v2 = vld [vmem:[#allocation24_spill] sm:$0xff]  ;;  %v19168_v11 = vld [vmem:[#allocation38_spill] sm:$0xff] }
 0x208   :  { %v12394_v59 = vpop.xlane.xlu1 %783  ;;  %1117 = vrot.lane.b32.xlu1 %v9937_v49, %s10486_s12  ;;  %v12400_v50 = vpop.xlane.xlu0 %780  ;;  %v5638_v49 = vsel %vm4889_vm10, %v5637_v61, %v5633_v8  ;;  %v5677_v20 = vsel %vm4833_vm2, %v5676_v3, %v5672_v34  ;;  %v5686_v58 = vrot.slane %v19163_v37, %v10850_v48  ;;  %v5583_v55 = vrot.slane %v19164_v46, %v10891_v13  ;;  %v9943_v8 = vld [vmem:[%s19005_s0 + $0x1c8] sm:$0xff]  ;;  %v9944_v34 = vld [vmem:[%s19005_s0 + $0x1d0] sm:$0xff] }
 0x209   :  { %1119 = vrot.lane.b32.xlu0 %v9938_v22, %s10486_s12  ;;  %v5760_v1 = vrot.slane %v12323_v5, %v10912_v33  ;;  %v5751_v61 = vsel %vm4875_vm8, %v5750_v51, %v5746_v47  ;;  %v5578_v60 = vrot.slane %v19165_v2, %v10858_v56  ;;  %v5652_v3 = vrot.slane %v19166_v41, %v10919_v42  ;;  %v19167_v5 = vld [vmem:[#allocation35_spill] sm:$0xff] }
 0x20a   :  { %v5756_v6 = vsel %vm19022_vm9, %v5755_v12, %v5751_v61  ;;  %v5691_v51 = vrot.slane %v19167_v5, %v10836_v40  ;;  %v5682_v39 = vsel %vm4840_vm3, %v5681_v4, %v5677_v20  ;;  %vm19066_vm9 = vcmask 1045509   ;;  %v9945_v61 = vld [vmem:[%s19005_s0 + $0x1d8] sm:$0xff] }
 0x20b   :  { %v5687_v12 = vsel %vm4847_vm4, %v5686_v58, %v5682_v39  ;;  %v5770_v0 = vrot.slane %v12360_v15, %v10922_v43  ;;  %v5761_v4 = vsel %vm4889_vm10, %v5760_v1, %v5756_v6  ;;  %v5775_v37 = vrot.slane %v12400_v50, %v10919_v42  ;;  %v19171_v50 = vld [vmem:[#allocation29_spill] sm:$0xff] }
 0x20c   :  { %v790_v54 = vpop.xlane.xlu1 %789  ;;  %1121 = vrot.lane.b32.xlu1 %v9939_v18, %s10486_s12  ;;  %v12435_v25 = vpop.xlane.xlu0 %786  ;;  %v5692_v46 = vsel %vm4854_vm5, %v5691_v51, %v5687_v12  ;;  %v5662_v2 = vrot.slane %v19171_v50, %v19158_v36  ;;  %v5780_v41 = vrot.slane %v12394_v59, %v19155_v62  ;;  %v5535_v59 = vsel %vm19072_vm14, %v5534_v28, %v12443_v63  ;;  %v9952_v50 = vld [vmem:[%s19005_s0 + $0x210] sm:$0xff] }
 0x20d   :  { %1123 = vrot.lane.b32.xlu0 %v9940_v19, %s10486_s12  ;;  %v5790_v24 = vrot.slane %v790_v54, %v10818_v30  ;;  %v5765_v54 = vrot.slane %v12366_v44, %v10909_v29  ;;  %v5643_v19 = vsel %vm19023_vm11, %v5642_v38, %v5638_v49  ;;  %v5696_v38 = vrot.slane %v19168_v11, %v10861_v57 }
 0x20e   :  { %v5648_v47 = vsel %vm19151_vm0, %v5647_v52, %v5643_v19  ;;  %vm19065_vm0 = vcmask 1046534   ;;  %v5540_v10 = vsel %vm19067_vm15, %v5539_v9, %v5535_v59 }
 0x20f   :  { %v5766_v20 = vsel %vm19023_vm11, %v5765_v54, %v5761_v4  ;;  %v5653_v15 = vsel %vm19073_vm13, %v5652_v3, %v5648_v47  ;;  %vm19173_vm11 = vcmask 851712   ;;  %v9947_v47 = vld [vmem:[%s19005_s0 + $0x1e8] sm:$0xff] }
 0x210   :  { %v796_v22 = vpop.xlane.xlu1 %795  ;;  %1125 = vrot.lane.b32.xlu1 %v9941_v23, %s10486_s12  ;;  %v793_v14 = vpop.xlane.xlu0 %792  ;;  %v19169_v23 = vld [vmem:[#allocation30_spill] sm:$0xff]  ;;  %v5771_v3 = vsel %vm19173_vm11, %v5770_v0, %v5766_v20  ;;  %vm19064_vm11 = vcmask 1047559  }
 0x211   :  { %v5794_v17 = vrot.slane %v793_v14, %v10824_v32  ;;  %1127 = vrot.lane.b32.xlu0 %v9942_v27, %s10486_s12  ;;  %v5799_v26 = vrot.slane %v796_v22, %v10831_v35  ;;  %v5657_v14 = vrot.slane %v19169_v23, %v19155_v62  ;;  %v5776_v39 = vsel %vm19073_vm13, %v5775_v37, %v5771_v3  ;;  %v9956_v3 = vld [vmem:[%s19005_s0 + $0x230] sm:$0xff] }
 0x212   :  { %v5781_v16 = vsel %vm19072_vm14, %v5780_v41, %v5776_v39  ;;  %v9958_v39 = vld [vmem:[%s19005_s0 + $0x240] sm:$0xff] }
 0x213   :  { %v5795_v18 = vsel %vm4826_vm1, %v5794_v17, %v5790_v24  ;;  %v5579_v24 = vsel %vm4868_vm7, %v5578_v60, %v5574_v53  ;;  %v19170_v17 = vld [vmem:[#allocation37_spill] sm:$0xff]  ;;  %v5697_v53 = vsel %vm4861_vm6, %v5696_v38, %v5692_v46  ;;  %v19172_v60 = vld [vmem:[#allocation39_spill] sm:$0xff]  ;;  %v5658_v51 = vsel %vm19072_vm14, %v5657_v14, %v5653_v15  ;;  %v9950_v15 = vld [vmem:[%s19005_s0 + $0x200] sm:$0xff] }
 0x214   :  { %v802_v45 = vpop.xlane.xlu1 %801  ;;  %1129 = vrot.lane.b32.xlu1 %v9943_v8, %s10486_s12  ;;  %v799_v44 = vpop.xlane.xlu0 %798  ;;  %v5800_v22 = vsel %vm4833_vm2, %v5799_v26, %v5795_v18  ;;  %v5701_v27 = vrot.slane %v19170_v17, %v10858_v56  ;;  %v5706_v6 = vrot.slane %v19172_v60, %v10891_v13  ;;  %v9946_v18 = vld [vmem:[%s19005_s0 + $0x1e0] sm:$0xff]  ;;  %v5584_v11 = vsel %vm4875_vm8, %v5583_v55, %v5579_v24  ;;  %v19174_v38 = vld [vmem:[#allocation19_spill] sm:$0xff] }
 0x215   :  { %v5804_v49 = vrot.slane %v799_v44, %v10821_v31  ;;  %1131 = vrot.lane.b32.xlu0 %v9944_v34, %s10486_s12  ;;  %v5809_v52 = vrot.slane %v802_v45, %v10850_v48  ;;  %v5785_v45 = vrot.slane %v12435_v25, %v19158_v36  ;;  %v9948_v34 = vld [vmem:[%s19005_s0 + $0x1f0] sm:$0xff] }
 0x216   :  { %v5702_v25 = vsel %vm4868_vm7, %v5701_v27, %v5697_v53 }
 0x217   :  { %v5805_v58 = vsel %vm4840_vm3, %v5804_v49, %v5800_v22  ;;  %v5848_v49 = vsel %vm19024_vm12, %v12438_v21, %v19174_v38  ;;  %v5707_v55 = vsel %vm4875_vm8, %v5706_v6, %v5702_v25  ;;  %v5663_v21 = vsel %vm19067_vm15, %v5662_v2, %v5658_v51  ;;  %v9949_v22 = vld [vmem:[%s19005_s0 + $0x1f8] sm:$0xff]  ;;  %v9954_v6 = vld [vmem:[%s19005_s0 + $0x220] sm:$0xff]  ;;  %v9963_v38 = vld [vmem:[%s19005_s0 + $0x268] sm:$0xff] }
 0x218   :  { %v808_v1 = vpop.xlane.xlu1 %807  ;;  %1133 = vrot.lane.b32.xlu1 %v9945_v61, %s10486_s12  ;;  %v805_v26 = vpop.xlane.xlu0 %804  ;;  %v5810_v5 = vsel %vm4847_vm4, %v5809_v52, %v5805_v58  ;;  %v5849_v4 = vsel %vm19066_vm9, %v5584_v11, %v5848_v49  ;;  %vm19063_vm12 = vcmask 588800   ;;  %v5786_v52 = vsel %vm19067_vm15, %v5785_v45, %v5781_v16  ;;  %v19175_v58 = vld [vmem:[#allocation20_spill] sm:$0xff]  ;;  %v9953_v2 = vld [vmem:[%s19005_s0 + $0x218] sm:$0xff]  ;;  %v9959_v45 = vld [vmem:[%s19005_s0 + $0x248] sm:$0xff] }
 0x219   :  { %v5814_v54 = vrot.slane %v805_v26, %v10836_v40  ;;  %1135 = vrot.lane.b32.xlu0 %v9946_v18, %s10486_s12  ;;  %v5819_v19 = vrot.slane %v808_v1, %v10861_v57  ;;  %v5850_v37 = vsel %vm19065_vm0, %v5707_v55, %v5849_v4  ;;  %v5840_v24 = vsel %vm19066_vm9, %v5540_v10, %v19175_v58  ;;  %v9951_v1 = vld [vmem:[%s19005_s0 + $0x208] sm:$0xff]  ;;  %v9962_v25 = vld [vmem:[%s19005_s0 + $0x260] sm:$0xff]  ;;  %v9968_v4 = vld [vmem:[%s19005_s0 + $0x290] sm:$0xff] }
 0x21a   :  { %v5842_v27 = vsel %vm19065_vm0, %v5663_v21, %v5840_v24  ;;  %v9967_v21 = vld [vmem:[%s19005_s0 + $0x288] sm:$0xff] }
 0x21b   :  { %v5815_v8 = vsel %vm4854_vm5, %v5814_v54, %v5810_v5  ;;  %v5844_v46 = vsel %vm19064_vm11, %v5786_v52, %v5842_v27  ;;  %v9955_v54 = vld [vmem:[%s19005_s0 + $0x228] sm:$0xff]  ;;  %v9969_v52 = vld [vmem:[%s19005_s0 + $0x298] sm:$0xff] }
 0x21c   :  { %v814_v44 = vpop.xlane.xlu1 %813  ;;  %1137 = vrot.lane.b32.xlu1 %v9947_v47, %s10486_s12  ;;  %v811_v12 = vpop.xlane.xlu0 %810  ;;  %v5820_v0 = vsel %vm4861_vm6, %v5819_v19, %v5815_v8  ;;  %v9957_v19 = vld [vmem:[%s19005_s0 + $0x238] sm:$0xff]  ;;  %v9971_v58 = vld [vmem:[%s19005_s0 + $0x2a8] sm:$0xff] }
 0x21d   :  { %v5829_v28 = vrot.slane %v814_v44, %v10891_v13  ;;  %v5824_v63 = vrot.slane %v811_v12, %v10858_v56  ;;  %1139 = vrot.lane.b32.xlu0 %v9948_v34, %s10486_s12  ;;  %v9960_v44 = vld [vmem:[%s19005_s0 + $0x250] sm:$0xff]  ;;  %v9961_v47 = vld [vmem:[%s19005_s0 + $0x258] sm:$0xff] }
 0x21e   :  { %v9973_v27 = vld [vmem:[%s19005_s0 + $0x2b8] sm:$0xff] }
 0x21f   :  { %v5825_v9 = vsel %vm4868_vm7, %v5824_v63, %v5820_v0  ;;  %v9965_v63 = vld [vmem:[%s19005_s0 + $0x278] sm:$0xff]  ;;  %v9966_v0 = vld [vmem:[%s19005_s0 + $0x280] sm:$0xff] }
 0x220   :  { %1141 = vrot.lane.b32.xlu1 %v9949_v22, %s10486_s12  ;;  %v12588_v23 = vpop.permute.xlu1 %1017  ;;  %v12590_v14 = vpop.permute.xlu0 %1015  ;;  %v5830_v20 = vsel %vm4875_vm8, %v5829_v28, %v5825_v9  ;;  %v9964_v28 = vld [vmem:[%s19005_s0 + $0x270] sm:$0xff] }
 0x221   :  { %1143 = vrot.lane.b32.xlu0 %v9950_v15, %s10486_s12  ;;  %v5851_v17 = vsel %vm19064_vm11, %v5830_v20, %v5850_v37  ;;  %v9970_v37 = vld [vmem:[%s19005_s0 + $0x2a0] sm:$0xff] }
 0x222   :  { %9779 = vmatprep.mubr.msk.f32.mxu0 %vm19063_vm12, %v5851_v17  ;;  %9783 = vmatprep.mubr.msk.f32.mxu1 %vm19063_vm12, %v5851_v17  ;;  %v9972_v17 = vld [vmem:[%s19005_s0 + $0x2b0] sm:$0xff]  ;;  %vm19275_vm12 = vcmask 31744  }
 0x223   :  { %9646 = vmatmul.mubr.f32.vlgmr.msra.gmra.mrb[0].mxu0 %v5844_v46  ;;  %9735 = vmatmul.mubr.f32.vlgmr.msra.gmra.mrb[0].mxu1 %v5844_v46  ;;  %vm19276_vm11 = vmmov %vm19275_vm12 }
 0x224   :  { %1145 = vrot.lane.b32.xlu1 %v9951_v1, %s10486_s12  ;;  %v12609_v61 = vpop.permute.xlu1 %1019  ;;  %v12611_v26 = vpop.permute.xlu0 %1023  ;;  %vm19278_vm0 = vmmov %vm19276_vm11 }
 0x225   :  { %1147 = vrot.lane.b32.xlu0 %v9952_v50, %s10486_s12  ;;  %v9974_v50 = vld [vmem:[%s19005_s0 + $0x2c0] sm:$0xff]  ;;  %vm19279_vm9 = vmmov %vm19278_vm0 }
 0x226   :  { %vm19286_vm15 = vmmov %vm19278_vm0 }
 0x228   :  { %1149 = vrot.lane.b32.xlu1 %v9953_v2, %s10486_s12  ;;  %v12621_v53 = vpop.permute.xlu1 %1021  ;;  %v12623_v60 = vpop.permute.xlu0 %1027  ;;  %v9975_v2 = vld [vmem:[%s19005_s0 + $0x2c8] sm:$0xff] }
 0x229   :  { %1151 = vrot.lane.b32.xlu0 %v9954_v6, %s10486_s12 }
 0x22c   :  { %1153 = vrot.lane.b32.xlu1 %v9955_v54, %s10486_s12  ;;  %v12633_v18 = vpop.permute.xlu1 %1025  ;;  %v12635_v41 = vpop.permute.xlu0 %1031 }
 0x22d   :  { %1155 = vrot.lane.b32.xlu0 %v9956_v3, %s10486_s12  ;;  %v9976_v3 = vld [vmem:[%s19005_s0 + $0x2d0] sm:$0xff] }
 0x230   :  { %1157 = vrot.lane.b32.xlu1 %v9957_v19, %s10486_s12  ;;  %v12645_v5 = vpop.permute.xlu1 %1029  ;;  %v12647_v51 = vpop.permute.xlu0 %1035  ;;  %v9977_v19 = vld [vmem:[%s19005_s0 + $0x2d8] sm:$0xff] }
 0x231   :  { %1159 = vrot.lane.b32.xlu0 %v9958_v39, %s10486_s12 }
 0x234   :  { %1161 = vrot.lane.b32.xlu1 %v9959_v45, %s10486_s12  ;;  %v12657_v8 = vpop.permute.xlu1 %1033  ;;  %v12659_v59 = vpop.permute.xlu0 %1039 }
 0x235   :  { %1163 = vrot.lane.b32.xlu0 %v9960_v44, %s10486_s12  ;;  %v9978_v44 = vld [vmem:[%s19005_s0 + $0x2e0] sm:$0xff] }
 0x238   :  { %1165 = vrot.lane.b32.xlu1 %v9961_v47, %s10486_s12  ;;  %v12669_v12 = vpop.permute.xlu1 %1037  ;;  %v12671_v11 = vpop.permute.xlu0 %1043  ;;  %v9979_v47 = vld [vmem:[%s19005_s0 + $0x2e8] sm:$0xff] }
 0x239   :  { %1167 = vrot.lane.b32.xlu0 %v9962_v25, %s10486_s12 }
 0x23c   :  { %1169 = vrot.lane.b32.xlu1 %v9963_v38, %s10486_s12  ;;  %v12681_v49 = vpop.permute.xlu1 %1041  ;;  %v12683_v10 = vpop.permute.xlu0 %1047 }
 0x23d   :  { %1171 = vrot.lane.b32.xlu0 %v9964_v28, %s10486_s12  ;;  %v9980_v28 = vld [vmem:[%s19005_s0 + $0x2f0] sm:$0xff] }
 0x240   :  { %1173 = vrot.lane.b32.xlu1 %v9965_v63, %s10486_s12  ;;  %v12693_v34 = vpop.permute.xlu1 %1045  ;;  %v12695_v55 = vpop.permute.xlu0 %1051  ;;  %v9981_v63 = vld [vmem:[%s19005_s0 + $0x2f8] sm:$0xff] }
 0x241   :  { %1175 = vrot.lane.b32.xlu0 %v9966_v0, %s10486_s12 }
 0x244   :  { %1177 = vrot.lane.b32.xlu1 %v9967_v21, %s10486_s12  ;;  %v12705_v16 = vpop.permute.xlu1 %1049  ;;  %v12707_v9 = vpop.permute.xlu0 %1055 }
 0x245   :  { %1179 = vrot.lane.b32.xlu0 %v9968_v4, %s10486_s12  ;;  %v9982_v4 = vld [vmem:[%s19005_s0 + $0x300] sm:$0xff] }
 0x248   :  { %1181 = vrot.lane.b32.xlu1 %v9969_v52, %s10486_s12  ;;  %v12717_v22 = vpop.permute.xlu1 %1053  ;;  %v12719_v20 = vpop.permute.xlu0 %1059  ;;  %v9983_v52 = vld [vmem:[%s19005_s0 + $0x308] sm:$0xff] }
 0x249   :  { %1183 = vrot.lane.b32.xlu0 %v9970_v37, %s10486_s12 }
 0x24c   :  { %1185 = vrot.lane.b32.xlu1 %v9971_v58, %s10486_s12  ;;  %v12729_v24 = vpop.permute.xlu1 %1057  ;;  %v12731_v15 = vpop.permute.xlu0 %1063 }
 0x24d   :  { %1187 = vrot.lane.b32.xlu0 %v9972_v17, %s10486_s12  ;;  %v9984_v17 = vld [vmem:[%s19005_s0 + $0x310] sm:$0xff] }
 0x250   :  { %1189 = vrot.lane.b32.xlu1 %v9973_v27, %s10486_s12  ;;  %v12741_v46 = vpop.permute.xlu1 %1061  ;;  %v12743_v1 = vpop.permute.xlu0 %1067  ;;  %v9985_v27 = vld [vmem:[%s19005_s0 + $0x318] sm:$0xff] }
 0x251   :  { %1191 = vrot.lane.b32.xlu0 %v9974_v50, %s10486_s12 }
 0x254   :  { %1193 = vrot.lane.b32.xlu1 %v9975_v2, %s10486_s12  ;;  %v12753_v6 = vpop.permute.xlu1 %1065  ;;  %v12755_v54 = vpop.permute.xlu0 %1071 }
 0x255   :  { %1195 = vrot.lane.b32.xlu0 %v9976_v3, %s10486_s12  ;;  %v9986_v3 = vld [vmem:[%s19005_s0 + $0x320] sm:$0xff] }
 0x258   :  { %1197 = vrot.lane.b32.xlu1 %v9977_v19, %s10486_s12  ;;  %v12765_v39 = vpop.permute.xlu1 %1069  ;;  %v12767_v45 = vpop.permute.xlu0 %1075  ;;  %v9987_v19 = vld [vmem:[%s19005_s0 + $0x328] sm:$0xff] }
 0x259   :  { %1199 = vrot.lane.b32.xlu0 %v9978_v44, %s10486_s12 }
 0x25c   :  { %1201 = vrot.lane.b32.xlu1 %v9979_v47, %s10486_s12  ;;  %v12777_v25 = vpop.permute.xlu1 %1073  ;;  %v12779_v38 = vpop.permute.xlu0 %1079 }
 0x25d   :  { %1203 = vrot.lane.b32.xlu0 %v9980_v28, %s10486_s12  ;;  %v9988_v28 = vld [vmem:[%s19005_s0 + $0x330] sm:$0xff] }
 0x260   :  { %1205 = vrot.lane.b32.xlu1 %v9981_v63, %s10486_s12  ;;  %v12789_v0 = vpop.permute.xlu1 %1077  ;;  %v12791_v21 = vpop.permute.xlu0 %1083  ;;  %v9989_v63 = vld [vmem:[%s19005_s0 + $0x338] sm:$0xff] }
 0x261   :  { %1207 = vrot.lane.b32.xlu0 %v9982_v4, %s10486_s12 }
 0x264   :  { %1209 = vrot.lane.b32.xlu1 %v9983_v52, %s10486_s12  ;;  %v12801_v37 = vpop.permute.xlu1 %1081  ;;  %v12803_v58 = vpop.permute.xlu0 %1087 }
 0x265   :  { %1211 = vrot.lane.b32.xlu0 %v9984_v17, %s10486_s12  ;;  %v9990_v17 = vld [vmem:[%s19005_s0 + $0x340] sm:$0xff] }
 0x268   :  { %1213 = vrot.lane.b32.xlu1 %v9985_v27, %s10486_s12  ;;  %v12813_v50 = vpop.permute.xlu1 %1085  ;;  %v12815_v2 = vpop.permute.xlu0 %1091  ;;  %v9991_v27 = vld [vmem:[%s19005_s0 + $0x348] sm:$0xff] }
 0x269   :  { %1215 = vrot.lane.b32.xlu0 %v9986_v3, %s10486_s12 }
 0x26c   :  { %1217 = vrot.lane.b32.xlu1 %v9987_v19, %s10486_s12  ;;  %v12825_v44 = vpop.permute.xlu1 %1089  ;;  %v12827_v47 = vpop.permute.xlu0 %1095 }
 0x26d   :  { %1219 = vrot.lane.b32.xlu0 %v9988_v28, %s10486_s12  ;;  %v9992_v28 = vld [vmem:[%s19005_s0 + $0x350] sm:$0xff] }
 0x270   :  { %1221 = vrot.lane.b32.xlu1 %v9989_v63, %s10486_s12  ;;  %v12837_v4 = vpop.permute.xlu1 %1093  ;;  %v12839_v52 = vpop.permute.xlu0 %1099  ;;  %v9993_v63 = vld [vmem:[%s19005_s0 + $0x358] sm:$0xff] }
 0x271   :  { %1223 = vrot.lane.b32.xlu0 %v9990_v17, %s10486_s12 }
 0x274   :  { %1225 = vrot.lane.b32.xlu1 %v9991_v27, %s10486_s12  ;;  %v12849_v3 = vpop.permute.xlu1 %1097  ;;  %v12851_v19 = vpop.permute.xlu0 %1103  ;;  %v9994_v27 = vld [vmem:[%s19005_s0 + $0x360] sm:$0xff] }
 0x275   :  { %1227 = vrot.lane.b32.xlu0 %v9992_v28, %s10486_s12  ;;  %v9995_v28 = vld [vmem:[%s19005_s0 + $0x368] sm:$0xff] }
 0x278   :  { %1229 = vrot.lane.b32.xlu1 %v9993_v63, %s10486_s12  ;;  %v12861_v17 = vpop.permute.xlu1 %1101  ;;  %v12863_v62 = vpop.permute.xlu0 %1107  ;;  %v9996_v63 = vld [vmem:[%s19005_s0 + $0x370] sm:$0xff] }
 0x279   :  { %1231 = vrot.lane.b32.xlu0 %v9994_v27, %s10486_s12  ;;  %v9997_v27 = vld [vmem:[%s19005_s0 + $0x378] sm:$0xff] }
 0x27c   :  { %1233 = vrot.lane.b32.xlu1 %v9995_v28, %s10486_s12  ;;  %v12873_v36 = vpop.permute.xlu1 %1105  ;;  %v12875_v43 = vpop.permute.xlu0 %1111  ;;  %v9998_v28 = vld [vmem:[%s19005_s0 + $0x380] sm:$0xff] }
 0x27d   :  { %19176 = vst [vmem:[#allocation26_spill] sm:$0xff] %v12875_v43  ;;  %1235 = vrot.lane.b32.xlu0 %v9996_v63, %s10486_s12  ;;  %v9999_v63 = vld [vmem:[%s19005_s0 + $0x388] sm:$0xff] }
 0x280   :  { %1237 = vrot.lane.b32.xlu1 %v9997_v27, %s10486_s12  ;;  %v12885_v42 = vpop.permute.xlu1 %1109  ;;  %v12887_v33 = vpop.permute.xlu0 %1115  ;;  %v10000_v27 = vld [vmem:[%s19005_s0 + $0x390] sm:$0xff] }
 0x281   :  { %19177 = vst [vmem:[#allocation31_spill] sm:$0xff] %v12887_v33  ;;  %1239 = vrot.lane.b32.xlu0 %v9998_v28, %s10486_s12  ;;  %v10001_v28 = vld [vmem:[%s19005_s0 + $0x398] sm:$0xff] }
 0x284   :  { %1241 = vrot.lane.b32.xlu1 %v9999_v63, %s10486_s12  ;;  %v12897_v29 = vpop.permute.xlu1 %1113  ;;  %v12899_v13 = vpop.permute.xlu0 %1119  ;;  %v10002_v63 = vld [vmem:[%s19005_s0 + $0x3a0] sm:$0xff] }
 0x285   :  { %19178 = vst [vmem:[#allocation32_spill] sm:$0xff] %v12899_v13  ;;  %1243 = vrot.lane.b32.xlu0 %v10000_v27, %s10486_s12  ;;  %v10003_v27 = vld [vmem:[%s19005_s0 + $0x3a8] sm:$0xff] }
 0x288   :  { %1245 = vrot.lane.b32.xlu1 %v10001_v28, %s10486_s12  ;;  %v12909_v7 = vpop.permute.xlu1 %1117  ;;  %v12911_v57 = vpop.permute.xlu0 %1123  ;;  %v10004_v28 = vld [vmem:[%s19005_s0 + $0x3b0] sm:$0xff] }
 0x289   :  { %19179 = vst [vmem:[#allocation21_spill] sm:$0xff] %v12909_v7  ;;  %19180 = vst [vmem:[#allocation34_spill] sm:$0xff] %v12911_v57  ;;  %1247 = vrot.lane.b32.xlu0 %v10002_v63, %s10486_s12  ;;  %v10005_v63 = vld [vmem:[%s19005_s0 + $0x3b8] sm:$0xff] }
 0x28c   :  { %1249 = vrot.lane.b32.xlu1 %v10003_v27, %s10486_s12  ;;  %v12921_v56 = vpop.permute.xlu1 %1121  ;;  %v12923_v48 = vpop.permute.xlu0 %1127  ;;  %v10006_v27 = vld [vmem:[%s19005_s0 + $0x3c0] sm:$0xff] }
 0x28d   :  { %19181 = vst [vmem:[#allocation22_spill] sm:$0xff] %v12921_v56  ;;  %19182 = vst [vmem:[#allocation25_spill] sm:$0xff] %v12923_v48  ;;  %1251 = vrot.lane.b32.xlu0 %v10004_v28, %s10486_s12  ;;  %v10007_v28 = vld [vmem:[%s19005_s0 + $0x3c8] sm:$0xff] }
 0x290   :  { %1253 = vrot.lane.b32.xlu1 %v10005_v63, %s10486_s12  ;;  %v12933_v40 = vpop.permute.xlu1 %1125  ;;  %v12935_v31 = vpop.permute.xlu0 %1131  ;;  %v10008_v63 = vld [vmem:[%s19005_s0 + $0x3d0] sm:$0xff] }
 0x291   :  { %19183 = vst [vmem:[#allocation28_spill] sm:$0xff] %v12933_v40  ;;  %19184 = vst [vmem:[#allocation33_spill] sm:$0xff] %v12935_v31  ;;  %1255 = vrot.lane.b32.xlu0 %v10006_v27, %s10486_s12  ;;  %v10009_v27 = vld [vmem:[%s19005_s0 + $0x3d8] sm:$0xff]  ;;  %v10054_v40 = vld [vmem:[%s19005_s0 + $0x540] sm:$0xff] }
 0x294   :  { %1257 = vrot.lane.b32.xlu1 %v10007_v28, %s10486_s12  ;;  %v12945_v35 = vpop.permute.xlu1 %1129  ;;  %v12947_v32 = vpop.permute.xlu0 %1135  ;;  %v10010_v28 = vld [vmem:[%s19005_s0 + $0x3e0] sm:$0xff] }
 0x295   :  { %19185 = vst [vmem:[#allocation36_spill] sm:$0xff] %v12945_v35  ;;  %19186 = vst [vmem:[#allocation23_spill] sm:$0xff] %v12947_v32  ;;  %1259 = vrot.lane.b32.xlu0 %v10008_v63, %s10486_s12  ;;  %v10011_v63 = vld [vmem:[%s19005_s0 + $0x3e8] sm:$0xff]  ;;  %v10053_v35 = vld [vmem:[%s19005_s0 + $0x538] sm:$0xff] }
 0x298   :  { %1261 = vrot.lane.b32.xlu1 %v10009_v27, %s10486_s12  ;;  %v12957_v30 = vpop.permute.xlu1 %1133  ;;  %v12959_v31 = vpop.permute.xlu0 %1139  ;;  %v10012_v27 = vld [vmem:[%s19005_s0 + $0x3f0] sm:$0xff] }
 0x299   :  { %19187 = vst [vmem:[#allocation24_spill] sm:$0xff] %v12957_v30  ;;  %19188 = vst [vmem:[#allocation27_spill] sm:$0xff] %v12959_v31  ;;  %1263 = vrot.lane.b32.xlu0 %v10010_v28, %s10486_s12  ;;  %v10013_v28 = vld [vmem:[%s19005_s0 + $0x3f8] sm:$0xff] }
 0x29c   :  { %1265 = vrot.lane.b32.xlu1 %v10011_v63, %s10486_s12  ;;  %v12969_v32 = vpop.permute.xlu1 %1137  ;;  %v12971_v48 = vpop.permute.xlu0 %1143  ;;  %v10014_v63 = vld [vmem:[%s19005_s0 + $0x400] sm:$0xff] }
 0x29d   :  { %19189 = vst [vmem:[#allocation35_spill] sm:$0xff] %v12969_v32  ;;  %19190 = vst [vmem:[#allocation38_spill] sm:$0xff] %v12971_v48  ;;  %1267 = vrot.lane.b32.xlu0 %v10012_v27, %s10486_s12  ;;  %v10015_v27 = vld [vmem:[%s19005_s0 + $0x408] sm:$0xff] }
 0x2a0   :  { %1269 = vrot.lane.b32.xlu1 %v10013_v28, %s10486_s12  ;;  %v12981_v31 = vpop.permute.xlu1 %1141  ;;  %v12983_v30 = vpop.permute.xlu0 %1147  ;;  %v10016_v28 = vld [vmem:[%s19005_s0 + $0x410] sm:$0xff] }
 0x2a1   :  { %19191 = vst [vmem:[#allocation30_spill] sm:$0xff] %v12981_v31  ;;  %19192 = vst [vmem:[#allocation37_spill] sm:$0xff] %v12983_v30  ;;  %1271 = vrot.lane.b32.xlu0 %v10014_v63, %s10486_s12  ;;  %v10017_v63 = vld [vmem:[%s19005_s0 + $0x418] sm:$0xff] }
 0x2a4   :  { %1273 = vrot.lane.b32.xlu1 %v10015_v27, %s10486_s12  ;;  %v12993_v48 = vpop.permute.xlu1 %1145  ;;  %v12995_v32 = vpop.permute.xlu0 %1151  ;;  %v10018_v27 = vld [vmem:[%s19005_s0 + $0x420] sm:$0xff] }
 0x2a5   :  { %19193 = vst [vmem:[#allocation29_spill] sm:$0xff] %v12993_v48  ;;  %19194 = vst [vmem:[#allocation39_spill] sm:$0xff] %v12995_v32  ;;  %1275 = vrot.lane.b32.xlu0 %v10016_v28, %s10486_s12  ;;  %v10019_v28 = vld [vmem:[%s19005_s0 + $0x428] sm:$0xff] }
 0x2a8   :  { %1277 = vrot.lane.b32.xlu1 %v10017_v63, %s10486_s12  ;;  %v13005_v30 = vpop.permute.xlu1 %1149  ;;  %v13007_v31 = vpop.permute.xlu0 %1155  ;;  %v10020_v63 = vld [vmem:[%s19005_s0 + $0x430] sm:$0xff] }
 0x2a9   :  { %19195 = vst [vmem:[#allocation19_spill] sm:$0xff] %v13005_v30  ;;  %19196 = vst [vmem:[#allocation20_spill] sm:$0xff] %v13007_v31  ;;  %1279 = vrot.lane.b32.xlu0 %v10018_v27, %s10486_s12  ;;  %v10021_v27 = vld [vmem:[%s19005_s0 + $0x438] sm:$0xff] }
 0x2ac   :  { %1281 = vrot.lane.b32.xlu1 %v10019_v28, %s10486_s12  ;;  %v13017_v32 = vpop.permute.xlu1 %1153  ;;  %v13019_v48 = vpop.permute.xlu0 %1159  ;;  %v10022_v28 = vld [vmem:[%s19005_s0 + $0x440] sm:$0xff] }
 0x2ad   :  { %19197 = vst [vmem:[#allocation40_spill] sm:$0xff] %v13017_v32  ;;  %19198 = vst [vmem:[#allocation41_spill] sm:$0xff] %v13019_v48  ;;  %1283 = vrot.lane.b32.xlu0 %v10020_v63, %s10486_s12  ;;  %v10023_v63 = vld [vmem:[%s19005_s0 + $0x448] sm:$0xff] }
 0x2b0   :  { %1285 = vrot.lane.b32.xlu1 %v10021_v27, %s10486_s12  ;;  %v13029_v31 = vpop.permute.xlu1 %1157  ;;  %v13031_v30 = vpop.permute.xlu0 %1163  ;;  %v10024_v27 = vld [vmem:[%s19005_s0 + $0x450] sm:$0xff] }
 0x2b1   :  { %19199 = vst [vmem:[#allocation42_spill] sm:$0xff] %v13029_v31  ;;  %19200 = vst [vmem:[#allocation43_spill] sm:$0xff] %v13031_v30  ;;  %1287 = vrot.lane.b32.xlu0 %v10022_v28, %s10486_s12  ;;  %v10025_v28 = vld [vmem:[%s19005_s0 + $0x458] sm:$0xff] }
 0x2b4   :  { %1289 = vrot.lane.b32.xlu1 %v10023_v63, %s10486_s12  ;;  %v13041_v48 = vpop.permute.xlu1 %1161  ;;  %v13043_v32 = vpop.permute.xlu0 %1167  ;;  %v10026_v63 = vld [vmem:[%s19005_s0 + $0x460] sm:$0xff] }
 0x2b5   :  { %19201 = vst [vmem:[#allocation44_spill] sm:$0xff] %v13041_v48  ;;  %19202 = vst [vmem:[#allocation45_spill] sm:$0xff] %v13043_v32  ;;  %1291 = vrot.lane.b32.xlu0 %v10024_v27, %s10486_s12  ;;  %v10027_v27 = vld [vmem:[%s19005_s0 + $0x468] sm:$0xff] }
 0x2b8   :  { %1293 = vrot.lane.b32.xlu1 %v10025_v28, %s10486_s12  ;;  %v13053_v30 = vpop.permute.xlu1 %1165  ;;  %v13055_v31 = vpop.permute.xlu0 %1171  ;;  %v10028_v28 = vld [vmem:[%s19005_s0 + $0x470] sm:$0xff] }
 0x2b9   :  { %19203 = vst [vmem:[#allocation46_spill] sm:$0xff] %v13053_v30  ;;  %19204 = vst [vmem:[#allocation47_spill] sm:$0xff] %v13055_v31  ;;  %1295 = vrot.lane.b32.xlu0 %v10026_v63, %s10486_s12  ;;  %v10029_v63 = vld [vmem:[%s19005_s0 + $0x478] sm:$0xff] }
 0x2bc   :  { %1297 = vrot.lane.b32.xlu1 %v10027_v27, %s10486_s12  ;;  %v13065_v32 = vpop.permute.xlu1 %1169  ;;  %v13067_v48 = vpop.permute.xlu0 %1175  ;;  %v10030_v27 = vld [vmem:[%s19005_s0 + $0x480] sm:$0xff] }
 0x2bd   :  { %19205 = vst [vmem:[#allocation48_spill] sm:$0xff] %v13065_v32  ;;  %19206 = vst [vmem:[#allocation49_spill] sm:$0xff] %v13067_v48  ;;  %1299 = vrot.lane.b32.xlu0 %v10028_v28, %s10486_s12  ;;  %v10031_v28 = vld [vmem:[%s19005_s0 + $0x488] sm:$0xff] }
 0x2c0   :  { %1301 = vrot.lane.b32.xlu1 %v10029_v63, %s10486_s12  ;;  %v13077_v31 = vpop.permute.xlu1 %1173  ;;  %v13079_v30 = vpop.permute.xlu0 %1179  ;;  %v10032_v63 = vld [vmem:[%s19005_s0 + $0x490] sm:$0xff] }
 0x2c1   :  { %19207 = vst [vmem:[#allocation50_spill] sm:$0xff] %v13077_v31  ;;  %19208 = vst [vmem:[#allocation51_spill] sm:$0xff] %v13079_v30  ;;  %1303 = vrot.lane.b32.xlu0 %v10030_v27, %s10486_s12  ;;  %v10033_v27 = vld [vmem:[%s19005_s0 + $0x498] sm:$0xff] }
 0x2c4   :  { %1305 = vrot.lane.b32.xlu1 %v10031_v28, %s10486_s12  ;;  %v13089_v48 = vpop.permute.xlu1 %1177  ;;  %v13091_v32 = vpop.permute.xlu0 %1183  ;;  %v10034_v28 = vld [vmem:[%s19005_s0 + $0x4a0] sm:$0xff] }
 0x2c5   :  { %19209 = vst [vmem:[#allocation52_spill] sm:$0xff] %v13089_v48  ;;  %19210 = vst [vmem:[#allocation53_spill] sm:$0xff] %v13091_v32  ;;  %1307 = vrot.lane.b32.xlu0 %v10032_v63, %s10486_s12  ;;  %v10035_v63 = vld [vmem:[%s19005_s0 + $0x4a8] sm:$0xff] }
 0x2c8   :  { %1309 = vrot.lane.b32.xlu1 %v10033_v27, %s10486_s12  ;;  %v13101_v30 = vpop.permute.xlu1 %1181  ;;  %v13103_v31 = vpop.permute.xlu0 %1187  ;;  %v10036_v27 = vld [vmem:[%s19005_s0 + $0x4b0] sm:$0xff] }
 0x2c9   :  { %19211 = vst [vmem:[#allocation54_spill] sm:$0xff] %v13101_v30  ;;  %19212 = vst [vmem:[#allocation55_spill] sm:$0xff] %v13103_v31  ;;  %1311 = vrot.lane.b32.xlu0 %v10034_v28, %s10486_s12  ;;  %v10037_v28 = vld [vmem:[%s19005_s0 + $0x4b8] sm:$0xff] }
 0x2cc   :  { %1313 = vrot.lane.b32.xlu1 %v10035_v63, %s10486_s12  ;;  %v13113_v32 = vpop.permute.xlu1 %1185  ;;  %v13115_v48 = vpop.permute.xlu0 %1191  ;;  %v10038_v63 = vld [vmem:[%s19005_s0 + $0x4c0] sm:$0xff] }
 0x2cd   :  { %19213 = vst [vmem:[#allocation56_spill] sm:$0xff] %v13113_v32  ;;  %19214 = vst [vmem:[#allocation57_spill] sm:$0xff] %v13115_v48  ;;  %1315 = vrot.lane.b32.xlu0 %v10036_v27, %s10486_s12  ;;  %v10039_v27 = vld [vmem:[%s19005_s0 + $0x4c8] sm:$0xff] }
 0x2d0   :  { %1317 = vrot.lane.b32.xlu1 %v10037_v28, %s10486_s12  ;;  %v13125_v31 = vpop.permute.xlu1 %1189  ;;  %v13127_v30 = vpop.permute.xlu0 %1195  ;;  %v10040_v28 = vld [vmem:[%s19005_s0 + $0x4d0] sm:$0xff] }
 0x2d1   :  { %19215 = vst [vmem:[#allocation58_spill] sm:$0xff] %v13125_v31  ;;  %19216 = vst [vmem:[#allocation59_spill] sm:$0xff] %v13127_v30  ;;  %1319 = vrot.lane.b32.xlu0 %v10038_v63, %s10486_s12  ;;  %v10041_v63 = vld [vmem:[%s19005_s0 + $0x4d8] sm:$0xff] }
 0x2d4   :  { %1321 = vrot.lane.b32.xlu1 %v10039_v27, %s10486_s12  ;;  %v13137_v48 = vpop.permute.xlu1 %1193  ;;  %v13139_v32 = vpop.permute.xlu0 %1199  ;;  %v10042_v27 = vld [vmem:[%s19005_s0 + $0x4e0] sm:$0xff] }
 0x2d5   :  { %19217 = vst [vmem:[#allocation60_spill] sm:$0xff] %v13137_v48  ;;  %19218 = vst [vmem:[#allocation61_spill] sm:$0xff] %v13139_v32  ;;  %1323 = vrot.lane.b32.xlu0 %v10040_v28, %s10486_s12  ;;  %v10043_v28 = vld [vmem:[%s19005_s0 + $0x4e8] sm:$0xff] }
 0x2d8   :  { %1325 = vrot.lane.b32.xlu1 %v10041_v63, %s10486_s12  ;;  %v13149_v30 = vpop.permute.xlu1 %1197  ;;  %v13151_v31 = vpop.permute.xlu0 %1203  ;;  %v10044_v63 = vld [vmem:[%s19005_s0 + $0x4f0] sm:$0xff] }
 0x2d9   :  { %19219 = vst [vmem:[#allocation62_spill] sm:$0xff] %v13149_v30  ;;  %19220 = vst [vmem:[#allocation63_spill] sm:$0xff] %v13151_v31  ;;  %1327 = vrot.lane.b32.xlu0 %v10042_v27, %s10486_s12  ;;  %v10045_v27 = vld [vmem:[%s19005_s0 + $0x4f8] sm:$0xff] }
 0x2dc   :  { %1329 = vrot.lane.b32.xlu1 %v10043_v28, %s10486_s12  ;;  %v13161_v32 = vpop.permute.xlu1 %1201  ;;  %v13163_v48 = vpop.permute.xlu0 %1207  ;;  %v10046_v28 = vld [vmem:[%s19005_s0 + $0x500] sm:$0xff] }
 0x2dd   :  { %19221 = vst [vmem:[#allocation64_spill] sm:$0xff] %v13161_v32  ;;  %19222 = vst [vmem:[#allocation65_spill] sm:$0xff] %v13163_v48  ;;  %1331 = vrot.lane.b32.xlu0 %v10044_v63, %s10486_s12  ;;  %v10047_v63 = vld [vmem:[%s19005_s0 + $0x508] sm:$0xff] }
 0x2e0   :  { %1333 = vrot.lane.b32.xlu1 %v10045_v27, %s10486_s12  ;;  %v13173_v31 = vpop.permute.xlu1 %1205  ;;  %v13175_v30 = vpop.permute.xlu0 %1211  ;;  %v10048_v27 = vld [vmem:[%s19005_s0 + $0x510] sm:$0xff] }
 0x2e1   :  { %19223 = vst [vmem:[#allocation66_spill] sm:$0xff] %v13173_v31  ;;  %19224 = vst [vmem:[#allocation67_spill] sm:$0xff] %v13175_v30  ;;  %1335 = vrot.lane.b32.xlu0 %v10046_v28, %s10486_s12  ;;  %v10049_v28 = vld [vmem:[%s19005_s0 + $0x518] sm:$0xff] }
 0x2e4   :  { %1337 = vrot.lane.b32.xlu1 %v10047_v63, %s10486_s12  ;;  %v13185_v48 = vpop.permute.xlu1 %1209  ;;  %v13187_v32 = vpop.permute.xlu0 %1215  ;;  %v10050_v63 = vld [vmem:[%s19005_s0 + $0x520] sm:$0xff] }
 0x2e5   :  { %19225 = vst [vmem:[#allocation68_spill] sm:$0xff] %v13185_v48  ;;  %19226 = vst [vmem:[#allocation69_spill] sm:$0xff] %v13187_v32  ;;  %1339 = vrot.lane.b32.xlu0 %v10048_v27, %s10486_s12  ;;  %v10051_v27 = vld [vmem:[%s19005_s0 + $0x528] sm:$0xff] }
 0x2e8   :  { %1341 = vrot.lane.b32.xlu1 %v10049_v28, %s10486_s12  ;;  %v13197_v30 = vpop.permute.xlu1 %1213  ;;  %v13199_v31 = vpop.permute.xlu0 %1219  ;;  %v10052_v28 = vld [vmem:[%s19005_s0 + $0x530] sm:$0xff] }
 0x2e9   :  { %19227 = vst [vmem:[#allocation70_spill] sm:$0xff] %v13197_v30  ;;  %19228 = vst [vmem:[#allocation71_spill] sm:$0xff] %v13199_v31  ;;  %1343 = vrot.lane.b32.xlu0 %v10050_v63, %s10486_s12  ;;  %v19231_v31 = vld [vmem:[#allocation2_spill] sm:$0xff] }
 0x2ea   :  { %v9554_v30 = vsub.s32 0, %v19231_v31  ;;  %v9562_v63 = vsub.s32 2, %v19231_v31  ;;  %v9566_v57 = vsub.s32 3, %v19231_v31 }
 0x2ec   :  { %1345 = vrot.lane.b32.xlu1 %v10051_v27, %s10486_s12  ;;  %v13209_v32 = vpop.permute.xlu1 %1217  ;;  %v13211_v48 = vpop.permute.xlu0 %1223 }
 0x2ed   :  { %19229 = vst [vmem:[#allocation72_spill] sm:$0xff] %v13209_v32  ;;  %19230 = vst [vmem:[#allocation73_spill] sm:$0xff] %v13211_v48  ;;  %1347 = vrot.lane.b32.xlu0 %v10052_v28, %s10486_s12  ;;  %v9550_v48 = vld [vmem:[%s19007_s2] sm:$0xf]  ;;  %v9558_v28 = vsub.s32 1, %v19231_v31 }
 0x2ee   :  { %v13236_v13 = vrot.slane %v9550_v48, %v9554_v30  ;;  %v13250_v33 = vrot.slane %v9550_v48, %v9566_v57  ;;  %v10056_v30 = vld [vmem:[%s19005_s0 + $0x550] sm:$0xff] }
 0x2ef   :  { %v13248_v31 = vrot.slane %v9550_v48, %v9558_v28 }
 0x2f0   :  { %1349 = vrot.lane.b32.xlu1 %v10053_v35, %s10486_s12  ;;  %v13223_v27 = vpop.permute.xlu1 %1221  ;;  %v13225_v32 = vpop.permute.xlu0 %1227  ;;  %19234 = vst [vmem:[#allocation75_spill] sm:$0xff] %v13236_v13  ;;  %v13238_v35 = vrot.slane %v9550_v48, %v9562_v63  ;;  %19239 = vst [vmem:[#allocation80_spill] sm:$0xff] %v13250_v33  ;;  %v10057_v48 = vld [vmem:[%s19005_s0 + $0x558] sm:$0xff] }
 0x2f1   :  { %19232 = vst [vmem:[#allocation2_spill] sm:$0xff] %v13223_v27  ;;  %19233 = vst [vmem:[#allocation74_spill] sm:$0xff] %v13225_v32  ;;  %1351 = vrot.lane.b32.xlu0 %v10054_v40, %s10486_s12  ;;  %v10055_v32 = vld [vmem:[%s19005_s0 + $0x548] sm:$0xff] }
 0x2f2   :  { %19235 = vst [vmem:[#allocation76_spill] sm:$0xff] %v13238_v35  ;;  %19238 = vst [vmem:[#allocation79_spill] sm:$0xff] %v13248_v31 }
 0x2f4   :  { %1353 = vrot.lane.b32.xlu1 %v10055_v32, %s10486_s12  ;;  %v13244_v27 = vpop.permute.xlu1 %1225  ;;  %v13246_v56 = vpop.permute.xlu0 %1231 }
 0x2f5   :  { %19236 = vst [vmem:[#allocation77_spill] sm:$0xff] %v13244_v27  ;;  %19237 = vst [vmem:[#allocation78_spill] sm:$0xff] %v13246_v56  ;;  %1355 = vrot.lane.b32.xlu0 %v10056_v30, %s10486_s12 }
 0x2f6   :  { %v9647_v40 = vpop.f32.mrb[0].mxu0  ;;  %v9736_v63 = vpop.f32.mrb[0].mxu1 }
 0x2f7   :  { %v9648_v7 = vadd.f32 %v9647_v40, %v13236_v13  ;;  %v9737_v32 = vadd.f32 %v9736_v63, %v13238_v35  ;;  %v9649_v43 = vpop.f32.mrb[1].mxu0  ;;  %v9738_v27 = vpop.f32.mrb[1].mxu1  ;;  %v10060_v63 = vld [vmem:[%s19005_s0 + $0x570] sm:$0xff] }
 0x2f8   :  { %v9650_v56 = vadd.f32 %v9649_v43, %v13248_v31  ;;  %v9739_v28 = vadd.f32 %v9738_v27, %v13250_v33  ;;  %1357 = vrot.lane.b32.xlu1 %v10057_v48, %s10486_s12  ;;  %v13264_v57 = vpop.permute.xlu1 %1229  ;;  %v13266_v30 = vpop.permute.xlu0 %1235  ;;  %v10058_v43 = vld [vmem:[%s19005_s0 + $0x560] sm:$0xff] }
 0x2f9   :  { %9759 = vst [vmem:[%s19008_s3] sm:$0xff] %v9648_v7  ;;  %9761 = vst [vmem:[%s19008_s3 + $0x10] sm:$0xff] %v9737_v32  ;;  %1359 = vrot.lane.b32.xlu0 %v10058_v43, %s10486_s12  ;;  %v10059_v7 = vld [vmem:[%s19005_s0 + $0x568] sm:$0xff] }
 0x2fa   :  { %9760 = vst [vmem:[%s19008_s3 + $0x8] sm:$0xff] %v9650_v56  ;;  %9762 = vst [vmem:[%s19008_s3 + $0x18] sm:$0xff] %v9739_v28  ;;  %v10061_v56 = vld [vmem:[%s19005_s0 + $0x578] sm:$0xff]  ;;  %v10062_v48 = vld [vmem:[%s19005_s0 + $0x580] sm:$0xff] }
 0x2fb   :  { %v10063_v43 = vld [vmem:[%s19005_s0 + $0x588] sm:$0xff] }
 0x2fc   :  { %1361 = vrot.lane.b32.xlu1 %v10059_v7, %s10486_s12  ;;  %v13288_v27 = vpop.permute.xlu1 %1233  ;;  %v13290_v40 = vpop.permute.xlu0 %1239 }
 0x2fd   :  { %19240 = vst [vmem:[#allocation81_spill] sm:$0xff] %v13290_v40  ;;  %1363 = vrot.lane.b32.xlu0 %v10060_v63, %s10486_s12 }
 0x300   :  { %1365 = vrot.lane.b32.xlu1 %v10061_v56, %s10486_s12  ;;  %v13300_v32 = vpop.permute.xlu1 %1237  ;;  %v13302_v28 = vpop.permute.xlu0 %1243  ;;  %v10064_v56 = vld [vmem:[%s19005_s0 + $0x590] sm:$0xff] }
 0x301   :  { %19241 = vst [vmem:[#allocation82_spill] sm:$0xff] %v13302_v28  ;;  %1367 = vrot.lane.b32.xlu0 %v10062_v48, %s10486_s12  ;;  %v10065_v48 = vld [vmem:[%s19005_s0 + $0x598] sm:$0xff] }
 0x304   :  { %1369 = vrot.lane.b32.xlu1 %v10063_v43, %s10486_s12  ;;  %v13312_v7 = vpop.permute.xlu1 %1241  ;;  %v13314_v63 = vpop.permute.xlu0 %1247  ;;  %v10066_v43 = vld [vmem:[%s19005_s0 + $0x5a0] sm:$0xff] }
 0x305   :  { %19242 = vst [vmem:[#allocation83_spill] sm:$0xff] %v13312_v7  ;;  %19243 = vst [vmem:[#allocation84_spill] sm:$0xff] %v13314_v63  ;;  %1371 = vrot.lane.b32.xlu0 %v10064_v56, %s10486_s12  ;;  %v10067_v56 = vld [vmem:[%s19005_s0 + $0x5a8] sm:$0xff] }
 0x308   :  { %1373 = vrot.lane.b32.xlu1 %v10065_v48, %s10486_s12  ;;  %v13324_v33 = vpop.permute.xlu1 %1245  ;;  %v13326_v31 = vpop.permute.xlu0 %1251  ;;  %v10068_v48 = vld [vmem:[%s19005_s0 + $0x5b0] sm:$0xff] }
 0x309   :  { %19244 = vst [vmem:[#allocation85_spill] sm:$0xff] %v13324_v33  ;;  %19245 = vst [vmem:[#allocation86_spill] sm:$0xff] %v13326_v31  ;;  %1375 = vrot.lane.b32.xlu0 %v10066_v43, %s10486_s12  ;;  %v10069_v43 = vld [vmem:[%s19005_s0 + $0x5b8] sm:$0xff] }
 0x30c   :  { %1377 = vrot.lane.b32.xlu1 %v10067_v56, %s10486_s12  ;;  %v13336_v35 = vpop.permute.xlu1 %1249  ;;  %v13338_v13 = vpop.permute.xlu0 %1255  ;;  %v10070_v56 = vld [vmem:[%s19005_s0 + $0x5c0] sm:$0xff] }
 0x30d   :  { %19246 = vst [vmem:[#allocation87_spill] sm:$0xff] %v13336_v35  ;;  %19247 = vst [vmem:[#allocation88_spill] sm:$0xff] %v13338_v13  ;;  %1379 = vrot.lane.b32.xlu0 %v10068_v48, %s10486_s12  ;;  %v10071_v48 = vld [vmem:[%s19005_s0 + $0x5c8] sm:$0xff] }
 0x310   :  { %1381 = vrot.lane.b32.xlu1 %v10069_v43, %s10486_s12  ;;  %v13348_v31 = vpop.permute.xlu1 %1253  ;;  %v13350_v63 = vpop.permute.xlu0 %1259  ;;  %v10072_v43 = vld [vmem:[%s19005_s0 + $0x5d0] sm:$0xff] }
 0x311   :  { %19248 = vst [vmem:[#allocation89_spill] sm:$0xff] %v13348_v31  ;;  %19249 = vst [vmem:[#allocation90_spill] sm:$0xff] %v13350_v63  ;;  %1383 = vrot.lane.b32.xlu0 %v10070_v56, %s10486_s12  ;;  %v10073_v56 = vld [vmem:[%s19005_s0 + $0x5d8] sm:$0xff] }
 0x314   :  { %1385 = vrot.lane.b32.xlu1 %v10071_v48, %s10486_s12  ;;  %v13360_v13 = vpop.permute.xlu1 %1257  ;;  %v13362_v35 = vpop.permute.xlu0 %1263  ;;  %v10074_v48 = vld [vmem:[%s19005_s0 + $0x5e0] sm:$0xff] }
 0x315   :  { %19250 = vst [vmem:[#allocation91_spill] sm:$0xff] %v13360_v13  ;;  %19251 = vst [vmem:[#allocation92_spill] sm:$0xff] %v13362_v35  ;;  %1387 = vrot.lane.b32.xlu0 %v10072_v43, %s10486_s12  ;;  %v10075_v43 = vld [vmem:[%s19005_s0 + $0x5e8] sm:$0xff] }
 0x318   :  { %1389 = vrot.lane.b32.xlu1 %v10073_v56, %s10486_s12  ;;  %v13372_v63 = vpop.permute.xlu1 %1261  ;;  %v13374_v31 = vpop.permute.xlu0 %1267  ;;  %v10076_v56 = vld [vmem:[%s19005_s0 + $0x5f0] sm:$0xff] }
 0x319   :  { %19252 = vst [vmem:[#allocation93_spill] sm:$0xff] %v13372_v63  ;;  %19253 = vst [vmem:[#allocation94_spill] sm:$0xff] %v13374_v31  ;;  %1391 = vrot.lane.b32.xlu0 %v10074_v48, %s10486_s12  ;;  %v10077_v48 = vld [vmem:[%s19005_s0 + $0x5f8] sm:$0xff] }
 0x31c   :  { %1393 = vrot.lane.b32.xlu1 %v10075_v43, %s10486_s12  ;;  %v13384_v35 = vpop.permute.xlu1 %1265  ;;  %v13386_v13 = vpop.permute.xlu0 %1271  ;;  %v10078_v43 = vld [vmem:[%s19005_s0 + $0x600] sm:$0xff] }
 0x31d   :  { %19254 = vst [vmem:[#allocation95_spill] sm:$0xff] %v13384_v35  ;;  %19255 = vst [vmem:[#allocation96_spill] sm:$0xff] %v13386_v13  ;;  %1395 = vrot.lane.b32.xlu0 %v10076_v56, %s10486_s12  ;;  %v10079_v56 = vld [vmem:[%s19005_s0 + $0x608] sm:$0xff] }
 0x320   :  { %1397 = vrot.lane.b32.xlu1 %v10077_v48, %s10486_s12  ;;  %v13396_v31 = vpop.permute.xlu1 %1269  ;;  %v13398_v63 = vpop.permute.xlu0 %1275  ;;  %v10080_v48 = vld [vmem:[%s19005_s0 + $0x610] sm:$0xff] }
 0x321   :  { %19256 = vst [vmem:[#allocation97_spill] sm:$0xff] %v13396_v31  ;;  %19257 = vst [vmem:[#allocation98_spill] sm:$0xff] %v13398_v63  ;;  %1399 = vrot.lane.b32.xlu0 %v10078_v43, %s10486_s12  ;;  %v10081_v43 = vld [vmem:[%s19005_s0 + $0x618] sm:$0xff] }
 0x324   :  { %1401 = vrot.lane.b32.xlu1 %v10079_v56, %s10486_s12  ;;  %v13408_v13 = vpop.permute.xlu1 %1273  ;;  %v13410_v35 = vpop.permute.xlu0 %1279  ;;  %v10082_v56 = vld [vmem:[%s19005_s0 + $0x620] sm:$0xff] }
 0x325   :  { %19258 = vst [vmem:[#allocation99_spill] sm:$0xff] %v13408_v13  ;;  %19259 = vst [vmem:[#allocation100_spill] sm:$0xff] %v13410_v35  ;;  %1403 = vrot.lane.b32.xlu0 %v10080_v48, %s10486_s12  ;;  %v10083_v48 = vld [vmem:[%s19005_s0 + $0x628] sm:$0xff] }
 0x328   :  { %1405 = vrot.lane.b32.xlu1 %v10081_v43, %s10486_s12  ;;  %v13420_v63 = vpop.permute.xlu1 %1277  ;;  %v13422_v31 = vpop.permute.xlu0 %1283  ;;  %v10084_v43 = vld [vmem:[%s19005_s0 + $0x630] sm:$0xff] }
 0x329   :  { %19260 = vst [vmem:[#allocation101_spill] sm:$0xff] %v13420_v63  ;;  %19261 = vst [vmem:[#allocation102_spill] sm:$0xff] %v13422_v31  ;;  %1407 = vrot.lane.b32.xlu0 %v10082_v56, %s10486_s12  ;;  %v10085_v56 = vld [vmem:[%s19005_s0 + $0x638] sm:$0xff] }
 0x32c   :  { %1409 = vrot.lane.b32.xlu1 %v10083_v48, %s10486_s12  ;;  %v13432_v35 = vpop.permute.xlu1 %1281  ;;  %v13434_v13 = vpop.permute.xlu0 %1287 }
 0x32d   :  { %19262 = vst [vmem:[#allocation103_spill] sm:$0xff] %v13432_v35  ;;  %19263 = vst [vmem:[#allocation104_spill] sm:$0xff] %v13434_v13  ;;  %1411 = vrot.lane.b32.xlu0 %v10084_v43, %s10486_s12 }
 0x330   :  { %1413 = vrot.lane.b32.xlu1 %v10085_v56, %s10486_s12  ;;  %v13444_v31 = vpop.permute.xlu1 %1285  ;;  %v13446_v63 = vpop.permute.xlu0 %1291 }
 0x331   :  { %19264 = vst [vmem:[#allocation105_spill] sm:$0xff] %v13444_v31  ;;  %19265 = vst [vmem:[#allocation106_spill] sm:$0xff] %v13446_v63 }
 0x334   :  { %v13448_v48 = vpop.permute.xlu1 %1289  ;;  %v13450_v35 = vpop.permute.xlu0 %1295 }
 0x335   :  { %19266 = vst [vmem:[#allocation107_spill] sm:$0xff] %v13448_v48  ;;  %19267 = vst [vmem:[#allocation108_spill] sm:$0xff] %v13450_v35  ;;  %v1615_v35 = vsel %vm19275_vm12, %v12590_v14, 0.0 }
 0x336   :  { %vm19280_vm12 = vmmov %vm19278_vm0 }
 0x338   :  { %v13452_v13 = vpop.permute.xlu1 %1293  ;;  %v13454_v28 = vpop.permute.xlu0 %1299 }
 0x339   :  { %19268 = vst [vmem:[#allocation109_spill] sm:$0xff] %v13454_v28 }
 0x33c   :  { %v13456_v33 = vpop.permute.xlu1 %1297  ;;  %v13458_v43 = vpop.permute.xlu0 %1303 }
 0x33d   :  { %19269 = vst [vmem:[#allocation110_spill] sm:$0xff] %v13456_v33  ;;  %19270 = vst [vmem:[#allocation111_spill] sm:$0xff] %v13458_v43  ;;  %v1621_v43 = vsel %vm19276_vm11, %v12609_v61, 0.0  ;;  %v1630_v61 = vsel %vm19280_vm12, %v12633_v18, 0.0 }
 0x33e   :  { %vm19281_vm11 = vmmov %vm19278_vm0 }
 0x33f   :  { %vm19283_vm12 = vmmov %vm19278_vm0 }
 0x340   :  { %v13460_v40 = vpop.permute.xlu1 %1301  ;;  %v13462_v7 = vpop.permute.xlu0 %1307  ;;  %v1642_v18 = vsel %vm19283_vm12, %v12657_v8, 0.0  ;;  %v1654_v8 = vsel %vm19286_vm15, %v12681_v49, 0.0  ;;  %vm19287_vm12 = vmmov %vm19278_vm0 }
 0x341   :  { %19271 = vst [vmem:[#allocation112_spill] sm:$0xff] %v13462_v7  ;;  %vm19289_vm15 = vmmov %vm19278_vm0 }
 0x342   :  { %v1666_v49 = vsel %vm19289_vm15, %v12705_v16, 0.0  ;;  %v1678_v16 = vsel %vm19278_vm0, %v12729_v24, 0.0  ;;  %vm19293_vm15 = vmmov %vm19278_vm0 }
 0x344   :  { %v13464_v56 = vpop.permute.xlu1 %1305  ;;  %v13466_v31 = vpop.permute.xlu0 %1311 }
 0x345   :  { %19272 = vst [vmem:[#allocation113_spill] sm:$0xff] %v13464_v56  ;;  %19273 = vst [vmem:[#allocation114_spill] sm:$0xff] %v13466_v31  ;;  %v1618_v31 = vsel %vm19278_vm0, %v12588_v23, 0.0  ;;  %v1636_v23 = vsel %vm19278_vm0, %v12645_v5, 0.0  ;;  %v1648_v5 = vsel %vm19278_vm0, %v12669_v12, 0.0 }
 0x348   :  { %v13468_v63 = vpop.permute.xlu1 %1309  ;;  %v13470_v48 = vpop.permute.xlu0 %1315 }
 0x349   :  { %19274 = vst [vmem:[#allocation115_spill] sm:$0xff] %v13470_v48  ;;  %v1624_v48 = vsel %vm19279_vm9, %v12621_v53, 0.0  ;;  %vm19282_vm9 = vmmov %vm19278_vm0 }
 0x34a   :  { %v1633_v53 = vsel %vm19282_vm9, %v12623_v60, 0.0  ;;  %vm19285_vm9 = vmmov %vm19278_vm0 }
 0x34b   :  { %v1645_v60 = vsel %vm19285_vm9, %v12647_v51, 0.0  ;;  %v1657_v51 = vsel %vm19278_vm0, %v12671_v11, 0.0  ;;  %vm19290_vm9 = vmmov %vm19278_vm0 }
 0x34c   :  { %v13474_v28 = vpop.permute.xlu1 %1313  ;;  %1616 = vadd.xlane.f32.xlu0 %v1615_v35  ;;  %v13476_v33 = vpop.permute.xlu0 %1319 }
 0x350   :  { %v13480_v7 = vpop.permute.xlu1 %1317  ;;  %1622 = vadd.xlane.f32.xlu0 %v1621_v43  ;;  %v13482_v56 = vpop.permute.xlu0 %1323  ;;  %v1627_v43 = vsel %vm19281_vm11, %v12611_v26, 0.0  ;;  %vm19284_vm11 = vmmov %vm19278_vm0 }
 0x351   :  { %19277 = vst [vmem:[#allocation116_spill] sm:$0xff] %v13482_v56  ;;  %v1639_v26 = vsel %vm19284_vm11, %v12635_v41, 0.0  ;;  %v1651_v41 = vsel %vm19287_vm12, %v12659_v59, 0.0  ;;  %vm19288_vm11 = vmmov %vm19278_vm0  ;;  %v1663_v59 = vsel %vm19290_vm9, %v12683_v10, 0.0  ;;  %v1675_v10 = vsel %vm19293_vm15, %v12707_v9, 0.0 }
 0x352   :  { %v1660_v12 = vsel %vm19288_vm11, %v12693_v34, 0.0  ;;  %vm19291_vm12 = vmmov %vm19278_vm0  ;;  %v1687_v9 = vsel %vm19278_vm0, %v12731_v15, 0.0 }
 0x353   :  { %v1672_v34 = vsel %vm19291_vm12, %v12717_v22, 0.0  ;;  %vm19292_vm11 = vmmov %vm19278_vm0 }
 0x354   :  { %1619 = vadd.xlane.f32.xlu1 %v1618_v31  ;;  %v13488_v14 = vpop.permute.xlu1 %1321  ;;  %1625 = vadd.xlane.f32.xlu0 %v1624_v48  ;;  %v13490_v35 = vpop.permute.xlu0 %1327  ;;  %v1669_v11 = vsel %vm19292_vm11, %v12695_v55, 0.0  ;;  %vm19294_vm9 = vmmov %vm19278_vm0 }
 0x355   :  { %v1684_v22 = vsel %vm19294_vm9, %v12741_v46, 0.0  ;;  %vm19295_vm12 = vmmov %vm19278_vm0 }
 0x356   :  { %v1681_v55 = vsel %vm19295_vm12, %v12719_v20, 0.0  ;;  %vm19296_vm11 = vmmov %vm19278_vm0 }
 0x357   :  { %v1690_v24 = vsel %vm19296_vm11, %v12753_v6, 0.0  ;;  %vm19297_vm15 = vmmov %vm19278_vm0 }
 0x358   :  { %1631 = vadd.xlane.f32.xlu1 %v1630_v61  ;;  %1628 = vadd.xlane.f32.xlu0 %v1627_v43  ;;  %v13496_v56 = vpop.permute.xlu1 %1325  ;;  %v13502_v31 = vpop.permute.xlu0 %1331  ;;  %v1696_v46 = vsel %vm19297_vm15, %v12765_v39, 0.0  ;;  %vm19298_vm9 = vmmov %vm19278_vm0  ;;  %v1708_v39 = vsel %vm19278_vm0, %v12789_v0, 0.0 }
 0x359   :  { %v1693_v20 = vsel %vm19298_vm9, %v12743_v1, 0.0  ;;  %vm19299_vm12 = vmmov %vm19278_vm0 }
 0x35a   :  { %v1702_v6 = vsel %vm19299_vm12, %v12777_v25, 0.0  ;;  %vm19300_vm11 = vmmov %vm19278_vm0 }
 0x35b   :  { %v1699_v15 = vsel %vm19300_vm11, %v12755_v54, 0.0  ;;  %vm19301_vm15 = vmmov %vm19278_vm0 }
 0x35c   :  { %1637 = vadd.xlane.f32.xlu1 %v1636_v23  ;;  %1634 = vadd.xlane.f32.xlu0 %v1633_v53  ;;  %v13504_v48 = vpop.permute.xlu1 %1329  ;;  %v13510_v61 = vpop.permute.xlu0 %1335  ;;  %v1705_v1 = vsel %vm19301_vm15, %v12767_v45, 0.0  ;;  %vm19303_vm9 = vmmov %vm19278_vm0  ;;  %v1717_v45 = vsel %vm19278_vm0, %v12791_v21, 0.0 }
 0x35d   :  { %v1714_v25 = vsel %vm19303_vm9, %v12801_v37, 0.0  ;;  %vm19304_vm12 = vmmov %vm19278_vm0 }
 0x35e   :  { %v1711_v54 = vsel %vm19304_vm12, %v12779_v38, 0.0  ;;  %vm19306_vm11 = vmmov %vm19278_vm0 }
 0x35f   :  { %v1720_v0 = vsel %vm19306_vm11, %v12813_v50, 0.0  ;;  %vm19308_vm15 = vmmov %vm19278_vm0 }
 0x360   :  { %1643 = vadd.xlane.f32.xlu1 %v1642_v18  ;;  %1640 = vadd.xlane.f32.xlu0 %v1639_v26  ;;  %v13516_v43 = vpop.permute.xlu1 %1333  ;;  %v13522_v23 = vpop.permute.xlu0 %1339  ;;  %v1726_v37 = vsel %vm19308_vm15, %v12825_v44, 0.0  ;;  %vm19309_vm9 = vmmov %vm19278_vm0  ;;  %v1738_v44 = vsel %vm19278_vm0, %v12849_v3, 0.0 }
 0x361   :  { %v1723_v38 = vsel %vm19309_vm9, %v12803_v58, 0.0  ;;  %vm19312_vm12 = vmmov %vm19278_vm0 }
 0x362   :  { %v1732_v50 = vsel %vm19312_vm12, %v12837_v4, 0.0  ;;  %vm19313_vm11 = vmmov %vm19278_vm0 }
 0x363   :  { %v1729_v21 = vsel %vm19313_vm11, %v12815_v2, 0.0  ;;  %vm19315_vm15 = vmmov %vm19278_vm0 }
 0x364   :  { %1649 = vadd.xlane.f32.xlu1 %v1648_v5  ;;  %1646 = vadd.xlane.f32.xlu0 %v1645_v60  ;;  %v13524_v53 = vpop.permute.xlu1 %1337  ;;  %v13530_v18 = vpop.permute.xlu0 %1343  ;;  %v1735_v58 = vsel %vm19315_vm15, %v12827_v47, 0.0  ;;  %vm19317_vm9 = vmmov %vm19278_vm0  ;;  %v1747_v47 = vsel %vm19278_vm0, %v12851_v19, 0.0 }
 0x365   :  { %v1744_v4 = vsel %vm19317_vm9, %v12861_v17, 0.0  ;;  %vm19318_vm12 = vmmov %vm19278_vm0 }
 0x366   :  { %v1741_v2 = vsel %vm19318_vm12, %v12839_v52, 0.0  ;;  %vm19321_vm11 = vmmov %vm19278_vm0 }
 0x367   :  { %v1750_v3 = vsel %vm19321_vm11, %v12873_v36, 0.0  ;;  %vm19323_vm15 = vmmov %vm19278_vm0 }
 0x368   :  { %1655 = vadd.xlane.f32.xlu1 %v1654_v8  ;;  %1652 = vadd.xlane.f32.xlu0 %v1651_v41  ;;  %v13536_v26 = vpop.permute.xlu1 %1341  ;;  %v13542_v5 = vpop.permute.xlu0 %1347  ;;  %v1756_v17 = vsel %vm19323_vm15, %v12885_v42, 0.0  ;;  %vm19324_vm9 = vmmov %vm19278_vm0  ;;  %v19331_v42 = vld [vmem:[#allocation21_spill] sm:$0xff] }
 0x369   :  { %v1753_v52 = vsel %vm19324_vm9, %v12863_v62, 0.0  ;;  %vm19326_vm12 = vmmov %vm19278_vm0  ;;  %v19332_v62 = vld [vmem:[#allocation31_spill] sm:$0xff] }
 0x36a   :  { %v1762_v36 = vsel %vm19326_vm12, %v12897_v29, 0.0  ;;  %vm19328_vm11 = vmmov %vm19278_vm0  ;;  %v19335_v29 = vld [vmem:[#allocation22_spill] sm:$0xff] }
 0x36b   :  { %vm19333_vm15 = vmmov %vm19278_vm0 }
 0x36c   :  { %1661 = vadd.xlane.f32.xlu1 %v1660_v12  ;;  %1658 = vadd.xlane.f32.xlu0 %v1657_v51  ;;  %v13544_v60 = vpop.permute.xlu1 %1345  ;;  %v13550_v8 = vpop.permute.xlu0 %1351  ;;  %vm19336_vm9 = vmmov %vm19278_vm0 }
 0x36d   :  { %vm19338_vm12 = vmmov %vm19278_vm0 }
 0x370   :  { %1667 = vadd.xlane.f32.xlu1 %v1666_v49  ;;  %1664 = vadd.xlane.f32.xlu0 %v1663_v59  ;;  %v13556_v41 = vpop.permute.xlu1 %1349  ;;  %v13562_v12 = vpop.permute.xlu0 %1355 }
 0x374   :  { %1673 = vadd.xlane.f32.xlu1 %v1672_v34  ;;  %1670 = vadd.xlane.f32.xlu0 %v1669_v11  ;;  %v13564_v51 = vpop.permute.xlu1 %1353  ;;  %v13570_v49 = vpop.permute.xlu0 %1359 }
 0x378   :  { %1679 = vadd.xlane.f32.xlu1 %v1678_v16  ;;  %1676 = vadd.xlane.f32.xlu0 %v1675_v10  ;;  %v13576_v59 = vpop.permute.xlu1 %1357  ;;  %v13582_v34 = vpop.permute.xlu0 %1363 }
 0x379   :  { %19302 = vst [vmem:[#allocation117_spill] sm:$0xff] %v13582_v34  ;;  %v19442_v34 = vld [vmem:[#allocation61_spill] sm:$0xff] }
 0x37c   :  { %1685 = vadd.xlane.f32.xlu1 %v1684_v22  ;;  %1682 = vadd.xlane.f32.xlu0 %v1681_v55  ;;  %v13584_v11 = vpop.permute.xlu1 %1361  ;;  %v13590_v16 = vpop.permute.xlu0 %1367 }
 0x37d   :  { %19305 = vst [vmem:[#allocation118_spill] sm:$0xff] %v13590_v16  ;;  %v19428_v16 = vld [vmem:[#allocation58_spill] sm:$0xff] }
 0x380   :  { %1691 = vadd.xlane.f32.xlu1 %v1690_v24  ;;  %1688 = vadd.xlane.f32.xlu0 %v1687_v9  ;;  %v13596_v10 = vpop.permute.xlu1 %1365  ;;  %v13602_v22 = vpop.permute.xlu0 %1371 }
 0x381   :  { %19307 = vst [vmem:[#allocation119_spill] sm:$0xff] %v13596_v10  ;;  %19310 = vst [vmem:[#allocation120_spill] sm:$0xff] %v13602_v22  ;;  %v19421_v22 = vld [vmem:[#allocation56_spill] sm:$0xff]  ;;  %v19457_v10 = vld [vmem:[#allocation69_spill] sm:$0xff] }
 0x384   :  { %1697 = vadd.xlane.f32.xlu1 %v1696_v46  ;;  %1694 = vadd.xlane.f32.xlu0 %v1693_v20  ;;  %v13604_v55 = vpop.permute.xlu1 %1369  ;;  %v13610_v24 = vpop.permute.xlu0 %1375 }
 0x385   :  { %19311 = vst [vmem:[#allocation121_spill] sm:$0xff] %v13604_v55  ;;  %19314 = vst [vmem:[#allocation122_spill] sm:$0xff] %v13610_v24  ;;  %v19414_v24 = vld [vmem:[#allocation54_spill] sm:$0xff]  ;;  %v19430_v55 = vld [vmem:[#allocation55_spill] sm:$0xff] }
 0x388   :  { %1703 = vadd.xlane.f32.xlu1 %v1702_v6  ;;  %1700 = vadd.xlane.f32.xlu0 %v1699_v15  ;;  %v13616_v9 = vpop.permute.xlu1 %1373  ;;  %v13622_v46 = vpop.permute.xlu0 %1379 }
 0x389   :  { %19316 = vst [vmem:[#allocation123_spill] sm:$0xff] %v13616_v9  ;;  %19319 = vst [vmem:[#allocation124_spill] sm:$0xff] %v13622_v46  ;;  %v19408_v46 = vld [vmem:[#allocation52_spill] sm:$0xff]  ;;  %v19423_v9 = vld [vmem:[#allocation53_spill] sm:$0xff] }
 0x38c   :  { %1709 = vadd.xlane.f32.xlu1 %v1708_v39  ;;  %1706 = vadd.xlane.f32.xlu0 %v1705_v1  ;;  %v13624_v20 = vpop.permute.xlu1 %1377  ;;  %v13630_v6 = vpop.permute.xlu0 %1383  ;;  %v19327_v39 = vld [vmem:[#allocation26_spill] sm:$0xff] }
 0x38d   :  { %19320 = vst [vmem:[#allocation125_spill] sm:$0xff] %v13624_v20  ;;  %19322 = vst [vmem:[#allocation126_spill] sm:$0xff] %v13630_v6  ;;  %v1759_v19 = vsel %vm19328_vm11, %v19327_v39, 0.0  ;;  %v19416_v20 = vld [vmem:[#allocation51_spill] sm:$0xff] }
 0x38e   :  { %vm19341_vm11 = vmmov %vm19278_vm0 }
 0x390   :  { %1715 = vadd.xlane.f32.xlu1 %v1714_v25  ;;  %1712 = vadd.xlane.f32.xlu0 %v1711_v54  ;;  %v13636_v15 = vpop.permute.xlu1 %1381  ;;  %v13642_v1 = vpop.permute.xlu0 %1387  ;;  %v1768_v54 = vsel %vm19278_vm0, %v19331_v42, 0.0  ;;  %v19350_v42 = vld [vmem:[#allocation24_spill] sm:$0xff] }
 0x391   :  { %19325 = vst [vmem:[#allocation127_spill] sm:$0xff] %v13636_v15  ;;  %19329 = vst [vmem:[#allocation26_spill] sm:$0xff] %v13642_v1  ;;  %v19395_v1 = vld [vmem:[#allocation8_spill] sm:$0xff]  ;;  %v19409_v15 = vld [vmem:[#allocation49_spill] sm:$0xff] }
 0x394   :  { %1721 = vadd.xlane.f32.xlu1 %v1720_v0  ;;  %1718 = vadd.xlane.f32.xlu0 %v1717_v45  ;;  %v13644_v25 = vpop.permute.xlu1 %1385  ;;  %v1765_v0 = vsel %vm19333_vm15, %v19332_v62, 0.0  ;;  %v13650_v45 = vpop.permute.xlu0 %1391  ;;  %vm19346_vm15 = vmmov %vm19278_vm0  ;;  %v19352_v62 = vld [vmem:[#allocation33_spill] sm:$0xff] }
 0x395   :  { %19330 = vst [vmem:[#allocation128_spill] sm:$0xff] %v13644_v25  ;;  %19334 = vst [vmem:[#allocation21_spill] sm:$0xff] %v13650_v45  ;;  %v19393_v45 = vld [vmem:[#allocation4_spill] sm:$0xff]  ;;  %v19404_v25 = vld [vmem:[#allocation47_spill] sm:$0xff] }
 0x398   :  { %1727 = vadd.xlane.f32.xlu1 %v1726_v37  ;;  %1724 = vadd.xlane.f32.xlu0 %v1723_v38  ;;  %v1774_v37 = vsel %vm19336_vm9, %v19335_v29, 0.0  ;;  %v19337_v38 = vld [vmem:[#allocation32_spill] sm:$0xff]  ;;  %vm19348_vm9 = vmmov %vm19278_vm0 }
 0x39c   :  { %1733 = vadd.xlane.f32.xlu1 %v1732_v50  ;;  %1730 = vadd.xlane.f32.xlu0 %v1729_v21  ;;  %v1771_v50 = vsel %vm19338_vm12, %v19337_v38, 0.0  ;;  %v13656_v21 = vpop.permute.xlu1 %1389  ;;  %vm19351_vm12 = vmmov %vm19278_vm0 }
 0x39d   :  { %19339 = vst [vmem:[#allocation31_spill] sm:$0xff] %v13656_v21 }
 0x3a0   :  { %1739 = vadd.xlane.f32.xlu1 %v1738_v44  ;;  %1736 = vadd.xlane.f32.xlu0 %v1735_v58  ;;  %v19340_v44 = vld [vmem:[#allocation28_spill] sm:$0xff] }
 0x3a1   :  { %v1780_v58 = vsel %vm19341_vm11, %v19340_v44, 0.0  ;;  %vm19353_vm11 = vmmov %vm19278_vm0 }
 0x3a4   :  { %1745 = vadd.xlane.f32.xlu1 %v1744_v4  ;;  %1742 = vadd.xlane.f32.xlu0 %v1741_v2  ;;  %v19342_v4 = vld [vmem:[#allocation34_spill] sm:$0xff] }
 0x3a5   :  { %v1777_v2 = vsel %vm19278_vm0, %v19342_v4, 0.0 }
 0x3a8   :  { %1751 = vadd.xlane.f32.xlu1 %v1750_v3  ;;  %1748 = vadd.xlane.f32.xlu0 %v1747_v47  ;;  %v13662_v3 = vpop.permute.xlu0 %1395  ;;  %v13664_v47 = vpop.permute.xlu1 %1393 }
 0x3a9   :  { %19343 = vst [vmem:[#allocation22_spill] sm:$0xff] %v13662_v3  ;;  %19344 = vst [vmem:[#allocation32_spill] sm:$0xff] %v13664_v47  ;;  %v19392_v3 = vld [vmem:[#allocation43_spill] sm:$0xff] }
 0x3aa   :  { %v19394_v47 = vld [vmem:[#allocation7_spill] sm:$0xff] }
 0x3ac   :  { %1757 = vadd.xlane.f32.xlu1 %v1756_v17  ;;  %1754 = vadd.xlane.f32.xlu0 %v1753_v52  ;;  %v19345_v17 = vld [vmem:[#allocation36_spill] sm:$0xff]  ;;  %v13676_v29 = vpop.permute.xlu1 %1397 }
 0x3ad   :  { %v1786_v52 = vsel %vm19346_vm15, %v19345_v17, 0.0  ;;  %19354 = vst [vmem:[#allocation34_spill] sm:$0xff] %v13676_v29  ;;  %vm19357_vm15 = vmmov %vm19278_vm0  ;;  %v1837_v29 = vsel %vm19278_vm0, %v19392_v3, 0.0  ;;  %v19398_v3 = vld [vmem:[#allocation45_spill] sm:$0xff] }
 0x3b0   :  { %1763 = vadd.xlane.f32.xlu1 %v1762_v36  ;;  %1760 = vadd.xlane.f32.xlu0 %v1759_v19  ;;  %v19347_v36 = vld [vmem:[#allocation25_spill] sm:$0xff]  ;;  %v13670_v19 = vpop.permute.xlu0 %1399  ;;  %v13684_v4 = vpop.permute.xlu1 %1401 }
 0x3b1   :  { %v1783_v39 = vsel %vm19348_vm9, %v19347_v36, 0.0  ;;  %19349 = vst [vmem:[#allocation28_spill] sm:$0xff] %v13670_v19  ;;  %19359 = vst [vmem:[#allocation25_spill] sm:$0xff] %v13684_v4  ;;  %v19388_v19 = vld [vmem:[#allocation5_spill] sm:$0xff] }
 0x3b2   :  { %vm19361_vm9 = vmmov %vm19278_vm0 }
 0x3b4   :  { %1769 = vadd.xlane.f32.xlu1 %v1768_v54  ;;  %1766 = vadd.xlane.f32.xlu0 %v1765_v0  ;;  %v1792_v54 = vsel %vm19351_vm12, %v19350_v42, 0.0  ;;  %v1789_v0 = vsel %vm19353_vm11, %v19352_v62, 0.0  ;;  %vm19363_vm12 = vmmov %vm19278_vm0  ;;  %v19365_v42 = vld [vmem:[#allocation29_spill] sm:$0xff]  ;;  %v19367_v62 = vld [vmem:[#allocation38_spill] sm:$0xff] }
 0x3b5   :  { %vm19366_vm11 = vmmov %vm19278_vm0 }
 0x3b8   :  { %1775 = vadd.xlane.f32.xlu1 %v1774_v37  ;;  %1772 = vadd.xlane.f32.xlu0 %v1771_v50  ;;  %v19355_v37 = vld [vmem:[#allocation35_spill] sm:$0xff] }
 0x3b9   :  { %v1798_v38 = vsel %vm19278_vm0, %v19355_v37, 0.0  ;;  %v19356_v50 = vld [vmem:[#allocation23_spill] sm:$0xff]  ;;  %v13696_v37 = vpop.permute.xlu1 %1405 }
 0x3ba   :  { %v1795_v44 = vsel %vm19357_vm15, %v19356_v50, 0.0  ;;  %19368 = vst [vmem:[#allocation33_spill] sm:$0xff] %v13696_v37  ;;  %vm19370_vm15 = vmmov %vm19278_vm0  ;;  %v19387_v37 = vld [vmem:[#allocation3_spill] sm:$0xff] }
 0x3bc   :  { %1781 = vadd.xlane.f32.xlu1 %v1780_v58  ;;  %1778 = vadd.xlane.f32.xlu0 %v1777_v2  ;;  %v13682_v58 = vpop.permute.xlu0 %1403  ;;  %v19360_v2 = vld [vmem:[#allocation30_spill] sm:$0xff] }
 0x3bd   :  { %19358 = vst [vmem:[#allocation36_spill] sm:$0xff] %v13682_v58  ;;  %v1804_v17 = vsel %vm19361_vm9, %v19360_v2, 0.0  ;;  %vm19372_vm9 = vmmov %vm19278_vm0  ;;  %v19380_v58 = vld [vmem:[#allocation20_spill] sm:$0xff] }
 0x3c0   :  { %1787 = vadd.xlane.f32.xlu1 %v1786_v52  ;;  %1784 = vadd.xlane.f32.xlu0 %v1783_v39  ;;  %v19362_v52 = vld [vmem:[#allocation27_spill] sm:$0xff]  ;;  %v13690_v39 = vpop.permute.xlu0 %1407 }
 0x3c1   :  { %v1801_v36 = vsel %vm19363_vm12, %v19362_v52, 0.0  ;;  %19364 = vst [vmem:[#allocation24_spill] sm:$0xff] %v13690_v39  ;;  %v13704_v52 = vpop.permute.xlu1 %1409  ;;  %vm19376_vm12 = vmmov %vm19278_vm0  ;;  %v19379_v39 = vld [vmem:[#allocation42_spill] sm:$0xff] }
 0x3c2   :  { %19374 = vst [vmem:[#allocation23_spill] sm:$0xff] %v13704_v52  ;;  %v19385_v52 = vld [vmem:[#allocation41_spill] sm:$0xff] }
 0x3c4   :  { %1793 = vadd.xlane.f32.xlu1 %v1792_v54  ;;  %1790 = vadd.xlane.f32.xlu0 %v1789_v0  ;;  %v1810_v54 = vsel %vm19366_vm11, %v19365_v42, 0.0  ;;  %v1807_v0 = vsel %vm19278_vm0, %v19367_v62, 0.0  ;;  %v19377_v62 = vld [vmem:[#allocation39_spill] sm:$0xff]  ;;  %vm19378_vm11 = vmmov %vm19278_vm0 }
 0x3c8   :  { %1799 = vadd.xlane.f32.xlu1 %v1798_v38  ;;  %1796 = vadd.xlane.f32.xlu0 %v1795_v44  ;;  %v19369_v38 = vld [vmem:[#allocation19_spill] sm:$0xff]  ;;  %v19371_v44 = vld [vmem:[#allocation37_spill] sm:$0xff] }
 0x3c9   :  { %v1816_v50 = vsel %vm19370_vm15, %v19369_v38, 0.0  ;;  %v1813_v2 = vsel %vm19372_vm9, %v19371_v44, 0.0  ;;  %v1828_v38 = vsel %vm19278_vm0, %v19379_v39, 0.0  ;;  %vm19381_vm15 = vmmov %vm19278_vm0  ;;  %v13714_v44 = vpop.permute.xlu1 %1413 }
 0x3ca   :  { %19382 = vst [vmem:[#allocation30_spill] sm:$0xff] %v13714_v44  ;;  %vm19384_vm9 = vmmov %vm19278_vm0 }
 0x3cc   :  { %1805 = vadd.xlane.f32.xlu1 %v1804_v17  ;;  %1802 = vadd.xlane.f32.xlu0 %v1801_v36  ;;  %v13702_v17 = vpop.permute.xlu0 %1411  ;;  %v19375_v36 = vld [vmem:[#allocation40_spill] sm:$0xff] }
 0x3cd   :  { %19373 = vst [vmem:[#allocation35_spill] sm:$0xff] %v13702_v17  ;;  %v1822_v42 = vsel %vm19376_vm12, %v19375_v36, 0.0  ;;  %v19383_v17 = vld [vmem:[#allocation44_spill] sm:$0xff]  ;;  %vm19386_vm12 = vmmov %vm19278_vm0 }
 0x3ce   :  { %v1834_v36 = vsel %vm19384_vm9, %v19383_v17, 0.0  ;;  %vm19399_vm9 = vmmov %vm19278_vm0 }
 0x3d0   :  { %1811 = vadd.xlane.f32.xlu1 %v1810_v54  ;;  %1808 = vadd.xlane.f32.xlu0 %v1807_v0  ;;  %v1819_v54 = vsel %vm19378_vm11, %v19377_v62, 0.0  ;;  %v1831_v62 = vsel %vm19386_vm12, %v19385_v52, 0.0  ;;  %vm19391_vm11 = vmmov %vm19278_vm0 }
 0x3d1   :  { %vm19403_vm12 = vmmov %vm19278_vm0 }
 0x3d4   :  { %1817 = vadd.xlane.f32.xlu1 %v1816_v50  ;;  %1814 = vadd.xlane.f32.xlu0 %v1813_v2  ;;  %v1825_v50 = vsel %vm19381_vm15, %v19380_v58, 0.0  ;;  %v19389_v58 = vld [vmem:[#allocation6_spill] sm:$0xff]  ;;  %vm19397_vm15 = vmmov %vm19278_vm0 }
 0x3d8   :  { %1823 = vadd.xlane.f32.xlu1 %v1822_v42  ;;  %1820 = vadd.xlane.f32.xlu0 %v1819_v54 }
 0x3d9   :  { %v1617_v0 = vpop.xlane.xlu0 %1616 }
 0x3da   :  { %v6056_v39 = vrot.slane %v1617_v0, %v19387_v37 }
 0x3dc   :  { %1829 = vadd.xlane.f32.xlu1 %v1828_v38  ;;  %1826 = vadd.xlane.f32.xlu0 %v1825_v50  ;;  %v19390_v50 = vld [vmem:[#allocation46_spill] sm:$0xff] }
 0x3dd   :  { %v1623_v2 = vpop.xlane.xlu0 %1622  ;;  %v1840_v44 = vsel %vm19391_vm11, %v19390_v50, 0.0  ;;  %v19396_v50 = vld [vmem:[#allocation48_spill] sm:$0xff]  ;;  %vm19405_vm11 = vmmov %vm19278_vm0 }
 0x3de   :  { %v6065_v38 = vrot.slane %v1623_v2, %v19389_v58  ;;  %v1846_v6 = vsel %vm19397_vm15, %v19396_v50, 0.0  ;;  %v1849_v50 = vsel %vm19405_vm11, %v19404_v25, 0.0  ;;  %vm19410_vm15 = vmmov %vm19278_vm0 }
 0x3df   :  { %vm19417_vm11 = vmmov %vm19278_vm0 }
 0x3e0   :  { %1835 = vadd.xlane.f32.xlu1 %v1834_v36  ;;  %1832 = vadd.xlane.f32.xlu0 %v1831_v62 }
 0x3e1   :  { %v1620_v42 = vpop.xlane.xlu1 %1619  ;;  %v1626_v54 = vpop.xlane.xlu0 %1625 }
 0x3e2   :  { %v6060_v4 = vrot.slane %v1620_v42, %v19388_v19  ;;  %v6070_v52 = vrot.slane %v1626_v54, %v19393_v45 }
 0x3e4   :  { %v6061_v17 = vsel %vm4826_vm1, %v6060_v4, %v6056_v39  ;;  %1841 = vadd.xlane.f32.xlu1 %v1840_v44  ;;  %1838 = vadd.xlane.f32.xlu0 %v1837_v29  ;;  %v1843_v4 = vsel %vm19399_vm9, %v19398_v3, 0.0  ;;  %vm19411_vm9 = vcmask 654912  }
 0x3e5   :  { %v6066_v36 = vsel %vm4833_vm2, %v6065_v38, %v6061_v17  ;;  %v1632_v62 = vpop.xlane.xlu1 %1631  ;;  %v1629_v0 = vpop.xlane.xlu0 %1628  ;;  %v19400_v38 = vld [vmem:[#allocation9_spill] sm:$0xff] }
 0x3e6   :  { %v6071_v42 = vsel %vm4840_vm3, %v6070_v52, %v6066_v36  ;;  %v6080_v2 = vrot.slane %v1632_v62, %v19394_v47  ;;  %v6075_v21 = vrot.slane %v1629_v0, %v19395_v1  ;;  %v19401_v52 = vld [vmem:[#allocation10_spill] sm:$0xff] }
 0x3e7   :  { %v19402_v62 = vld [vmem:[#allocation50_spill] sm:$0xff] }
 0x3e8   :  { %v6076_v54 = vsel %vm4847_vm4, %v6075_v21, %v6071_v42  ;;  %1847 = vadd.xlane.f32.xlu1 %v1846_v6  ;;  %1844 = vadd.xlane.f32.xlu0 %v1843_v4  ;;  %v1852_v0 = vsel %vm19403_vm12, %v19402_v62, 0.0  ;;  %v1855_v62 = vsel %vm19410_vm15, %v19409_v15, 0.0  ;;  %vm19415_vm12 = vmmov %vm19278_vm0 }
 0x3e9   :  { %v1638_v29 = vpop.xlane.xlu1 %1637  ;;  %v6081_v44 = vsel %vm4854_vm5, %v6080_v2, %v6076_v54  ;;  %v1635_v39 = vpop.xlane.xlu0 %1634  ;;  %v19406_v2 = vld [vmem:[#allocation11_spill] sm:$0xff]  ;;  %v19407_v54 = vld [vmem:[#allocation12_spill] sm:$0xff]  ;;  %vm19422_vm15 = vmmov %vm19417_vm11 }
 0x3ea   :  { %v6090_v17 = vrot.slane %v1638_v29, %v19400_v38  ;;  %v6085_v36 = vrot.slane %v1635_v39, %v19401_v52  ;;  %v1858_v39 = vsel %vm19278_vm0, %v19408_v46, 0.0  ;;  %v1861_v46 = vsel %vm19417_vm11, %v19416_v20, 0.0 }
 0x3eb   :  { %vm19418_vm0 = vcmask 786112  }
 0x3ec   :  { %v6086_v3 = vsel %vm4861_vm6, %v6085_v36, %v6081_v44  ;;  %1853 = vadd.xlane.f32.xlu1 %v1852_v0  ;;  %1850 = vadd.xlane.f32.xlu0 %v1849_v50 }
 0x3ed   :  { %v1644_v6 = vpop.xlane.xlu1 %1643  ;;  %v6091_v21 = vsel %vm4868_vm7, %v6090_v17, %v6086_v3  ;;  %v1641_v42 = vpop.xlane.xlu0 %1640  ;;  %v19412_v17 = vld [vmem:[#allocation13_spill] sm:$0xff]  ;;  %v19413_v3 = vld [vmem:[#allocation14_spill] sm:$0xff] }
 0x3ee   :  { %v6100_v4 = vrot.slane %v1644_v6, %v19406_v2  ;;  %v6095_v29 = vrot.slane %v1641_v42, %v19407_v54  ;;  %v1864_v42 = vsel %vm19415_vm12, %v19414_v24, 0.0  ;;  %vm19425_vm12 = vcmask 851712  }
 0x3f0   :  { %v6096_v25 = vsel %vm4875_vm8, %v6095_v29, %v6091_v21  ;;  %1859 = vadd.xlane.f32.xlu1 %v1858_v39  ;;  %1856 = vadd.xlane.f32.xlu0 %v1855_v62 }
 0x3f1   :  { %v1650_v44 = vpop.xlane.xlu1 %1649  ;;  %v6101_v36 = vsel %vm19411_vm9, %v6100_v4, %v6096_v25  ;;  %v1647_v0 = vpop.xlane.xlu0 %1646  ;;  %v19419_v4 = vld [vmem:[#allocation15_spill] sm:$0xff]  ;;  %v19420_v25 = vld [vmem:[#allocation16_spill] sm:$0xff]  ;;  %vm19424_vm9 = vmmov %vm19417_vm11 }
 0x3f2   :  { %v6110_v50 = vrot.slane %v1650_v44, %v19412_v17  ;;  %v6105_v6 = vrot.slane %v1647_v0, %v19413_v3  ;;  %v1870_v0 = vsel %vm19422_vm15, %v19421_v22, 0.0  ;;  %v1867_v24 = vsel %vm19424_vm9, %v19423_v9, 0.0  ;;  %vm19429_vm11 = vmmov %vm19424_vm9 }
 0x3f3   :  { %vm19432_vm15 = vcmask 1048512  }
 0x3f4   :  { %v6106_v15 = vsel %vm4889_vm10, %v6105_v6, %v6101_v36  ;;  %1865 = vadd.xlane.f32.xlu1 %v1864_v42  ;;  %1862 = vadd.xlane.f32.xlu0 %v1861_v46 }
 0x3f5   :  { %v1656_v21 = vpop.xlane.xlu1 %1655  ;;  %v6111_v29 = vsel %vm19418_vm0, %v6110_v50, %v6106_v15  ;;  %v1653_v39 = vpop.xlane.xlu0 %1652  ;;  %v19426_v50 = vld [vmem:[#allocation17_spill] sm:$0xff]  ;;  %v19427_v15 = vld [vmem:[#allocation18_spill] sm:$0xff]  ;;  %vm19431_vm0 = vmmov %vm19424_vm9 }
 0x3f6   :  { %v6120_v62 = vrot.slane %v1656_v21, %v19419_v4  ;;  %v6115_v44 = vrot.slane %v1653_v39, %v19420_v25  ;;  %v1876_v39 = vsel %vm19429_vm11, %v19428_v16, 0.0  ;;  %v1873_v22 = vsel %vm19431_vm0, %v19430_v55, 0.0  ;;  %vm19434_vm9 = vmmov %vm19431_vm0  ;;  %v19435_v16 = vld [vmem:[#allocation57_spill] sm:$0xff] }
 0x3f7   :  { %vm19438_vm11 = vmmov %vm19431_vm0 }
 0x3f8   :  { %v6116_v20 = vsel %vm19425_vm12, %v6115_v44, %v6111_v29  ;;  %1871 = vadd.xlane.f32.xlu1 %v1870_v0  ;;  %1868 = vadd.xlane.f32.xlu0 %v1867_v24  ;;  %vm19436_vm12 = vmmov %vm19431_vm0 }
 0x3f9   :  { %v1662_v36 = vpop.xlane.xlu1 %1661  ;;  %v6121_v6 = vsel %vm19073_vm13, %v6120_v62, %v6116_v20  ;;  %v1659_v42 = vpop.xlane.xlu0 %1658  ;;  %v19433_v20 = vld [vmem:[#allocation60_spill] sm:$0xff] }
 0x3fa   :  { %v6130_v46 = vrot.slane %v1662_v36, %v19426_v50  ;;  %v6125_v21 = vrot.slane %v1659_v42, %v19427_v15  ;;  %v1882_v36 = vsel %vm19434_vm9, %v19433_v20, 0.0  ;;  %v1879_v42 = vsel %vm19436_vm12, %v19435_v16, 0.0  ;;  %vm19443_vm9 = vmmov %vm19431_vm0 }
 0x3fb   :  { %vm19445_vm12 = vmmov %vm19431_vm0 }
 0x3fc   :  { %v6126_v9 = vsel %vm19072_vm14, %v6125_v21, %v6121_v6  ;;  %1877 = vadd.xlane.f32.xlu1 %v1876_v39  ;;  %1874 = vadd.xlane.f32.xlu0 %v1873_v22  ;;  %v19437_v22 = vld [vmem:[#allocation62_spill] sm:$0xff] }
 0x3fd   :  { %v13779_v29 = vsel %vm19432_vm15, %v6130_v46, %v6126_v9  ;;  %v1668_v44 = vpop.xlane.xlu1 %1667  ;;  %v1665_v62 = vpop.xlane.xlu0 %1664  ;;  %v1888_v9 = vsel %vm19438_vm11, %v19437_v22, 0.0  ;;  %vm19441_vm15 = vmmov %vm19431_vm0  ;;  %v1891_v22 = vsel %vm19443_vm9, %v19442_v34, 0.0 }
 0x3fe   :  { %v6139_v0 = vrot.slane %v1668_v44, %v19388_v19  ;;  %v6135_v24 = vrot.slane %v1665_v62, %v19387_v37  ;;  %v19439_v44 = vld [vmem:[#allocation59_spill] sm:$0xff]  ;;  %vm19447_vm11 = vmmov %vm19431_vm0 }
 0x3ff   :  { %v1885_v62 = vsel %vm19431_vm0, %v19439_v44, 0.0  ;;  %vm19452_vm9 = vmmov %vm19431_vm0 }
 0x400   :  { %v6140_v55 = vsel %vm4826_vm1, %v6139_v0, %v6135_v24  ;;  %1883 = vadd.xlane.f32.xlu1 %v1882_v36  ;;  %1880 = vadd.xlane.f32.xlu0 %v1879_v42 }
 0x401   :  { %v1674_v6 = vpop.xlane.xlu1 %1673  ;;  %v1671_v21 = vpop.xlane.xlu0 %1670 }
 0x402   :  { %v6149_v46 = vrot.slane %v1674_v6, %v19393_v45  ;;  %v6144_v39 = vrot.slane %v1671_v21, %v19389_v58  ;;  %v19440_v6 = vld [vmem:[#allocation64_spill] sm:$0xff] }
 0x403   :  { %v1894_v21 = vsel %vm19441_vm15, %v19440_v6, 0.0  ;;  %vm19450_vm15 = vmmov %vm19431_vm0 }
 0x404   :  { %v6145_v20 = vsel %vm4833_vm2, %v6144_v39, %v6140_v55  ;;  %1889 = vadd.xlane.f32.xlu1 %v1888_v9  ;;  %1886 = vadd.xlane.f32.xlu0 %v1885_v62 }
 0x405   :  { %v1680_v16 = vpop.xlane.xlu1 %1679  ;;  %v6150_v0 = vsel %vm4840_vm3, %v6149_v46, %v6145_v20  ;;  %v1677_v24 = vpop.xlane.xlu0 %1676  ;;  %v19444_v20 = vld [vmem:[#allocation66_spill] sm:$0xff] }
 0x406   :  { %v6159_v36 = vrot.slane %v1680_v16, %v19394_v47  ;;  %v6154_v42 = vrot.slane %v1677_v24, %v19395_v1  ;;  %v1900_v16 = vsel %vm19445_vm12, %v19444_v20, 0.0  ;;  %v19446_v24 = vld [vmem:[#allocation63_spill] sm:$0xff]  ;;  %vm19454_vm12 = vmmov %vm19431_vm0 }
 0x407   :  { %v1897_v6 = vsel %vm19447_vm11, %v19446_v24, 0.0  ;;  %vm19456_vm11 = vmmov %vm19431_vm0 }
 0x408   :  { %v6155_v44 = vsel %vm4847_vm4, %v6154_v42, %v6150_v0  ;;  %1895 = vadd.xlane.f32.xlu1 %v1894_v21  ;;  %1892 = vadd.xlane.f32.xlu0 %v1891_v22  ;;  %v19448_v22 = vld [vmem:[#allocation68_spill] sm:$0xff] }
 0x409   :  { %v1686_v55 = vpop.xlane.xlu1 %1685  ;;  %v6160_v39 = vsel %vm4854_vm5, %v6159_v36, %v6155_v44  ;;  %v1683_v9 = vpop.xlane.xlu0 %1682  ;;  %v1906_v44 = vsel %vm19431_vm0, %v19448_v22, 0.0 }
 0x40a   :  { %v6169_v46 = vrot.slane %v1686_v55, %v19400_v38  ;;  %v6164_v62 = vrot.slane %v1683_v9, %v19401_v52  ;;  %v19449_v55 = vld [vmem:[#allocation65_spill] sm:$0xff] }
 0x40b   :  { %v1903_v9 = vsel %vm19450_vm15, %v19449_v55, 0.0  ;;  %vm19459_vm15 = vmmov %vm19431_vm0 }
 0x40c   :  { %v6165_v34 = vsel %vm4861_vm6, %v6164_v62, %v6160_v39  ;;  %1901 = vadd.xlane.f32.xlu1 %v1900_v16  ;;  %1898 = vadd.xlane.f32.xlu0 %v1897_v6  ;;  %v19451_v6 = vld [vmem:[#allocation70_spill] sm:$0xff] }
 0x40d   :  { %v1692_v0 = vpop.xlane.xlu1 %1691  ;;  %v6170_v42 = vsel %vm4868_vm7, %v6169_v46, %v6165_v34  ;;  %v1689_v21 = vpop.xlane.xlu0 %1688  ;;  %v1912_v34 = vsel %vm19452_vm9, %v19451_v6, 0.0  ;;  %v1915_v6 = vsel %vm19431_vm0, %v19457_v10, 0.0  ;;  %vm19461_vm9 = vmmov %vm19431_vm0 }
 0x40e   :  { %v6174_v36 = vrot.slane %v1689_v21, %v19407_v54  ;;  %v6179_v16 = vrot.slane %v1692_v0, %v19387_v37  ;;  %v19453_v21 = vld [vmem:[#allocation67_spill] sm:$0xff] }
 0x40f   :  { %v1909_v22 = vsel %vm19454_vm12, %v19453_v21, 0.0  ;;  %vm19463_vm12 = vmmov %vm19431_vm0 }
 0x410   :  { %v13818_v20 = vsel %vm4875_vm8, %v6174_v36, %v6170_v42  ;;  %1907 = vadd.xlane.f32.xlu1 %v1906_v44  ;;  %1904 = vadd.xlane.f32.xlu0 %v1903_v9 }
 0x411   :  { %v1698_v39 = vpop.xlane.xlu1 %1697  ;;  %v1695_v62 = vpop.xlane.xlu0 %1694 }
 0x412   :  { %v6188_v46 = vrot.slane %v1698_v39, %v19389_v58  ;;  %v6183_v24 = vrot.slane %v1695_v62, %v19388_v19  ;;  %v19455_v39 = vld [vmem:[#allocation72_spill] sm:$0xff] }
 0x413   :  { %v1918_v62 = vsel %vm19456_vm11, %v19455_v39, 0.0  ;;  %vm19465_vm11 = vmmov %vm19431_vm0 }
 0x414   :  { %v6184_v55 = vsel %vm4826_vm1, %v6183_v24, %v6179_v16  ;;  %1913 = vadd.xlane.f32.xlu1 %v1912_v34  ;;  %1910 = vadd.xlane.f32.xlu0 %v1909_v22 }
 0x415   :  { %v1704_v42 = vpop.xlane.xlu1 %1703  ;;  %v6189_v36 = vsel %vm4833_vm2, %v6188_v46, %v6184_v55  ;;  %v1701_v44 = vpop.xlane.xlu0 %1700  ;;  %v19458_v55 = vld [vmem:[#allocation2_spill] sm:$0xff] }
 0x416   :  { %v6198_v0 = vrot.slane %v1704_v42, %v19395_v1  ;;  %v6193_v9 = vrot.slane %v1701_v44, %v19393_v45  ;;  %v1924_v42 = vsel %vm19459_vm15, %v19458_v55, 0.0  ;;  %v19460_v44 = vld [vmem:[#allocation71_spill] sm:$0xff]  ;;  %vm19467_vm15 = vmmov %vm19431_vm0 }
 0x417   :  { %v1921_v39 = vsel %vm19461_vm9, %v19460_v44, 0.0  ;;  %vm19468_vm9 = vcmask 654912  }
 0x418   :  { %v6194_v21 = vsel %vm4840_vm3, %v6193_v9, %v6189_v36  ;;  %1919 = vadd.xlane.f32.xlu1 %v1918_v62  ;;  %1916 = vadd.xlane.f32.xlu0 %v1915_v6 }
 0x419   :  { %v1710_v16 = vpop.xlane.xlu1 %1709  ;;  %v6199_v24 = vsel %vm4847_vm4, %v6198_v0, %v6194_v21  ;;  %v1707_v34 = vpop.xlane.xlu0 %1706  ;;  %v19462_v21 = vld [vmem:[#allocation77_spill] sm:$0xff] }
 0x41a   :  { %v6208_v46 = vrot.slane %v1710_v16, %v19401_v52  ;;  %v6203_v22 = vrot.slane %v1707_v34, %v19394_v47  ;;  %v1930_v16 = vsel %vm19463_vm12, %v19462_v21, 0.0  ;;  %v19464_v34 = vld [vmem:[#allocation73_spill] sm:$0xff]  ;;  %vm19469_vm12 = vmmov %vm19431_vm0 }
 0x41b   :  { %v1927_v55 = vsel %vm19465_vm11, %v19464_v34, 0.0  ;;  %vm19471_vm11 = vmmov %vm19431_vm0 }
 0x41c   :  { %v6204_v10 = vsel %vm4854_vm5, %v6203_v22, %v6199_v24  ;;  %1925 = vadd.xlane.f32.xlu1 %v1924_v42  ;;  %1922 = vadd.xlane.f32.xlu0 %v1921_v39 }
 0x41d   :  { %v1716_v36 = vpop.xlane.xlu1 %1715  ;;  %v6209_v9 = vsel %vm4861_vm6, %v6208_v46, %v6204_v10  ;;  %v1713_v62 = vpop.xlane.xlu0 %1712  ;;  %v1936_v10 = vsel %vm19431_vm0, %v13264_v57, 0.0  ;;  %vm19472_vm0 = vcmask 786112  }
 0x41e   :  { %v6218_v0 = vrot.slane %v1716_v36, %v19407_v54  ;;  %v6213_v6 = vrot.slane %v1713_v62, %v19400_v38  ;;  %v19466_v36 = vld [vmem:[#allocation74_spill] sm:$0xff] }
 0x41f   :  { %v1933_v62 = vsel %vm19467_vm15, %v19466_v36, 0.0  ;;  %vm19473_vm15 = vcmask 851712  }
 0x420   :  { %v6214_v44 = vsel %vm4868_vm7, %v6213_v6, %v6209_v9  ;;  %1931 = vadd.xlane.f32.xlu1 %v1930_v16  ;;  %1928 = vadd.xlane.f32.xlu0 %v1927_v55  ;;  %v1942_v55 = vsel %vm19469_vm12, %v13288_v27, 0.0 }
 0x421   :  { %v1722_v24 = vpop.xlane.xlu1 %1721  ;;  %v6219_v22 = vsel %vm4875_vm8, %v6218_v0, %v6214_v44  ;;  %v1719_v42 = vpop.xlane.xlu0 %1718  ;;  %v19470_v44 = vld [vmem:[#allocation78_spill] sm:$0xff] }
 0x422   :  { %v6228_v46 = vrot.slane %v1722_v24, %v19413_v3  ;;  %v6223_v39 = vrot.slane %v1719_v42, %v19406_v2  ;;  %v1939_v57 = vsel %vm19471_vm11, %v19470_v44, 0.0 }
 0x424   :  { %v6224_v21 = vsel %vm19468_vm9, %v6223_v39, %v6219_v22  ;;  %1937 = vadd.xlane.f32.xlu1 %v1936_v10  ;;  %1934 = vadd.xlane.f32.xlu0 %v1933_v62  ;;  %vm19474_vm9 = vmmov %vm19471_vm11 }
 0x425   :  { %v1728_v9 = vpop.xlane.xlu1 %1727  ;;  %v6229_v6 = vsel %vm4889_vm10, %v6228_v46, %v6224_v21  ;;  %v1725_v16 = vpop.xlane.xlu0 %1724  ;;  %v1948_v36 = vsel %vm19474_vm9, %v13300_v32, 0.0  ;;  %vm19475_vm12 = vmmov %vm19474_vm9 }
 0x426   :  { %v6238_v0 = vrot.slane %v1728_v9, %v19420_v25  ;;  %v6233_v34 = vrot.slane %v1725_v16, %v19412_v17  ;;  %v1945_v27 = vsel %vm19475_vm12, %v13266_v30, 0.0  ;;  %vm19477_vm11 = vmmov %vm19474_vm9 }
 0x428   :  { %v6234_v24 = vsel %vm19472_vm0, %v6233_v34, %v6229_v6  ;;  %1943 = vadd.xlane.f32.xlu1 %v1942_v55  ;;  %1940 = vadd.xlane.f32.xlu0 %v1939_v57  ;;  %v19478_v55 = vld [vmem:[#allocation81_spill] sm:$0xff]  ;;  %vm19479_vm0 = vmmov %vm19474_vm9  ;;  %vm19481_vm9 = vcmask 1041409  }
 0x429   :  { %v1734_v22 = vpop.xlane.xlu1 %1733  ;;  %v6239_v42 = vsel %vm19473_vm15, %v6238_v0, %v6234_v24  ;;  %v1731_v39 = vpop.xlane.xlu0 %1730  ;;  %v19476_v0 = vld [vmem:[#allocation83_spill] sm:$0xff]  ;;  %v1951_v44 = vsel %vm19479_vm0, %v19478_v55, 0.0  ;;  %vm19480_vm15 = vcmask 1048512   ;;  %vm19483_vm12 = vmmov %vm19479_vm0  ;;  %v19487_v55 = vld [vmem:[#allocation84_spill] sm:$0xff] }
 0x42a   :  { %v6248_v46 = vrot.slane %v1734_v22, %v19427_v15  ;;  %v6243_v10 = vrot.slane %v1731_v39, %v19419_v4  ;;  %v1954_v34 = vsel %vm19477_vm11, %v19476_v0, 0.0  ;;  %vm19485_vm11 = vmmov %vm19479_vm0  ;;  %v19486_v0 = vld [vmem:[#allocation87_spill] sm:$0xff] }
 0x42c   :  { %v6244_v62 = vsel %vm19073_vm13, %v6243_v10, %v6239_v42  ;;  %1949 = vadd.xlane.f32.xlu1 %v1948_v36  ;;  %1946 = vadd.xlane.f32.xlu0 %v1945_v27  ;;  %v19484_v36 = vld [vmem:[#allocation82_spill] sm:$0xff] }
 0x42d   :  { %v1740_v21 = vpop.xlane.xlu1 %1739  ;;  %v6249_v9 = vsel %vm19072_vm14, %v6248_v46, %v6244_v62  ;;  %v1737_v6 = vpop.xlane.xlu0 %1736  ;;  %v19482_v46 = vld [vmem:[#allocation85_spill] sm:$0xff]  ;;  %v1957_v27 = vsel %vm19485_vm11, %v19484_v36, 0.0  ;;  %v19491_v36 = vld [vmem:[#allocation86_spill] sm:$0xff]  ;;  %vm19494_vm11 = vmmov %vm19479_vm0 }
 0x42e   :  { %v6253_v16 = vrot.slane %v1737_v6, %v19426_v50  ;;  %v6258_v22 = vrot.slane %v1740_v21, %v19387_v37  ;;  %v1960_v10 = vsel %vm19483_vm12, %v19482_v46, 0.0  ;;  %v19489_v46 = vld [vmem:[#allocation89_spill] sm:$0xff]  ;;  %vm19492_vm12 = vmmov %vm19479_vm0 }
 0x430   :  { %v6254_v32 = vsel %vm19480_vm15, %v6253_v16, %v6249_v9  ;;  %1955 = vadd.xlane.f32.xlu1 %v1954_v34  ;;  %1952 = vadd.xlane.f32.xlu0 %v1951_v44  ;;  %v1966_v34 = vsel %vm19479_vm0, %v19486_v0, 0.0  ;;  %vm19488_vm15 = vmmov %vm19479_vm0  ;;  %v19493_v0 = vld [vmem:[#allocation91_spill] sm:$0xff] }
 0x431   :  { %v13885_v30 = vsel %vm19481_vm9, %v6254_v32, %v13779_v29  ;;  %v1746_v57 = vpop.xlane.xlu1 %1745  ;;  %v1743_v24 = vpop.xlane.xlu0 %1742  ;;  %v1963_v44 = vsel %vm19488_vm15, %v19487_v55, 0.0  ;;  %vm19490_vm9 = vmmov %vm19479_vm0  ;;  %v19495_v55 = vld [vmem:[#allocation88_spill] sm:$0xff]  ;;  %vm19496_vm15 = vcmask 1041409  }
 0x432   :  { %v6267_v42 = vrot.slane %v1746_v57, %v19389_v58  ;;  %v6262_v39 = vrot.slane %v1743_v24, %v19388_v19 }
 0x434   :  { %v6263_v62 = vsel %vm4826_vm1, %v6262_v39, %v6258_v22  ;;  %1961 = vadd.xlane.f32.xlu1 %v1960_v10  ;;  %1958 = vadd.xlane.f32.xlu0 %v1957_v27  ;;  %v1972_v10 = vsel %vm19490_vm9, %v19489_v46, 0.0  ;;  %v1969_v27 = vsel %vm19492_vm12, %v19491_v36, 0.0  ;;  %vm19498_vm9 = vmmov %vm19479_vm0 }
 0x435   :  { %v1752_v29 = vpop.xlane.xlu1 %1751  ;;  %v6268_v9 = vsel %vm4833_vm2, %v6267_v42, %v6263_v62  ;;  %v1749_v6 = vpop.xlane.xlu0 %1748  ;;  %vm19500_vm12 = vmmov %vm19479_vm0 }
 0x436   :  { %v6277_v21 = vrot.slane %v1752_v29, %v19395_v1  ;;  %v6272_v16 = vrot.slane %v1749_v6, %v19393_v45 }
 0x438   :  { %v6273_v32 = vsel %vm4840_vm3, %v6272_v16, %v6268_v9  ;;  %1967 = vadd.xlane.f32.xlu1 %v1966_v34  ;;  %1964 = vadd.xlane.f32.xlu0 %v1963_v44  ;;  %v1978_v34 = vsel %vm19494_vm11, %v19493_v0, 0.0  ;;  %v1975_v44 = vsel %vm19479_vm0, %v19495_v55, 0.0  ;;  %v19501_v0 = vld [vmem:[#allocation95_spill] sm:$0xff]  ;;  %vm19502_vm11 = vmmov %vm19479_vm0 }
 0x439   :  { %v1758_v57 = vpop.xlane.xlu1 %1757  ;;  %v6278_v24 = vsel %vm4847_vm4, %v6277_v21, %v6273_v32  ;;  %v1755_v22 = vpop.xlane.xlu0 %1754 }
 0x43a   :  { %v6287_v42 = vrot.slane %v1758_v57, %v19401_v52  ;;  %v6282_v39 = vrot.slane %v1755_v22, %v19394_v47 }
 0x43c   :  { %v6283_v62 = vsel %vm4854_vm5, %v6282_v39, %v6278_v24  ;;  %1973 = vadd.xlane.f32.xlu1 %v1972_v10  ;;  %1970 = vadd.xlane.f32.xlu0 %v1969_v27  ;;  %v19497_v10 = vld [vmem:[#allocation93_spill] sm:$0xff]  ;;  %v19499_v27 = vld [vmem:[#allocation90_spill] sm:$0xff] }
 0x43d   :  { %v1764_v29 = vpop.xlane.xlu1 %1763  ;;  %v6288_v9 = vsel %vm4861_vm6, %v6287_v42, %v6283_v62  ;;  %v1761_v6 = vpop.xlane.xlu0 %1760  ;;  %v1984_v36 = vsel %vm19498_vm9, %v19497_v10, 0.0  ;;  %v1981_v62 = vsel %vm19500_vm12, %v19499_v27, 0.0  ;;  %vm19507_vm9 = vmmov %vm19479_vm0 }
 0x43e   :  { %v6297_v21 = vrot.slane %v1764_v29, %v19407_v54  ;;  %v6292_v16 = vrot.slane %v1761_v6, %v19400_v38  ;;  %vm19509_vm12 = vmmov %vm19479_vm0 }
 0x440   :  { %v6293_v32 = vsel %vm4868_vm7, %v6292_v16, %v6288_v9  ;;  %1979 = vadd.xlane.f32.xlu1 %v1978_v34  ;;  %1976 = vadd.xlane.f32.xlu0 %v1975_v44  ;;  %v19503_v34 = vld [vmem:[#allocation92_spill] sm:$0xff] }
 0x441   :  { %v6298_v57 = vsel %vm4875_vm8, %v6297_v21, %v6293_v32  ;;  %v1770_v24 = vpop.xlane.xlu1 %1769  ;;  %v1767_v22 = vpop.xlane.xlu0 %1766  ;;  %v1987_v55 = vsel %vm19479_vm0, %v19503_v34, 0.0  ;;  %v19510_v34 = vld [vmem:[#allocation96_spill] sm:$0xff] }
 0x442   :  { %v6306_v42 = vrot.slane %v1770_v24, %v19388_v19  ;;  %v6302_v39 = vrot.slane %v1767_v22, %v19387_v37  ;;  %v13924_v46 = vsel %vm19496_vm15, %v6298_v57, %v13818_v20  ;;  %v1990_v20 = vsel %vm19502_vm11, %v19501_v0, 0.0  ;;  %vm19505_vm15 = vmmov %vm19479_vm0  ;;  %v19508_v0 = vld [vmem:[#allocation99_spill] sm:$0xff] }
 0x443   :  { %vm19511_vm11 = vmmov %vm19479_vm0 }
 0x444   :  { %v6307_v29 = vsel %vm4826_vm1, %v6306_v42, %v6302_v39  ;;  %1985 = vadd.xlane.f32.xlu1 %v1984_v36  ;;  %1982 = vadd.xlane.f32.xlu0 %v1981_v62  ;;  %v19504_v39 = vld [vmem:[#allocation97_spill] sm:$0xff]  ;;  %v19506_v36 = vld [vmem:[#allocation94_spill] sm:$0xff] }
 0x445   :  { %v1776_v9 = vpop.xlane.xlu1 %1775  ;;  %v1773_v6 = vpop.xlane.xlu0 %1772  ;;  %v1996_v10 = vsel %vm19505_vm15, %v19504_v39, 0.0  ;;  %v1993_v27 = vsel %vm19507_vm9, %v19506_v36, 0.0  ;;  %v19512_v39 = vld [vmem:[#allocation101_spill] sm:$0xff]  ;;  %v19513_v36 = vld [vmem:[#allocation98_spill] sm:$0xff]  ;;  %vm19514_vm15 = vmmov %vm19479_vm0  ;;  %vm19515_vm9 = vcmask 654912  }
 0x446   :  { %v6316_v21 = vrot.slane %v1776_v9, %v19393_v45  ;;  %v6311_v16 = vrot.slane %v1773_v6, %v19389_v58 }
 0x448   :  { %v6312_v44 = vsel %vm4833_vm2, %v6311_v16, %v6307_v29  ;;  %1991 = vadd.xlane.f32.xlu1 %v1990_v20  ;;  %1988 = vadd.xlane.f32.xlu0 %v1987_v55  ;;  %v2002_v20 = vsel %vm19509_vm12, %v19508_v0, 0.0  ;;  %v1999_v55 = vsel %vm19511_vm11, %v19510_v34, 0.0  ;;  %v19516_v0 = vld [vmem:[#allocation103_spill] sm:$0xff]  ;;  %vm19517_vm12 = vmmov %vm19479_vm0  ;;  %v19518_v34 = vld [vmem:[#allocation100_spill] sm:$0xff] }
 0x449   :  { %v1782_v32 = vpop.xlane.xlu1 %1781  ;;  %v6317_v57 = vsel %vm4840_vm3, %v6316_v21, %v6312_v44  ;;  %v1779_v24 = vpop.xlane.xlu0 %1778  ;;  %vm19519_vm11 = vmmov %vm19479_vm0 }
 0x44a   :  { %v6326_v22 = vrot.slane %v1782_v32, %v19394_v47  ;;  %v6321_v42 = vrot.slane %v1779_v24, %v19395_v1 }
 0x44c   :  { %v6322_v62 = vsel %vm4847_vm4, %v6321_v42, %v6317_v57  ;;  %1997 = vadd.xlane.f32.xlu1 %v1996_v10  ;;  %1994 = vadd.xlane.f32.xlu0 %v1993_v27  ;;  %v2008_v10 = vsel %vm19479_vm0, %v19512_v39, 0.0  ;;  %v2005_v27 = vsel %vm19514_vm15, %v19513_v36, 0.0  ;;  %vm19520_vm0 = vcmask 786112   ;;  %v19521_v39 = vld [vmem:[#allocation105_spill] sm:$0xff]  ;;  %vm19522_vm15 = vmmov %vm19519_vm11  ;;  %v19523_v36 = vld [vmem:[#allocation102_spill] sm:$0xff] }
 0x44d   :  { %v1788_v29 = vpop.xlane.xlu1 %1787  ;;  %v6327_v9 = vsel %vm4854_vm5, %v6326_v22, %v6322_v62  ;;  %v1785_v6 = vpop.xlane.xlu0 %1784 }
 0x44e   :  { %v6336_v21 = vrot.slane %v1788_v29, %v19400_v38  ;;  %v6331_v16 = vrot.slane %v1785_v6, %v19401_v52 }
 0x450   :  { %v6332_v44 = vsel %vm4861_vm6, %v6331_v16, %v6327_v9  ;;  %2003 = vadd.xlane.f32.xlu1 %v2002_v20  ;;  %2000 = vadd.xlane.f32.xlu0 %v1999_v55  ;;  %v2014_v20 = vsel %vm19517_vm12, %v19516_v0, 0.0  ;;  %v2011_v55 = vsel %vm19519_vm11, %v19518_v34, 0.0  ;;  %vm19525_vm12 = vcmask 851712   ;;  %v19526_v0 = vld [vmem:[#allocation107_spill] sm:$0xff]  ;;  %v19528_v34 = vld [vmem:[#allocation104_spill] sm:$0xff] }
 0x451   :  { %v1794_v32 = vpop.xlane.xlu1 %1793  ;;  %v6337_v57 = vsel %vm4868_vm7, %v6336_v21, %v6332_v44  ;;  %v1791_v24 = vpop.xlane.xlu0 %1790 }
 0x452   :  { %v6346_v22 = vrot.slane %v1794_v32, %v19406_v2  ;;  %v6341_v42 = vrot.slane %v1791_v24, %v19407_v54 }
 0x454   :  { %v6342_v62 = vsel %vm4875_vm8, %v6341_v42, %v6337_v57  ;;  %2009 = vadd.xlane.f32.xlu1 %v2008_v10  ;;  %2006 = vadd.xlane.f32.xlu0 %v2005_v27  ;;  %v2020_v10 = vsel %vm19522_vm15, %v19521_v39, 0.0  ;;  %vm19530_vm15 = vcmask 1048512  }
 0x455   :  { %v1800_v29 = vpop.xlane.xlu1 %1799  ;;  %v6347_v9 = vsel %vm19515_vm9, %v6346_v22, %v6342_v62  ;;  %v1797_v6 = vpop.xlane.xlu0 %1796  ;;  %vm19524_vm9 = vmmov %vm19519_vm11 }
 0x456   :  { %v6356_v21 = vrot.slane %v1800_v29, %v19412_v17  ;;  %v6351_v16 = vrot.slane %v1797_v6, %v19413_v3  ;;  %v2017_v27 = vsel %vm19524_vm9, %v19523_v36, 0.0  ;;  %vm19527_vm11 = vmmov %vm19524_vm9  ;;  %v19533_v36 = vld [vmem:[#allocation106_spill] sm:$0xff] }
 0x458   :  { %v6352_v44 = vsel %vm4889_vm10, %v6351_v16, %v6347_v9  ;;  %2015 = vadd.xlane.f32.xlu1 %v2014_v20  ;;  %2012 = vadd.xlane.f32.xlu0 %v2011_v55  ;;  %v2026_v20 = vsel %vm19527_vm11, %v19526_v0, 0.0  ;;  %v19536_v0 = vld [vmem:[#allocation108_spill] sm:$0xff] }
 0x459   :  { %v1806_v32 = vpop.xlane.xlu1 %1805  ;;  %v6357_v57 = vsel %vm19520_vm0, %v6356_v21, %v6352_v44  ;;  %v1803_v24 = vpop.xlane.xlu0 %1802  ;;  %vm19529_vm0 = vmmov %vm19524_vm9  ;;  %vm19531_vm9 = vcmask 1042434  }
 0x45a   :  { %v6366_v22 = vrot.slane %v1806_v32, %v19419_v4  ;;  %v6361_v42 = vrot.slane %v1803_v24, %v19420_v25  ;;  %v2023_v55 = vsel %vm19529_vm0, %v19528_v34, 0.0  ;;  %vm19534_vm11 = vmmov %vm19529_vm0 }
 0x45c   :  { %v6362_v62 = vsel %vm19525_vm12, %v6361_v42, %v6357_v57  ;;  %2021 = vadd.xlane.f32.xlu1 %v2020_v10  ;;  %2018 = vadd.xlane.f32.xlu0 %v2017_v27  ;;  %vm19532_vm12 = vmmov %vm19529_vm0  ;;  %v2029_v27 = vsel %vm19534_vm11, %v19533_v36, 0.0 }
 0x45d   :  { %v1812_v29 = vpop.xlane.xlu1 %1811  ;;  %v6367_v9 = vsel %vm19073_vm13, %v6366_v22, %v6362_v62  ;;  %v1809_v6 = vpop.xlane.xlu0 %1808  ;;  %v2032_v10 = vsel %vm19532_vm12, %v13452_v13, 0.0  ;;  %vm19540_vm12 = vmmov %vm19529_vm0 }
 0x45e   :  { %v6376_v21 = vrot.slane %v1812_v29, %v19426_v50  ;;  %v6371_v16 = vrot.slane %v1809_v6, %v19427_v15  ;;  %vm19542_vm11 = vmmov %vm19529_vm0 }
 0x460   :  { %v6372_v44 = vsel %vm19072_vm14, %v6371_v16, %v6367_v9  ;;  %2027 = vadd.xlane.f32.xlu1 %v2026_v20  ;;  %2024 = vadd.xlane.f32.xlu0 %v2023_v55  ;;  %v19535_v16 = vld [vmem:[#allocation110_spill] sm:$0xff] }
 0x461   :  { %v6377_v32 = vsel %vm19530_vm15, %v6376_v21, %v6372_v44  ;;  %v1818_v57 = vpop.xlane.xlu1 %1817  ;;  %v1815_v24 = vpop.xlane.xlu0 %1814  ;;  %vm19537_vm15 = vmmov %vm19529_vm0 }
 0x462   :  { %v6385_v22 = vrot.slane %v1818_v57, %v19388_v19  ;;  %v6381_v42 = vrot.slane %v1815_v24, %v19387_v37  ;;  %v13991_v39 = vsel %vm19531_vm9, %v6377_v32, %v13885_v30  ;;  %v2038_v30 = vsel %vm19529_vm0, %v19535_v16, 0.0  ;;  %vm19538_vm9 = vmmov %vm19529_vm0  ;;  %v19543_v16 = vld [vmem:[#allocation111_spill] sm:$0xff] }
 0x463   :  { %v2035_v20 = vsel %vm19537_vm15, %v19536_v0, 0.0  ;;  %v2044_v24 = vsel %vm19538_vm9, %v13460_v40, 0.0  ;;  %v2047_v40 = vsel %vm19529_vm0, %v19543_v16, 0.0  ;;  %vm19544_vm15 = vmmov %vm19529_vm0 }
 0x464   :  { %v6386_v62 = vsel %vm4826_vm1, %v6385_v22, %v6381_v42  ;;  %2033 = vadd.xlane.f32.xlu1 %v2032_v10  ;;  %2030 = vadd.xlane.f32.xlu0 %v2029_v27  ;;  %v19539_v22 = vld [vmem:[#allocation109_spill] sm:$0xff]  ;;  %vm19546_vm9 = vmmov %vm19529_vm0 }
 0x465   :  { %v1824_v29 = vpop.xlane.xlu1 %1823  ;;  %v1821_v9 = vpop.xlane.xlu0 %1820  ;;  %v2041_v42 = vsel %vm19540_vm12, %v19539_v22, 0.0  ;;  %vm19547_vm12 = vcmask 1042434  }
 0x466   :  { %v6395_v6 = vrot.slane %v1824_v29, %v19393_v45  ;;  %v6390_v21 = vrot.slane %v1821_v9, %v19389_v58 }
 0x468   :  { %v6391_v13 = vsel %vm4833_vm2, %v6390_v21, %v6386_v62  ;;  %2039 = vadd.xlane.f32.xlu1 %v2038_v30  ;;  %2036 = vadd.xlane.f32.xlu0 %v2035_v20 }
 0x469   :  { %v1830_v34 = vpop.xlane.xlu1 %1829  ;;  %v6396_v55 = vsel %vm4840_vm3, %v6395_v6, %v6391_v13  ;;  %v1827_v44 = vpop.xlane.xlu0 %1826  ;;  %v19541_v6 = vld [vmem:[#allocation113_spill] sm:$0xff] }
 0x46a   :  { %v6405_v32 = vrot.slane %v1830_v34, %v19394_v47  ;;  %v6400_v57 = vrot.slane %v1827_v44, %v19395_v1  ;;  %v2050_v21 = vsel %vm19542_vm11, %v19541_v6, 0.0  ;;  %v19545_v44 = vld [vmem:[#allocation112_spill] sm:$0xff]  ;;  %vm19548_vm11 = vmmov %vm19529_vm0 }
 0x46c   :  { %v6401_v10 = vsel %vm4847_vm4, %v6400_v57, %v6396_v55  ;;  %2045 = vadd.xlane.f32.xlu1 %v2044_v24  ;;  %2042 = vadd.xlane.f32.xlu0 %v2041_v42  ;;  %v2056_v55 = vsel %vm19544_vm15, %v13468_v63, 0.0  ;;  %v2062_v63 = vsel %vm19548_vm11, %v13474_v28, 0.0  ;;  %vm19550_vm15 = vmmov %vm19529_vm0 }
 0x46d   :  { %v1836_v36 = vpop.xlane.xlu1 %1835  ;;  %v6406_v27 = vsel %vm4854_vm5, %v6405_v32, %v6401_v10  ;;  %v1833_v62 = vpop.xlane.xlu0 %1832  ;;  %v2053_v32 = vsel %vm19546_vm9, %v19545_v44, 0.0  ;;  %vm19552_vm9 = vmmov %vm19529_vm0 }
 0x46e   :  { %v6415_v29 = vrot.slane %v1836_v36, %v19400_v38  ;;  %v6410_v9 = vrot.slane %v1833_v62, %v19401_v52  ;;  %v19549_v62 = vld [vmem:[#allocation114_spill] sm:$0xff]  ;;  %vm19554_vm11 = vmmov %vm19529_vm0 }
 0x470   :  { %v6411_v30 = vsel %vm4861_vm6, %v6410_v9, %v6406_v27  ;;  %2051 = vadd.xlane.f32.xlu1 %v2050_v21  ;;  %2048 = vadd.xlane.f32.xlu0 %v2047_v40 }
 0x471   :  { %v1842_v0 = vpop.xlane.xlu1 %1841  ;;  %v6416_v20 = vsel %vm4868_vm7, %v6415_v29, %v6411_v30  ;;  %v1839_v13 = vpop.xlane.xlu0 %1838  ;;  %v2059_v29 = vsel %vm19529_vm0, %v19549_v62, 0.0  ;;  %v2068_v30 = vsel %vm19550_vm15, %v13480_v7, 0.0  ;;  %v2071_v7 = vsel %vm19554_vm11, %v13476_v33, 0.0  ;;  %vm19556_vm15 = vmmov %vm19529_vm0 }
 0x472   :  { %v6420_v34 = vrot.slane %v1839_v13, %v19407_v54  ;;  %v6425_v10 = vrot.slane %v1842_v0, %v19387_v37  ;;  %v19551_v0 = vld [vmem:[#allocation115_spill] sm:$0xff]  ;;  %v2080_v62 = vsel %vm19529_vm0, %v13496_v56, 0.0  ;;  %vm19559_vm11 = vcmask 654912  }
 0x473   :  { %v2065_v28 = vsel %vm19552_vm9, %v19551_v0, 0.0  ;;  %vm19557_vm9 = vmmov %vm19529_vm0 }
 0x474   :  { %v6421_v57 = vsel %vm4875_vm8, %v6420_v34, %v6416_v20  ;;  %2057 = vadd.xlane.f32.xlu1 %v2056_v55  ;;  %2054 = vadd.xlane.f32.xlu0 %v2053_v32 }
 0x475   :  { %v14030_v24 = vsel %vm19547_vm12, %v6421_v57, %v13924_v46  ;;  %v1848_v22 = vpop.xlane.xlu1 %1847  ;;  %v1845_v42 = vpop.xlane.xlu0 %1844  ;;  %vm19553_vm12 = vmmov %vm19529_vm0 }
 0x476   :  { %v6434_v36 = vrot.slane %v1848_v22, %v19389_v58  ;;  %v6429_v27 = vrot.slane %v1845_v42, %v19388_v19  ;;  %v2074_v57 = vsel %vm19553_vm12, %v13488_v14, 0.0  ;;  %vm19558_vm12 = vmmov %vm19529_vm0 }
 0x477   :  { %v2083_v56 = vsel %vm19558_vm12, %v13490_v35, 0.0  ;;  %vm19562_vm12 = vcmask 851712  }
 0x478   :  { %v6430_v9 = vsel %vm4826_vm1, %v6429_v27, %v6425_v10  ;;  %2063 = vadd.xlane.f32.xlu1 %v2062_v63  ;;  %2060 = vadd.xlane.f32.xlu0 %v2059_v29  ;;  %v19555_v29 = vld [vmem:[#allocation116_spill] sm:$0xff] }
 0x479   :  { %v1854_v46 = vpop.xlane.xlu1 %1853  ;;  %v6435_v6 = vsel %vm4833_vm2, %v6434_v36, %v6430_v9  ;;  %v1851_v21 = vpop.xlane.xlu0 %1850  ;;  %v2077_v14 = vsel %vm19556_vm15, %v19555_v29, 0.0  ;;  %vm19560_vm15 = vmmov %vm19529_vm0 }
 0x47a   :  { %v6444_v16 = vrot.slane %v1854_v46, %v19395_v1  ;;  %v6439_v40 = vrot.slane %v1851_v21, %v19393_v45 }
 0x47c   :  { %v6440_v20 = vsel %vm4840_vm3, %v6439_v40, %v6435_v6  ;;  %2069 = vadd.xlane.f32.xlu1 %v2068_v30  ;;  %2066 = vadd.xlane.f32.xlu0 %v2065_v28  ;;  %v2086_v40 = vsel %vm19557_vm9, %v13504_v48, 0.0  ;;  %v2089_v48 = vsel %vm19560_vm15, %v13502_v31, 0.0  ;;  %vm19561_vm9 = vcmask 786112   ;;  %vm19564_vm15 = vmmov %vm19529_vm0 }
 0x47d   :  { %v1860_v13 = vpop.xlane.xlu1 %1859  ;;  %v6445_v34 = vsel %vm4847_vm4, %v6444_v16, %v6440_v20  ;;  %v1857_v55 = vpop.xlane.xlu0 %1856 }
 0x47e   :  { %v6454_v44 = vrot.slane %v1860_v13, %v19401_v52  ;;  %v6449_v32 = vrot.slane %v1857_v55, %v19394_v47  ;;  %v2092_v55 = vsel %vm19529_vm0, %v13516_v43, 0.0  ;;  %v2095_v43 = vsel %vm19529_vm0, %v13510_v61, 0.0 }
 0x480   :  { %v6450_v22 = vsel %vm4854_vm5, %v6449_v32, %v6445_v34  ;;  %2075 = vadd.xlane.f32.xlu1 %v2074_v57  ;;  %2072 = vadd.xlane.f32.xlu0 %v2071_v7 }
 0x481   :  { %v1866_v42 = vpop.xlane.xlu1 %1865  ;;  %v6455_v10 = vsel %vm4861_vm6, %v6454_v44, %v6450_v22  ;;  %v1863_v36 = vpop.xlane.xlu0 %1862 }
 0x482   :  { %v6464_v27 = vrot.slane %v1866_v42, %v19407_v54  ;;  %v6459_v63 = vrot.slane %v1863_v36, %v19400_v38 }
 0x484   :  { %v6460_v33 = vsel %vm4868_vm7, %v6459_v63, %v6455_v10  ;;  %2081 = vadd.xlane.f32.xlu1 %v2080_v62  ;;  %2078 = vadd.xlane.f32.xlu0 %v2077_v14  ;;  %v2104_v62 = vsel %vm19564_vm15, %v13536_v26, 0.0  ;;  %v2110_v26 = vsel %vm19529_vm0, %v13544_v60, 0.0  ;;  %vm19568_vm15 = vmmov %vm19529_vm0 }
 0x485   :  { %v1872_v9 = vpop.xlane.xlu1 %1871  ;;  %v6465_v46 = vsel %vm4875_vm8, %v6464_v27, %v6460_v33  ;;  %v1869_v6 = vpop.xlane.xlu0 %1868 }
 0x486   :  { %v6474_v21 = vrot.slane %v1872_v9, %v19413_v3  ;;  %v6469_v16 = vrot.slane %v1869_v6, %v19406_v2 }
 0x488   :  { %v6470_v30 = vsel %vm19559_vm11, %v6469_v16, %v6465_v46  ;;  %2087 = vadd.xlane.f32.xlu1 %v2086_v40  ;;  %2084 = vadd.xlane.f32.xlu0 %v2083_v56  ;;  %vm19563_vm11 = vmmov %vm19529_vm0 }
 0x489   :  { %v1878_v0 = vpop.xlane.xlu1 %1877  ;;  %v6475_v28 = vsel %vm4889_vm10, %v6474_v21, %v6470_v30  ;;  %v1875_v20 = vpop.xlane.xlu0 %1874  ;;  %v2098_v42 = vsel %vm19563_vm11, %v13524_v53, 0.0  ;;  %vm19567_vm11 = vcmask 1043459  }
 0x48a   :  { %v6484_v13 = vrot.slane %v1878_v0, %v19420_v25  ;;  %v6479_v34 = vrot.slane %v1875_v20, %v19412_v17 }
 0x48c   :  { %v6480_v35 = vsel %vm19561_vm9, %v6479_v34, %v6475_v28  ;;  %2093 = vadd.xlane.f32.xlu1 %v2092_v55  ;;  %2090 = vadd.xlane.f32.xlu0 %v2089_v48  ;;  %vm19565_vm9 = vmmov %vm19529_vm0 }
 0x48d   :  { %v1884_v44 = vpop.xlane.xlu1 %1883  ;;  %v6485_v32 = vsel %vm19562_vm12, %v6484_v13, %v6480_v35  ;;  %v1881_v57 = vpop.xlane.xlu0 %1880  ;;  %v2101_v29 = vsel %vm19565_vm9, %v13522_v23, 0.0  ;;  %vm19566_vm12 = vcmask 1048512   ;;  %v2107_v23 = vsel %vm19568_vm15, %v13530_v18, 0.0  ;;  %vm19569_vm9 = vmmov %vm19529_vm0 }
 0x48e   :  { %v6494_v7 = vrot.slane %v1884_v44, %v19427_v15  ;;  %v6489_v22 = vrot.slane %v1881_v57, %v19419_v4  ;;  %v2116_v0 = vsel %vm19569_vm9, %v13556_v41, 0.0  ;;  %v2119_v41 = vsel %vm19529_vm0, %v13550_v8, 0.0  ;;  %vm19572_vm15 = vmmov %vm19529_vm0 }
 0x48f   :  { %vm19573_vm9 = vmmov %vm19529_vm0 }
 0x490   :  { %v6490_v31 = vsel %vm19073_vm13, %v6489_v22, %v6485_v32  ;;  %2099 = vadd.xlane.f32.xlu1 %v2098_v42  ;;  %2096 = vadd.xlane.f32.xlu0 %v2095_v43  ;;  %v2128_v22 = vsel %vm19572_vm15, %v13576_v59, 0.0  ;;  %vm19578_vm15 = vmmov %vm19529_vm0 }
 0x491   :  { %v1890_v10 = vpop.xlane.xlu1 %1889  ;;  %v6495_v36 = vsel %vm19072_vm14, %v6494_v7, %v6490_v31  ;;  %v1887_v27 = vpop.xlane.xlu0 %1886 }
 0x492   :  { %v6499_v63 = vrot.slane %v1887_v27, %v19426_v50  ;;  %v6504_v9 = vrot.slane %v1890_v10, %v19387_v37 }
 0x494   :  { %v6500_v53 = vsel %vm19566_vm12, %v6499_v63, %v6495_v36  ;;  %2105 = vadd.xlane.f32.xlu1 %v2104_v62  ;;  %2102 = vadd.xlane.f32.xlu0 %v2101_v29  ;;  %vm19570_vm12 = vmmov %vm19529_vm0 }
 0x495   :  { %v14097_v61 = vsel %vm19567_vm11, %v6500_v53, %v13991_v39  ;;  %v1896_v14 = vpop.xlane.xlu1 %1895  ;;  %v1893_v33 = vpop.xlane.xlu0 %1892  ;;  %v2113_v60 = vsel %vm19570_vm12, %v13542_v5, 0.0  ;;  %vm19571_vm11 = vmmov %vm19529_vm0  ;;  %vm19574_vm12 = vcmask 1043459  }
 0x496   :  { %v6513_v46 = vrot.slane %v1896_v14, %v19389_v58  ;;  %v6508_v6 = vrot.slane %v1893_v33, %v19388_v19  ;;  %v2122_v48 = vsel %vm19571_vm11, %v13564_v51, 0.0  ;;  %v2125_v51 = vsel %vm19573_vm9, %v13562_v12, 0.0  ;;  %vm19576_vm11 = vmmov %vm19529_vm0  ;;  %v19577_v33 = vld [vmem:[#allocation119_spill] sm:$0xff] }
 0x497   :  { %v2134_v59 = vsel %vm19576_vm11, %v13584_v11, 0.0  ;;  %v2131_v12 = vsel %vm19529_vm0, %v13570_v49, 0.0  ;;  %vm19580_vm9 = vmmov %vm19529_vm0 }
 0x498   :  { %v6509_v21 = vsel %vm4826_vm1, %v6508_v6, %v6504_v9  ;;  %2111 = vadd.xlane.f32.xlu1 %v2110_v26  ;;  %2108 = vadd.xlane.f32.xlu0 %v2107_v23  ;;  %v19579_v9 = vld [vmem:[#allocation117_spill] sm:$0xff]  ;;  %vm19584_vm11 = vmmov %vm19529_vm0 }
 0x499   :  { %v1902_v39 = vpop.xlane.xlu1 %1901  ;;  %v6514_v16 = vsel %vm4833_vm2, %v6513_v46, %v6509_v21  ;;  %v1899_v40 = vpop.xlane.xlu0 %1898  ;;  %v2137_v46 = vsel %vm19580_vm9, %v19579_v9, 0.0  ;;  %vm19589_vm9 = vmmov %vm19529_vm0 }
 0x49a   :  { %v6523_v56 = vrot.slane %v1902_v39, %v19395_v1  ;;  %v6518_v30 = vrot.slane %v1899_v40, %v19393_v45  ;;  %v19581_v39 = vld [vmem:[#allocation121_spill] sm:$0xff]  ;;  %v19583_v40 = vld [vmem:[#allocation118_spill] sm:$0xff] }
 0x49c   :  { %v6519_v18 = vsel %vm4840_vm3, %v6518_v30, %v6514_v16  ;;  %2117 = vadd.xlane.f32.xlu1 %v2116_v0  ;;  %2114 = vadd.xlane.f32.xlu0 %v2113_v60 }
 0x49d   :  { %v1908_v28 = vpop.xlane.xlu1 %1907  ;;  %v6524_v20 = vsel %vm4847_vm4, %v6523_v56, %v6519_v18  ;;  %v1905_v13 = vpop.xlane.xlu0 %1904  ;;  %v2143_v56 = vsel %vm19584_vm11, %v19583_v40, 0.0  ;;  %vm19592_vm11 = vcmask 654912  }
 0x49e   :  { %v6533_v34 = vrot.slane %v1908_v28, %v19401_v52  ;;  %v6528_v55 = vrot.slane %v1905_v13, %v19394_v47  ;;  %v19585_v13 = vld [vmem:[#allocation123_spill] sm:$0xff] }
 0x4a0   :  { %v6529_v5 = vsel %vm4854_vm5, %v6528_v55, %v6524_v20  ;;  %2123 = vadd.xlane.f32.xlu1 %v2122_v48  ;;  %2120 = vadd.xlane.f32.xlu0 %v2119_v41  ;;  %v19586_v55 = vld [vmem:[#allocation120_spill] sm:$0xff] }
 0x4a1   :  { %v1914_v35 = vpop.xlane.xlu1 %1913  ;;  %v6534_v44 = vsel %vm4861_vm6, %v6533_v34, %v6529_v5  ;;  %v1911_v32 = vpop.xlane.xlu0 %1910  ;;  %v2152_v34 = vsel %vm19529_vm0, %v19585_v13, 0.0 }
 0x4a2   :  { %v6543_v57 = vrot.slane %v1914_v35, %v19407_v54  ;;  %v6538_v7 = vrot.slane %v1911_v32, %v19400_v38 }
 0x4a4   :  { %v6539_v8 = vsel %vm4868_vm7, %v6538_v7, %v6534_v44  ;;  %2129 = vadd.xlane.f32.xlu1 %v2128_v22  ;;  %2126 = vadd.xlane.f32.xlu0 %v2125_v51  ;;  %v19588_v7 = vld [vmem:[#allocation125_spill] sm:$0xff]  ;;  %v19590_v51 = vld [vmem:[#allocation122_spill] sm:$0xff] }
 0x4a5   :  { %v6544_v42 = vsel %vm4875_vm8, %v6543_v57, %v6539_v8  ;;  %v1920_v43 = vpop.xlane.xlu1 %1919  ;;  %v1917_v31 = vpop.xlane.xlu0 %1916  ;;  %v2158_v22 = vsel %vm19589_vm9, %v19588_v7, 0.0  ;;  %vm19596_vm9 = vcmask 786112  }
 0x4a6   :  { %v6552_v10 = vrot.slane %v1920_v43, %v19388_v19  ;;  %v6548_v36 = vrot.slane %v1917_v31, %v19387_v37  ;;  %v14136_v27 = vsel %vm19574_vm12, %v6544_v42, %v14030_v24  ;;  %v2140_v24 = vsel %vm19578_vm15, %v19577_v33, 0.0  ;;  %vm19582_vm12 = vmmov %vm19529_vm0 }
 0x4a7   :  { %19575 = vst [vmem:[#allocation27_spill] sm:$0xff] %v14136_v27  ;;  %v2146_v16 = vsel %vm19582_vm12, %v19581_v39, 0.0  ;;  %vm19587_vm15 = vmmov %vm19529_vm0 }
 0x4a8   :  { %v6553_v63 = vsel %vm4826_vm1, %v6552_v10, %v6548_v36  ;;  %2135 = vadd.xlane.f32.xlu1 %v2134_v59  ;;  %2132 = vadd.xlane.f32.xlu0 %v2131_v12  ;;  %v2149_v48 = vsel %vm19587_vm15, %v19586_v55, 0.0  ;;  %vm19591_vm12 = vmmov %vm19529_vm0  ;;  %v19593_v12 = vld [vmem:[#allocation127_spill] sm:$0xff] }
 0x4a9   :  { %v1926_v62 = vpop.xlane.xlu1 %1925  ;;  %v1923_v29 = vpop.xlane.xlu0 %1922  ;;  %v2155_v8 = vsel %vm19591_vm12, %v19590_v51, 0.0  ;;  %vm19595_vm15 = vmmov %vm19529_vm0 }
 0x4aa   :  { %v6557_v53 = vrot.slane %v1923_v29, %v19389_v58  ;;  %v6562_v14 = vrot.slane %v1926_v62, %v19393_v45  ;;  %v19594_v62 = vld [vmem:[#allocation124_spill] sm:$0xff]  ;;  %vm19598_vm12 = vmmov %vm19529_vm0 }
 0x4ab   :  { %v2161_v29 = vsel %vm19595_vm15, %v19594_v62, 0.0  ;;  %v19622_v62 = vld [vmem:[#allocation36_spill] sm:$0xff] }
 0x4ac   :  { %v6558_v11 = vsel %vm4833_vm2, %v6557_v53, %v6553_v63  ;;  %2141 = vadd.xlane.f32.xlu1 %v2140_v24  ;;  %2138 = vadd.xlane.f32.xlu0 %v2137_v46  ;;  %v2164_v63 = vsel %vm19529_vm0, %v19593_v12, 0.0  ;;  %v19620_v12 = vld [vmem:[#allocation33_spill] sm:$0xff] }
 0x4ad   :  { %v1932_v49 = vpop.xlane.xlu1 %1931  ;;  %v1929_v6 = vpop.xlane.xlu0 %1928  ;;  %v6563_v21 = vsel %vm4840_vm3, %v6562_v14, %v6558_v11  ;;  %v19597_v11 = vld [vmem:[#allocation128_spill] sm:$0xff] }
 0x4ae   :  { %v6567_v26 = vrot.slane %v1929_v6, %v19395_v1  ;;  %v6572_v23 = vrot.slane %v1932_v49, %v19394_v47  ;;  %v2170_v49 = vsel %vm19598_vm12, %v19597_v11, 0.0  ;;  %v19599_v6 = vld [vmem:[#allocation126_spill] sm:$0xff]  ;;  %vm19606_vm12 = vcmask 1048512  }
 0x4b0   :  { %v6568_v30 = vsel %vm4847_vm4, %v6567_v26, %v6563_v21  ;;  %2147 = vadd.xlane.f32.xlu1 %v2146_v16  ;;  %2144 = vadd.xlane.f32.xlu0 %v2143_v56 }
 0x4b1   :  { %v1938_v0 = vpop.xlane.xlu1 %1937  ;;  %v1935_v60 = vpop.xlane.xlu0 %1934  ;;  %v6573_v20 = vsel %vm4854_vm5, %v6572_v23, %v6568_v30  ;;  %v19602_v30 = vld [vmem:[#allocation31_spill] sm:$0xff] }
 0x4b2   :  { %v6577_v18 = vrot.slane %v1935_v60, %v19401_v52  ;;  %v6582_v28 = vrot.slane %v1938_v0, %v19400_v38  ;;  %v19604_v60 = vld [vmem:[#allocation26_spill] sm:$0xff] }
 0x4b4   :  { %v6578_v41 = vsel %vm4861_vm6, %v6577_v18, %v6573_v20  ;;  %2153 = vadd.xlane.f32.xlu1 %v2152_v34  ;;  %2150 = vadd.xlane.f32.xlu0 %v2149_v48  ;;  %v19609_v48 = vld [vmem:[#allocation32_spill] sm:$0xff] }
 0x4b5   :  { %v1944_v5 = vpop.xlane.xlu1 %1943  ;;  %v1941_v35 = vpop.xlane.xlu0 %1940  ;;  %v6583_v57 = vsel %vm4868_vm7, %v6582_v28, %v6578_v41 }
 0x4b6   :  { %v6587_v44 = vrot.slane %v1941_v35, %v19407_v54  ;;  %v6592_v32 = vrot.slane %v1944_v5, %v19406_v2  ;;  %v19611_v5 = vld [vmem:[#allocation21_spill] sm:$0xff] }
 0x4b8   :  { %v6588_v42 = vsel %vm4875_vm8, %v6587_v44, %v6583_v57  ;;  %2159 = vadd.xlane.f32.xlu1 %v2158_v22  ;;  %2156 = vadd.xlane.f32.xlu0 %v2155_v8  ;;  %v19613_v57 = vld [vmem:[#allocation34_spill] sm:$0xff] }
 0x4b9   :  { %v1950_v43 = vpop.xlane.xlu1 %1949  ;;  %v1947_v31 = vpop.xlane.xlu0 %1946  ;;  %v6593_v59 = vsel %vm19592_vm11, %v6592_v32, %v6588_v42  ;;  %vm19600_vm11 = vmmov %vm19529_vm0  ;;  %vm19601_vm0 = vcmask 851712   ;;  %v19615_v22 = vld [vmem:[#allocation22_spill] sm:$0xff]  ;;  %v19617_v42 = vld [vmem:[#allocation25_spill] sm:$0xff] }
 0x4ba   :  { %v6597_v10 = vrot.slane %v1947_v31, %v19413_v3  ;;  %v6602_v36 = vrot.slane %v1950_v43, %v19412_v17  ;;  %v2167_v26 = vsel %vm19600_vm11, %v19599_v6, 0.0  ;;  %vm19603_vm15 = vmmov %vm19600_vm11  ;;  %v19619_v31 = vld [vmem:[#allocation28_spill] sm:$0xff]  ;;  %v19628_v6 = vld [vmem:[#allocation30_spill] sm:$0xff] }
 0x4bb   :  { %v2176_v0 = vsel %vm19603_vm15, %v19602_v30, 0.0 }
 0x4bc   :  { %v6598_v53 = vsel %vm4889_vm10, %v6597_v10, %v6593_v59  ;;  %2165 = vadd.xlane.f32.xlu1 %v2164_v63  ;;  %2162 = vadd.xlane.f32.xlu0 %v2161_v29 }
 0x4bd   :  { %v1956_v14 = vpop.xlane.xlu1 %1955  ;;  %v1953_v33 = vpop.xlane.xlu0 %1952  ;;  %v6603_v46 = vsel %vm19596_vm9, %v6602_v36, %v6598_v53  ;;  %vm19605_vm9 = vmmov %vm19600_vm11  ;;  %vm19607_vm11 = vcmask 1044484  }
 0x4be   :  { %v6607_v24 = vrot.slane %v1953_v33, %v19420_v25  ;;  %v6612_v9 = vrot.slane %v1956_v14, %v19419_v4  ;;  %v2173_v18 = vsel %vm19605_vm9, %v19604_v60, 0.0  ;;  %v19624_v33 = vld [vmem:[#allocation23_spill] sm:$0xff] }
 0x4c0   :  { %v6608_v23 = vsel %vm19601_vm0, %v6607_v24, %v6603_v46  ;;  %2171 = vadd.xlane.f32.xlu1 %v2170_v49  ;;  %2168 = vadd.xlane.f32.xlu0 %v2167_v26  ;;  %vm19610_vm0 = vmmov %vm19605_vm9 }
 0x4c1   :  { %v1962_v21 = vpop.xlane.xlu1 %1961  ;;  %v1959_v39 = vpop.xlane.xlu0 %1958  ;;  %v6613_v56 = vsel %vm19073_vm13, %v6612_v9, %v6608_v23  ;;  %v2182_v41 = vsel %vm19610_vm0, %v19609_v48, 0.0  ;;  %vm19612_vm15 = vmmov %vm19610_vm0  ;;  %v2191_v10 = vsel %vm19610_vm0, %v19619_v31, 0.0  ;;  %v19626_v9 = vld [vmem:[#allocation24_spill] sm:$0xff]  ;;  %v2212_v26 = vsel %vm19610_vm0, %v19628_v6, 0.0  ;;  %v19629_v23 = vld [vmem:[#allocation35_spill] sm:$0xff] }
 0x4c2   :  { %v6622_v16 = vrot.slane %v1962_v21, %v19426_v50  ;;  %v6617_v40 = vrot.slane %v1959_v39, %v19427_v15  ;;  %v2179_v35 = vsel %vm19612_vm15, %v19611_v5, 0.0  ;;  %vm19614_vm9 = vmmov %vm19610_vm0  ;;  %v10096_v6 = vld [vmem:[%s19005_s0 + $0x50] sm:$0xff] }
 0x4c3   :  { %v2188_v7 = vsel %vm19614_vm9, %v19613_v57, 0.0  ;;  %vm19621_vm15 = vmmov %vm19610_vm0  ;;  %v10088_v57 = vld [vmem:[%s19005_s0] sm:$0xff] }
 0x4c4   :  { %v6618_v28 = vsel %vm19072_vm14, %v6617_v40, %v6613_v56  ;;  %2177 = vadd.xlane.f32.xlu1 %v2176_v0  ;;  %2174 = vadd.xlane.f32.xlu0 %v2173_v18  ;;  %v2200_v63 = vsel %vm19621_vm15, %v19620_v12, 0.0  ;;  %vm19623_vm9 = vmmov %vm19610_vm0  ;;  %v10092_v12 = vld [vmem:[%s19005_s0 + $0x30] sm:$0xff] }
 0x4c5   :  { %v6623_v20 = vsel %vm19606_vm12, %v6622_v16, %v6618_v28  ;;  %v14199_v13 = vpop.xlane.xlu1 %1967  ;;  %v14201_v34 = vpop.xlane.xlu0 %1964  ;;  %vm19616_vm12 = vmmov %vm19610_vm0  ;;  %v2197_v29 = vsel %vm19623_vm9, %v19622_v62, 0.0  ;;  %v10086_v28 = vld [vmem:[%s19005_s0 + $0x8] sm:$0xff]  ;;  %vm19650_vm9 = vcmask 654912  }
 0x4c6   :  { %v14205_v55 = vsel %vm19607_vm11, %v6623_v20, %v14097_v61  ;;  %v2185_v51 = vsel %vm19616_vm12, %v19615_v22, 0.0  ;;  %vm19618_vm11 = vmmov %vm19610_vm0 }
 0x4c7   :  { %19608 = vst [vmem:[#allocation29_spill] sm:$0xff] %v14205_v55  ;;  %v2194_v43 = vsel %vm19618_vm11, %v19617_v42, 0.0  ;;  %vm19625_vm12 = vmmov %vm19610_vm0  ;;  %v10090_v42 = vld [vmem:[%s19005_s0 + $0x20] sm:$0xff] }
 0x4c8   :  { %2183 = vadd.xlane.f32.xlu1 %v2182_v41  ;;  %2180 = vadd.xlane.f32.xlu0 %v2179_v35  ;;  %v2206_v24 = vsel %vm19625_vm12, %v19624_v33, 0.0  ;;  %vm19627_vm11 = vmmov %vm19610_vm0  ;;  %v10087_v41 = vld [vmem:[%s19005_s0 + $0x10] sm:$0xff]  ;;  %v10094_v33 = vld [vmem:[%s19005_s0 + $0x40] sm:$0xff]  ;;  %vm19651_vm12 = vcmask 786112  }
 0x4c9   :  { %v14211_v44 = vpop.xlane.xlu1 %1973  ;;  %v14213_v32 = vpop.xlane.xlu0 %1970  ;;  %v2203_v46 = vsel %vm19627_vm11, %v19626_v9, 0.0  ;;  %vm19630_vm15 = vmmov %vm19610_vm0  ;;  %vm19652_vm11 = vcmask 851712  }
 0x4ca   :  { %v2209_v21 = vsel %vm19630_vm15, %v19629_v23, 0.0  ;;  %vm19662_vm0 = vmmov %vm19650_vm9 }
 0x4cb   :  { %vm19668_vm15 = vmmov %vm19662_vm0 }
 0x4cc   :  { %2189 = vadd.xlane.f32.xlu1 %v2188_v7  ;;  %2186 = vadd.xlane.f32.xlu0 %v2185_v51  ;;  %v10089_v7 = vld [vmem:[%s19005_s0 + $0x18] sm:$0xff] }
 0x4cd   :  { %v14219_v61 = vpop.xlane.xlu1 %1979  ;;  %v14221_v8 = vpop.xlane.xlu0 %1976 }
 0x4d0   :  { %2195 = vadd.xlane.f32.xlu1 %v2194_v43  ;;  %2192 = vadd.xlane.f32.xlu0 %v2191_v10  ;;  %v10091_v43 = vld [vmem:[%s19005_s0 + $0x28] sm:$0xff] }
 0x4d1   :  { %v14227_v36 = vpop.xlane.xlu1 %1985  ;;  %v14229_v59 = vpop.xlane.xlu0 %1982 }
 0x4d4   :  { %2201 = vadd.xlane.f32.xlu1 %v2200_v63  ;;  %2198 = vadd.xlane.f32.xlu0 %v2197_v29  ;;  %v10093_v63 = vld [vmem:[%s19005_s0 + $0x38] sm:$0xff] }
 0x4d5   :  { %v14235_v53 = vpop.xlane.xlu1 %1991  ;;  %v14237_v14 = vpop.xlane.xlu0 %1988 }
 0x4d8   :  { %2207 = vadd.xlane.f32.xlu1 %v2206_v24  ;;  %2204 = vadd.xlane.f32.xlu0 %v2203_v46  ;;  %v10095_v24 = vld [vmem:[%s19005_s0 + $0x48] sm:$0xff] }
 0x4d9   :  { %v14243_v11 = vpop.xlane.xlu1 %1997  ;;  %v14245_v49 = vpop.xlane.xlu0 %1994 }
 0x4dc   :  { %2213 = vadd.xlane.f32.xlu1 %v2212_v26  ;;  %2210 = vadd.xlane.f32.xlu0 %v2209_v21  ;;  %v10097_v26 = vld [vmem:[%s19005_s0 + $0x58] sm:$0xff] }
 0x4dd   :  { %v14251_v39 = vpop.xlane.xlu1 %2003  ;;  %v14253_v16 = vpop.xlane.xlu0 %2000 }
 0x4e1   :  { %v14255_v40 = vpop.xlane.xlu1 %2009  ;;  %v14257_v56 = vpop.xlane.xlu0 %2006 }
 0x4e5   :  { %v14259_v30 = vpop.xlane.xlu1 %2015  ;;  %v14261_v0 = vpop.xlane.xlu0 %2012 }
 0x4e9   :  { %v14263_v60 = vpop.xlane.xlu1 %2021  ;;  %v14265_v18 = vpop.xlane.xlu0 %2018 }
 0x4ed   :  { %2217 = vrot.lane.b32.xlu1 %v10086_v28, %s10487_s22  ;;  %v14271_v20 = vpop.xlane.xlu1 %2027  ;;  %v14273_v48 = vpop.xlane.xlu0 %2024  ;;  %v10098_v28 = vld [vmem:[%s19005_s0 + $0x60] sm:$0xff] }
 0x4f1   :  { %2219 = vrot.lane.b32.xlu1 %v10087_v41, %s10487_s22  ;;  %v14279_v5 = vpop.xlane.xlu1 %2033  ;;  %v14281_v35 = vpop.xlane.xlu0 %2030  ;;  %v10099_v41 = vld [vmem:[%s19005_s0 + $0x68] sm:$0xff] }
 0x4f2   :  { %19631 = vst [vmem:[#allocation38_spill] sm:$0xff] %v14279_v5  ;;  %2215 = vrot.lane.b32.xlu0 %v10088_v57, %s10487_s22 }
 0x4f5   :  { %2221 = vrot.lane.b32.xlu1 %v10089_v7, %s10487_s22  ;;  %v14291_v22 = vpop.xlane.xlu1 %2039  ;;  %v14293_v51 = vpop.xlane.xlu0 %2036 }
 0x4f6   :  { %19632 = vst [vmem:[#allocation19_spill] sm:$0xff] %v14293_v51  ;;  %2223 = vrot.lane.b32.xlu0 %v10090_v42, %s10487_s22  ;;  %v10100_v42 = vld [vmem:[%s19005_s0 + $0x70] sm:$0xff] }
 0x4f9   :  { %2225 = vrot.lane.b32.xlu1 %v10091_v43, %s10487_s22  ;;  %v14303_v31 = vpop.xlane.xlu1 %2045  ;;  %v14305_v10 = vpop.xlane.xlu0 %2042  ;;  %v10101_v43 = vld [vmem:[%s19005_s0 + $0x78] sm:$0xff] }
 0x4fa   :  { %2227 = vrot.lane.b32.xlu0 %v10092_v12, %s10487_s22 }
 0x4fd   :  { %2229 = vrot.lane.b32.xlu1 %v10093_v63, %s10487_s22  ;;  %v14315_v62 = vpop.xlane.xlu1 %2051  ;;  %v14317_v29 = vpop.xlane.xlu0 %2048 }
 0x4fe   :  { %2231 = vrot.lane.b32.xlu0 %v10094_v33, %s10487_s22  ;;  %v10102_v33 = vld [vmem:[%s19005_s0 + $0x80] sm:$0xff] }
 0x501   :  { %2233 = vrot.lane.b32.xlu1 %v10095_v24, %s10487_s22  ;;  %v14327_v9 = vpop.xlane.xlu1 %2057  ;;  %v14329_v46 = vpop.xlane.xlu0 %2054  ;;  %v10103_v24 = vld [vmem:[%s19005_s0 + $0x88] sm:$0xff] }
 0x502   :  { %2235 = vrot.lane.b32.xlu0 %v10096_v6, %s10487_s22 }
 0x505   :  { %2237 = vrot.lane.b32.xlu1 %v10097_v26, %s10487_s22  ;;  %v14339_v23 = vpop.xlane.xlu1 %2063  ;;  %v14341_v21 = vpop.xlane.xlu0 %2060 }
 0x506   :  { %19633 = vst [vmem:[#allocation37_spill] sm:$0xff] %v14339_v23  ;;  %19634 = vst [vmem:[#allocation40_spill] sm:$0xff] %v14341_v21  ;;  %2239 = vrot.lane.b32.xlu0 %v10098_v28, %s10487_s22  ;;  %v10104_v28 = vld [vmem:[%s19005_s0 + $0x90] sm:$0xff] }
 0x509   :  { %2241 = vrot.lane.b32.xlu1 %v10099_v41, %s10487_s22  ;;  %v14351_v57 = vpop.xlane.xlu1 %2069  ;;  %v14353_v7 = vpop.xlane.xlu0 %2066  ;;  %v10105_v41 = vld [vmem:[%s19005_s0 + $0x98] sm:$0xff] }
 0x50a   :  { %2243 = vrot.lane.b32.xlu0 %v10100_v42, %s10487_s22 }
 0x50d   :  { %2245 = vrot.lane.b32.xlu1 %v10101_v43, %s10487_s22  ;;  %v14363_v12 = vpop.xlane.xlu1 %2075  ;;  %v14365_v63 = vpop.xlane.xlu0 %2072 }
 0x50e   :  { %2247 = vrot.lane.b32.xlu0 %v10102_v33, %s10487_s22  ;;  %v10106_v33 = vld [vmem:[%s19005_s0 + $0xa0] sm:$0xff] }
 0x511   :  { %2249 = vrot.lane.b32.xlu1 %v10103_v24, %s10487_s22  ;;  %v14375_v6 = vpop.xlane.xlu1 %2081  ;;  %v14377_v26 = vpop.xlane.xlu0 %2078  ;;  %v10107_v24 = vld [vmem:[%s19005_s0 + $0xa8] sm:$0xff] }
 0x512   :  { %2251 = vrot.lane.b32.xlu0 %v10104_v28, %s10487_s22 }
 0x515   :  { %2253 = vrot.lane.b32.xlu1 %v10105_v41, %s10487_s22  ;;  %v14387_v42 = vpop.xlane.xlu1 %2087  ;;  %v14389_v43 = vpop.xlane.xlu0 %2084  ;;  %v10108_v41 = vld [vmem:[%s19005_s0 + $0xb0] sm:$0xff] }
 0x516   :  { %2255 = vrot.lane.b32.xlu0 %v10106_v33, %s10487_s22  ;;  %v10109_v33 = vld [vmem:[%s19005_s0 + $0xb8] sm:$0xff] }
 0x519   :  { %2257 = vrot.lane.b32.xlu1 %v10107_v24, %s10487_s22  ;;  %v14399_v28 = vpop.xlane.xlu1 %2093  ;;  %v14401_v55 = vpop.xlane.xlu0 %2090  ;;  %v10110_v24 = vld [vmem:[%s19005_s0 + $0xc0] sm:$0xff] }
 0x51a   :  { %2259 = vrot.lane.b32.xlu0 %v10108_v41, %s10487_s22  ;;  %v10111_v41 = vld [vmem:[%s19005_s0 + $0xc8] sm:$0xff] }
 0x51d   :  { %2261 = vrot.lane.b32.xlu1 %v10109_v33, %s10487_s22  ;;  %v14411_v27 = vpop.xlane.xlu1 %2099  ;;  %v14413_v21 = vpop.xlane.xlu0 %2096  ;;  %v10112_v33 = vld [vmem:[%s19005_s0 + $0xd0] sm:$0xff] }
 0x51e   :  { %19635 = vst [vmem:[#allocation39_spill] sm:$0xff] %v14411_v27  ;;  %19636 = vst [vmem:[#allocation42_spill] sm:$0xff] %v14413_v21  ;;  %2263 = vrot.lane.b32.xlu0 %v10110_v24, %s10487_s22  ;;  %v10113_v24 = vld [vmem:[%s19005_s0 + $0xd8] sm:$0xff] }
 0x521   :  { %2265 = vrot.lane.b32.xlu1 %v10111_v41, %s10487_s22  ;;  %v14423_v23 = vpop.xlane.xlu1 %2105  ;;  %v14425_v51 = vpop.xlane.xlu0 %2102  ;;  %v10114_v41 = vld [vmem:[%s19005_s0 + $0xe0] sm:$0xff] }
 0x522   :  { %19637 = vst [vmem:[#allocation20_spill] sm:$0xff] %v14423_v23  ;;  %19638 = vst [vmem:[#allocation44_spill] sm:$0xff] %v14425_v51  ;;  %2267 = vrot.lane.b32.xlu0 %v10112_v33, %s10487_s22  ;;  %v10115_v33 = vld [vmem:[%s19005_s0 + $0xe8] sm:$0xff] }
 0x525   :  { %2269 = vrot.lane.b32.xlu1 %v10113_v24, %s10487_s22  ;;  %v14435_v27 = vpop.xlane.xlu1 %2111  ;;  %v14437_v50 = vpop.xlane.xlu0 %2108  ;;  %v10116_v24 = vld [vmem:[%s19005_s0 + $0xf0] sm:$0xff] }
 0x526   :  { %19639 = vst [vmem:[#allocation41_spill] sm:$0xff] %v14435_v27  ;;  %19640 = vst [vmem:[#allocation46_spill] sm:$0xff] %v14437_v50  ;;  %2271 = vrot.lane.b32.xlu0 %v10114_v41, %s10487_s22  ;;  %v10117_v41 = vld [vmem:[%s19005_s0 + $0xf8] sm:$0xff] }
 0x529   :  { %2273 = vrot.lane.b32.xlu1 %v10115_v33, %s10487_s22  ;;  %v14447_v23 = vpop.xlane.xlu1 %2117  ;;  %v14449_v51 = vpop.xlane.xlu0 %2114  ;;  %v10118_v33 = vld [vmem:[%s19005_s0 + $0x100] sm:$0xff] }
 0x52a   :  { %19641 = vst [vmem:[#allocation43_spill] sm:$0xff] %v14447_v23  ;;  %19642 = vst [vmem:[#allocation48_spill] sm:$0xff] %v14449_v51  ;;  %2275 = vrot.lane.b32.xlu0 %v10116_v24, %s10487_s22  ;;  %v10119_v24 = vld [vmem:[%s19005_s0 + $0x108] sm:$0xff] }
 0x52d   :  { %2277 = vrot.lane.b32.xlu1 %v10117_v41, %s10487_s22  ;;  %v14459_v27 = vpop.xlane.xlu1 %2123  ;;  %v14461_v50 = vpop.xlane.xlu0 %2120  ;;  %v10120_v41 = vld [vmem:[%s19005_s0 + $0x110] sm:$0xff] }
 0x52e   :  { %19643 = vst [vmem:[#allocation45_spill] sm:$0xff] %v14459_v27  ;;  %19644 = vst [vmem:[#allocation50_spill] sm:$0xff] %v14461_v50  ;;  %2279 = vrot.lane.b32.xlu0 %v10118_v33, %s10487_s22  ;;  %v10121_v33 = vld [vmem:[%s19005_s0 + $0x118] sm:$0xff] }
 0x531   :  { %2281 = vrot.lane.b32.xlu1 %v10119_v24, %s10487_s22  ;;  %v14471_v5 = vpop.xlane.xlu1 %2129  ;;  %v14473_v15 = vpop.xlane.xlu0 %2126  ;;  %v10122_v24 = vld [vmem:[%s19005_s0 + $0x120] sm:$0xff] }
 0x532   :  { %19645 = vst [vmem:[#allocation47_spill] sm:$0xff] %v14471_v5  ;;  %19646 = vst [vmem:[#allocation52_spill] sm:$0xff] %v14473_v15  ;;  %2283 = vrot.lane.b32.xlu0 %v10120_v41, %s10487_s22  ;;  %v6675_v5 = vrot.slane %v14245_v49, %v19388_v19  ;;  %v10123_v41 = vld [vmem:[%s19005_s0 + $0x128] sm:$0xff]  ;;  %v6680_v49 = vrot.slane %v14243_v11, %v19389_v58  ;;  %v6627_v11 = vrot.slane %v14201_v34, %v19387_v37 }
 0x533   :  { %v10127_v34 = vld [vmem:[%s19005_s0 + $0x148] sm:$0xff] }
 0x535   :  { %2285 = vrot.lane.b32.xlu1 %v10121_v33, %s10487_s22  ;;  %v14483_v27 = vpop.xlane.xlu1 %2135  ;;  %v14485_v50 = vpop.xlane.xlu0 %2132 }
 0x536   :  { %19647 = vst [vmem:[#allocation49_spill] sm:$0xff] %v14483_v27  ;;  %19648 = vst [vmem:[#allocation54_spill] sm:$0xff] %v14485_v50  ;;  %2287 = vrot.lane.b32.xlu0 %v10122_v24, %s10487_s22  ;;  %v10124_v50 = vld [vmem:[%s19005_s0 + $0x130] sm:$0xff]  ;;  %v6671_v24 = vrot.slane %v14235_v53, %v19387_v37  ;;  %v6631_v53 = vrot.slane %v14199_v13, %v19388_v19  ;;  %v6695_v13 = vrot.slane %v14257_v56, %v19394_v47 }
 0x538   :  { %v6676_v15 = vsel %vm4826_vm1, %v6675_v5, %v6671_v24  ;;  %v6636_v5 = vrot.slane %v14213_v32, %v19389_v58  ;;  %v6632_v32 = vsel %vm4826_vm1, %v6631_v53, %v6627_v11  ;;  %v10129_v11 = vld [vmem:[%s19005_s0 + $0x158] sm:$0xff] }
 0x539   :  { %2289 = vrot.lane.b32.xlu1 %v10123_v41, %s10487_s22  ;;  %v14497_v33 = vpop.xlane.xlu1 %2141  ;;  %v14499_v27 = vpop.xlane.xlu0 %2138  ;;  %v6685_v41 = vrot.slane %v14253_v16, %v19393_v45  ;;  %v10126_v16 = vld [vmem:[%s19005_s0 + $0x140] sm:$0xff]  ;;  %v6681_v24 = vsel %vm4833_vm2, %v6680_v49, %v6676_v15  ;;  %v6641_v15 = vrot.slane %v14211_v44, %v19393_v45  ;;  %v6646_v49 = vrot.slane %v14221_v8, %v19395_v1 }
 0x53a   :  { %19649 = vst [vmem:[#allocation51_spill] sm:$0xff] %v14499_v27  ;;  %2291 = vrot.lane.b32.xlu0 %v10124_v50, %s10487_s22  ;;  %v10125_v27 = vld [vmem:[%s19005_s0 + $0x138] sm:$0xff]  ;;  %v6637_v56 = vsel %vm4833_vm2, %v6636_v5, %v6632_v32  ;;  %v6705_v44 = vrot.slane %v14261_v0, %v19400_v38  ;;  %v6651_v0 = vrot.slane %v14219_v61, %v19394_v47  ;;  %v10131_v61 = vld [vmem:[%s19005_s0 + $0x168] sm:$0xff] }
 0x53b   :  { %v6686_v23 = vsel %vm4840_vm3, %v6685_v41, %v6681_v24  ;;  %v6700_v41 = vrot.slane %v14255_v40, %v19401_v52  ;;  %v6642_v8 = vsel %vm4840_vm3, %v6641_v15, %v6637_v56  ;;  %v10130_v40 = vld [vmem:[%s19005_s0 + $0x160] sm:$0xff]  ;;  %v6798_v32 = vrot.slane %v14351_v57, %v19388_v19 }
 0x53c   :  { %v6794_v15 = vrot.slane %v14353_v7, %v19387_v37  ;;  %v6803_v56 = vrot.slane %v14365_v63, %v19389_v58  ;;  %v6715_v57 = vrot.slane %v14265_v18, %v19406_v2  ;;  %v10132_v7 = vld [vmem:[%s19005_s0 + $0x170] sm:$0xff]  ;;  %v6808_v18 = vrot.slane %v14363_v12, %v19393_v45 }
 0x53d   :  { %2293 = vrot.lane.b32.xlu1 %v10125_v27, %s10487_s22  ;;  %v14516_v51 = vpop.xlane.xlu1 %2147  ;;  %v14518_v50 = vpop.xlane.xlu0 %2144  ;;  %v6690_v27 = vrot.slane %v14251_v39, %v19395_v1  ;;  %v10128_v39 = vld [vmem:[%s19005_s0 + $0x150] sm:$0xff] }
 0x53e   :  { %2295 = vrot.lane.b32.xlu0 %v10126_v16, %s10487_s22 }
 0x53f   :  { %v6691_v24 = vsel %vm4847_vm4, %v6690_v27, %v6686_v23  ;;  %v6647_v23 = vsel %vm4847_vm4, %v6646_v49, %v6642_v8  ;;  %v6710_v27 = vrot.slane %v14259_v30, %v19407_v54  ;;  %v6720_v8 = vrot.slane %v14263_v60, %v19413_v3 }
 0x540   :  { %v6696_v53 = vsel %vm4854_vm5, %v6695_v13, %v6691_v24  ;;  %v6652_v63 = vsel %vm4854_vm5, %v6651_v0, %v6647_v23  ;;  %v6754_v24 = vrot.slane %v14305_v10, %v19388_v19  ;;  %v6813_v10 = vrot.slane %v14377_v26, %v19395_v1  ;;  %v10133_v0 = vld [vmem:[%s19005_s0 + $0x178] sm:$0xff] }
 0x541   :  { %2297 = vrot.lane.b32.xlu1 %v10127_v34, %s10487_s22  ;;  %v14540_v16 = vpop.xlane.xlu1 %2153  ;;  %v14542_v21 = vpop.xlane.xlu0 %2150  ;;  %v6701_v13 = vsel %vm4861_vm6, %v6700_v41, %v6696_v53  ;;  %v6656_v41 = vrot.slane %v14229_v59, %v19401_v52  ;;  %v6759_v23 = vrot.slane %v14303_v31, %v19389_v58  ;;  %v6917_v26 = vrot.slane %v14497_v33, %v19387_v37 }
 0x542   :  { %2299 = vrot.lane.b32.xlu0 %v10128_v39, %s10487_s22  ;;  %v6706_v39 = vsel %vm4868_vm7, %v6705_v44, %v6701_v13  ;;  %v6799_v44 = vsel %vm4826_vm1, %v6798_v32, %v6794_v15  ;;  %v6661_v13 = vrot.slane %v14227_v36, %v19400_v38  ;;  %v6926_v31 = vrot.slane %v14516_v51, %v19389_v58  ;;  %v10135_v51 = vld [vmem:[%s19005_s0 + $0x188] sm:$0xff] }
 0x543   :  { %v6711_v53 = vsel %vm4875_vm8, %v6710_v27, %v6706_v39  ;;  %v6804_v59 = vsel %vm4833_vm2, %v6803_v56, %v6799_v44  ;;  %v10134_v27 = vld [vmem:[%s19005_s0 + $0x180] sm:$0xff]  ;;  %v6818_v33 = vrot.slane %v14375_v6, %v19394_v47  ;;  %v6931_v56 = vrot.slane %v14542_v21, %v19393_v45 }
 0x544   :  { %v6716_v60 = vsel %vm19650_vm9, %v6715_v57, %v6711_v53  ;;  %v6809_v15 = vsel %vm4840_vm3, %v6808_v18, %v6804_v59  ;;  %v6657_v36 = vsel %vm4861_vm6, %v6656_v41, %v6652_v63  ;;  %v6730_v21 = vrot.slane %v14271_v20, %v19420_v25  ;;  %vm19670_vm9 = vmmov %vm19651_vm12 }
 0x545   :  { %2301 = vrot.lane.b32.xlu1 %v10129_v11, %s10487_s22  ;;  %v14564_v5 = vpop.xlane.xlu1 %2159  ;;  %v14566_v34 = vpop.xlane.xlu0 %2156  ;;  %v6921_v11 = vrot.slane %v14518_v50, %v19388_v19  ;;  %v6814_v57 = vsel %vm4847_vm4, %v6813_v10, %v6809_v15  ;;  %v6769_v41 = vrot.slane %v14315_v62, %v19395_v1  ;;  %v6774_v44 = vrot.slane %v14329_v46, %v19394_v47 }
 0x546   :  { %2303 = vrot.lane.b32.xlu0 %v10130_v40, %s10487_s22  ;;  %v6750_v40 = vrot.slane %v14291_v22, %v19387_v37  ;;  %v6725_v22 = vrot.slane %v14273_v48, %v19412_v17  ;;  %v6764_v48 = vrot.slane %v14317_v29, %v19393_v45  ;;  %v6823_v29 = vrot.slane %v14389_v43, %v19401_v52 }
 0x547   :  { %v6922_v39 = vsel %vm4826_vm1, %v6921_v11, %v6917_v26  ;;  %v6936_v20 = vrot.slane %v14540_v16, %v19395_v1  ;;  %v6828_v62 = vrot.slane %v14387_v42, %v19400_v38  ;;  %v6819_v11 = vsel %vm4854_vm5, %v6818_v33, %v6814_v57  ;;  %v10137_v16 = vld [vmem:[%s19005_s0 + $0x198] sm:$0xff] }
 0x548   :  { %v6755_v32 = vsel %vm4826_vm1, %v6754_v24, %v6750_v40  ;;  %v10136_v24 = vld [vmem:[%s19005_s0 + $0x190] sm:$0xff]  ;;  %v6927_v18 = vsel %vm4833_vm2, %v6926_v31, %v6922_v39  ;;  %v6941_v40 = vrot.slane %v14566_v34, %v19394_v47  ;;  %v6662_v59 = vsel %vm4868_vm7, %v6661_v13, %v6657_v36  ;;  %v19654_v39 = vld [vmem:[#allocation43_spill] sm:$0xff] }
 0x549   :  { %2305 = vrot.lane.b32.xlu1 %v10131_v61, %s10487_s22  ;;  %v14590_v30 = vpop.xlane.xlu1 %2165  ;;  %v14592_v49 = vpop.xlane.xlu0 %2162  ;;  %v6721_v61 = vsel %vm4889_vm10, %v6720_v8, %v6716_v60  ;;  %v6760_v43 = vsel %vm4833_vm2, %v6759_v23, %v6755_v32  ;;  %v6932_v8 = vsel %vm4840_vm3, %v6931_v56, %v6927_v18  ;;  %v6824_v10 = vsel %vm4861_vm6, %v6823_v29, %v6819_v11  ;;  %v10138_v23 = vld [vmem:[%s19005_s0 + $0x1a0] sm:$0xff]  ;;  %v19655_v56 = vld [vmem:[#allocation48_spill] sm:$0xff] }
 0x54a   :  { %2307 = vrot.lane.b32.xlu0 %v10132_v7, %s10487_s22  ;;  %v6726_v63 = vsel %vm19651_vm12, %v6725_v22, %v6721_v61  ;;  %v6765_v53 = vsel %vm4840_vm3, %v6764_v48, %v6760_v43  ;;  %v6833_v46 = vrot.slane %v14401_v55, %v19407_v54  ;;  %v6666_v34 = vrot.slane %v14237_v14, %v19407_v54  ;;  %v19656_v29 = vld [vmem:[#allocation18_spill] sm:$0xff]  ;;  %vm19672_vm12 = vmmov %vm19652_vm11 }
 0x54b   :  { %v6731_v60 = vsel %vm19652_vm11, %v6730_v21, %v6726_v63  ;;  %v6735_v22 = vrot.slane %v14281_v35, %v19419_v4  ;;  %v6770_v55 = vsel %vm4847_vm4, %v6769_v41, %v6765_v53  ;;  %v6779_v26 = vrot.slane %v14327_v9, %v19401_v52  ;;  %v19653_v9 = vld [vmem:[#allocation42_spill] sm:$0xff]  ;;  %v19659_v53 = vld [vmem:[#allocation17_spill] sm:$0xff]  ;;  %vm19675_vm11 = vmmov %vm19670_vm9 }
 0x54c   :  { %v6946_v14 = vrot.slane %v14564_v5, %v19401_v52  ;;  %v6937_v13 = vsel %vm4847_vm4, %v6936_v20, %v6932_v8  ;;  %v6838_v35 = vrot.slane %v14399_v28, %v19406_v2  ;;  %v6829_v32 = vsel %vm4868_vm7, %v6828_v62, %v6824_v10  ;;  %v10139_v28 = vld [vmem:[%s19005_s0 + $0x1a8] sm:$0xff]  ;;  %v19658_v41 = vld [vmem:[#allocation50_spill] sm:$0xff] }
 0x54d   :  { %2309 = vrot.lane.b32.xlu1 %v10133_v0, %s10487_s22  ;;  %v14622_v12 = vpop.xlane.xlu1 %2171  ;;  %v14624_v50 = vpop.xlane.xlu0 %2168  ;;  %v6942_v48 = vsel %vm4854_vm5, %v6941_v40, %v6937_v13  ;;  %v6951_v31 = vrot.slane %v14592_v49, %v19400_v38  ;;  %v6834_v33 = vsel %vm4875_vm8, %v6833_v46, %v6829_v32  ;;  %v6843_v15 = vrot.slane %v19653_v9, %v19413_v3  ;;  %v19661_v8 = vld [vmem:[#allocation39_spill] sm:$0xff] }
 0x54e   :  { %2311 = vrot.lane.b32.xlu0 %v10134_v27, %s10487_s22  ;;  %v6775_v27 = vsel %vm4854_vm5, %v6774_v44, %v6770_v55  ;;  %v6877_v5 = vrot.slane %v19654_v39, %v19388_v19  ;;  %v6873_v36 = vrot.slane %v19655_v56, %v19387_v37  ;;  %v14733_v49 = vsel %vm4875_vm8, %v6666_v34, %v6662_v59  ;;  %v19660_v44 = vld [vmem:[#allocation19_spill] sm:$0xff]  ;;  %v19663_v34 = vld [vmem:[#allocation44_spill] sm:$0xff] }
 0x54f   :  { %v14738_v63 = vsel %vm19073_vm13, %v6735_v22, %v6731_v60  ;;  %v6882_v43 = vrot.slane %v19658_v41, %v19389_v58  ;;  %v6745_v20 = vrot.slane %v19660_v44, %v19659_v53  ;;  %v6780_v18 = vsel %vm4861_vm6, %v6779_v26, %v6775_v27  ;;  %v19669_v41 = vld [vmem:[#allocation20_spill] sm:$0xff] }
 0x550   :  { %v6956_v62 = vrot.slane %v14590_v30, %v19407_v54  ;;  %v6947_v11 = vsel %vm4861_vm6, %v6946_v14, %v6942_v48  ;;  %v6848_v40 = vrot.slane %v19661_v8, %v19412_v17  ;;  %v6839_v59 = vsel %vm19662_vm0, %v6838_v35, %v6834_v33  ;;  %v19664_v30 = vld [vmem:[#allocation45_spill] sm:$0xff]  ;;  %v19665_v14 = vld [vmem:[#allocation52_spill] sm:$0xff]  ;;  %v10142_v48 = vld [vmem:[%s19005_s0 + $0x1c0] sm:$0xff] }
 0x551   :  { %2313 = vrot.lane.b32.xlu1 %v10135_v51, %s10487_s22  ;;  %v14659_v6 = vpop.xlane.xlu1 %2177  ;;  %v14661_v7 = vpop.xlane.xlu0 %2174  ;;  %v19657_v51 = vld [vmem:[#allocation38_spill] sm:$0xff]  ;;  %v6952_v10 = vsel %vm4868_vm7, %v6951_v31, %v6947_v11  ;;  %v6961_v46 = vrot.slane %v14624_v50, %v19406_v2  ;;  %v6853_v60 = vrot.slane %v19663_v34, %v19420_v25  ;;  %v6878_v22 = vsel %vm4826_vm1, %v6877_v5, %v6873_v36  ;;  %v19666_v31 = vld [vmem:[#allocation37_spill] sm:$0xff]  ;;  %v19667_v5 = vld [vmem:[#allocation40_spill] sm:$0xff] }
 0x552   :  { %2315 = vrot.lane.b32.xlu0 %v10136_v24, %s10487_s22  ;;  %v6740_v21 = vrot.slane %v19657_v51, %v19656_v29  ;;  %v10140_v24 = vld [vmem:[%s19005_s0 + $0x1b0] sm:$0xff]  ;;  %v6887_v55 = vrot.slane %v19664_v30, %v19393_v45  ;;  %v6883_v50 = vsel %vm4833_vm2, %v6882_v43, %v6878_v22  ;;  %v6892_v13 = vrot.slane %v19665_v14, %v19395_v1  ;;  %v10143_v8 = vld [vmem:[%s19005_s0 + $0x1c8] sm:$0xff]  ;;  %v19673_v34 = vld [vmem:[#allocation54_spill] sm:$0xff] }
 0x553   :  { %v6789_v33 = vrot.slane %v19666_v31, %v19407_v54  ;;  %v6966_v9 = vrot.slane %v14622_v12, %v19413_v3  ;;  %v6784_v56 = vrot.slane %v19667_v5, %v19400_v38  ;;  %v6858_v43 = vrot.slane %v19669_v41, %v19419_v4  ;;  %v19671_v12 = vld [vmem:[#allocation47_spill] sm:$0xff]  ;;  %v10144_v22 = vld [vmem:[%s19005_s0 + $0x1d0] sm:$0xff]  ;;  %vm19679_vm0 = vmmov %vm19672_vm12 }
 0x554   :  { %v6888_v11 = vsel %vm4840_vm3, %v6887_v55, %v6883_v50  ;;  %v6976_v30 = vrot.slane %v14659_v6, %v19420_v25 }
 0x555   :  { %2317 = vrot.lane.b32.xlu1 %v10137_v16, %s10487_s22  ;;  %v14693_v42 = vpop.xlane.xlu1 %2183  ;;  %v14695_v0 = vpop.xlane.xlu0 %2180  ;;  %v6844_v16 = vsel %vm4889_vm10, %v6843_v15, %v6839_v59  ;;  %v6957_v15 = vsel %vm4875_vm8, %v6956_v62, %v6952_v10  ;;  %v6897_v62 = vrot.slane %v19671_v12, %v19394_v47 }
 0x556   :  { %2319 = vrot.lane.b32.xlu0 %v10138_v23, %s10487_s22  ;;  %v10141_v23 = vld [vmem:[%s19005_s0 + $0x1b8] sm:$0xff]  ;;  %v6962_v36 = vsel %vm19668_vm15, %v6961_v46, %v6957_v15  ;;  %v6893_v46 = vsel %vm4847_vm4, %v6892_v13, %v6888_v11  ;;  %v6981_v14 = vrot.slane %v14695_v0, %v19419_v4  ;;  %v6986_v41 = vrot.slane %v14693_v42, %v19656_v29 }
 0x557   :  { %v6967_v55 = vsel %vm4889_vm10, %v6966_v9, %v6962_v36  ;;  %v6898_v31 = vsel %vm4854_vm5, %v6897_v62, %v6893_v46  ;;  %v10145_v9 = vld [vmem:[%s19005_s0 + $0x1d8] sm:$0xff]  ;;  %v6741_v42 = vsel %vm19072_vm14, %v6740_v21, %v14738_v63  ;;  %v10147_v46 = vld [vmem:[%s19005_s0 + $0x1e8] sm:$0xff]  ;;  %vm19680_vm15 = vcmask 1048512  }
 0x558   :  { %v19677_v0 = vld [vmem:[#allocation41_spill] sm:$0xff] }
 0x559   :  { %2321 = vrot.lane.b32.xlu1 %v10139_v28, %s10487_s22  ;;  %v2190_v61 = vpop.xlane.xlu1 %2189  ;;  %v14730_v57 = vpop.xlane.xlu0 %2186  ;;  %v6971_v28 = vrot.slane %v14661_v7, %v19412_v17  ;;  %v6868_v5 = vrot.slane %v19677_v0, %v19659_v53  ;;  %v10152_v0 = vld [vmem:[%s19005_s0 + $0x210] sm:$0xff] }
 0x55a   :  { %2323 = vrot.lane.b32.xlu0 %v10140_v24, %s10487_s22  ;;  %v6996_v35 = vrot.slane %v2190_v61, %v19387_v37  ;;  %v6849_v24 = vsel %vm19670_vm9, %v6848_v40, %v6844_v16  ;;  %v6902_v40 = vrot.slane %v19673_v34, %v19401_v52  ;;  %vm19682_vm9 = vcmask 1044484  }
 0x55b   :  { %v6854_v10 = vsel %vm19672_vm12, %v6853_v60, %v6849_v24  ;;  %v6972_v50 = vsel %vm19675_vm11, %v6971_v28, %v6967_v55  ;;  %vm19683_vm12 = vmmov %vm19680_vm15  ;;  %vm19684_vm11 = vcmask 1045509  }
 0x55c   :  { %v6859_v6 = vsel %vm19073_vm13, %v6858_v43, %v6854_v10  ;;  %v6977_v43 = vsel %vm19679_vm0, %v6976_v30, %v6972_v50  ;;  %vm19685_vm0 = vmmov %vm19683_vm12 }
 0x55d   :  { %2325 = vrot.lane.b32.xlu1 %v10141_v23, %s10487_s22  ;;  %v2196_v26 = vpop.xlane.xlu1 %2195  ;;  %v2193_v27 = vpop.xlane.xlu0 %2192  ;;  %v6982_v11 = vsel %vm19073_vm13, %v6981_v14, %v6977_v43  ;;  %v10156_v43 = vld [vmem:[%s19005_s0 + $0x230] sm:$0xff] }
 0x55e   :  { %v7000_v32 = vrot.slane %v2193_v27, %v19388_v19  ;;  %2327 = vrot.lane.b32.xlu0 %v10142_v48, %s10487_s22  ;;  %v7005_v39 = vrot.slane %v2196_v26, %v19389_v58  ;;  %v19674_v26 = vld [vmem:[#allocation46_spill] sm:$0xff]  ;;  %v6987_v30 = vsel %vm19072_vm14, %v6986_v41, %v6982_v11 }
 0x55f   :  { %v6863_v27 = vrot.slane %v19674_v26, %v19656_v29  ;;  %v10149_v26 = vld [vmem:[%s19005_s0 + $0x1f8] sm:$0xff]  ;;  %v10158_v11 = vld [vmem:[%s19005_s0 + $0x240] sm:$0xff] }
 0x560   :  { %v7001_v61 = vsel %vm4826_vm1, %v7000_v32, %v6996_v35  ;;  %v6785_v35 = vsel %vm4868_vm7, %v6784_v56, %v6780_v18  ;;  %v19676_v32 = vld [vmem:[#allocation49_spill] sm:$0xff]  ;;  %v6903_v18 = vsel %vm4861_vm6, %v6902_v40, %v6898_v31  ;;  %v19678_v56 = vld [vmem:[#allocation51_spill] sm:$0xff]  ;;  %v6746_v40 = vsel %vm19680_vm15, %v6745_v20, %v6741_v42 }
 0x561   :  { %2329 = vrot.lane.b32.xlu1 %v10143_v8, %s10487_s22  ;;  %v2202_v59 = vpop.xlane.xlu1 %2201  ;;  %v2199_v7 = vpop.xlane.xlu0 %2198  ;;  %v7006_v23 = vsel %vm4833_vm2, %v7005_v39, %v7001_v61  ;;  %v6907_v48 = vrot.slane %v19676_v32, %v19400_v38  ;;  %v6912_v36 = vrot.slane %v19678_v56, %v19407_v54  ;;  %v10146_v61 = vld [vmem:[%s19005_s0 + $0x1e0] sm:$0xff]  ;;  %v6864_v62 = vsel %vm19072_vm14, %v6863_v27, %v6859_v6 }
 0x562   :  { %v7010_v16 = vrot.slane %v2199_v7, %v19393_v45  ;;  %2331 = vrot.lane.b32.xlu0 %v10144_v22, %s10487_s22  ;;  %v7015_v60 = vrot.slane %v2202_v59, %v19395_v1  ;;  %v6991_v8 = vrot.slane %v14730_v57, %v19659_v53  ;;  %v6790_v7 = vsel %vm4875_vm8, %v6789_v33, %v6785_v35  ;;  %v10148_v33 = vld [vmem:[%s19005_s0 + $0x1f0] sm:$0xff]  ;;  %v10150_v6 = vld [vmem:[%s19005_s0 + $0x200] sm:$0xff] }
 0x563   :  { %v6908_v10 = vsel %vm4868_vm7, %v6907_v48, %v6903_v18  ;;  %v6869_v20 = vsel %vm19683_vm12, %v6868_v5, %v6864_v62  ;;  %vm19686_vm15 = vcmask 1046534   ;;  %vm19689_vm12 = vcmask 1047559   ;;  %v10153_v5 = vld [vmem:[%s19005_s0 + $0x218] sm:$0xff] }
 0x564   :  { %v7011_v13 = vsel %vm4840_vm3, %v7010_v16, %v7006_v23  ;;  %v6913_v51 = vsel %vm4875_vm8, %v6912_v36, %v6908_v10  ;;  %v19681_v16 = vld [vmem:[#allocation27_spill] sm:$0xff]  ;;  %v6992_v23 = vsel %vm19685_vm0, %v6991_v8, %v6987_v30  ;;  %vm19691_vm0 = vcmask 588800   ;;  %vm19693_vm13 = vmmov %vm19689_vm12  ;;  %v10154_v36 = vld [vmem:[%s19005_s0 + $0x220] sm:$0xff] }
 0x565   :  { %2333 = vrot.lane.b32.xlu1 %v10145_v9, %s10487_s22  ;;  %v2208_v15 = vpop.xlane.xlu1 %2207  ;;  %v2205_v39 = vpop.xlane.xlu0 %2204  ;;  %v7016_v12 = vsel %vm4847_vm4, %v7015_v60, %v7011_v13  ;;  %v7047_v22 = vsel %vm19682_vm9, %v14733_v49, %v19681_v16  ;;  %v19687_v13 = vld [vmem:[#allocation29_spill] sm:$0xff]  ;;  %vm19688_vm9 = vmmov %vm19684_vm11  ;;  %v10151_v9 = vld [vmem:[%s19005_s0 + $0x208] sm:$0xff] }
 0x566   :  { %v7020_v28 = vrot.slane %v2205_v39, %v19394_v47  ;;  %2335 = vrot.lane.b32.xlu0 %v10146_v61, %s10487_s22  ;;  %v7025_v24 = vrot.slane %v2208_v15, %v19401_v52  ;;  %v7048_v60 = vsel %vm19684_vm11, %v6790_v7, %v7047_v22  ;;  %v7041_v35 = vsel %vm19688_vm9, %v6746_v40, %v19687_v13  ;;  %vm19690_vm11 = vmmov %vm19686_vm15  ;;  %v10159_v8 = vld [vmem:[%s19005_s0 + $0x248] sm:$0xff]  ;;  %v10160_v7 = vld [vmem:[%s19005_s0 + $0x250] sm:$0xff] }
 0x567   :  { %v7049_v14 = vsel %vm19686_vm15, %v6913_v51, %v7048_v60  ;;  %v7042_v48 = vsel %vm19690_vm11, %v6869_v20, %v7041_v35  ;;  %vm19692_vm14 = vmmov %vm19691_vm0  ;;  %v10161_v10 = vld [vmem:[%s19005_s0 + $0x258] sm:$0xff]  ;;  %v10163_v40 = vld [vmem:[%s19005_s0 + $0x268] sm:$0xff] }
 0x568   :  { %v7021_v59 = vsel %vm4854_vm5, %v7020_v28, %v7016_v12  ;;  %v7043_v31 = vsel %vm19693_vm13, %v6992_v23, %v7042_v48  ;;  %v10155_v28 = vld [vmem:[%s19005_s0 + $0x228] sm:$0xff]  ;;  %v10168_v60 = vld [vmem:[%s19005_s0 + $0x290] sm:$0xff]  ;;  %v10169_v23 = vld [vmem:[%s19005_s0 + $0x298] sm:$0xff]  ;;  %vm19792_vm13 = vcmask 31744  }
 0x569   :  { %2337 = vrot.lane.b32.xlu1 %v10147_v46, %s10487_s22  ;;  %v2214_v34 = vpop.xlane.xlu1 %2213  ;;  %v2211_v57 = vpop.xlane.xlu0 %2210  ;;  %v7026_v44 = vsel %vm4861_vm6, %v7025_v24, %v7021_v59  ;;  %v10157_v24 = vld [vmem:[%s19005_s0 + $0x238] sm:$0xff]  ;;  %v10167_v20 = vld [vmem:[%s19005_s0 + $0x288] sm:$0xff]  ;;  %vm19795_vm15 = vmmov %vm19792_vm13 }
 0x56a   :  { %v7035_v21 = vrot.slane %v2214_v34, %v19407_v54  ;;  %v7030_v63 = vrot.slane %v2211_v57, %v19400_v38  ;;  %2339 = vrot.lane.b32.xlu0 %v10148_v33, %s10487_s22  ;;  %v10162_v57 = vld [vmem:[%s19005_s0 + $0x260] sm:$0xff]  ;;  %v10165_v33 = vld [vmem:[%s19005_s0 + $0x278] sm:$0xff]  ;;  %v10171_v13 = vld [vmem:[%s19005_s0 + $0x2a8] sm:$0xff] }
 0x56b   :  { %v10173_v48 = vld [vmem:[%s19005_s0 + $0x2b8] sm:$0xff]  ;;  %vm19796_vm9 = vmmov %vm19792_vm13 }
 0x56c   :  { %v7031_v55 = vsel %vm4868_vm7, %v7030_v63, %v7026_v44  ;;  %v10164_v63 = vld [vmem:[%s19005_s0 + $0x270] sm:$0xff]  ;;  %v10166_v44 = vld [vmem:[%s19005_s0 + $0x280] sm:$0xff]  ;;  %vm19798_vm11 = vmmov %vm19796_vm9 }
 0x56d   :  { %2341 = vrot.lane.b32.xlu1 %v10149_v26, %s10487_s22  ;;  %v14883_v27 = vpop.permute.xlu1 %2217  ;;  %v14885_v49 = vpop.permute.xlu0 %2215  ;;  %v7036_v50 = vsel %vm4875_vm8, %v7035_v21, %v7031_v55 }
 0x56e   :  { %2343 = vrot.lane.b32.xlu0 %v10150_v6, %s10487_s22  ;;  %v7050_v32 = vsel %vm19689_vm12, %v7036_v50, %v7049_v14  ;;  %v10170_v14 = vld [vmem:[%s19005_s0 + $0x2a0] sm:$0xff]  ;;  %vm19797_vm12 = vmmov %vm19796_vm9 }
 0x56f   :  { %9780 = vmatprep.mubr.msk.f32.mxu0 %vm19691_vm0, %v7050_v32  ;;  %9784 = vmatprep.mubr.msk.f32.mxu1 %vm19692_vm14, %v7050_v32  ;;  %v10172_v32 = vld [vmem:[%s19005_s0 + $0x2b0] sm:$0xff]  ;;  %vm19793_vm14 = vmmov %vm19792_vm13 }
 0x570   :  { %9652 = vmatmul.mubr.f32.gmra.mrb[2].mxu0 %v7043_v31  ;;  %9741 = vmatmul.mubr.f32.gmra.mrb[2].mxu1 %v7043_v31  ;;  %vm19799_vm0 = vmmov %vm19796_vm9 }
 0x571   :  { %2345 = vrot.lane.b32.xlu1 %v10151_v9, %s10487_s22  ;;  %v14904_v15 = vpop.permute.xlu1 %2219  ;;  %v14906_v39 = vpop.permute.xlu0 %2223 }
 0x572   :  { %2347 = vrot.lane.b32.xlu0 %v10152_v0, %s10487_s22  ;;  %v10174_v0 = vld [vmem:[%s19005_s0 + $0x2c0] sm:$0xff] }
 0x575   :  { %2349 = vrot.lane.b32.xlu1 %v10153_v5, %s10487_s22  ;;  %v14916_v18 = vpop.permute.xlu1 %2221  ;;  %v14918_v56 = vpop.permute.xlu0 %2227  ;;  %v10175_v5 = vld [vmem:[%s19005_s0 + $0x2c8] sm:$0xff] }
 0x576   :  { %2351 = vrot.lane.b32.xlu0 %v10154_v36, %s10487_s22 }
 0x579   :  { %2353 = vrot.lane.b32.xlu1 %v10155_v28, %s10487_s22  ;;  %v14928_v61 = vpop.permute.xlu1 %2225  ;;  %v14930_v41 = vpop.permute.xlu0 %2231 }
 0x57a   :  { %2355 = vrot.lane.b32.xlu0 %v10156_v43, %s10487_s22  ;;  %v10176_v43 = vld [vmem:[%s19005_s0 + $0x2d0] sm:$0xff] }
 0x57d   :  { %2357 = vrot.lane.b32.xlu1 %v10157_v24, %s10487_s22  ;;  %v14940_v12 = vpop.permute.xlu1 %2229  ;;  %v14942_v62 = vpop.permute.xlu0 %2235  ;;  %v10177_v24 = vld [vmem:[%s19005_s0 + $0x2d8] sm:$0xff] }
 0x57e   :  { %2359 = vrot.lane.b32.xlu0 %v10158_v11, %s10487_s22 }
 0x581   :  { %2361 = vrot.lane.b32.xlu1 %v10159_v8, %s10487_s22  ;;  %v14952_v59 = vpop.permute.xlu1 %2233  ;;  %v14954_v42 = vpop.permute.xlu0 %2239 }
 0x582   :  { %2363 = vrot.lane.b32.xlu0 %v10160_v7, %s10487_s22  ;;  %v10178_v7 = vld [vmem:[%s19005_s0 + $0x2e0] sm:$0xff] }
 0x585   :  { %2365 = vrot.lane.b32.xlu1 %v10161_v10, %s10487_s22  ;;  %v14964_v46 = vpop.permute.xlu1 %2237  ;;  %v14966_v34 = vpop.permute.xlu0 %2243  ;;  %v10179_v10 = vld [vmem:[%s19005_s0 + $0x2e8] sm:$0xff] }
 0x586   :  { %2367 = vrot.lane.b32.xlu0 %v10162_v57, %s10487_s22 }
 0x589   :  { %2369 = vrot.lane.b32.xlu1 %v10163_v40, %s10487_s22  ;;  %v14976_v51 = vpop.permute.xlu1 %2241  ;;  %v14978_v21 = vpop.permute.xlu0 %2247 }
 0x58a   :  { %2371 = vrot.lane.b32.xlu0 %v10164_v63, %s10487_s22  ;;  %v10180_v63 = vld [vmem:[%s19005_s0 + $0x2f0] sm:$0xff] }
 0x58d   :  { %2373 = vrot.lane.b32.xlu1 %v10165_v33, %s10487_s22  ;;  %v14988_v16 = vpop.permute.xlu1 %2245  ;;  %v14990_v22 = vpop.permute.xlu0 %2251  ;;  %v10181_v33 = vld [vmem:[%s19005_s0 + $0x2f8] sm:$0xff] }
 0x58e   :  { %2375 = vrot.lane.b32.xlu0 %v10166_v44, %s10487_s22 }
 0x591   :  { %2377 = vrot.lane.b32.xlu1 %v10167_v20, %s10487_s22  ;;  %v15000_v30 = vpop.permute.xlu1 %2249  ;;  %v15002_v55 = vpop.permute.xlu0 %2255 }
 0x592   :  { %2379 = vrot.lane.b32.xlu0 %v10168_v60, %s10487_s22  ;;  %v10182_v60 = vld [vmem:[%s19005_s0 + $0x300] sm:$0xff] }
 0x595   :  { %2381 = vrot.lane.b32.xlu1 %v10169_v23, %s10487_s22  ;;  %v15012_v26 = vpop.permute.xlu1 %2253  ;;  %v15014_v50 = vpop.permute.xlu0 %2259  ;;  %v10183_v23 = vld [vmem:[%s19005_s0 + $0x308] sm:$0xff] }
 0x596   :  { %2383 = vrot.lane.b32.xlu0 %v10170_v14, %s10487_s22 }
 0x599   :  { %2385 = vrot.lane.b32.xlu1 %v10171_v13, %s10487_s22  ;;  %v15024_v35 = vpop.permute.xlu1 %2257  ;;  %v15026_v6 = vpop.permute.xlu0 %2263 }
 0x59a   :  { %2387 = vrot.lane.b32.xlu0 %v10172_v32, %s10487_s22  ;;  %v10184_v32 = vld [vmem:[%s19005_s0 + $0x310] sm:$0xff] }
 0x59d   :  { %2389 = vrot.lane.b32.xlu1 %v10173_v48, %s10487_s22  ;;  %v15036_v31 = vpop.permute.xlu1 %2261  ;;  %v15038_v9 = vpop.permute.xlu0 %2267  ;;  %v10185_v48 = vld [vmem:[%s19005_s0 + $0x318] sm:$0xff] }
 0x59e   :  { %2391 = vrot.lane.b32.xlu0 %v10174_v0, %s10487_s22 }
 0x5a1   :  { %2393 = vrot.lane.b32.xlu1 %v10175_v5, %s10487_s22  ;;  %v15048_v36 = vpop.permute.xlu1 %2265  ;;  %v15050_v28 = vpop.permute.xlu0 %2271 }
 0x5a2   :  { %2395 = vrot.lane.b32.xlu0 %v10176_v43, %s10487_s22  ;;  %v10186_v43 = vld [vmem:[%s19005_s0 + $0x320] sm:$0xff] }
 0x5a5   :  { %2397 = vrot.lane.b32.xlu1 %v10177_v24, %s10487_s22  ;;  %v15060_v11 = vpop.permute.xlu1 %2269  ;;  %v15062_v8 = vpop.permute.xlu0 %2275  ;;  %v10187_v24 = vld [vmem:[%s19005_s0 + $0x328] sm:$0xff] }
 0x5a6   :  { %2399 = vrot.lane.b32.xlu0 %v10178_v7, %s10487_s22 }
 0x5a9   :  { %2401 = vrot.lane.b32.xlu1 %v10179_v10, %s10487_s22  ;;  %v15072_v57 = vpop.permute.xlu1 %2273  ;;  %v15074_v40 = vpop.permute.xlu0 %2279 }
 0x5aa   :  { %2403 = vrot.lane.b32.xlu0 %v10180_v63, %s10487_s22  ;;  %v10188_v63 = vld [vmem:[%s19005_s0 + $0x330] sm:$0xff] }
 0x5ad   :  { %2405 = vrot.lane.b32.xlu1 %v10181_v33, %s10487_s22  ;;  %v15084_v44 = vpop.permute.xlu1 %2277  ;;  %v15086_v20 = vpop.permute.xlu0 %2283  ;;  %v10189_v33 = vld [vmem:[%s19005_s0 + $0x338] sm:$0xff] }
 0x5ae   :  { %2407 = vrot.lane.b32.xlu0 %v10182_v60, %s10487_s22 }
 0x5b1   :  { %2409 = vrot.lane.b32.xlu1 %v10183_v23, %s10487_s22  ;;  %v15096_v14 = vpop.permute.xlu1 %2281  ;;  %v15098_v13 = vpop.permute.xlu0 %2287 }
 0x5b2   :  { %2411 = vrot.lane.b32.xlu0 %v10184_v32, %s10487_s22  ;;  %v10190_v32 = vld [vmem:[%s19005_s0 + $0x340] sm:$0xff] }
 0x5b5   :  { %2413 = vrot.lane.b32.xlu1 %v10185_v48, %s10487_s22  ;;  %v15108_v0 = vpop.permute.xlu1 %2285  ;;  %v15110_v5 = vpop.permute.xlu0 %2291  ;;  %v10191_v48 = vld [vmem:[%s19005_s0 + $0x348] sm:$0xff] }
 0x5b6   :  { %2415 = vrot.lane.b32.xlu0 %v10186_v43, %s10487_s22 }
 0x5b9   :  { %2417 = vrot.lane.b32.xlu1 %v10187_v24, %s10487_s22  ;;  %v15120_v7 = vpop.permute.xlu1 %2289  ;;  %v15122_v10 = vpop.permute.xlu0 %2295 }
 0x5ba   :  { %2419 = vrot.lane.b32.xlu0 %v10188_v63, %s10487_s22  ;;  %v10192_v63 = vld [vmem:[%s19005_s0 + $0x350] sm:$0xff] }
 0x5bd   :  { %2421 = vrot.lane.b32.xlu1 %v10189_v33, %s10487_s22  ;;  %v15132_v60 = vpop.permute.xlu1 %2293  ;;  %v15134_v23 = vpop.permute.xlu0 %2299  ;;  %v10193_v33 = vld [vmem:[%s19005_s0 + $0x358] sm:$0xff] }
 0x5be   :  { %2423 = vrot.lane.b32.xlu0 %v10190_v32, %s10487_s22 }
 0x5c1   :  { %2425 = vrot.lane.b32.xlu1 %v10191_v48, %s10487_s22  ;;  %v15144_v43 = vpop.permute.xlu1 %2297  ;;  %v15146_v24 = vpop.permute.xlu0 %2303  ;;  %v10194_v48 = vld [vmem:[%s19005_s0 + $0x360] sm:$0xff] }
 0x5c2   :  { %2427 = vrot.lane.b32.xlu0 %v10192_v63, %s10487_s22  ;;  %v10195_v63 = vld [vmem:[%s19005_s0 + $0x368] sm:$0xff] }
 0x5c5   :  { %2429 = vrot.lane.b32.xlu1 %v10193_v33, %s10487_s22  ;;  %v15156_v32 = vpop.permute.xlu1 %2301  ;;  %v15158_v29 = vpop.permute.xlu0 %2307  ;;  %v10196_v33 = vld [vmem:[%s19005_s0 + $0x370] sm:$0xff] }
 0x5c6   :  { %2431 = vrot.lane.b32.xlu0 %v10194_v48, %s10487_s22  ;;  %v10197_v48 = vld [vmem:[%s19005_s0 + $0x378] sm:$0xff] }
 0x5c9   :  { %2433 = vrot.lane.b32.xlu1 %v10195_v63, %s10487_s22  ;;  %v15168_v53 = vpop.permute.xlu1 %2305  ;;  %v15170_v25 = vpop.permute.xlu0 %2311  ;;  %v10198_v63 = vld [vmem:[%s19005_s0 + $0x380] sm:$0xff] }
 0x5ca   :  { %19694 = vst [vmem:[#allocation56_spill] sm:$0xff] %v15170_v25  ;;  %2435 = vrot.lane.b32.xlu0 %v10196_v33, %s10487_s22  ;;  %v10199_v33 = vld [vmem:[%s19005_s0 + $0x388] sm:$0xff] }
 0x5cd   :  { %2437 = vrot.lane.b32.xlu1 %v10197_v48, %s10487_s22  ;;  %v15180_v4 = vpop.permute.xlu1 %2309  ;;  %v15182_v3 = vpop.permute.xlu0 %2315  ;;  %v10200_v48 = vld [vmem:[%s19005_s0 + $0x390] sm:$0xff] }
 0x5ce   :  { %19695 = vst [vmem:[#allocation53_spill] sm:$0xff] %v15182_v3  ;;  %2439 = vrot.lane.b32.xlu0 %v10198_v63, %s10487_s22  ;;  %v10201_v63 = vld [vmem:[%s19005_s0 + $0x398] sm:$0xff]  ;;  %v19755_v3 = vld [vmem:[#allocation79_spill] sm:$0xff] }
 0x5d1   :  { %2441 = vrot.lane.b32.xlu1 %v10199_v33, %s10487_s22  ;;  %v15192_v17 = vpop.permute.xlu1 %2313  ;;  %v15194_v54 = vpop.permute.xlu0 %2319  ;;  %v10202_v33 = vld [vmem:[%s19005_s0 + $0x3a0] sm:$0xff] }
 0x5d2   :  { %19696 = vst [vmem:[#allocation58_spill] sm:$0xff] %v15194_v54  ;;  %2443 = vrot.lane.b32.xlu0 %v10200_v48, %s10487_s22  ;;  %v10203_v48 = vld [vmem:[%s19005_s0 + $0x3a8] sm:$0xff] }
 0x5d5   :  { %2445 = vrot.lane.b32.xlu1 %v10201_v63, %s10487_s22  ;;  %v15204_v2 = vpop.permute.xlu1 %2317  ;;  %v15206_v52 = vpop.permute.xlu0 %2323  ;;  %v10204_v63 = vld [vmem:[%s19005_s0 + $0x3b0] sm:$0xff] }
 0x5d6   :  { %19697 = vst [vmem:[#allocation55_spill] sm:$0xff] %v15204_v2  ;;  %19698 = vst [vmem:[#allocation60_spill] sm:$0xff] %v15206_v52  ;;  %2447 = vrot.lane.b32.xlu0 %v10202_v33, %s10487_s22  ;;  %v10205_v33 = vld [vmem:[%s19005_s0 + $0x3b8] sm:$0xff]  ;;  %v19754_v52 = vld [vmem:[#allocation76_spill] sm:$0xff] }
 0x5d7   :  { %v19756_v2 = vld [vmem:[#allocation80_spill] sm:$0xff] }
 0x5d9   :  { %2449 = vrot.lane.b32.xlu1 %v10203_v48, %s10487_s22  ;;  %v15216_v38 = vpop.permute.xlu1 %2321  ;;  %v15218_v1 = vpop.permute.xlu0 %2327  ;;  %v10206_v48 = vld [vmem:[%s19005_s0 + $0x3c0] sm:$0xff] }
 0x5da   :  { %19699 = vst [vmem:[#allocation57_spill] sm:$0xff] %v15216_v38  ;;  %19700 = vst [vmem:[#allocation62_spill] sm:$0xff] %v15218_v1  ;;  %2451 = vrot.lane.b32.xlu0 %v10204_v63, %s10487_s22  ;;  %v10207_v63 = vld [vmem:[%s19005_s0 + $0x3c8] sm:$0xff] }
 0x5dd   :  { %2453 = vrot.lane.b32.xlu1 %v10205_v33, %s10487_s22  ;;  %v15228_v47 = vpop.permute.xlu1 %2325  ;;  %v15230_v45 = vpop.permute.xlu0 %2331  ;;  %v10208_v33 = vld [vmem:[%s19005_s0 + $0x3d0] sm:$0xff] }
 0x5de   :  { %19701 = vst [vmem:[#allocation59_spill] sm:$0xff] %v15228_v47  ;;  %19702 = vst [vmem:[#allocation64_spill] sm:$0xff] %v15230_v45  ;;  %2455 = vrot.lane.b32.xlu0 %v10206_v48, %s10487_s22  ;;  %v10209_v48 = vld [vmem:[%s19005_s0 + $0x3d8] sm:$0xff] }
 0x5e1   :  { %2457 = vrot.lane.b32.xlu1 %v10207_v63, %s10487_s22  ;;  %v15240_v58 = vpop.permute.xlu1 %2329  ;;  %v15242_v19 = vpop.permute.xlu0 %2335  ;;  %v10210_v63 = vld [vmem:[%s19005_s0 + $0x3e0] sm:$0xff] }
 0x5e2   :  { %19703 = vst [vmem:[#allocation61_spill] sm:$0xff] %v15240_v58  ;;  %19704 = vst [vmem:[#allocation66_spill] sm:$0xff] %v15242_v19  ;;  %2459 = vrot.lane.b32.xlu0 %v10208_v33, %s10487_s22  ;;  %v10211_v33 = vld [vmem:[%s19005_s0 + $0x3e8] sm:$0xff] }
 0x5e3   :  { %v19753_v58 = vld [vmem:[#allocation75_spill] sm:$0xff] }
 0x5e5   :  { %2461 = vrot.lane.b32.xlu1 %v10209_v48, %s10487_s22  ;;  %v15252_v37 = vpop.permute.xlu1 %2333  ;;  %v15254_v45 = vpop.permute.xlu0 %2339  ;;  %v10212_v48 = vld [vmem:[%s19005_s0 + $0x3f0] sm:$0xff] }
 0x5e6   :  { %19705 = vst [vmem:[#allocation63_spill] sm:$0xff] %v15252_v37  ;;  %19706 = vst [vmem:[#allocation68_spill] sm:$0xff] %v15254_v45  ;;  %2463 = vrot.lane.b32.xlu0 %v10210_v63, %s10487_s22  ;;  %v10213_v63 = vld [vmem:[%s19005_s0 + $0x3f8] sm:$0xff] }
 0x5e9   :  { %2465 = vrot.lane.b32.xlu1 %v10211_v33, %s10487_s22  ;;  %v15264_v19 = vpop.permute.xlu1 %2337  ;;  %v15266_v1 = vpop.permute.xlu0 %2343  ;;  %v10214_v33 = vld [vmem:[%s19005_s0 + $0x400] sm:$0xff] }
 0x5ea   :  { %19707 = vst [vmem:[#allocation65_spill] sm:$0xff] %v15264_v19  ;;  %19708 = vst [vmem:[#allocation70_spill] sm:$0xff] %v15266_v1  ;;  %2467 = vrot.lane.b32.xlu0 %v10212_v48, %s10487_s22  ;;  %v10215_v48 = vld [vmem:[%s19005_s0 + $0x408] sm:$0xff] }
 0x5ed   :  { %2469 = vrot.lane.b32.xlu1 %v10213_v63, %s10487_s22  ;;  %v15276_v45 = vpop.permute.xlu1 %2341  ;;  %v15278_v37 = vpop.permute.xlu0 %2347  ;;  %v10216_v63 = vld [vmem:[%s19005_s0 + $0x410] sm:$0xff] }
 0x5ee   :  { %19709 = vst [vmem:[#allocation67_spill] sm:$0xff] %v15276_v45  ;;  %19710 = vst [vmem:[#allocation72_spill] sm:$0xff] %v15278_v37  ;;  %2471 = vrot.lane.b32.xlu0 %v10214_v33, %s10487_s22  ;;  %v10217_v33 = vld [vmem:[%s19005_s0 + $0x418] sm:$0xff] }
 0x5f1   :  { %2473 = vrot.lane.b32.xlu1 %v10215_v48, %s10487_s22  ;;  %v15288_v1 = vpop.permute.xlu1 %2345  ;;  %v15290_v19 = vpop.permute.xlu0 %2351  ;;  %v10218_v48 = vld [vmem:[%s19005_s0 + $0x420] sm:$0xff] }
 0x5f2   :  { %19711 = vst [vmem:[#allocation69_spill] sm:$0xff] %v15288_v1  ;;  %19712 = vst [vmem:[#allocation2_spill] sm:$0xff] %v15290_v19  ;;  %2475 = vrot.lane.b32.xlu0 %v10216_v63, %s10487_s22  ;;  %v10219_v63 = vld [vmem:[%s19005_s0 + $0x428] sm:$0xff] }
 0x5f5   :  { %2477 = vrot.lane.b32.xlu1 %v10217_v33, %s10487_s22  ;;  %v15300_v37 = vpop.permute.xlu1 %2349  ;;  %v15302_v45 = vpop.permute.xlu0 %2355  ;;  %v10220_v33 = vld [vmem:[%s19005_s0 + $0x430] sm:$0xff] }
 0x5f6   :  { %19713 = vst [vmem:[#allocation71_spill] sm:$0xff] %v15300_v37  ;;  %19714 = vst [vmem:[#allocation77_spill] sm:$0xff] %v15302_v45  ;;  %2479 = vrot.lane.b32.xlu0 %v10218_v48, %s10487_s22  ;;  %v10221_v48 = vld [vmem:[%s19005_s0 + $0x438] sm:$0xff] }
 0x5f9   :  { %2481 = vrot.lane.b32.xlu1 %v10219_v63, %s10487_s22  ;;  %v15312_v19 = vpop.permute.xlu1 %2353  ;;  %v15314_v1 = vpop.permute.xlu0 %2359  ;;  %v10222_v63 = vld [vmem:[%s19005_s0 + $0x440] sm:$0xff] }
 0x5fa   :  { %19715 = vst [vmem:[#allocation73_spill] sm:$0xff] %v15312_v19  ;;  %19716 = vst [vmem:[#allocation74_spill] sm:$0xff] %v15314_v1  ;;  %2483 = vrot.lane.b32.xlu0 %v10220_v33, %s10487_s22  ;;  %v10223_v33 = vld [vmem:[%s19005_s0 + $0x448] sm:$0xff] }
 0x5fd   :  { %2485 = vrot.lane.b32.xlu1 %v10221_v48, %s10487_s22  ;;  %v15324_v45 = vpop.permute.xlu1 %2357  ;;  %v15326_v37 = vpop.permute.xlu0 %2363  ;;  %v10224_v48 = vld [vmem:[%s19005_s0 + $0x450] sm:$0xff] }
 0x5fe   :  { %19717 = vst [vmem:[#allocation78_spill] sm:$0xff] %v15324_v45  ;;  %19718 = vst [vmem:[#allocation83_spill] sm:$0xff] %v15326_v37  ;;  %2487 = vrot.lane.b32.xlu0 %v10222_v63, %s10487_s22  ;;  %v10225_v63 = vld [vmem:[%s19005_s0 + $0x458] sm:$0xff] }
 0x601   :  { %2489 = vrot.lane.b32.xlu1 %v10223_v33, %s10487_s22  ;;  %v15336_v1 = vpop.permute.xlu1 %2361  ;;  %v15338_v19 = vpop.permute.xlu0 %2367  ;;  %v10226_v33 = vld [vmem:[%s19005_s0 + $0x460] sm:$0xff] }
 0x602   :  { %19719 = vst [vmem:[#allocation81_spill] sm:$0xff] %v15336_v1  ;;  %19720 = vst [vmem:[#allocation85_spill] sm:$0xff] %v15338_v19  ;;  %2491 = vrot.lane.b32.xlu0 %v10224_v48, %s10487_s22  ;;  %v10227_v48 = vld [vmem:[%s19005_s0 + $0x468] sm:$0xff] }
 0x605   :  { %2493 = vrot.lane.b32.xlu1 %v10225_v63, %s10487_s22  ;;  %v15348_v37 = vpop.permute.xlu1 %2365  ;;  %v15350_v45 = vpop.permute.xlu0 %2371  ;;  %v10228_v63 = vld [vmem:[%s19005_s0 + $0x470] sm:$0xff] }
 0x606   :  { %19721 = vst [vmem:[#allocation82_spill] sm:$0xff] %v15348_v37  ;;  %19722 = vst [vmem:[#allocation87_spill] sm:$0xff] %v15350_v45  ;;  %2495 = vrot.lane.b32.xlu0 %v10226_v33, %s10487_s22  ;;  %v10229_v33 = vld [vmem:[%s19005_s0 + $0x478] sm:$0xff] }
 0x609   :  { %2497 = vrot.lane.b32.xlu1 %v10227_v48, %s10487_s22  ;;  %v15360_v19 = vpop.permute.xlu1 %2369  ;;  %v15362_v1 = vpop.permute.xlu0 %2375  ;;  %v10230_v48 = vld [vmem:[%s19005_s0 + $0x480] sm:$0xff] }
 0x60a   :  { %19723 = vst [vmem:[#allocation84_spill] sm:$0xff] %v15360_v19  ;;  %19724 = vst [vmem:[#allocation89_spill] sm:$0xff] %v15362_v1  ;;  %2499 = vrot.lane.b32.xlu0 %v10228_v63, %s10487_s22  ;;  %v10231_v63 = vld [vmem:[%s19005_s0 + $0x488] sm:$0xff] }
 0x60d   :  { %2501 = vrot.lane.b32.xlu1 %v10229_v33, %s10487_s22  ;;  %v15372_v45 = vpop.permute.xlu1 %2373  ;;  %v15374_v37 = vpop.permute.xlu0 %2379  ;;  %v10232_v33 = vld [vmem:[%s19005_s0 + $0x490] sm:$0xff] }
 0x60e   :  { %19725 = vst [vmem:[#allocation86_spill] sm:$0xff] %v15372_v45  ;;  %19726 = vst [vmem:[#allocation91_spill] sm:$0xff] %v15374_v37  ;;  %2503 = vrot.lane.b32.xlu0 %v10230_v48, %s10487_s22  ;;  %v10233_v48 = vld [vmem:[%s19005_s0 + $0x498] sm:$0xff] }
 0x611   :  { %2505 = vrot.lane.b32.xlu1 %v10231_v63, %s10487_s22  ;;  %v15384_v1 = vpop.permute.xlu1 %2377  ;;  %v15386_v19 = vpop.permute.xlu0 %2383  ;;  %v10234_v63 = vld [vmem:[%s19005_s0 + $0x4a0] sm:$0xff] }
 0x612   :  { %19727 = vst [vmem:[#allocation88_spill] sm:$0xff] %v15384_v1  ;;  %19728 = vst [vmem:[#allocation93_spill] sm:$0xff] %v15386_v19  ;;  %2507 = vrot.lane.b32.xlu0 %v10232_v33, %s10487_s22  ;;  %v10235_v33 = vld [vmem:[%s19005_s0 + $0x4a8] sm:$0xff] }
 0x615   :  { %2509 = vrot.lane.b32.xlu1 %v10233_v48, %s10487_s22  ;;  %v15396_v37 = vpop.permute.xlu1 %2381  ;;  %v15398_v45 = vpop.permute.xlu0 %2387  ;;  %v10236_v48 = vld [vmem:[%s19005_s0 + $0x4b0] sm:$0xff] }
 0x616   :  { %19729 = vst [vmem:[#allocation90_spill] sm:$0xff] %v15396_v37  ;;  %19730 = vst [vmem:[#allocation95_spill] sm:$0xff] %v15398_v45  ;;  %2511 = vrot.lane.b32.xlu0 %v10234_v63, %s10487_s22  ;;  %v10237_v63 = vld [vmem:[%s19005_s0 + $0x4b8] sm:$0xff] }
 0x619   :  { %2513 = vrot.lane.b32.xlu1 %v10235_v33, %s10487_s22  ;;  %v15408_v19 = vpop.permute.xlu1 %2385  ;;  %v15410_v1 = vpop.permute.xlu0 %2391  ;;  %v10238_v33 = vld [vmem:[%s19005_s0 + $0x4c0] sm:$0xff] }
 0x61a   :  { %19731 = vst [vmem:[#allocation92_spill] sm:$0xff] %v15408_v19  ;;  %19732 = vst [vmem:[#allocation97_spill] sm:$0xff] %v15410_v1  ;;  %2515 = vrot.lane.b32.xlu0 %v10236_v48, %s10487_s22  ;;  %v10239_v48 = vld [vmem:[%s19005_s0 + $0x4c8] sm:$0xff] }
 0x61d   :  { %2517 = vrot.lane.b32.xlu1 %v10237_v63, %s10487_s22  ;;  %v15420_v45 = vpop.permute.xlu1 %2389  ;;  %v15422_v37 = vpop.permute.xlu0 %2395  ;;  %v10240_v63 = vld [vmem:[%s19005_s0 + $0x4d0] sm:$0xff] }
 0x61e   :  { %19733 = vst [vmem:[#allocation94_spill] sm:$0xff] %v15420_v45  ;;  %19734 = vst [vmem:[#allocation99_spill] sm:$0xff] %v15422_v37  ;;  %2519 = vrot.lane.b32.xlu0 %v10238_v33, %s10487_s22  ;;  %v10241_v33 = vld [vmem:[%s19005_s0 + $0x4d8] sm:$0xff] }
 0x621   :  { %2521 = vrot.lane.b32.xlu1 %v10239_v48, %s10487_s22  ;;  %v15432_v1 = vpop.permute.xlu1 %2393  ;;  %v15434_v19 = vpop.permute.xlu0 %2399  ;;  %v10242_v48 = vld [vmem:[%s19005_s0 + $0x4e0] sm:$0xff] }
 0x622   :  { %19735 = vst [vmem:[#allocation96_spill] sm:$0xff] %v15432_v1  ;;  %19736 = vst [vmem:[#allocation101_spill] sm:$0xff] %v15434_v19  ;;  %2523 = vrot.lane.b32.xlu0 %v10240_v63, %s10487_s22  ;;  %v10243_v63 = vld [vmem:[%s19005_s0 + $0x4e8] sm:$0xff] }
 0x625   :  { %2525 = vrot.lane.b32.xlu1 %v10241_v33, %s10487_s22  ;;  %v15444_v37 = vpop.permute.xlu1 %2397  ;;  %v15446_v45 = vpop.permute.xlu0 %2403  ;;  %v10244_v33 = vld [vmem:[%s19005_s0 + $0x4f0] sm:$0xff] }
 0x626   :  { %19737 = vst [vmem:[#allocation98_spill] sm:$0xff] %v15444_v37  ;;  %19738 = vst [vmem:[#allocation103_spill] sm:$0xff] %v15446_v45  ;;  %2527 = vrot.lane.b32.xlu0 %v10242_v48, %s10487_s22  ;;  %v10245_v48 = vld [vmem:[%s19005_s0 + $0x4f8] sm:$0xff] }
 0x629   :  { %2529 = vrot.lane.b32.xlu1 %v10243_v63, %s10487_s22  ;;  %v15456_v19 = vpop.permute.xlu1 %2401  ;;  %v15458_v1 = vpop.permute.xlu0 %2407  ;;  %v10246_v63 = vld [vmem:[%s19005_s0 + $0x500] sm:$0xff] }
 0x62a   :  { %19739 = vst [vmem:[#allocation100_spill] sm:$0xff] %v15456_v19  ;;  %19740 = vst [vmem:[#allocation105_spill] sm:$0xff] %v15458_v1  ;;  %2531 = vrot.lane.b32.xlu0 %v10244_v33, %s10487_s22  ;;  %v10247_v33 = vld [vmem:[%s19005_s0 + $0x508] sm:$0xff] }
 0x62d   :  { %2533 = vrot.lane.b32.xlu1 %v10245_v48, %s10487_s22  ;;  %v15468_v45 = vpop.permute.xlu1 %2405  ;;  %v15470_v37 = vpop.permute.xlu0 %2411  ;;  %v10248_v48 = vld [vmem:[%s19005_s0 + $0x510] sm:$0xff] }
 0x62e   :  { %19741 = vst [vmem:[#allocation102_spill] sm:$0xff] %v15468_v45  ;;  %19742 = vst [vmem:[#allocation107_spill] sm:$0xff] %v15470_v37  ;;  %2535 = vrot.lane.b32.xlu0 %v10246_v63, %s10487_s22  ;;  %v10249_v63 = vld [vmem:[%s19005_s0 + $0x518] sm:$0xff] }
 0x631   :  { %2537 = vrot.lane.b32.xlu1 %v10247_v33, %s10487_s22  ;;  %v15480_v1 = vpop.permute.xlu1 %2409  ;;  %v15482_v19 = vpop.permute.xlu0 %2415  ;;  %v10250_v33 = vld [vmem:[%s19005_s0 + $0x520] sm:$0xff] }
 0x632   :  { %19743 = vst [vmem:[#allocation104_spill] sm:$0xff] %v15480_v1  ;;  %19744 = vst [vmem:[#allocation106_spill] sm:$0xff] %v15482_v19  ;;  %2539 = vrot.lane.b32.xlu0 %v10248_v48, %s10487_s22  ;;  %v10251_v48 = vld [vmem:[%s19005_s0 + $0x528] sm:$0xff] }
 0x635   :  { %2541 = vrot.lane.b32.xlu1 %v10249_v63, %s10487_s22  ;;  %v15492_v37 = vpop.permute.xlu1 %2413  ;;  %v15494_v45 = vpop.permute.xlu0 %2419  ;;  %v10252_v63 = vld [vmem:[%s19005_s0 + $0x530] sm:$0xff] }
 0x636   :  { %19745 = vst [vmem:[#allocation110_spill] sm:$0xff] %v15492_v37  ;;  %19746 = vst [vmem:[#allocation108_spill] sm:$0xff] %v15494_v45  ;;  %2543 = vrot.lane.b32.xlu0 %v10250_v33, %s10487_s22  ;;  %v10253_v33 = vld [vmem:[%s19005_s0 + $0x538] sm:$0xff] }
 0x639   :  { %2545 = vrot.lane.b32.xlu1 %v10251_v48, %s10487_s22  ;;  %v15504_v19 = vpop.permute.xlu1 %2417  ;;  %v15506_v1 = vpop.permute.xlu0 %2423  ;;  %v10254_v48 = vld [vmem:[%s19005_s0 + $0x540] sm:$0xff] }
 0x63a   :  { %19747 = vst [vmem:[#allocation109_spill] sm:$0xff] %v15504_v19  ;;  %19748 = vst [vmem:[#allocation113_spill] sm:$0xff] %v15506_v1  ;;  %2547 = vrot.lane.b32.xlu0 %v10252_v63, %s10487_s22  ;;  %v10255_v63 = vld [vmem:[%s19005_s0 + $0x548] sm:$0xff] }
 0x63d   :  { %2549 = vrot.lane.b32.xlu1 %v10253_v33, %s10487_s22  ;;  %v15516_v45 = vpop.permute.xlu1 %2421  ;;  %v15518_v37 = vpop.permute.xlu0 %2427  ;;  %v10256_v33 = vld [vmem:[%s19005_s0 + $0x550] sm:$0xff] }
 0x63e   :  { %19749 = vst [vmem:[#allocation111_spill] sm:$0xff] %v15516_v45  ;;  %19750 = vst [vmem:[#allocation112_spill] sm:$0xff] %v15518_v37  ;;  %2551 = vrot.lane.b32.xlu0 %v10254_v48, %s10487_s22 }
 0x641   :  { %2553 = vrot.lane.b32.xlu1 %v10255_v63, %s10487_s22  ;;  %v15528_v1 = vpop.permute.xlu1 %2425  ;;  %v15530_v19 = vpop.permute.xlu0 %2431 }
 0x642   :  { %19751 = vst [vmem:[#allocation114_spill] sm:$0xff] %v15528_v1  ;;  %19752 = vst [vmem:[#allocation115_spill] sm:$0xff] %v15530_v19  ;;  %2555 = vrot.lane.b32.xlu0 %v10256_v33, %s10487_s22  ;;  %v10257_v19 = vld [vmem:[%s19005_s0 + $0x558] sm:$0xff] }
 0x643   :  { %v9653_v37 = vpop.f32.mrb[2].mxu0  ;;  %v9742_v45 = vpop.f32.mrb[2].mxu1 }
 0x644   :  { %v9654_v48 = vadd.f32 %v9653_v37, %v19753_v58  ;;  %v9743_v47 = vadd.f32 %v9742_v45, %v19754_v52  ;;  %v9655_v54 = vpop.f32.mrb[3].mxu0  ;;  %v9744_v38 = vpop.f32.mrb[3].mxu1  ;;  %v10258_v45 = vld [vmem:[%s19005_s0 + $0x560] sm:$0xff] }
 0x645   :  { %v9656_v63 = vadd.f32 %v9655_v54, %v19755_v3  ;;  %v9745_v1 = vadd.f32 %v9744_v38, %v19756_v2  ;;  %2557 = vrot.lane.b32.xlu1 %v10257_v19, %s10487_s22  ;;  %v15544_v25 = vpop.permute.xlu1 %2429  ;;  %v15546_v33 = vpop.permute.xlu0 %2435  ;;  %v10259_v19 = vld [vmem:[%s19005_s0 + $0x568] sm:$0xff]  ;;  %v10260_v38 = vld [vmem:[%s19005_s0 + $0x570] sm:$0xff] }
 0x646   :  { %9763 = vst [vmem:[%s19008_s3 + $0x20] sm:$0xff] %v9654_v48  ;;  %9765 = vst [vmem:[%s19008_s3 + $0x30] sm:$0xff] %v9743_v47  ;;  %2559 = vrot.lane.b32.xlu0 %v10258_v45, %s10487_s22  ;;  %v10263_v45 = vld [vmem:[%s19005_s0 + $0x588] sm:$0xff] }
 0x647   :  { %9764 = vst [vmem:[%s19008_s3 + $0x28] sm:$0xff] %v9656_v63  ;;  %9766 = vst [vmem:[%s19008_s3 + $0x38] sm:$0xff] %v9745_v1  ;;  %v10261_v1 = vld [vmem:[%s19005_s0 + $0x578] sm:$0xff]  ;;  %v10262_v63 = vld [vmem:[%s19005_s0 + $0x580] sm:$0xff] }
 0x649   :  { %2561 = vrot.lane.b32.xlu1 %v10259_v19, %s10487_s22  ;;  %v15568_v47 = vpop.permute.xlu1 %2433  ;;  %v15570_v37 = vpop.permute.xlu0 %2439 }
 0x64a   :  { %19757 = vst [vmem:[#allocation116_spill] sm:$0xff] %v15570_v37  ;;  %2563 = vrot.lane.b32.xlu0 %v10260_v38, %s10487_s22 }
 0x64d   :  { %2565 = vrot.lane.b32.xlu1 %v10261_v1, %s10487_s22  ;;  %v15580_v54 = vpop.permute.xlu1 %2437  ;;  %v15582_v48 = vpop.permute.xlu0 %2443  ;;  %v10264_v1 = vld [vmem:[%s19005_s0 + $0x590] sm:$0xff] }
 0x64e   :  { %19758 = vst [vmem:[#allocation119_spill] sm:$0xff] %v15582_v48  ;;  %2567 = vrot.lane.b32.xlu0 %v10262_v63, %s10487_s22  ;;  %v10265_v63 = vld [vmem:[%s19005_s0 + $0x598] sm:$0xff] }
 0x651   :  { %2569 = vrot.lane.b32.xlu1 %v10263_v45, %s10487_s22  ;;  %v15592_v19 = vpop.permute.xlu1 %2441  ;;  %v15594_v38 = vpop.permute.xlu0 %2447  ;;  %v10266_v45 = vld [vmem:[%s19005_s0 + $0x5a0] sm:$0xff] }
 0x652   :  { %19759 = vst [vmem:[#allocation117_spill] sm:$0xff] %v15592_v19  ;;  %19760 = vst [vmem:[#allocation121_spill] sm:$0xff] %v15594_v38  ;;  %2571 = vrot.lane.b32.xlu0 %v10264_v1, %s10487_s22  ;;  %v10267_v1 = vld [vmem:[%s19005_s0 + $0x5a8] sm:$0xff] }
 0x655   :  { %2573 = vrot.lane.b32.xlu1 %v10265_v63, %s10487_s22  ;;  %v15604_v2 = vpop.permute.xlu1 %2445  ;;  %v15606_v3 = vpop.permute.xlu0 %2451  ;;  %v10268_v63 = vld [vmem:[%s19005_s0 + $0x5b0] sm:$0xff] }
 0x656   :  { %19761 = vst [vmem:[#allocation118_spill] sm:$0xff] %v15604_v2  ;;  %19762 = vst [vmem:[#allocation123_spill] sm:$0xff] %v15606_v3  ;;  %2575 = vrot.lane.b32.xlu0 %v10266_v45, %s10487_s22  ;;  %v10269_v45 = vld [vmem:[%s19005_s0 + $0x5b8] sm:$0xff] }
 0x659   :  { %2577 = vrot.lane.b32.xlu1 %v10267_v1, %s10487_s22  ;;  %v15616_v52 = vpop.permute.xlu1 %2449  ;;  %v15618_v58 = vpop.permute.xlu0 %2455  ;;  %v10270_v1 = vld [vmem:[%s19005_s0 + $0x5c0] sm:$0xff] }
 0x65a   :  { %19763 = vst [vmem:[#allocation120_spill] sm:$0xff] %v15616_v52  ;;  %19764 = vst [vmem:[#allocation125_spill] sm:$0xff] %v15618_v58  ;;  %2579 = vrot.lane.b32.xlu0 %v10268_v63, %s10487_s22  ;;  %v10271_v63 = vld [vmem:[%s19005_s0 + $0x5c8] sm:$0xff] }
 0x65d   :  { %2581 = vrot.lane.b32.xlu1 %v10269_v45, %s10487_s22  ;;  %v15628_v3 = vpop.permute.xlu1 %2453  ;;  %v15630_v38 = vpop.permute.xlu0 %2459  ;;  %v10272_v45 = vld [vmem:[%s19005_s0 + $0x5d0] sm:$0xff] }
 0x65e   :  { %19765 = vst [vmem:[#allocation122_spill] sm:$0xff] %v15628_v3  ;;  %19766 = vst [vmem:[#allocation127_spill] sm:$0xff] %v15630_v38  ;;  %2583 = vrot.lane.b32.xlu0 %v10270_v1, %s10487_s22  ;;  %v10273_v1 = vld [vmem:[%s19005_s0 + $0x5d8] sm:$0xff] }
 0x661   :  { %2585 = vrot.lane.b32.xlu1 %v10271_v63, %s10487_s22  ;;  %v15640_v58 = vpop.permute.xlu1 %2457  ;;  %v15642_v52 = vpop.permute.xlu0 %2463  ;;  %v10274_v63 = vld [vmem:[%s19005_s0 + $0x5e0] sm:$0xff] }
 0x662   :  { %19767 = vst [vmem:[#allocation124_spill] sm:$0xff] %v15640_v58  ;;  %19768 = vst [vmem:[#allocation128_spill] sm:$0xff] %v15642_v52  ;;  %2587 = vrot.lane.b32.xlu0 %v10272_v45, %s10487_s22  ;;  %v10275_v45 = vld [vmem:[%s19005_s0 + $0x5e8] sm:$0xff] }
 0x665   :  { %2589 = vrot.lane.b32.xlu1 %v10273_v1, %s10487_s22  ;;  %v15652_v38 = vpop.permute.xlu1 %2461  ;;  %v15654_v3 = vpop.permute.xlu0 %2467  ;;  %v10276_v1 = vld [vmem:[%s19005_s0 + $0x5f0] sm:$0xff] }
 0x666   :  { %19769 = vst [vmem:[#allocation126_spill] sm:$0xff] %v15652_v38  ;;  %19770 = vst [vmem:[#allocation31_spill] sm:$0xff] %v15654_v3  ;;  %2591 = vrot.lane.b32.xlu0 %v10274_v63, %s10487_s22  ;;  %v10277_v63 = vld [vmem:[%s19005_s0 + $0x5f8] sm:$0xff] }
 0x669   :  { %2593 = vrot.lane.b32.xlu1 %v10275_v45, %s10487_s22  ;;  %v15664_v52 = vpop.permute.xlu1 %2465  ;;  %v15666_v58 = vpop.permute.xlu0 %2471  ;;  %v10278_v45 = vld [vmem:[%s19005_s0 + $0x600] sm:$0xff] }
 0x66a   :  { %19771 = vst [vmem:[#allocation26_spill] sm:$0xff] %v15664_v52  ;;  %19772 = vst [vmem:[#allocation32_spill] sm:$0xff] %v15666_v58  ;;  %2595 = vrot.lane.b32.xlu0 %v10276_v1, %s10487_s22  ;;  %v10279_v1 = vld [vmem:[%s19005_s0 + $0x608] sm:$0xff] }
 0x66d   :  { %2597 = vrot.lane.b32.xlu1 %v10277_v63, %s10487_s22  ;;  %v15676_v3 = vpop.permute.xlu1 %2469  ;;  %v15678_v38 = vpop.permute.xlu0 %2475  ;;  %v10280_v63 = vld [vmem:[%s19005_s0 + $0x610] sm:$0xff] }
 0x66e   :  { %19773 = vst [vmem:[#allocation21_spill] sm:$0xff] %v15676_v3  ;;  %19774 = vst [vmem:[#allocation34_spill] sm:$0xff] %v15678_v38  ;;  %2599 = vrot.lane.b32.xlu0 %v10278_v45, %s10487_s22  ;;  %v10281_v45 = vld [vmem:[%s19005_s0 + $0x618] sm:$0xff] }
 0x671   :  { %2601 = vrot.lane.b32.xlu1 %v10279_v1, %s10487_s22  ;;  %v15688_v58 = vpop.permute.xlu1 %2473  ;;  %v15690_v52 = vpop.permute.xlu0 %2479  ;;  %v10282_v1 = vld [vmem:[%s19005_s0 + $0x620] sm:$0xff] }
 0x672   :  { %19775 = vst [vmem:[#allocation22_spill] sm:$0xff] %v15688_v58  ;;  %19776 = vst [vmem:[#allocation25_spill] sm:$0xff] %v15690_v52  ;;  %2603 = vrot.lane.b32.xlu0 %v10280_v63, %s10487_s22  ;;  %v10283_v63 = vld [vmem:[%s19005_s0 + $0x628] sm:$0xff] }
 0x675   :  { %2605 = vrot.lane.b32.xlu1 %v10281_v45, %s10487_s22  ;;  %v15700_v38 = vpop.permute.xlu1 %2477  ;;  %v15702_v3 = vpop.permute.xlu0 %2483  ;;  %v10284_v45 = vld [vmem:[%s19005_s0 + $0x630] sm:$0xff] }
 0x676   :  { %19777 = vst [vmem:[#allocation28_spill] sm:$0xff] %v15700_v38  ;;  %19778 = vst [vmem:[#allocation33_spill] sm:$0xff] %v15702_v3  ;;  %2607 = vrot.lane.b32.xlu0 %v10282_v1, %s10487_s22  ;;  %v10285_v1 = vld [vmem:[%s19005_s0 + $0x638] sm:$0xff] }
 0x679   :  { %2609 = vrot.lane.b32.xlu1 %v10283_v63, %s10487_s22  ;;  %v15712_v52 = vpop.permute.xlu1 %2481  ;;  %v15714_v58 = vpop.permute.xlu0 %2487 }
 0x67a   :  { %19779 = vst [vmem:[#allocation36_spill] sm:$0xff] %v15712_v52  ;;  %19780 = vst [vmem:[#allocation23_spill] sm:$0xff] %v15714_v58  ;;  %2611 = vrot.lane.b32.xlu0 %v10284_v45, %s10487_s22 }
 0x67d   :  { %2613 = vrot.lane.b32.xlu1 %v10285_v1, %s10487_s22  ;;  %v15724_v3 = vpop.permute.xlu1 %2485  ;;  %v15726_v38 = vpop.permute.xlu0 %2491 }
 0x67e   :  { %19781 = vst [vmem:[#allocation24_spill] sm:$0xff] %v15724_v3  ;;  %19782 = vst [vmem:[#allocation30_spill] sm:$0xff] %v15726_v38 }
 0x681   :  { %v15728_v63 = vpop.permute.xlu1 %2489  ;;  %v15730_v52 = vpop.permute.xlu0 %2495 }
 0x682   :  { %19783 = vst [vmem:[#allocation35_spill] sm:$0xff] %v15728_v63  ;;  %19784 = vst [vmem:[#allocation42_spill] sm:$0xff] %v15730_v52  ;;  %v2815_v52 = vsel %vm19792_vm13, %v14885_v49, 0.0 }
 0x683   :  { %vm19800_vm13 = vmmov %vm19799_vm0 }
 0x685   :  { %v15732_v58 = vpop.permute.xlu1 %2493  ;;  %v15734_v48 = vpop.permute.xlu0 %2499 }
 0x686   :  { %19785 = vst [vmem:[#allocation43_spill] sm:$0xff] %v15734_v48 }
 0x689   :  { %v15736_v2 = vpop.permute.xlu1 %2497  ;;  %v15738_v45 = vpop.permute.xlu0 %2503 }
 0x68a   :  { %19786 = vst [vmem:[#allocation48_spill] sm:$0xff] %v15736_v2  ;;  %19787 = vst [vmem:[#allocation38_spill] sm:$0xff] %v15738_v45  ;;  %v2821_v45 = vsel %vm19793_vm14, %v14904_v15, 0.0  ;;  %v2830_v15 = vsel %vm19797_vm12, %v14928_v61, 0.0 }
 0x68b   :  { %vm19801_vm14 = vmmov %vm19799_vm0 }
 0x68c   :  { %v2842_v61 = vsel %vm19801_vm14, %v14952_v59, 0.0  ;;  %vm19804_vm12 = vmmov %vm19799_vm0 }
 0x68d   :  { %v15740_v37 = vpop.permute.xlu1 %2501  ;;  %v15742_v19 = vpop.permute.xlu0 %2507  ;;  %vm19807_vm14 = vmmov %vm19799_vm0 }
 0x68e   :  { %19788 = vst [vmem:[#allocation50_spill] sm:$0xff] %v15742_v19 }
 0x691   :  { %v15744_v1 = vpop.permute.xlu1 %2505  ;;  %v15746_v3 = vpop.permute.xlu0 %2511 }
 0x692   :  { %19789 = vst [vmem:[#allocation19_spill] sm:$0xff] %v15744_v1  ;;  %19790 = vst [vmem:[#allocation39_spill] sm:$0xff] %v15746_v3  ;;  %v2818_v3 = vsel %vm19795_vm15, %v14883_v27, 0.0  ;;  %v2836_v27 = vsel %vm19799_vm0, %v14940_v12, 0.0 }
 0x693   :  { %vm19802_vm15 = vmmov %vm19799_vm0 }
 0x695   :  { %v15748_v38 = vpop.permute.xlu1 %2509  ;;  %v15750_v63 = vpop.permute.xlu0 %2515 }
 0x696   :  { %19791 = vst [vmem:[#allocation44_spill] sm:$0xff] %v15750_v63  ;;  %v2824_v63 = vsel %vm19796_vm9, %v14916_v18, 0.0  ;;  %vm19803_vm9 = vmmov %vm19799_vm0 }
 0x697   :  { %v2848_v12 = vsel %vm19803_vm9, %v14964_v46, 0.0  ;;  %vm19809_vm9 = vmmov %vm19799_vm0 }
 0x699   :  { %v15754_v48 = vpop.permute.xlu1 %2513  ;;  %2816 = vadd.xlane.f32.xlu0 %v2815_v52  ;;  %v15756_v2 = vpop.permute.xlu0 %2519 }
 0x69d   :  { %v15760_v19 = vpop.permute.xlu1 %2517  ;;  %2822 = vadd.xlane.f32.xlu0 %v2821_v45  ;;  %v15762_v1 = vpop.permute.xlu0 %2523  ;;  %v2827_v45 = vsel %vm19798_vm11, %v14906_v39, 0.0  ;;  %v2839_v39 = vsel %vm19802_vm15, %v14930_v41, 0.0  ;;  %vm19805_vm11 = vmmov %vm19799_vm0  ;;  %v2851_v41 = vsel %vm19799_vm0, %v14954_v42, 0.0  ;;  %v2863_v42 = vsel %vm19809_vm9, %v14978_v21, 0.0 }
 0x69e   :  { %19794 = vst [vmem:[#allocation45_spill] sm:$0xff] %v15762_v1  ;;  %v2854_v59 = vsel %vm19805_vm11, %v14976_v51, 0.0  ;;  %vm19808_vm15 = vmmov %vm19799_vm0 }
 0x69f   :  { %v2866_v51 = vsel %vm19808_vm15, %v15000_v30, 0.0  ;;  %vm19811_vm11 = vmmov %vm19799_vm0  ;;  %v2878_v30 = vsel %vm19799_vm0, %v15024_v35, 0.0 }
 0x6a0   :  { %vm19814_vm15 = vmmov %vm19799_vm0 }
 0x6a1   :  { %2819 = vadd.xlane.f32.xlu1 %v2818_v3  ;;  %v15768_v49 = vpop.permute.xlu1 %2521  ;;  %2825 = vadd.xlane.f32.xlu0 %v2824_v63  ;;  %v15770_v52 = vpop.permute.xlu0 %2527  ;;  %v2833_v3 = vsel %vm19800_vm13, %v14918_v56, 0.0  ;;  %v2845_v56 = vsel %vm19804_vm12, %v14942_v62, 0.0  ;;  %vm19806_vm13 = vmmov %vm19799_vm0  ;;  %v2857_v62 = vsel %vm19807_vm14, %v14966_v34, 0.0  ;;  %v2869_v34 = vsel %vm19811_vm11, %v14990_v22, 0.0 }
 0x6a2   :  { %v2860_v46 = vsel %vm19806_vm13, %v14988_v16, 0.0  ;;  %vm19810_vm12 = vmmov %vm19799_vm0  ;;  %v2881_v22 = vsel %vm19814_vm15, %v15014_v50, 0.0  ;;  %v2893_v50 = vsel %vm19799_vm0, %v15038_v9, 0.0 }
 0x6a3   :  { %v2872_v16 = vsel %vm19810_vm12, %v15012_v26, 0.0  ;;  %vm19812_vm13 = vmmov %vm19799_vm0 }
 0x6a4   :  { %v2875_v21 = vsel %vm19812_vm13, %v15002_v55, 0.0  ;;  %vm19813_vm14 = vmmov %vm19799_vm0 }
 0x6a5   :  { %2831 = vadd.xlane.f32.xlu1 %v2830_v15  ;;  %2828 = vadd.xlane.f32.xlu0 %v2827_v45  ;;  %v15776_v1 = vpop.permute.xlu1 %2525  ;;  %v15782_v18 = vpop.permute.xlu0 %2531  ;;  %v2884_v26 = vsel %vm19813_vm14, %v15036_v31, 0.0  ;;  %vm19815_vm9 = vmmov %vm19799_vm0 }
 0x6a6   :  { %v2890_v35 = vsel %vm19815_vm9, %v15048_v36, 0.0  ;;  %vm19816_vm12 = vmmov %vm19799_vm0 }
 0x6a7   :  { %v2887_v55 = vsel %vm19816_vm12, %v15026_v6, 0.0  ;;  %vm19817_vm11 = vmmov %vm19799_vm0 }
 0x6a8   :  { %v2896_v31 = vsel %vm19817_vm11, %v15060_v11, 0.0  ;;  %vm19818_vm13 = vmmov %vm19799_vm0 }
 0x6a9   :  { %2837 = vadd.xlane.f32.xlu1 %v2836_v27  ;;  %2834 = vadd.xlane.f32.xlu0 %v2833_v3  ;;  %v15784_v63 = vpop.permute.xlu1 %2529  ;;  %v15790_v15 = vpop.permute.xlu0 %2535  ;;  %v2902_v36 = vsel %vm19818_vm13, %v15072_v57, 0.0  ;;  %vm19819_vm14 = vmmov %vm19799_vm0 }
 0x6aa   :  { %v2899_v6 = vsel %vm19819_vm14, %v15050_v28, 0.0  ;;  %vm19820_vm15 = vmmov %vm19799_vm0 }
 0x6ab   :  { %v2908_v11 = vsel %vm19820_vm15, %v15084_v44, 0.0  ;;  %vm19821_vm9 = vmmov %vm19799_vm0  ;;  %v2920_v44 = vsel %vm19799_vm0, %v15108_v0, 0.0 }
 0x6ac   :  { %v2905_v9 = vsel %vm19821_vm9, %v15062_v8, 0.0  ;;  %vm19823_vm12 = vmmov %vm19799_vm0 }
 0x6ad   :  { %2843 = vadd.xlane.f32.xlu1 %v2842_v61  ;;  %2840 = vadd.xlane.f32.xlu0 %v2839_v39  ;;  %v15796_v45 = vpop.permute.xlu1 %2533  ;;  %v15802_v27 = vpop.permute.xlu0 %2539  ;;  %v2914_v57 = vsel %vm19823_vm12, %v15096_v14, 0.0  ;;  %vm19824_vm11 = vmmov %vm19799_vm0 }
 0x6ae   :  { %v2911_v28 = vsel %vm19824_vm11, %v15074_v40, 0.0  ;;  %vm19826_vm13 = vmmov %vm19799_vm0 }
 0x6af   :  { %v2917_v8 = vsel %vm19826_vm13, %v15086_v20, 0.0  ;;  %vm19828_vm14 = vmmov %vm19799_vm0 }
 0x6b0   :  { %v2926_v14 = vsel %vm19828_vm14, %v15120_v7, 0.0  ;;  %vm19829_vm15 = vmmov %vm19799_vm0 }
 0x6b1   :  { %2849 = vadd.xlane.f32.xlu1 %v2848_v12  ;;  %2846 = vadd.xlane.f32.xlu0 %v2845_v56  ;;  %v15804_v3 = vpop.permute.xlu1 %2537  ;;  %v15810_v61 = vpop.permute.xlu0 %2543  ;;  %v2923_v40 = vsel %vm19829_vm15, %v15098_v13, 0.0  ;;  %vm19832_vm9 = vmmov %vm19799_vm0  ;;  %v2935_v13 = vsel %vm19799_vm0, %v15122_v10, 0.0 }
 0x6b2   :  { %v2932_v0 = vsel %vm19832_vm9, %v15132_v60, 0.0  ;;  %vm19833_vm12 = vmmov %vm19799_vm0 }
 0x6b3   :  { %v2929_v20 = vsel %vm19833_vm12, %v15110_v5, 0.0  ;;  %vm19835_vm11 = vmmov %vm19799_vm0 }
 0x6b4   :  { %v2938_v7 = vsel %vm19835_vm11, %v15144_v43, 0.0  ;;  %vm19837_vm13 = vmmov %vm19799_vm0 }
 0x6b5   :  { %2855 = vadd.xlane.f32.xlu1 %v2854_v59  ;;  %2852 = vadd.xlane.f32.xlu0 %v2851_v41  ;;  %v15816_v39 = vpop.permute.xlu1 %2541  ;;  %v15822_v12 = vpop.permute.xlu0 %2547  ;;  %v2944_v60 = vsel %vm19837_vm13, %v15156_v32, 0.0  ;;  %vm19838_vm14 = vmmov %vm19799_vm0 }
 0x6b6   :  { %v2941_v5 = vsel %vm19838_vm14, %v15134_v23, 0.0  ;;  %vm19841_vm15 = vmmov %vm19799_vm0 }
 0x6b7   :  { %v2950_v43 = vsel %vm19841_vm15, %v15168_v53, 0.0  ;;  %vm19842_vm9 = vmmov %vm19799_vm0  ;;  %v2962_v53 = vsel %vm19799_vm0, %v15192_v17, 0.0  ;;  %v19856_v17 = vld [vmem:[#allocation57_spill] sm:$0xff] }
 0x6b8   :  { %v2947_v10 = vsel %vm19842_vm9, %v15146_v24, 0.0  ;;  %vm19844_vm12 = vmmov %vm19799_vm0 }
 0x6b9   :  { %2861 = vadd.xlane.f32.xlu1 %v2860_v46  ;;  %2858 = vadd.xlane.f32.xlu0 %v2857_v62  ;;  %v15824_v56 = vpop.permute.xlu1 %2545  ;;  %v15830_v59 = vpop.permute.xlu0 %2551  ;;  %v2956_v32 = vsel %vm19844_vm12, %v15180_v4, 0.0  ;;  %vm19845_vm11 = vmmov %vm19799_vm0  ;;  %v19851_v4 = vld [vmem:[#allocation55_spill] sm:$0xff] }
 0x6ba   :  { %v2953_v23 = vsel %vm19845_vm11, %v15158_v29, 0.0  ;;  %vm19848_vm13 = vmmov %vm19799_vm0  ;;  %v19853_v29 = vld [vmem:[#allocation53_spill] sm:$0xff] }
 0x6bb   :  { %vm19852_vm14 = vmmov %vm19799_vm0 }
 0x6bc   :  { %vm19854_vm15 = vmmov %vm19799_vm0 }
 0x6bd   :  { %2867 = vadd.xlane.f32.xlu1 %v2866_v51  ;;  %2864 = vadd.xlane.f32.xlu0 %v2863_v42  ;;  %v15836_v41 = vpop.permute.xlu1 %2549  ;;  %v15842_v46 = vpop.permute.xlu0 %2555  ;;  %vm19857_vm9 = vmmov %vm19799_vm0 }
 0x6be   :  { %vm19859_vm12 = vmmov %vm19799_vm0 }
 0x6bf   :  { %vm19862_vm11 = vmmov %vm19799_vm0 }
 0x6c1   :  { %2873 = vadd.xlane.f32.xlu1 %v2872_v16  ;;  %2870 = vadd.xlane.f32.xlu0 %v2869_v34  ;;  %v15844_v62 = vpop.permute.xlu1 %2553  ;;  %v15850_v51 = vpop.permute.xlu0 %2559 }
 0x6c5   :  { %2879 = vadd.xlane.f32.xlu1 %v2878_v30  ;;  %2876 = vadd.xlane.f32.xlu0 %v2875_v21  ;;  %v15856_v42 = vpop.permute.xlu1 %2557  ;;  %v15862_v16 = vpop.permute.xlu0 %2563 }
 0x6c6   :  { %19822 = vst [vmem:[#allocation52_spill] sm:$0xff] %v15862_v16  ;;  %v19965_v16 = vld [vmem:[#allocation101_spill] sm:$0xff] }
 0x6c9   :  { %2885 = vadd.xlane.f32.xlu1 %v2884_v26  ;;  %2882 = vadd.xlane.f32.xlu0 %v2881_v22  ;;  %v15864_v34 = vpop.permute.xlu1 %2561  ;;  %v15870_v30 = vpop.permute.xlu0 %2567 }
 0x6ca   :  { %19825 = vst [vmem:[#allocation37_spill] sm:$0xff] %v15870_v30  ;;  %v19951_v30 = vld [vmem:[#allocation94_spill] sm:$0xff] }
 0x6cd   :  { %2891 = vadd.xlane.f32.xlu1 %v2890_v35  ;;  %2888 = vadd.xlane.f32.xlu0 %v2887_v55  ;;  %v15876_v21 = vpop.permute.xlu1 %2565  ;;  %v15882_v26 = vpop.permute.xlu0 %2571 }
 0x6ce   :  { %19827 = vst [vmem:[#allocation40_spill] sm:$0xff] %v15876_v21  ;;  %19830 = vst [vmem:[#allocation20_spill] sm:$0xff] %v15882_v26  ;;  %v19943_v26 = vld [vmem:[#allocation92_spill] sm:$0xff]  ;;  %v19980_v21 = vld [vmem:[#allocation106_spill] sm:$0xff] }
 0x6d1   :  { %2897 = vadd.xlane.f32.xlu1 %v2896_v31  ;;  %2894 = vadd.xlane.f32.xlu0 %v2893_v50  ;;  %v15884_v22 = vpop.permute.xlu1 %2569  ;;  %v15890_v35 = vpop.permute.xlu0 %2575 }
 0x6d2   :  { %19831 = vst [vmem:[#allocation47_spill] sm:$0xff] %v15884_v22  ;;  %19834 = vst [vmem:[#allocation54_spill] sm:$0xff] %v15890_v35  ;;  %v19937_v35 = vld [vmem:[#allocation90_spill] sm:$0xff]  ;;  %v19952_v22 = vld [vmem:[#allocation95_spill] sm:$0xff] }
 0x6d5   :  { %2903 = vadd.xlane.f32.xlu1 %v2902_v36  ;;  %2900 = vadd.xlane.f32.xlu0 %v2899_v6  ;;  %v15896_v55 = vpop.permute.xlu1 %2573  ;;  %v15902_v31 = vpop.permute.xlu0 %2579 }
 0x6d6   :  { %19836 = vst [vmem:[#allocation46_spill] sm:$0xff] %v15896_v55  ;;  %19839 = vst [vmem:[#allocation49_spill] sm:$0xff] %v15902_v31  ;;  %v19930_v31 = vld [vmem:[#allocation88_spill] sm:$0xff]  ;;  %v19945_v55 = vld [vmem:[#allocation93_spill] sm:$0xff] }
 0x6d9   :  { %2909 = vadd.xlane.f32.xlu1 %v2908_v11  ;;  %2906 = vadd.xlane.f32.xlu0 %v2905_v9  ;;  %v15904_v50 = vpop.permute.xlu1 %2577  ;;  %v15910_v36 = vpop.permute.xlu0 %2583  ;;  %v19847_v11 = vld [vmem:[#allocation56_spill] sm:$0xff] }
 0x6da   :  { %19840 = vst [vmem:[#allocation41_spill] sm:$0xff] %v15904_v50  ;;  %19843 = vst [vmem:[#allocation51_spill] sm:$0xff] %v15910_v36  ;;  %v2959_v24 = vsel %vm19848_vm13, %v19847_v11, 0.0  ;;  %v19938_v50 = vld [vmem:[#allocation91_spill] sm:$0xff] }
 0x6db   :  { %vm19867_vm13 = vmmov %vm19799_vm0 }
 0x6dd   :  { %2915 = vadd.xlane.f32.xlu1 %v2914_v57  ;;  %2912 = vadd.xlane.f32.xlu0 %v2911_v28  ;;  %v15916_v6 = vpop.permute.xlu1 %2581  ;;  %v15922_v9 = vpop.permute.xlu0 %2587  ;;  %v2968_v28 = vsel %vm19852_vm14, %v19851_v4, 0.0  ;;  %vm19869_vm14 = vmmov %vm19799_vm0  ;;  %v19871_v4 = vld [vmem:[#allocation63_spill] sm:$0xff] }
 0x6de   :  { %19846 = vst [vmem:[#allocation27_spill] sm:$0xff] %v15916_v6  ;;  %19849 = vst [vmem:[#allocation29_spill] sm:$0xff] %v15922_v9  ;;  %v19918_v9 = vld [vmem:[#allocation8_spill] sm:$0xff]  ;;  %v19932_v6 = vld [vmem:[#allocation89_spill] sm:$0xff] }
 0x6e1   :  { %2921 = vadd.xlane.f32.xlu1 %v2920_v44  ;;  %2918 = vadd.xlane.f32.xlu0 %v2917_v8  ;;  %v15924_v57 = vpop.permute.xlu1 %2585  ;;  %v2965_v44 = vsel %vm19854_vm15, %v19853_v29, 0.0  ;;  %v15930_v8 = vpop.permute.xlu0 %2591  ;;  %vm19872_vm15 = vmmov %vm19799_vm0  ;;  %v19873_v29 = vld [vmem:[#allocation64_spill] sm:$0xff] }
 0x6e2   :  { %19850 = vst [vmem:[#allocation56_spill] sm:$0xff] %v15924_v57  ;;  %19855 = vst [vmem:[#allocation55_spill] sm:$0xff] %v15930_v8  ;;  %v19916_v8 = vld [vmem:[#allocation4_spill] sm:$0xff]  ;;  %v19926_v57 = vld [vmem:[#allocation87_spill] sm:$0xff] }
 0x6e5   :  { %2927 = vadd.xlane.f32.xlu1 %v2926_v14  ;;  %2924 = vadd.xlane.f32.xlu0 %v2923_v40  ;;  %v2974_v14 = vsel %vm19857_vm9, %v19856_v17, 0.0  ;;  %v19858_v40 = vld [vmem:[#allocation58_spill] sm:$0xff]  ;;  %vm19874_vm9 = vmmov %vm19799_vm0 }
 0x6e9   :  { %2933 = vadd.xlane.f32.xlu1 %v2932_v0  ;;  %2930 = vadd.xlane.f32.xlu0 %v2929_v20  ;;  %v2971_v0 = vsel %vm19859_vm12, %v19858_v40, 0.0  ;;  %v15936_v20 = vpop.permute.xlu1 %2589  ;;  %vm19877_vm12 = vmmov %vm19799_vm0 }
 0x6ea   :  { %19860 = vst [vmem:[#allocation53_spill] sm:$0xff] %v15936_v20 }
 0x6ed   :  { %2939 = vadd.xlane.f32.xlu1 %v2938_v7  ;;  %2936 = vadd.xlane.f32.xlu0 %v2935_v13  ;;  %v19861_v7 = vld [vmem:[#allocation59_spill] sm:$0xff] }
 0x6ee   :  { %v2980_v13 = vsel %vm19862_vm11, %v19861_v7, 0.0  ;;  %vm19879_vm11 = vmmov %vm19799_vm0 }
 0x6f1   :  { %2945 = vadd.xlane.f32.xlu1 %v2944_v60  ;;  %2942 = vadd.xlane.f32.xlu0 %v2941_v5  ;;  %v19863_v60 = vld [vmem:[#allocation60_spill] sm:$0xff] }
 0x6f2   :  { %v2977_v5 = vsel %vm19799_vm0, %v19863_v60, 0.0 }
 0x6f5   :  { %2951 = vadd.xlane.f32.xlu1 %v2950_v43  ;;  %2948 = vadd.xlane.f32.xlu0 %v2947_v10  ;;  %v15942_v43 = vpop.permute.xlu0 %2595  ;;  %v15944_v10 = vpop.permute.xlu1 %2593 }
 0x6f6   :  { %19864 = vst [vmem:[#allocation57_spill] sm:$0xff] %v15942_v43  ;;  %19865 = vst [vmem:[#allocation58_spill] sm:$0xff] %v15944_v10  ;;  %v19914_v43 = vld [vmem:[#allocation83_spill] sm:$0xff] }
 0x6f7   :  { %v19917_v10 = vld [vmem:[#allocation7_spill] sm:$0xff] }
 0x6f9   :  { %2957 = vadd.xlane.f32.xlu1 %v2956_v32  ;;  %2954 = vadd.xlane.f32.xlu0 %v2953_v23  ;;  %v19866_v32 = vld [vmem:[#allocation61_spill] sm:$0xff]  ;;  %v15956_v17 = vpop.permute.xlu1 %2597 }
 0x6fa   :  { %v2986_v23 = vsel %vm19867_vm13, %v19866_v32, 0.0  ;;  %19875 = vst [vmem:[#allocation60_spill] sm:$0xff] %v15956_v17  ;;  %vm19884_vm13 = vmmov %vm19799_vm0 }
 0x6fd   :  { %2963 = vadd.xlane.f32.xlu1 %v2962_v53  ;;  %2960 = vadd.xlane.f32.xlu0 %v2959_v24  ;;  %v19868_v53 = vld [vmem:[#allocation62_spill] sm:$0xff]  ;;  %v15950_v24 = vpop.permute.xlu0 %2599  ;;  %v15964_v60 = vpop.permute.xlu1 %2601 }
 0x6fe   :  { %v2983_v11 = vsel %vm19869_vm14, %v19868_v53, 0.0  ;;  %19870 = vst [vmem:[#allocation59_spill] sm:$0xff] %v15950_v24  ;;  %19881 = vst [vmem:[#allocation62_spill] sm:$0xff] %v15964_v60  ;;  %v19910_v24 = vld [vmem:[#allocation5_spill] sm:$0xff] }
 0x6ff   :  { %vm19887_vm14 = vmmov %vm19799_vm0 }
 0x701   :  { %2969 = vadd.xlane.f32.xlu1 %v2968_v28  ;;  %2966 = vadd.xlane.f32.xlu0 %v2965_v44  ;;  %v2992_v28 = vsel %vm19872_vm15, %v19871_v4, 0.0  ;;  %v2989_v44 = vsel %vm19874_vm9, %v19873_v29, 0.0  ;;  %v19886_v4 = vld [vmem:[#allocation69_spill] sm:$0xff]  ;;  %v19888_v29 = vld [vmem:[#allocation70_spill] sm:$0xff]  ;;  %vm19889_vm15 = vmmov %vm19799_vm0 }
 0x702   :  { %vm19892_vm9 = vmmov %vm19799_vm0 }
 0x705   :  { %2975 = vadd.xlane.f32.xlu1 %v2974_v14  ;;  %2972 = vadd.xlane.f32.xlu0 %v2971_v0  ;;  %v19876_v14 = vld [vmem:[#allocation65_spill] sm:$0xff]  ;;  %v19878_v0 = vld [vmem:[#allocation66_spill] sm:$0xff] }
 0x706   :  { %v2998_v40 = vsel %vm19877_vm12, %v19876_v14, 0.0  ;;  %v2995_v7 = vsel %vm19879_vm11, %v19878_v0, 0.0  ;;  %v15976_v14 = vpop.permute.xlu1 %2605  ;;  %vm19894_vm12 = vmmov %vm19799_vm0 }
 0x707   :  { %19890 = vst [vmem:[#allocation64_spill] sm:$0xff] %v15976_v14  ;;  %vm19898_vm11 = vmmov %vm19799_vm0  ;;  %v19909_v14 = vld [vmem:[#allocation3_spill] sm:$0xff] }
 0x709   :  { %2981 = vadd.xlane.f32.xlu1 %v2980_v13  ;;  %2978 = vadd.xlane.f32.xlu0 %v2977_v5  ;;  %v15962_v13 = vpop.permute.xlu0 %2603  ;;  %v19882_v5 = vld [vmem:[#allocation67_spill] sm:$0xff] }
 0x70a   :  { %19880 = vst [vmem:[#allocation61_spill] sm:$0xff] %v15962_v13  ;;  %v3004_v32 = vsel %vm19799_vm0, %v19882_v5, 0.0  ;;  %v19902_v13 = vld [vmem:[#allocation77_spill] sm:$0xff] }
 0x70d   :  { %2987 = vadd.xlane.f32.xlu1 %v2986_v23  ;;  %2984 = vadd.xlane.f32.xlu0 %v2983_v11  ;;  %v19883_v23 = vld [vmem:[#allocation68_spill] sm:$0xff]  ;;  %v15970_v11 = vpop.permute.xlu0 %2607 }
 0x70e   :  { %v3001_v53 = vsel %vm19884_vm13, %v19883_v23, 0.0  ;;  %19885 = vst [vmem:[#allocation63_spill] sm:$0xff] %v15970_v11  ;;  %v15984_v23 = vpop.permute.xlu1 %2609  ;;  %v19900_v11 = vld [vmem:[#allocation78_spill] sm:$0xff]  ;;  %vm19901_vm13 = vmmov %vm19799_vm0 }
 0x70f   :  { %19896 = vst [vmem:[#allocation66_spill] sm:$0xff] %v15984_v23  ;;  %v19907_v23 = vld [vmem:[#allocation74_spill] sm:$0xff] }
 0x711   :  { %2993 = vadd.xlane.f32.xlu1 %v2992_v28  ;;  %2990 = vadd.xlane.f32.xlu0 %v2989_v44  ;;  %v3010_v28 = vsel %vm19887_vm14, %v19886_v4, 0.0  ;;  %v3007_v44 = vsel %vm19889_vm15, %v19888_v29, 0.0  ;;  %v19899_v29 = vld [vmem:[#allocation2_spill] sm:$0xff]  ;;  %vm19903_vm14 = vmmov %vm19799_vm0 }
 0x712   :  { %vm19906_vm15 = vmmov %vm19799_vm0 }
 0x715   :  { %2999 = vadd.xlane.f32.xlu1 %v2998_v40  ;;  %2996 = vadd.xlane.f32.xlu0 %v2995_v7  ;;  %v19891_v40 = vld [vmem:[#allocation71_spill] sm:$0xff]  ;;  %v19893_v7 = vld [vmem:[#allocation72_spill] sm:$0xff] }
 0x716   :  { %v3016_v0 = vsel %vm19892_vm9, %v19891_v40, 0.0  ;;  %v3013_v5 = vsel %vm19894_vm12, %v19893_v7, 0.0  ;;  %v3028_v40 = vsel %vm19901_vm13, %v19900_v11, 0.0  ;;  %v15994_v7 = vpop.permute.xlu1 %2613  ;;  %vm19908_vm9 = vmmov %vm19799_vm0 }
 0x717   :  { %19904 = vst [vmem:[#allocation67_spill] sm:$0xff] %v15994_v7  ;;  %vm19913_vm12 = vmmov %vm19799_vm0 }
 0x718   :  { %vm19921_vm13 = vmmov %vm19799_vm0 }
 0x719   :  { %3005 = vadd.xlane.f32.xlu1 %v3004_v32  ;;  %3002 = vadd.xlane.f32.xlu0 %v3001_v53  ;;  %v15982_v32 = vpop.permute.xlu0 %2611  ;;  %v19897_v53 = vld [vmem:[#allocation73_spill] sm:$0xff] }
 0x71a   :  { %19895 = vst [vmem:[#allocation65_spill] sm:$0xff] %v15982_v32  ;;  %v3022_v4 = vsel %vm19898_vm11, %v19897_v53, 0.0  ;;  %v19905_v32 = vld [vmem:[#allocation81_spill] sm:$0xff]  ;;  %vm19915_vm11 = vmmov %vm19799_vm0 }
 0x71b   :  { %v3034_v53 = vsel %vm19906_vm15, %v19905_v32, 0.0  ;;  %v3037_v17 = vsel %vm19915_vm11, %v19914_v43, 0.0  ;;  %v19920_v43 = vld [vmem:[#allocation85_spill] sm:$0xff]  ;;  %vm19927_vm15 = vmmov %vm19799_vm0  ;;  %vm19934_vm11 = vcmask 654912  }
 0x71d   :  { %3011 = vadd.xlane.f32.xlu1 %v3010_v28  ;;  %3008 = vadd.xlane.f32.xlu0 %v3007_v44  ;;  %v3019_v28 = vsel %vm19799_vm0, %v19899_v29, 0.0  ;;  %v3031_v29 = vsel %vm19908_vm9, %v19907_v23, 0.0  ;;  %vm19931_vm9 = vmmov %vm19799_vm0 }
 0x721   :  { %3017 = vadd.xlane.f32.xlu1 %v3016_v0  ;;  %3014 = vadd.xlane.f32.xlu0 %v3013_v5  ;;  %v3025_v0 = vsel %vm19903_vm14, %v19902_v13, 0.0  ;;  %v19911_v13 = vld [vmem:[#allocation6_spill] sm:$0xff]  ;;  %vm19925_vm14 = vmmov %vm19799_vm0 }
 0x725   :  { %3023 = vadd.xlane.f32.xlu1 %v3022_v4  ;;  %3020 = vadd.xlane.f32.xlu0 %v3019_v28 }
 0x726   :  { %v2817_v44 = vpop.xlane.xlu0 %2816 }
 0x727   :  { %v7255_v11 = vrot.slane %v2817_v44, %v19909_v14 }
 0x729   :  { %3029 = vadd.xlane.f32.xlu1 %v3028_v40  ;;  %3026 = vadd.xlane.f32.xlu0 %v3025_v0  ;;  %v19912_v0 = vld [vmem:[#allocation82_spill] sm:$0xff] }
 0x72a   :  { %v2823_v5 = vpop.xlane.xlu0 %2822  ;;  %v3040_v7 = vsel %vm19913_vm12, %v19912_v0, 0.0  ;;  %v19919_v0 = vld [vmem:[#allocation84_spill] sm:$0xff]  ;;  %vm19933_vm12 = vmmov %vm19799_vm0 }
 0x72b   :  { %v7264_v40 = vrot.slane %v2823_v5, %v19911_v13  ;;  %v3046_v36 = vsel %vm19799_vm0, %v19919_v0, 0.0  ;;  %v3049_v0 = vsel %vm19927_vm15, %v19926_v57, 0.0  ;;  %vm19944_vm15 = vmmov %vm19799_vm0 }
 0x72d   :  { %3035 = vadd.xlane.f32.xlu1 %v3034_v53  ;;  %3032 = vadd.xlane.f32.xlu0 %v3031_v29 }
 0x72e   :  { %v2820_v4 = vpop.xlane.xlu1 %2819  ;;  %v2826_v28 = vpop.xlane.xlu0 %2825 }
 0x72f   :  { %v7259_v60 = vrot.slane %v2820_v4, %v19910_v24  ;;  %v7269_v23 = vrot.slane %v2826_v28, %v19916_v8 }
 0x731   :  { %v7260_v32 = vsel %vm4826_vm1, %v7259_v60, %v7255_v11  ;;  %3041 = vadd.xlane.f32.xlu1 %v3040_v7  ;;  %3038 = vadd.xlane.f32.xlu0 %v3037_v17  ;;  %v3043_v60 = vsel %vm19921_vm13, %v19920_v43, 0.0  ;;  %vm19939_vm13 = vmmov %vm19799_vm0 }
 0x732   :  { %v7265_v53 = vsel %vm4833_vm2, %v7264_v40, %v7260_v32  ;;  %v2832_v29 = vpop.xlane.xlu1 %2831  ;;  %v2829_v44 = vpop.xlane.xlu0 %2828  ;;  %v19922_v40 = vld [vmem:[#allocation9_spill] sm:$0xff] }
 0x733   :  { %v7270_v4 = vsel %vm4840_vm3, %v7269_v23, %v7265_v53  ;;  %v7279_v5 = vrot.slane %v2832_v29, %v19917_v10  ;;  %v7274_v20 = vrot.slane %v2829_v44, %v19918_v9  ;;  %v19923_v23 = vld [vmem:[#allocation10_spill] sm:$0xff] }
 0x734   :  { %v19924_v29 = vld [vmem:[#allocation86_spill] sm:$0xff] }
 0x735   :  { %v7275_v28 = vsel %vm4847_vm4, %v7274_v20, %v7270_v4  ;;  %3047 = vadd.xlane.f32.xlu1 %v3046_v36  ;;  %3044 = vadd.xlane.f32.xlu0 %v3043_v60  ;;  %v3052_v44 = vsel %vm19925_vm14, %v19924_v29, 0.0  ;;  %v3055_v29 = vsel %vm19933_vm12, %v19932_v6, 0.0  ;;  %vm19940_vm14 = vcmask 786112  }
 0x736   :  { %v2838_v17 = vpop.xlane.xlu1 %2837  ;;  %v7280_v7 = vsel %vm4854_vm5, %v7279_v5, %v7275_v28  ;;  %v2835_v11 = vpop.xlane.xlu0 %2834  ;;  %v19928_v5 = vld [vmem:[#allocation11_spill] sm:$0xff]  ;;  %v19929_v28 = vld [vmem:[#allocation12_spill] sm:$0xff]  ;;  %vm19947_vm12 = vcmask 851712  }
 0x737   :  { %v7289_v32 = vrot.slane %v2838_v17, %v19922_v40  ;;  %v7284_v53 = vrot.slane %v2835_v11, %v19923_v23  ;;  %v3058_v11 = vsel %vm19931_vm9, %v19930_v31, 0.0  ;;  %v3061_v31 = vsel %vm19939_vm13, %v19938_v50, 0.0  ;;  %vm19946_vm9 = vmmov %vm19799_vm0 }
 0x738   :  { %vm19953_vm13 = vmmov %vm19799_vm0 }
 0x739   :  { %v7285_v43 = vsel %vm4861_vm6, %v7284_v53, %v7280_v7  ;;  %3053 = vadd.xlane.f32.xlu1 %v3052_v44  ;;  %3050 = vadd.xlane.f32.xlu0 %v3049_v0 }
 0x73a   :  { %v2844_v36 = vpop.xlane.xlu1 %2843  ;;  %v7290_v20 = vsel %vm4868_vm7, %v7289_v32, %v7285_v43  ;;  %v2841_v4 = vpop.xlane.xlu0 %2840  ;;  %v19935_v32 = vld [vmem:[#allocation13_spill] sm:$0xff]  ;;  %v19936_v43 = vld [vmem:[#allocation14_spill] sm:$0xff] }
 0x73b   :  { %v7299_v60 = vrot.slane %v2844_v36, %v19928_v5  ;;  %v7294_v17 = vrot.slane %v2841_v4, %v19929_v28  ;;  %v3064_v4 = vsel %vm19799_vm0, %v19937_v35, 0.0  ;;  %v3067_v35 = vsel %vm19946_vm9, %v19945_v55, 0.0  ;;  %vm19957_vm9 = vmmov %vm19799_vm0 }
 0x73d   :  { %v7295_v57 = vsel %vm4875_vm8, %v7294_v17, %v7290_v20  ;;  %3059 = vadd.xlane.f32.xlu1 %v3058_v11  ;;  %3056 = vadd.xlane.f32.xlu0 %v3055_v29 }
 0x73e   :  { %v2850_v7 = vpop.xlane.xlu1 %2849  ;;  %v7300_v53 = vsel %vm19934_vm11, %v7299_v60, %v7295_v57  ;;  %v2847_v44 = vpop.xlane.xlu0 %2846  ;;  %v19941_v60 = vld [vmem:[#allocation15_spill] sm:$0xff]  ;;  %v19942_v57 = vld [vmem:[#allocation16_spill] sm:$0xff]  ;;  %vm19948_vm11 = vcmask 917312  }
 0x73f   :  { %v7309_v0 = vrot.slane %v2850_v7, %v19935_v32  ;;  %v7304_v36 = vrot.slane %v2847_v44, %v19936_v43  ;;  %v3070_v44 = vsel %vm19944_vm15, %v19943_v26, 0.0  ;;  %v3073_v26 = vsel %vm19953_vm13, %v19952_v22, 0.0  ;;  %vm19964_vm13 = vmmov %vm19799_vm0 }
 0x740   :  { %vm19955_vm15 = vcmask 1048512  }
 0x741   :  { %v7305_v6 = vsel %vm4889_vm10, %v7304_v36, %v7300_v53  ;;  %3065 = vadd.xlane.f32.xlu1 %v3064_v4  ;;  %3062 = vadd.xlane.f32.xlu0 %v3061_v31 }
 0x742   :  { %v2856_v20 = vpop.xlane.xlu1 %2855  ;;  %v7310_v17 = vsel %vm19940_vm14, %v7309_v0, %v7305_v6  ;;  %v2853_v11 = vpop.xlane.xlu0 %2852  ;;  %v19949_v0 = vld [vmem:[#allocation17_spill] sm:$0xff]  ;;  %v19950_v6 = vld [vmem:[#allocation18_spill] sm:$0xff]  ;;  %vm19954_vm14 = vcmask 982912  }
 0x743   :  { %v7319_v29 = vrot.slane %v2856_v20, %v19941_v60  ;;  %v7314_v7 = vrot.slane %v2853_v11, %v19942_v57  ;;  %v3076_v11 = vsel %vm19799_vm0, %v19951_v30, 0.0  ;;  %v19958_v30 = vld [vmem:[#allocation97_spill] sm:$0xff] }
 0x745   :  { %v7315_v50 = vsel %vm19947_vm12, %v7314_v7, %v7310_v17  ;;  %3071 = vadd.xlane.f32.xlu1 %v3070_v44  ;;  %3068 = vadd.xlane.f32.xlu0 %v3067_v35  ;;  %vm19959_vm12 = vmmov %vm19799_vm0 }
 0x746   :  { %v2862_v53 = vpop.xlane.xlu1 %2861  ;;  %v7320_v36 = vsel %vm19948_vm11, %v7319_v29, %v7315_v50  ;;  %v2859_v4 = vpop.xlane.xlu0 %2858  ;;  %v19956_v50 = vld [vmem:[#allocation96_spill] sm:$0xff]  ;;  %vm19961_vm11 = vmmov %vm19799_vm0 }
 0x747   :  { %v7329_v31 = vrot.slane %v2862_v53, %v19949_v0  ;;  %v7324_v20 = vrot.slane %v2859_v4, %v19950_v6  ;;  %v3082_v53 = vsel %vm19957_vm9, %v19956_v50, 0.0  ;;  %v3079_v4 = vsel %vm19959_vm12, %v19958_v30, 0.0  ;;  %vm19970_vm9 = vmmov %vm19799_vm0 }
 0x748   :  { %vm19972_vm12 = vmmov %vm19799_vm0 }
 0x749   :  { %v7325_v55 = vsel %vm19954_vm14, %v7324_v20, %v7320_v36  ;;  %3077 = vadd.xlane.f32.xlu1 %v3076_v11  ;;  %3074 = vadd.xlane.f32.xlu0 %v3073_v26  ;;  %v19960_v26 = vld [vmem:[#allocation98_spill] sm:$0xff]  ;;  %vm19966_vm14 = vmmov %vm19799_vm0 }
 0x74a   :  { %v16059_v17 = vsel %vm19955_vm15, %v7329_v31, %v7325_v55  ;;  %v2868_v7 = vpop.xlane.xlu1 %2867  ;;  %v2865_v29 = vpop.xlane.xlu0 %2864  ;;  %v3088_v55 = vsel %vm19961_vm11, %v19960_v26, 0.0  ;;  %v3091_v26 = vsel %vm19966_vm14, %v19965_v16, 0.0  ;;  %vm19968_vm15 = vmmov %vm19799_vm0 }
 0x74b   :  { %v7338_v44 = vrot.slane %v2868_v7, %v19910_v24  ;;  %v7334_v35 = vrot.slane %v2865_v29, %v19909_v14  ;;  %v19962_v7 = vld [vmem:[#allocation99_spill] sm:$0xff]  ;;  %vm19974_vm11 = vmmov %vm19799_vm0 }
 0x74c   :  { %v3085_v29 = vsel %vm19799_vm0, %v19962_v7, 0.0  ;;  %vm19979_vm14 = vmmov %vm19799_vm0 }
 0x74d   :  { %v7339_v22 = vsel %vm4826_vm1, %v7338_v44, %v7334_v35  ;;  %3083 = vadd.xlane.f32.xlu1 %v3082_v53  ;;  %3080 = vadd.xlane.f32.xlu0 %v3079_v4 }
 0x74e   :  { %v2874_v36 = vpop.xlane.xlu1 %2873  ;;  %v2871_v20 = vpop.xlane.xlu0 %2870 }
 0x74f   :  { %v7348_v31 = vrot.slane %v2874_v36, %v19916_v8  ;;  %v7343_v11 = vrot.slane %v2871_v20, %v19911_v13  ;;  %v19963_v36 = vld [vmem:[#allocation100_spill] sm:$0xff] }
 0x750   :  { %v3094_v20 = vsel %vm19964_vm13, %v19963_v36, 0.0  ;;  %vm19977_vm13 = vmmov %vm19799_vm0 }
 0x751   :  { %v7344_v50 = vsel %vm4833_vm2, %v7343_v11, %v7339_v22  ;;  %3089 = vadd.xlane.f32.xlu1 %v3088_v55  ;;  %3086 = vadd.xlane.f32.xlu0 %v3085_v29 }
 0x752   :  { %v2880_v30 = vpop.xlane.xlu1 %2879  ;;  %v7349_v44 = vsel %vm4840_vm3, %v7348_v31, %v7344_v50  ;;  %v2877_v35 = vpop.xlane.xlu0 %2876  ;;  %v19967_v50 = vld [vmem:[#allocation102_spill] sm:$0xff] }
 0x753   :  { %v7358_v53 = vrot.slane %v2880_v30, %v19917_v10  ;;  %v7353_v4 = vrot.slane %v2877_v35, %v19918_v9  ;;  %v3100_v30 = vsel %vm19968_vm15, %v19967_v50, 0.0  ;;  %v19969_v35 = vld [vmem:[#allocation103_spill] sm:$0xff]  ;;  %vm19981_vm15 = vmmov %vm19799_vm0 }
 0x754   :  { %v3097_v36 = vsel %vm19970_vm9, %v19969_v35, 0.0  ;;  %vm19983_vm9 = vmmov %vm19799_vm0 }
 0x755   :  { %v7354_v7 = vsel %vm4847_vm4, %v7353_v4, %v7349_v44  ;;  %3095 = vadd.xlane.f32.xlu1 %v3094_v20  ;;  %3092 = vadd.xlane.f32.xlu0 %v3091_v26  ;;  %v19971_v26 = vld [vmem:[#allocation104_spill] sm:$0xff] }
 0x756   :  { %v2886_v22 = vpop.xlane.xlu1 %2885  ;;  %v7359_v11 = vsel %vm4854_vm5, %v7358_v53, %v7354_v7  ;;  %v2883_v55 = vpop.xlane.xlu0 %2882  ;;  %v3106_v7 = vsel %vm19972_vm12, %v19971_v26, 0.0  ;;  %vm19985_vm12 = vmmov %vm19799_vm0 }
 0x757   :  { %v7368_v31 = vrot.slane %v2886_v22, %v19922_v40  ;;  %v7363_v29 = vrot.slane %v2883_v55, %v19923_v23  ;;  %v19973_v22 = vld [vmem:[#allocation105_spill] sm:$0xff] }
 0x758   :  { %v3103_v55 = vsel %vm19974_vm11, %v19973_v22, 0.0  ;;  %vm19987_vm11 = vmmov %vm19799_vm0 }
 0x759   :  { %v7364_v16 = vsel %vm4861_vm6, %v7363_v29, %v7359_v11  ;;  %3101 = vadd.xlane.f32.xlu1 %v3100_v30  ;;  %3098 = vadd.xlane.f32.xlu0 %v3097_v36  ;;  %v19975_v36 = vld [vmem:[#allocation110_spill] sm:$0xff] }
 0x75a   :  { %v2892_v44 = vpop.xlane.xlu1 %2891  ;;  %v7369_v4 = vsel %vm4868_vm7, %v7368_v31, %v7364_v16  ;;  %v2889_v20 = vpop.xlane.xlu0 %2888  ;;  %v3112_v16 = vsel %vm19799_vm0, %v19975_v36, 0.0  ;;  %v3115_v36 = vsel %vm19981_vm15, %v19980_v21, 0.0  ;;  %vm19992_vm15 = vcmask 654912  }
 0x75b   :  { %v7373_v53 = vrot.slane %v2889_v20, %v19929_v28  ;;  %v7378_v30 = vrot.slane %v2892_v44, %v19909_v14  ;;  %v19976_v20 = vld [vmem:[#allocation107_spill] sm:$0xff] }
 0x75c   :  { %v3109_v26 = vsel %vm19977_vm13, %v19976_v20, 0.0  ;;  %vm19989_vm13 = vmmov %vm19799_vm0 }
 0x75d   :  { %v16098_v50 = vsel %vm4875_vm8, %v7373_v53, %v7369_v4  ;;  %3107 = vadd.xlane.f32.xlu1 %v3106_v7  ;;  %3104 = vadd.xlane.f32.xlu0 %v3103_v55 }
 0x75e   :  { %v2898_v11 = vpop.xlane.xlu1 %2897  ;;  %v2895_v29 = vpop.xlane.xlu0 %2894 }
 0x75f   :  { %v7387_v31 = vrot.slane %v2898_v11, %v19911_v13  ;;  %v7382_v35 = vrot.slane %v2895_v29, %v19910_v24  ;;  %v19978_v11 = vld [vmem:[#allocation109_spill] sm:$0xff] }
 0x760   :  { %v3118_v29 = vsel %vm19979_vm14, %v19978_v11, 0.0  ;;  %vm19991_vm14 = vmmov %vm19799_vm0 }
 0x761   :  { %v7383_v22 = vsel %vm4826_vm1, %v7382_v35, %v7378_v30  ;;  %3113 = vadd.xlane.f32.xlu1 %v3112_v16  ;;  %3110 = vadd.xlane.f32.xlu0 %v3109_v26 }
 0x762   :  { %v2904_v4 = vpop.xlane.xlu1 %2903  ;;  %v7388_v53 = vsel %vm4833_vm2, %v7387_v31, %v7383_v22  ;;  %v2901_v7 = vpop.xlane.xlu0 %2900  ;;  %v19982_v22 = vld [vmem:[#allocation111_spill] sm:$0xff] }
 0x763   :  { %v7397_v44 = vrot.slane %v2904_v4, %v19918_v9  ;;  %v7392_v55 = vrot.slane %v2901_v7, %v19916_v8  ;;  %v3124_v4 = vsel %vm19983_vm9, %v19982_v22, 0.0  ;;  %v19984_v7 = vld [vmem:[#allocation108_spill] sm:$0xff]  ;;  %vm19993_vm9 = vmmov %vm19799_vm0 }
 0x764   :  { %v3121_v11 = vsel %vm19985_vm12, %v19984_v7, 0.0  ;;  %vm19995_vm12 = vmmov %vm19799_vm0 }
 0x765   :  { %v7393_v20 = vsel %vm4840_vm3, %v7392_v55, %v7388_v53  ;;  %3119 = vadd.xlane.f32.xlu1 %v3118_v29  ;;  %3116 = vadd.xlane.f32.xlu0 %v3115_v36 }
 0x766   :  { %v2910_v30 = vpop.xlane.xlu1 %2909  ;;  %v7398_v35 = vsel %vm4847_vm4, %v7397_v44, %v7393_v20  ;;  %v2907_v16 = vpop.xlane.xlu0 %2906  ;;  %v19986_v20 = vld [vmem:[#allocation114_spill] sm:$0xff] }
 0x767   :  { %v7407_v31 = vrot.slane %v2910_v30, %v19923_v23  ;;  %v7402_v26 = vrot.slane %v2907_v16, %v19917_v10  ;;  %v3130_v30 = vsel %vm19987_vm11, %v19986_v20, 0.0  ;;  %v19988_v16 = vld [vmem:[#allocation113_spill] sm:$0xff]  ;;  %vm19996_vm11 = vcmask 786112  }
 0x768   :  { %v3127_v22 = vsel %vm19799_vm0, %v19988_v16, 0.0  ;;  %vm19997_vm0 = vcmask 851712  }
 0x769   :  { %v7403_v21 = vsel %vm4854_vm5, %v7402_v26, %v7398_v35  ;;  %3125 = vadd.xlane.f32.xlu1 %v3124_v4  ;;  %3122 = vadd.xlane.f32.xlu0 %v3121_v11 }
 0x76a   :  { %v2916_v53 = vpop.xlane.xlu1 %2915  ;;  %v7408_v55 = vsel %vm4861_vm6, %v7407_v31, %v7403_v21  ;;  %v2913_v29 = vpop.xlane.xlu0 %2912  ;;  %v3136_v21 = vsel %vm19989_vm13, %v15544_v25, 0.0  ;;  %vm19998_vm13 = vmmov %vm19993_vm9 }
 0x76b   :  { %v7417_v44 = vrot.slane %v2916_v53, %v19929_v28  ;;  %v7412_v36 = vrot.slane %v2913_v29, %v19922_v40  ;;  %v19990_v53 = vld [vmem:[#allocation112_spill] sm:$0xff] }
 0x76c   :  { %v3133_v29 = vsel %vm19991_vm14, %v19990_v53, 0.0  ;;  %v3148_v53 = vsel %vm19998_vm13, %v15580_v54, 0.0  ;;  %vm19999_vm14 = vmmov %vm19993_vm9  ;;  %vm20006_vm13 = vcmask 1041409  }
 0x76d   :  { %v7413_v7 = vsel %vm4868_vm7, %v7412_v36, %v7408_v55  ;;  %3131 = vadd.xlane.f32.xlu1 %v3130_v30  ;;  %3128 = vadd.xlane.f32.xlu0 %v3127_v22  ;;  %v3142_v22 = vsel %vm19993_vm9, %v15568_v47, 0.0  ;;  %v3145_v47 = vsel %vm19999_vm14, %v15546_v33, 0.0  ;;  %vm20001_vm9 = vcmask 982912  }
 0x76e   :  { %v2922_v35 = vpop.xlane.xlu1 %2921  ;;  %v7418_v26 = vsel %vm4875_vm8, %v7417_v44, %v7413_v7  ;;  %v2919_v4 = vpop.xlane.xlu0 %2918  ;;  %v19994_v7 = vld [vmem:[#allocation115_spill] sm:$0xff] }
 0x76f   :  { %v7427_v31 = vrot.slane %v2922_v35, %v19936_v43  ;;  %v7422_v11 = vrot.slane %v2919_v4, %v19928_v5  ;;  %v3139_v25 = vsel %vm19995_vm12, %v19994_v7, 0.0 }
 0x771   :  { %v7423_v20 = vsel %vm19992_vm15, %v7422_v11, %v7418_v26  ;;  %3137 = vadd.xlane.f32.xlu1 %v3136_v21  ;;  %3134 = vadd.xlane.f32.xlu0 %v3133_v29  ;;  %vm20000_vm15 = vcmask 917312  }
 0x772   :  { %v2928_v55 = vpop.xlane.xlu1 %2927  ;;  %v7428_v36 = vsel %vm4889_vm10, %v7427_v31, %v7423_v20  ;;  %v2925_v30 = vpop.xlane.xlu0 %2924 }
 0x773   :  { %v7437_v44 = vrot.slane %v2928_v55, %v19942_v57  ;;  %v7432_v16 = vrot.slane %v2925_v30, %v19935_v32 }
 0x775   :  { %v7433_v35 = vsel %vm19996_vm11, %v7432_v16, %v7428_v36  ;;  %3143 = vadd.xlane.f32.xlu1 %v3142_v22  ;;  %3140 = vadd.xlane.f32.xlu0 %v3139_v25  ;;  %v20003_v22 = vld [vmem:[#allocation116_spill] sm:$0xff]  ;;  %vm20004_vm11 = vmmov %vm19995_vm12 }
 0x776   :  { %v2934_v26 = vpop.xlane.xlu1 %2933  ;;  %v7438_v4 = vsel %vm19997_vm0, %v7437_v44, %v7433_v35  ;;  %v2931_v11 = vpop.xlane.xlu0 %2930  ;;  %v20002_v44 = vld [vmem:[#allocation117_spill] sm:$0xff]  ;;  %v3151_v7 = vsel %vm20004_vm11, %v20003_v22, 0.0  ;;  %vm20005_vm0 = vcmask 1048512   ;;  %vm20008_vm14 = vmmov %vm20004_vm11 }
 0x777   :  { %v7447_v31 = vrot.slane %v2934_v26, %v19950_v6  ;;  %v7442_v21 = vrot.slane %v2931_v11, %v19941_v60  ;;  %v3154_v16 = vsel %vm19995_vm12, %v20002_v44, 0.0  ;;  %v20011_v44 = vld [vmem:[#allocation120_spill] sm:$0xff]  ;;  %v20013_v22 = vld [vmem:[#allocation121_spill] sm:$0xff] }
 0x779   :  { %v7443_v29 = vsel %vm20000_vm15, %v7442_v21, %v7438_v4  ;;  %3149 = vadd.xlane.f32.xlu1 %v3148_v53  ;;  %3146 = vadd.xlane.f32.xlu0 %v3145_v47  ;;  %v20009_v53 = vld [vmem:[#allocation119_spill] sm:$0xff]  ;;  %vm20010_vm15 = vmmov %vm20004_vm11 }
 0x77a   :  { %v2940_v20 = vpop.xlane.xlu1 %2939  ;;  %v7448_v55 = vsel %vm20001_vm9, %v7447_v31, %v7443_v29  ;;  %v2937_v36 = vpop.xlane.xlu0 %2936  ;;  %v20007_v31 = vld [vmem:[#allocation118_spill] sm:$0xff]  ;;  %v3157_v47 = vsel %vm20010_vm15, %v20009_v53, 0.0  ;;  %vm20012_vm9 = vmmov %vm20004_vm11  ;;  %v20017_v53 = vld [vmem:[#allocation123_spill] sm:$0xff]  ;;  %vm20023_vm15 = vcmask 1041409  }
 0x77b   :  { %v7452_v30 = vrot.slane %v2937_v36, %v19949_v0  ;;  %v7457_v26 = vrot.slane %v2940_v20, %v19909_v14  ;;  %v3160_v21 = vsel %vm20008_vm14, %v20007_v31, 0.0  ;;  %vm20014_vm12 = vmmov %vm20012_vm9  ;;  %v20015_v31 = vld [vmem:[#allocation122_spill] sm:$0xff] }
 0x77c   :  { %vm20016_vm11 = vmmov %vm20012_vm9 }
 0x77d   :  { %v7453_v54 = vsel %vm20005_vm0, %v7452_v30, %v7448_v55  ;;  %3155 = vadd.xlane.f32.xlu1 %v3154_v16  ;;  %3152 = vadd.xlane.f32.xlu0 %v3151_v7  ;;  %v3166_v16 = vsel %vm20012_vm9, %v20011_v44, 0.0  ;;  %v3163_v7 = vsel %vm20014_vm12, %v20013_v22, 0.0  ;;  %vm20018_vm0 = vmmov %vm20012_vm9  ;;  %v20019_v44 = vld [vmem:[#allocation124_spill] sm:$0xff]  ;;  %v20021_v22 = vld [vmem:[#allocation125_spill] sm:$0xff] }
 0x77e   :  { %v16165_v33 = vsel %vm20006_vm13, %v7453_v54, %v16059_v17  ;;  %v2946_v25 = vpop.xlane.xlu1 %2945  ;;  %v2943_v35 = vpop.xlane.xlu0 %2942  ;;  %vm20020_vm13 = vmmov %vm20018_vm0 }
 0x77f   :  { %v7466_v4 = vrot.slane %v2946_v25, %v19911_v13  ;;  %v7461_v11 = vrot.slane %v2943_v35, %v19910_v24  ;;  %vm20022_vm14 = vmmov %vm20018_vm0 }
 0x780   :  { %vm20025_vm9 = vmmov %vm20018_vm0 }
 0x781   :  { %v7462_v29 = vsel %vm4826_vm1, %v7461_v11, %v7457_v26  ;;  %3161 = vadd.xlane.f32.xlu1 %v3160_v21  ;;  %3158 = vadd.xlane.f32.xlu0 %v3157_v47  ;;  %v3172_v21 = vsel %vm20016_vm11, %v20015_v31, 0.0  ;;  %v3169_v47 = vsel %vm20018_vm0, %v20017_v53, 0.0  ;;  %vm20027_vm12 = vmmov %vm20018_vm0 }
 0x782   :  { %v2952_v17 = vpop.xlane.xlu1 %2951  ;;  %v7467_v55 = vsel %vm4833_vm2, %v7466_v4, %v7462_v29  ;;  %v2949_v36 = vpop.xlane.xlu0 %2948  ;;  %vm20029_vm11 = vmmov %vm20018_vm0 }
 0x783   :  { %v7476_v20 = vrot.slane %v2952_v17, %v19918_v9  ;;  %v7471_v30 = vrot.slane %v2949_v36, %v19916_v8 }
 0x785   :  { %v7472_v54 = vsel %vm4840_vm3, %v7471_v30, %v7467_v55  ;;  %3167 = vadd.xlane.f32.xlu1 %v3166_v16  ;;  %3164 = vadd.xlane.f32.xlu0 %v3163_v7  ;;  %v3178_v16 = vsel %vm20020_vm13, %v20019_v44, 0.0  ;;  %v3175_v7 = vsel %vm20022_vm14, %v20021_v22, 0.0  ;;  %v20028_v44 = vld [vmem:[#allocation26_spill] sm:$0xff]  ;;  %vm20032_vm13 = vmmov %vm20018_vm0 }
 0x786   :  { %v2958_v25 = vpop.xlane.xlu1 %2957  ;;  %v7477_v35 = vsel %vm4847_vm4, %v7476_v20, %v7472_v54  ;;  %v2955_v26 = vpop.xlane.xlu0 %2954  ;;  %vm20034_vm14 = vmmov %vm20018_vm0 }
 0x787   :  { %v7486_v4 = vrot.slane %v2958_v25, %v19923_v23  ;;  %v7481_v11 = vrot.slane %v2955_v26, %v19917_v10 }
 0x789   :  { %v7482_v29 = vsel %vm4854_vm5, %v7481_v11, %v7477_v35  ;;  %3173 = vadd.xlane.f32.xlu1 %v3172_v21  ;;  %3170 = vadd.xlane.f32.xlu0 %v3169_v47  ;;  %v20024_v21 = vld [vmem:[#allocation126_spill] sm:$0xff]  ;;  %v20026_v47 = vld [vmem:[#allocation127_spill] sm:$0xff] }
 0x78a   :  { %v2964_v17 = vpop.xlane.xlu1 %2963  ;;  %v7487_v55 = vsel %vm4861_vm6, %v7486_v4, %v7482_v29  ;;  %v2961_v36 = vpop.xlane.xlu0 %2960  ;;  %v3184_v53 = vsel %vm20025_vm9, %v20024_v21, 0.0  ;;  %v3181_v29 = vsel %vm20027_vm12, %v20026_v47, 0.0  ;;  %vm20038_vm9 = vmmov %vm20018_vm0 }
 0x78b   :  { %v7496_v20 = vrot.slane %v2964_v17, %v19929_v28  ;;  %v7491_v30 = vrot.slane %v2961_v36, %v19922_v40  ;;  %vm20040_vm12 = vmmov %vm20018_vm0 }
 0x78d   :  { %v7492_v54 = vsel %vm4868_vm7, %v7491_v30, %v7487_v55  ;;  %3179 = vadd.xlane.f32.xlu1 %v3178_v16  ;;  %3176 = vadd.xlane.f32.xlu0 %v3175_v7  ;;  %v20030_v16 = vld [vmem:[#allocation128_spill] sm:$0xff] }
 0x78e   :  { %v7497_v25 = vsel %vm4875_vm8, %v7496_v20, %v7492_v54  ;;  %v2970_v35 = vpop.xlane.xlu1 %2969  ;;  %v2967_v26 = vpop.xlane.xlu0 %2966  ;;  %v3187_v22 = vsel %vm20018_vm0, %v20030_v16, 0.0  ;;  %v20037_v16 = vld [vmem:[#allocation32_spill] sm:$0xff] }
 0x78f   :  { %v7505_v4 = vrot.slane %v2970_v35, %v19910_v24  ;;  %v7501_v11 = vrot.slane %v2967_v26, %v19909_v14  ;;  %v16204_v31 = vsel %vm20023_vm15, %v7497_v25, %v16098_v50  ;;  %v3190_v50 = vsel %vm20029_vm11, %v20028_v44, 0.0  ;;  %v20035_v44 = vld [vmem:[#allocation22_spill] sm:$0xff]  ;;  %vm20036_vm15 = vmmov %vm20018_vm0 }
 0x790   :  { %vm20042_vm11 = vmmov %vm20018_vm0  ;;  %vm20043_vm0 = vcmask 654912  }
 0x791   :  { %v7506_v17 = vsel %vm4826_vm1, %v7505_v4, %v7501_v11  ;;  %3185 = vadd.xlane.f32.xlu1 %v3184_v53  ;;  %3182 = vadd.xlane.f32.xlu0 %v3181_v29  ;;  %v20031_v11 = vld [vmem:[#allocation21_spill] sm:$0xff]  ;;  %v20033_v53 = vld [vmem:[#allocation31_spill] sm:$0xff] }
 0x792   :  { %v2976_v55 = vpop.xlane.xlu1 %2975  ;;  %v2973_v36 = vpop.xlane.xlu0 %2972  ;;  %v3196_v21 = vsel %vm20032_vm13, %v20031_v11, 0.0  ;;  %v3193_v47 = vsel %vm20034_vm14, %v20033_v53, 0.0  ;;  %v20039_v11 = vld [vmem:[#allocation28_spill] sm:$0xff]  ;;  %v20041_v53 = vld [vmem:[#allocation34_spill] sm:$0xff]  ;;  %vm20045_vm13 = vmmov %vm20038_vm9 }
 0x793   :  { %v7515_v20 = vrot.slane %v2976_v55, %v19916_v8  ;;  %v7510_v30 = vrot.slane %v2973_v36, %v19911_v13  ;;  %vm20047_vm14 = vmmov %vm20038_vm9 }
 0x795   :  { %v7511_v7 = vsel %vm4833_vm2, %v7510_v30, %v7506_v17  ;;  %3191 = vadd.xlane.f32.xlu1 %v3190_v50  ;;  %3188 = vadd.xlane.f32.xlu0 %v3187_v22  ;;  %v3202_v50 = vsel %vm20036_vm15, %v20035_v44, 0.0  ;;  %v3199_v22 = vsel %vm20038_vm9, %v20037_v16, 0.0  ;;  %v20044_v44 = vld [vmem:[#allocation36_spill] sm:$0xff]  ;;  %v20046_v16 = vld [vmem:[#allocation25_spill] sm:$0xff]  ;;  %vm20048_vm15 = vcmask 786112  }
 0x796   :  { %v2982_v54 = vpop.xlane.xlu1 %2981  ;;  %v7516_v25 = vsel %vm4840_vm3, %v7515_v20, %v7511_v7  ;;  %v2979_v35 = vpop.xlane.xlu0 %2978 }
 0x797   :  { %v7525_v26 = vrot.slane %v2982_v54, %v19917_v10  ;;  %v7520_v4 = vrot.slane %v2979_v35, %v19918_v9 }
 0x799   :  { %v7521_v29 = vsel %vm4847_vm4, %v7520_v4, %v7516_v25  ;;  %3197 = vadd.xlane.f32.xlu1 %v3196_v21  ;;  %3194 = vadd.xlane.f32.xlu0 %v3193_v47  ;;  %v3208_v21 = vsel %vm20040_vm12, %v20039_v11, 0.0  ;;  %v3205_v47 = vsel %vm20042_vm11, %v20041_v53, 0.0  ;;  %v20049_v11 = vld [vmem:[#allocation24_spill] sm:$0xff]  ;;  %v20050_v53 = vld [vmem:[#allocation33_spill] sm:$0xff]  ;;  %vm20051_vm12 = vmmov %vm20038_vm9  ;;  %vm20052_vm11 = vcmask 851712  }
 0x79a   :  { %v2988_v17 = vpop.xlane.xlu1 %2987  ;;  %v7526_v55 = vsel %vm4854_vm5, %v7525_v26, %v7521_v29  ;;  %v2985_v36 = vpop.xlane.xlu0 %2984 }
 0x79b   :  { %v7535_v20 = vrot.slane %v2988_v17, %v19922_v40  ;;  %v7530_v30 = vrot.slane %v2985_v36, %v19923_v23 }
 0x79d   :  { %v7531_v7 = vsel %vm4861_vm6, %v7530_v30, %v7526_v55  ;;  %3203 = vadd.xlane.f32.xlu1 %v3202_v50  ;;  %3200 = vadd.xlane.f32.xlu0 %v3199_v22  ;;  %v3214_v50 = vsel %vm20045_vm13, %v20044_v44, 0.0  ;;  %v3211_v22 = vsel %vm20047_vm14, %v20046_v16, 0.0  ;;  %v20054_v44 = vld [vmem:[#allocation35_spill] sm:$0xff]  ;;  %vm20055_vm13 = vmmov %vm20038_vm9 }
 0x79e   :  { %v2994_v54 = vpop.xlane.xlu1 %2993  ;;  %v7536_v25 = vsel %vm4868_vm7, %v7535_v20, %v7531_v7  ;;  %v2991_v35 = vpop.xlane.xlu0 %2990  ;;  %v20056_v16 = vld [vmem:[#allocation23_spill] sm:$0xff]  ;;  %vm20057_vm14 = vmmov %vm20038_vm9 }
 0x79f   :  { %v7545_v26 = vrot.slane %v2994_v54, %v19928_v5  ;;  %v7540_v4 = vrot.slane %v2991_v35, %v19929_v28 }
 0x7a1   :  { %v7541_v29 = vsel %vm4875_vm8, %v7540_v4, %v7536_v25  ;;  %3209 = vadd.xlane.f32.xlu1 %v3208_v21  ;;  %3206 = vadd.xlane.f32.xlu0 %v3205_v47  ;;  %v3220_v21 = vsel %vm20038_vm9, %v20049_v11, 0.0  ;;  %v3217_v47 = vsel %vm20051_vm12, %v20050_v53, 0.0  ;;  %vm20059_vm9 = vcmask 1048512   ;;  %v20062_v53 = vld [vmem:[#allocation30_spill] sm:$0xff] }
 0x7a2   :  { %v3000_v17 = vpop.xlane.xlu1 %2999  ;;  %v7546_v55 = vsel %vm20043_vm0, %v7545_v26, %v7541_v29  ;;  %v2997_v36 = vpop.xlane.xlu0 %2996  ;;  %vm20053_vm0 = vcmask 917312   ;;  %vm20060_vm12 = vcmask 1042434  }
 0x7a3   :  { %v7555_v20 = vrot.slane %v3000_v17, %v19935_v32  ;;  %v7550_v30 = vrot.slane %v2997_v36, %v19936_v43 }
 0x7a5   :  { %v7551_v7 = vsel %vm4889_vm10, %v7550_v30, %v7546_v55  ;;  %3215 = vadd.xlane.f32.xlu1 %v3214_v50  ;;  %3212 = vadd.xlane.f32.xlu0 %v3211_v22  ;;  %v3226_v50 = vsel %vm20055_vm13, %v20054_v44, 0.0  ;;  %v3223_v22 = vsel %vm20057_vm14, %v20056_v16, 0.0  ;;  %v20066_v44 = vld [vmem:[#allocation42_spill] sm:$0xff] }
 0x7a6   :  { %v3006_v54 = vpop.xlane.xlu1 %3005  ;;  %v7556_v25 = vsel %vm20048_vm15, %v7555_v20, %v7551_v7  ;;  %v3003_v35 = vpop.xlane.xlu0 %3002  ;;  %vm20058_vm15 = vcmask 982912  }
 0x7a7   :  { %v7565_v26 = vrot.slane %v3006_v54, %v19941_v60  ;;  %v7560_v4 = vrot.slane %v3003_v35, %v19942_v57 }
 0x7a9   :  { %v7561_v29 = vsel %vm20052_vm11, %v7560_v4, %v7556_v25  ;;  %3221 = vadd.xlane.f32.xlu1 %v3220_v21  ;;  %3218 = vadd.xlane.f32.xlu0 %v3217_v47  ;;  %vm20061_vm11 = vmmov %vm20055_vm13 }
 0x7aa   :  { %v3012_v17 = vpop.xlane.xlu1 %3011  ;;  %v7566_v55 = vsel %vm20053_vm0, %v7565_v26, %v7561_v29  ;;  %v3009_v36 = vpop.xlane.xlu0 %3008  ;;  %v3232_v21 = vsel %vm20061_vm11, %v15732_v58, 0.0  ;;  %vm20063_vm0 = vmmov %vm20061_vm11 }
 0x7ab   :  { %v7575_v20 = vrot.slane %v3012_v17, %v19949_v0  ;;  %v7570_v30 = vrot.slane %v3009_v36, %v19950_v6  ;;  %v3229_v47 = vsel %vm20063_vm0, %v20062_v53, 0.0  ;;  %vm20065_vm13 = vmmov %vm20063_vm0 }
 0x7ac   :  { %vm20067_vm14 = vmmov %vm20063_vm0 }
 0x7ad   :  { %v7571_v7 = vsel %vm20058_vm15, %v7570_v30, %v7566_v55  ;;  %3227 = vadd.xlane.f32.xlu1 %v3226_v50  ;;  %3224 = vadd.xlane.f32.xlu0 %v3223_v22  ;;  %v20064_v30 = vld [vmem:[#allocation48_spill] sm:$0xff]  ;;  %v3235_v50 = vsel %vm20067_vm14, %v20066_v44, 0.0  ;;  %vm20068_vm15 = vmmov %vm20063_vm0  ;;  %vm20077_vm14 = vcmask 1042434  }
 0x7ae   :  { %v7576_v54 = vsel %vm20059_vm9, %v7575_v20, %v7571_v7  ;;  %v3018_v25 = vpop.xlane.xlu1 %3017  ;;  %v3015_v35 = vpop.xlane.xlu0 %3014  ;;  %vm20070_vm9 = vmmov %vm20063_vm0 }
 0x7af   :  { %v7584_v26 = vrot.slane %v3018_v25, %v19910_v24  ;;  %v7580_v4 = vrot.slane %v3015_v35, %v19909_v14  ;;  %v16271_v11 = vsel %vm20060_vm12, %v7576_v54, %v16165_v33  ;;  %v3238_v33 = vsel %vm20065_vm13, %v20064_v30, 0.0  ;;  %vm20072_vm12 = vmmov %vm20063_vm0  ;;  %v20073_v30 = vld [vmem:[#allocation38_spill] sm:$0xff] }
 0x7b0   :  { %v3244_v35 = vsel %vm20068_vm15, %v15740_v37, 0.0  ;;  %vm20074_vm11 = vmmov %vm20063_vm0 }
 0x7b1   :  { %v7585_v29 = vsel %vm4826_vm1, %v7584_v26, %v7580_v4  ;;  %3233 = vadd.xlane.f32.xlu1 %v3232_v21  ;;  %3230 = vadd.xlane.f32.xlu0 %v3229_v47  ;;  %v20069_v26 = vld [vmem:[#allocation43_spill] sm:$0xff]  ;;  %v3247_v37 = vsel %vm20074_vm11, %v20073_v30, 0.0  ;;  %vm20076_vm13 = vmmov %vm20063_vm0 }
 0x7b2   :  { %v3024_v17 = vpop.xlane.xlu1 %3023  ;;  %v3021_v55 = vpop.xlane.xlu0 %3020  ;;  %v3241_v4 = vsel %vm20070_vm9, %v20069_v26, 0.0  ;;  %vm20078_vm15 = vmmov %vm20063_vm0 }
 0x7b3   :  { %v7594_v36 = vrot.slane %v3024_v17, %v19916_v8  ;;  %v7589_v20 = vrot.slane %v3021_v55, %v19911_v13  ;;  %vm20080_vm9 = vmmov %vm20063_vm0 }
 0x7b4   :  { %vm20083_vm11 = vmmov %vm20063_vm0 }
 0x7b5   :  { %v7590_v58 = vsel %vm4833_vm2, %v7589_v20, %v7585_v29  ;;  %3239 = vadd.xlane.f32.xlu1 %v3238_v33  ;;  %3236 = vadd.xlane.f32.xlu0 %v3235_v50 }
 0x7b6   :  { %v3030_v16 = vpop.xlane.xlu1 %3029  ;;  %v7595_v22 = vsel %vm4840_vm3, %v7594_v36, %v7590_v58  ;;  %v3027_v7 = vpop.xlane.xlu0 %3026  ;;  %v20071_v36 = vld [vmem:[#allocation19_spill] sm:$0xff] }
 0x7b7   :  { %v7604_v54 = vrot.slane %v3030_v16, %v19917_v10  ;;  %v7599_v25 = vrot.slane %v3027_v7, %v19918_v9  ;;  %v3250_v20 = vsel %vm20072_vm12, %v20071_v36, 0.0  ;;  %v20075_v7 = vld [vmem:[#allocation50_spill] sm:$0xff]  ;;  %vm20081_vm12 = vmmov %vm20063_vm0 }
 0x7b9   :  { %v7600_v21 = vsel %vm4847_vm4, %v7599_v25, %v7595_v22  ;;  %3245 = vadd.xlane.f32.xlu1 %v3244_v35  ;;  %3242 = vadd.xlane.f32.xlu0 %v3241_v4  ;;  %v3256_v22 = vsel %vm20063_vm0, %v15748_v38, 0.0  ;;  %v3262_v38 = vsel %vm20078_vm15, %v15754_v48, 0.0  ;;  %vm20087_vm15 = vmmov %vm20063_vm0 }
 0x7ba   :  { %v3036_v53 = vpop.xlane.xlu1 %3035  ;;  %v7605_v47 = vsel %vm4854_vm5, %v7604_v54, %v7600_v21  ;;  %v3033_v29 = vpop.xlane.xlu0 %3032  ;;  %v3253_v54 = vsel %vm20076_vm13, %v20075_v7, 0.0  ;;  %vm20084_vm13 = vmmov %vm20063_vm0 }
 0x7bb   :  { %v7614_v17 = vrot.slane %v3036_v53, %v19922_v40  ;;  %v7609_v55 = vrot.slane %v3033_v29, %v19923_v23  ;;  %v20079_v29 = vld [vmem:[#allocation39_spill] sm:$0xff] }
 0x7bd   :  { %v7610_v33 = vsel %vm4861_vm6, %v7609_v55, %v7605_v47  ;;  %3251 = vadd.xlane.f32.xlu1 %v3250_v20  ;;  %3248 = vadd.xlane.f32.xlu0 %v3247_v37 }
 0x7be   :  { %v3042_v44 = vpop.xlane.xlu1 %3041  ;;  %v7615_v50 = vsel %vm4868_vm7, %v7614_v17, %v7610_v33  ;;  %v3039_v58 = vpop.xlane.xlu0 %3038  ;;  %v3259_v17 = vsel %vm20080_vm9, %v20079_v29, 0.0  ;;  %v3268_v33 = vsel %vm20081_vm12, %v15760_v19, 0.0  ;;  %v3271_v19 = vsel %vm20084_vm13, %v15756_v2, 0.0  ;;  %vm20088_vm9 = vmmov %vm20063_vm0 }
 0x7bf   :  { %v7619_v16 = vrot.slane %v3039_v58, %v19929_v28  ;;  %v7624_v21 = vrot.slane %v3042_v44, %v19909_v14  ;;  %v20082_v44 = vld [vmem:[#allocation44_spill] sm:$0xff]  ;;  %vm20089_vm12 = vmmov %vm20063_vm0 }
 0x7c0   :  { %v3265_v48 = vsel %vm20083_vm11, %v20082_v44, 0.0  ;;  %vm20090_vm11 = vcmask 654912   ;;  %vm20091_vm13 = vmmov %vm20063_vm0 }
 0x7c1   :  { %v7620_v25 = vsel %vm4875_vm8, %v7619_v16, %v7615_v50  ;;  %3257 = vadd.xlane.f32.xlu1 %v3256_v22  ;;  %3254 = vadd.xlane.f32.xlu0 %v3253_v54 }
 0x7c2   :  { %v16310_v35 = vsel %vm20077_vm14, %v7620_v25, %v16204_v31  ;;  %v3048_v26 = vpop.xlane.xlu1 %3047  ;;  %v3045_v4 = vpop.xlane.xlu0 %3044  ;;  %v3274_v25 = vsel %vm20063_vm0, %v15768_v49, 0.0  ;;  %vm20085_vm14 = vmmov %vm20063_vm0 }
 0x7c3   :  { %v7633_v53 = vrot.slane %v3048_v26, %v19911_v13  ;;  %v7628_v47 = vrot.slane %v3045_v4, %v19910_v24  ;;  %v3280_v29 = vsel %vm20085_vm14, %v15776_v1, 0.0  ;;  %v3283_v1 = vsel %vm20089_vm12, %v15770_v52, 0.0  ;;  %vm20095_vm12 = vmmov %vm20063_vm0 }
 0x7c4   :  { %vm20092_vm14 = vcmask 786112  }
 0x7c5   :  { %v7629_v55 = vsel %vm4826_vm1, %v7628_v47, %v7624_v21  ;;  %3263 = vadd.xlane.f32.xlu1 %v3262_v38  ;;  %3260 = vadd.xlane.f32.xlu0 %v3259_v17  ;;  %v20086_v17 = vld [vmem:[#allocation45_spill] sm:$0xff] }
 0x7c6   :  { %v3054_v31 = vpop.xlane.xlu1 %3053  ;;  %v7634_v36 = vsel %vm4833_vm2, %v7633_v53, %v7629_v55  ;;  %v3051_v20 = vpop.xlane.xlu0 %3050  ;;  %v3277_v49 = vsel %vm20087_vm15, %v20086_v17, 0.0  ;;  %vm20093_vm15 = vcmask 851712  }
 0x7c7   :  { %v7643_v30 = vrot.slane %v3054_v31, %v19918_v9  ;;  %v7638_v37 = vrot.slane %v3051_v20, %v19916_v8 }
 0x7c9   :  { %v7639_v50 = vsel %vm4840_vm3, %v7638_v37, %v7634_v36  ;;  %3269 = vadd.xlane.f32.xlu1 %v3268_v33  ;;  %3266 = vadd.xlane.f32.xlu0 %v3265_v48  ;;  %v3286_v37 = vsel %vm20088_vm9, %v15784_v63, 0.0  ;;  %v3289_v63 = vsel %vm20091_vm13, %v15782_v18, 0.0  ;;  %vm20094_vm9 = vmmov %vm20063_vm0 }
 0x7ca   :  { %v3060_v58 = vpop.xlane.xlu1 %3059  ;;  %v7644_v16 = vsel %vm4847_vm4, %v7643_v30, %v7639_v50  ;;  %v3057_v22 = vpop.xlane.xlu0 %3056  ;;  %vm20098_vm13 = vmmov %vm20094_vm9 }
 0x7cb   :  { %v7653_v7 = vrot.slane %v3060_v58, %v19923_v23  ;;  %v7648_v54 = vrot.slane %v3057_v22, %v19917_v10  ;;  %v3292_v22 = vsel %vm20063_vm0, %v15796_v45, 0.0  ;;  %v3295_v45 = vsel %vm20095_vm12, %v15790_v15, 0.0 }
 0x7cc   :  { %vm20097_vm0 = vcmask 982912  }
 0x7cd   :  { %v7649_v26 = vsel %vm4854_vm5, %v7648_v54, %v7644_v16  ;;  %3275 = vadd.xlane.f32.xlu1 %v3274_v25  ;;  %3272 = vadd.xlane.f32.xlu0 %v3271_v19 }
 0x7ce   :  { %v3066_v4 = vpop.xlane.xlu1 %3065  ;;  %v7654_v21 = vsel %vm4861_vm6, %v7653_v7, %v7649_v26  ;;  %v3063_v53 = vpop.xlane.xlu0 %3062 }
 0x7cf   :  { %v7663_v47 = vrot.slane %v3066_v4, %v19929_v28  ;;  %v7658_v38 = vrot.slane %v3063_v53, %v19922_v40  ;;  %v3298_v4 = vsel %vm20094_vm9, %v15804_v3, 0.0 }
 0x7d1   :  { %v7659_v2 = vsel %vm4868_vm7, %v7658_v38, %v7654_v21  ;;  %3281 = vadd.xlane.f32.xlu1 %v3280_v29  ;;  %3278 = vadd.xlane.f32.xlu0 %v3277_v49  ;;  %v3304_v29 = vsel %vm20098_vm13, %v15816_v39, 0.0  ;;  %v3310_v39 = vsel %vm20095_vm12, %v15824_v56, 0.0 }
 0x7d2   :  { %v3072_v55 = vpop.xlane.xlu1 %3071  ;;  %v7664_v31 = vsel %vm4875_vm8, %v7663_v47, %v7659_v2  ;;  %v3069_v36 = vpop.xlane.xlu0 %3068 }
 0x7d3   :  { %v7673_v20 = vrot.slane %v3072_v55, %v19936_v43  ;;  %v7668_v30 = vrot.slane %v3069_v36, %v19928_v5 }
 0x7d5   :  { %v7669_v33 = vsel %vm20090_vm11, %v7668_v30, %v7664_v31  ;;  %3287 = vadd.xlane.f32.xlu1 %v3286_v37  ;;  %3284 = vadd.xlane.f32.xlu0 %v3283_v1  ;;  %vm20096_vm11 = vcmask 917312  }
 0x7d6   :  { %v3078_v44 = vpop.xlane.xlu1 %3077  ;;  %v7674_v48 = vsel %vm4889_vm10, %v7673_v20, %v7669_v33  ;;  %v3075_v50 = vpop.xlane.xlu0 %3074 }
 0x7d7   :  { %v7683_v58 = vrot.slane %v3078_v44, %v19942_v57  ;;  %v7678_v16 = vrot.slane %v3075_v50, %v19935_v32 }
 0x7d9   :  { %v7679_v52 = vsel %vm20092_vm14, %v7678_v16, %v7674_v48  ;;  %3293 = vadd.xlane.f32.xlu1 %v3292_v22  ;;  %3290 = vadd.xlane.f32.xlu0 %v3289_v63  ;;  %vm20099_vm14 = vmmov %vm20094_vm9  ;;  %vm20101_vm9 = vcmask 1043459  }
 0x7da   :  { %v3084_v7 = vpop.xlane.xlu1 %3083  ;;  %v7684_v54 = vsel %vm20093_vm15, %v7683_v58, %v7679_v52  ;;  %v3081_v25 = vpop.xlane.xlu0 %3080  ;;  %v3301_v17 = vsel %vm20099_vm14, %v15802_v27, 0.0  ;;  %vm20100_vm15 = vcmask 1048512  }
 0x7db   :  { %v7693_v19 = vrot.slane %v3084_v7, %v19950_v6  ;;  %v7688_v26 = vrot.slane %v3081_v25, %v19941_v60 }
 0x7dd   :  { %v7689_v18 = vsel %vm20096_vm11, %v7688_v26, %v7684_v54  ;;  %3299 = vadd.xlane.f32.xlu1 %v3298_v4  ;;  %3296 = vadd.xlane.f32.xlu0 %v3295_v45  ;;  %vm20102_vm11 = vmmov %vm20095_vm12 }
 0x7de   :  { %v3090_v21 = vpop.xlane.xlu1 %3089  ;;  %v7694_v53 = vsel %vm20097_vm0, %v7693_v19, %v7689_v18  ;;  %v3087_v47 = vpop.xlane.xlu0 %3086  ;;  %v3307_v27 = vsel %vm20102_vm11, %v15810_v61, 0.0  ;;  %vm20103_vm0 = vmmov %vm20102_vm11  ;;  %vm20109_vm11 = vcmask 1043459  }
 0x7df   :  { %v7698_v38 = vrot.slane %v3087_v47, %v19949_v0  ;;  %v7703_v55 = vrot.slane %v3090_v21, %v19909_v14  ;;  %v3316_v44 = vsel %vm20103_vm0, %v15836_v41, 0.0  ;;  %vm20104_vm13 = vmmov %vm20103_vm0 }
 0x7e0   :  { %v3313_v56 = vsel %vm20104_vm13, %v15822_v12, 0.0  ;;  %vm20105_vm14 = vmmov %vm20103_vm0 }
 0x7e1   :  { %v7699_v3 = vsel %vm20100_vm15, %v7698_v38, %v7694_v53  ;;  %3305 = vadd.xlane.f32.xlu1 %v3304_v29  ;;  %3302 = vadd.xlane.f32.xlu0 %v3301_v17  ;;  %v3322_v63 = vsel %vm20105_vm14, %v15844_v62, 0.0  ;;  %vm20106_vm15 = vmmov %vm20103_vm0 }
 0x7e2   :  { %v16377_v15 = vsel %vm20101_vm9, %v7699_v3, %v16271_v11  ;;  %v3096_v49 = vpop.xlane.xlu1 %3095  ;;  %v3093_v2 = vpop.xlane.xlu0 %3092  ;;  %v3319_v41 = vsel %vm20106_vm15, %v15830_v59, 0.0  ;;  %vm20107_vm9 = vmmov %vm20103_vm0 }
 0x7e3   :  { %v7712_v31 = vrot.slane %v3096_v49, %v19911_v13  ;;  %v7707_v36 = vrot.slane %v3093_v2, %v19910_v24  ;;  %v3328_v26 = vsel %vm20107_vm9, %v15856_v42, 0.0  ;;  %vm20108_vm12 = vmmov %vm20103_vm0  ;;  %v3334_v42 = vsel %vm20103_vm0, %v15864_v34, 0.0  ;;  %v20112_v2 = vld [vmem:[#allocation40_spill] sm:$0xff] }
 0x7e4   :  { %v3325_v62 = vsel %vm20108_vm12, %v15842_v46, 0.0  ;;  %vm20111_vm13 = vmmov %vm20103_vm0 }
 0x7e5   :  { %v7708_v20 = vsel %vm4826_vm1, %v7707_v36, %v7703_v55  ;;  %3311 = vadd.xlane.f32.xlu1 %v3310_v39  ;;  %3308 = vadd.xlane.f32.xlu0 %v3307_v27  ;;  %v3331_v46 = vsel %vm20111_vm13, %v15850_v51, 0.0  ;;  %vm20113_vm14 = vmmov %vm20103_vm0  ;;  %v20114_v55 = vld [vmem:[#allocation52_spill] sm:$0xff] }
 0x7e6   :  { %v3102_v11 = vpop.xlane.xlu1 %3101  ;;  %v7713_v30 = vsel %vm4833_vm2, %v7712_v31, %v7708_v20  ;;  %v3099_v37 = vpop.xlane.xlu0 %3098  ;;  %vm20115_vm15 = vmmov %vm20103_vm0 }
 0x7e7   :  { %v7722_v1 = vrot.slane %v3102_v11, %v19918_v9  ;;  %v7717_v33 = vrot.slane %v3099_v37, %v19916_v8  ;;  %v3337_v31 = vsel %vm20115_vm15, %v20114_v55, 0.0  ;;  %v20116_v11 = vld [vmem:[#allocation47_spill] sm:$0xff]  ;;  %vm20117_vm9 = vmmov %vm20103_vm0  ;;  %v20118_v37 = vld [vmem:[#allocation37_spill] sm:$0xff]  ;;  %vm20127_vm15 = vcmask 654912  }
 0x7e8   :  { %vm20119_vm12 = vmmov %vm20103_vm0 }
 0x7e9   :  { %v7718_v61 = vsel %vm4840_vm3, %v7717_v33, %v7713_v30  ;;  %3317 = vadd.xlane.f32.xlu1 %v3316_v44  ;;  %3314 = vadd.xlane.f32.xlu0 %v3313_v56  ;;  %v3346_v30 = vsel %vm20117_vm9, %v20116_v11, 0.0  ;;  %vm20124_vm13 = vmmov %vm20103_vm0 }
 0x7ea   :  { %v3108_v48 = vpop.xlane.xlu1 %3107  ;;  %v7723_v50 = vsel %vm4847_vm4, %v7722_v1, %v7718_v61  ;;  %v3105_v58 = vpop.xlane.xlu0 %3104  ;;  %v3343_v1 = vsel %vm20119_vm12, %v20118_v37, 0.0  ;;  %vm20129_vm9 = vmmov %vm20103_vm0 }
 0x7eb   :  { %v7732_v16 = vrot.slane %v3108_v48, %v19923_v23  ;;  %v7727_v22 = vrot.slane %v3105_v58, %v19917_v10  ;;  %v20120_v58 = vld [vmem:[#allocation46_spill] sm:$0xff]  ;;  %vm20131_vm12 = vmmov %vm20103_vm0 }
 0x7ed   :  { %v7728_v12 = vsel %vm4854_vm5, %v7727_v22, %v7723_v50  ;;  %3323 = vadd.xlane.f32.xlu1 %v3322_v63  ;;  %3320 = vadd.xlane.f32.xlu0 %v3319_v41  ;;  %v20122_v22 = vld [vmem:[#allocation20_spill] sm:$0xff] }
 0x7ee   :  { %v3114_v52 = vpop.xlane.xlu1 %3113  ;;  %v7733_v7 = vsel %vm4861_vm6, %v7732_v16, %v7728_v12  ;;  %v3111_v54 = vpop.xlane.xlu0 %3110  ;;  %v3349_v63 = vsel %vm20103_vm0, %v20122_v22, 0.0 }
 0x7ef   :  { %v7742_v25 = vrot.slane %v3114_v52, %v19929_v28  ;;  %v7737_v19 = vrot.slane %v3111_v54, %v19922_v40 }
 0x7f1   :  { %v7738_v59 = vsel %vm4868_vm7, %v7737_v19, %v7733_v7  ;;  %3329 = vadd.xlane.f32.xlu1 %v3328_v26  ;;  %3326 = vadd.xlane.f32.xlu0 %v3325_v62  ;;  %v20123_v19 = vld [vmem:[#allocation41_spill] sm:$0xff]  ;;  %v20125_v62 = vld [vmem:[#allocation54_spill] sm:$0xff] }
 0x7f2   :  { %v7743_v4 = vsel %vm4875_vm8, %v7742_v25, %v7738_v59  ;;  %v3120_v45 = vpop.xlane.xlu1 %3119  ;;  %v3117_v18 = vpop.xlane.xlu0 %3116  ;;  %v3358_v26 = vsel %vm20124_vm13, %v20123_v19, 0.0  ;;  %vm20135_vm13 = vmmov %vm20103_vm0 }
 0x7f3   :  { %v7751_v21 = vrot.slane %v3120_v45, %v19910_v24  ;;  %v7747_v53 = vrot.slane %v3117_v18, %v19909_v14  ;;  %v16416_v47 = vsel %vm20109_vm11, %v7743_v4, %v16310_v35  ;;  %v3340_v35 = vsel %vm20113_vm14, %v20112_v2, 0.0  ;;  %vm20121_vm11 = vmmov %vm20103_vm0 }
 0x7f4   :  { %20110 = vst [vmem:[#allocation68_spill] sm:$0xff] %v16416_v47  ;;  %v3352_v16 = vsel %vm20121_vm11, %v20120_v58, 0.0  ;;  %vm20126_vm14 = vmmov %vm20103_vm0  ;;  %vm20132_vm11 = vcmask 786112  }
 0x7f5   :  { %v7752_v38 = vsel %vm4826_vm1, %v7751_v21, %v7747_v53  ;;  %3335 = vadd.xlane.f32.xlu1 %v3334_v42  ;;  %3332 = vadd.xlane.f32.xlu0 %v3331_v46  ;;  %v3355_v59 = vsel %vm20126_vm14, %v20125_v62, 0.0  ;;  %v20128_v46 = vld [vmem:[#allocation27_spill] sm:$0xff]  ;;  %vm20136_vm14 = vcmask 851712  }
 0x7f6   :  { %v3126_v29 = vpop.xlane.xlu1 %3125  ;;  %v3123_v17 = vpop.xlane.xlu0 %3122 }
 0x7f7   :  { %v7756_v3 = vrot.slane %v3123_v17, %v19911_v13  ;;  %v7761_v49 = vrot.slane %v3126_v29, %v19916_v8  ;;  %v20130_v29 = vld [vmem:[#allocation49_spill] sm:$0xff] }
 0x7f8   :  { %v3361_v17 = vsel %vm20131_vm12, %v20130_v29, 0.0  ;;  %vm20141_vm12 = vmmov %vm20103_vm0  ;;  %v20159_v29 = vld [vmem:[#allocation61_spill] sm:$0xff] }
 0x7f9   :  { %v7757_v34 = vsel %vm4833_vm2, %v7756_v3, %v7752_v38  ;;  %3341 = vadd.xlane.f32.xlu1 %v3340_v35  ;;  %3338 = vadd.xlane.f32.xlu0 %v3337_v31  ;;  %v3364_v38 = vsel %vm20129_vm9, %v20128_v46, 0.0  ;;  %vm20139_vm9 = vmmov %vm20103_vm0  ;;  %v20157_v46 = vld [vmem:[#allocation64_spill] sm:$0xff] }
 0x7fa   :  { %v3132_v51 = vpop.xlane.xlu1 %3131  ;;  %v3129_v36 = vpop.xlane.xlu0 %3128  ;;  %v7762_v20 = vsel %vm4840_vm3, %v7761_v49, %v7757_v34  ;;  %v20133_v34 = vld [vmem:[#allocation56_spill] sm:$0xff] }
 0x7fb   :  { %v7766_v39 = vrot.slane %v3129_v36, %v19918_v9  ;;  %v7771_v27 = vrot.slane %v3132_v51, %v19917_v10  ;;  %v3370_v51 = vsel %vm20103_vm0, %v20133_v34, 0.0  ;;  %v20134_v36 = vld [vmem:[#allocation51_spill] sm:$0xff]  ;;  %vm20143_vm0 = vcmask 1048512  }
 0x7fd   :  { %v7767_v33 = vsel %vm4847_vm4, %v7766_v39, %v7762_v20  ;;  %3347 = vadd.xlane.f32.xlu1 %v3346_v30  ;;  %3344 = vadd.xlane.f32.xlu0 %v3343_v1  ;;  %v3367_v39 = vsel %vm20135_vm13, %v20134_v36, 0.0  ;;  %vm20144_vm13 = vcmask 1044484   ;;  %v20165_v36 = vld [vmem:[#allocation67_spill] sm:$0xff] }
 0x7fe   :  { %v3138_v44 = vpop.xlane.xlu1 %3137  ;;  %v3135_v56 = vpop.xlane.xlu0 %3134  ;;  %v7772_v50 = vsel %vm4854_vm5, %v7771_v27, %v7767_v33  ;;  %v20138_v33 = vld [vmem:[#allocation53_spill] sm:$0xff] }
 0x7ff   :  { %v7776_v61 = vrot.slane %v3135_v56, %v19923_v23  ;;  %v7781_v48 = vrot.slane %v3138_v44, %v19922_v40  ;;  %v3376_v44 = vsel %vm20139_vm9, %v20138_v33, 0.0  ;;  %v20140_v56 = vld [vmem:[#allocation29_spill] sm:$0xff] }
 0x801   :  { %v7777_v41 = vsel %vm4861_vm6, %v7776_v61, %v7772_v50  ;;  %3353 = vadd.xlane.f32.xlu1 %v3352_v16  ;;  %3350 = vadd.xlane.f32.xlu0 %v3349_v63  ;;  %v3373_v61 = vsel %vm20141_vm12, %v20140_v56, 0.0  ;;  %v20146_v63 = vld [vmem:[#allocation58_spill] sm:$0xff]  ;;  %vm20152_vm12 = vmmov %vm20139_vm9 }
 0x802   :  { %v3144_v12 = vpop.xlane.xlu1 %3143  ;;  %v3141_v52 = vpop.xlane.xlu0 %3140  ;;  %v7782_v25 = vsel %vm4868_vm7, %v7781_v48, %v7777_v41 }
 0x803   :  { %v7786_v7 = vrot.slane %v3141_v52, %v19929_v28  ;;  %v7791_v54 = vrot.slane %v3144_v12, %v19928_v5  ;;  %v20148_v12 = vld [vmem:[#allocation55_spill] sm:$0xff] }
 0x805   :  { %v7787_v4 = vsel %vm4875_vm8, %v7786_v7, %v7782_v25  ;;  %3359 = vadd.xlane.f32.xlu1 %v3358_v26  ;;  %3356 = vadd.xlane.f32.xlu0 %v3355_v59  ;;  %v20150_v25 = vld [vmem:[#allocation60_spill] sm:$0xff]  ;;  %v20151_v26 = vld [vmem:[#allocation57_spill] sm:$0xff] }
 0x806   :  { %v3150_v45 = vpop.xlane.xlu1 %3149  ;;  %v3147_v18 = vpop.xlane.xlu0 %3146  ;;  %v7792_v42 = vsel %vm20127_vm15, %v7791_v54, %v7787_v4  ;;  %vm20137_vm15 = vcmask 917312   ;;  %v3388_v19 = vsel %vm20139_vm9, %v20150_v25, 0.0  ;;  %v3385_v62 = vsel %vm20152_vm12, %v20151_v26, 0.0  ;;  %v20153_v4 = vld [vmem:[#allocation62_spill] sm:$0xff] }
 0x807   :  { %v7796_v21 = vrot.slane %v3147_v18, %v19936_v43  ;;  %v7801_v53 = vrot.slane %v3150_v45, %v19935_v32  ;;  %v20155_v18 = vld [vmem:[#allocation59_spill] sm:$0xff]  ;;  %v10288_v25 = vld [vmem:[%s19005_s0] sm:$0xff] }
 0x809   :  { %v7797_v3 = vsel %vm4889_vm10, %v7796_v21, %v7792_v42  ;;  %3365 = vadd.xlane.f32.xlu1 %v3364_v38  ;;  %3362 = vadd.xlane.f32.xlu0 %v3361_v17 }
 0x80a   :  { %v3156_v49 = vpop.xlane.xlu1 %3155  ;;  %v3153_v2 = vpop.xlane.xlu0 %3152  ;;  %v7802_v31 = vsel %vm20132_vm11, %v7801_v53, %v7797_v3  ;;  %vm20142_vm11 = vcmask 982912  }
 0x80b   :  { %v7806_v35 = vrot.slane %v3153_v2, %v19942_v57  ;;  %v7811_v55 = vrot.slane %v3156_v49, %v19941_v60  ;;  %v20161_v2 = vld [vmem:[#allocation66_spill] sm:$0xff] }
 0x80d   :  { %v7807_v27 = vsel %vm20136_vm14, %v7806_v35, %v7802_v31  ;;  %3371 = vadd.xlane.f32.xlu1 %v3370_v51  ;;  %3368 = vadd.xlane.f32.xlu0 %v3367_v39  ;;  %vm20147_vm14 = vmmov %vm20139_vm9 }
 0x80e   :  { %v3162_v20 = vpop.xlane.xlu1 %3161  ;;  %v3159_v11 = vpop.xlane.xlu0 %3158  ;;  %v7812_v1 = vsel %vm20137_vm15, %v7811_v55, %v7807_v27  ;;  %v3382_v41 = vsel %vm20147_vm14, %v20146_v63, 0.0  ;;  %vm20149_vm15 = vmmov %vm20139_vm9  ;;  %v20163_v55 = vld [vmem:[#allocation63_spill] sm:$0xff]  ;;  %v20167_v27 = vld [vmem:[#allocation65_spill] sm:$0xff] }
 0x80f   :  { %v7821_v30 = vrot.slane %v3162_v20, %v19949_v0  ;;  %v7816_v37 = vrot.slane %v3159_v11, %v19950_v6  ;;  %v3379_v52 = vsel %vm20149_vm15, %v20148_v12, 0.0 }
 0x811   :  { %v7817_v48 = vsel %vm20142_vm11, %v7816_v37, %v7812_v1  ;;  %3377 = vadd.xlane.f32.xlu1 %v3376_v44  ;;  %3374 = vadd.xlane.f32.xlu0 %v3373_v61  ;;  %vm20154_vm11 = vmmov %vm20139_vm9 }
 0x812   :  { %v7822_v50 = vsel %vm20143_vm0, %v7821_v30, %v7817_v48  ;;  %v16479_v58 = vpop.xlane.xlu1 %3167  ;;  %v16481_v16 = vpop.xlane.xlu0 %3164  ;;  %v3394_v45 = vsel %vm20154_vm11, %v20153_v4, 0.0  ;;  %vm20156_vm0 = vmmov %vm20139_vm9  ;;  %v10286_v48 = vld [vmem:[%s19005_s0 + $0x8] sm:$0xff]  ;;  %v10290_v4 = vld [vmem:[%s19005_s0 + $0x20] sm:$0xff] }
 0x813   :  { %v16485_v22 = vsel %vm20144_vm13, %v7822_v50, %v16377_v15  ;;  %v3391_v21 = vsel %vm20156_vm0, %v20155_v18, 0.0  ;;  %vm20158_vm13 = vmmov %vm20156_vm0 }
 0x814   :  { %20145 = vst [vmem:[#allocation69_spill] sm:$0xff] %v16485_v22  ;;  %v3400_v38 = vsel %vm20158_vm13, %v20157_v46, 0.0  ;;  %vm20160_vm14 = vmmov %vm20156_vm0  ;;  %v10292_v46 = vld [vmem:[%s19005_s0 + $0x30] sm:$0xff]  ;;  %vm20189_vm13 = vcmask 786112  }
 0x815   :  { %3383 = vadd.xlane.f32.xlu1 %v3382_v41  ;;  %3380 = vadd.xlane.f32.xlu0 %v3379_v52  ;;  %v3397_v17 = vsel %vm20160_vm14, %v20159_v29, 0.0  ;;  %vm20162_vm15 = vmmov %vm20156_vm0  ;;  %v10287_v41 = vld [vmem:[%s19005_s0 + $0x10] sm:$0xff]  ;;  %vm20190_vm14 = vcmask 851712  }
 0x816   :  { %v16491_v7 = vpop.xlane.xlu1 %3173  ;;  %v16493_v54 = vpop.xlane.xlu0 %3170  ;;  %v3406_v35 = vsel %vm20162_vm15, %v20161_v2, 0.0  ;;  %vm20164_vm9 = vmmov %vm20156_vm0  ;;  %v10294_v2 = vld [vmem:[%s19005_s0 + $0x40] sm:$0xff]  ;;  %vm20196_vm15 = vcmask 917312  }
 0x817   :  { %v3403_v31 = vsel %vm20164_vm9, %v20163_v55, 0.0  ;;  %vm20166_vm12 = vmmov %vm20156_vm0 }
 0x818   :  { %v3412_v39 = vsel %vm20166_vm12, %v20165_v36, 0.0  ;;  %vm20168_vm11 = vmmov %vm20156_vm0  ;;  %v10296_v36 = vld [vmem:[%s19005_s0 + $0x50] sm:$0xff]  ;;  %vm20188_vm0 = vcmask 654912  }
 0x819   :  { %3389 = vadd.xlane.f32.xlu1 %v3388_v19  ;;  %3386 = vadd.xlane.f32.xlu0 %v3385_v62  ;;  %v3409_v20 = vsel %vm20168_vm11, %v20167_v27, 0.0  ;;  %v10289_v19 = vld [vmem:[%s19005_s0 + $0x18] sm:$0xff]  ;;  %vm20201_vm9 = vmmov %vm20188_vm0 }
 0x81a   :  { %v16499_v15 = vpop.xlane.xlu1 %3179  ;;  %v16501_v59 = vpop.xlane.xlu0 %3176  ;;  %vm20207_vm12 = vmmov %vm20188_vm0 }
 0x81b   :  { %vm20209_vm11 = vmmov %vm20189_vm13 }
 0x81d   :  { %3395 = vadd.xlane.f32.xlu1 %v3394_v45  ;;  %3392 = vadd.xlane.f32.xlu0 %v3391_v21  ;;  %v10291_v45 = vld [vmem:[%s19005_s0 + $0x28] sm:$0xff] }
 0x81e   :  { %v16507_v53 = vpop.xlane.xlu1 %3185  ;;  %v16509_v42 = vpop.xlane.xlu0 %3182 }
 0x821   :  { %3401 = vadd.xlane.f32.xlu1 %v3400_v38  ;;  %3398 = vadd.xlane.f32.xlu0 %v3397_v17  ;;  %v10293_v38 = vld [vmem:[%s19005_s0 + $0x38] sm:$0xff] }
 0x822   :  { %v16515_v3 = vpop.xlane.xlu1 %3191  ;;  %v16517_v49 = vpop.xlane.xlu0 %3188 }
 0x825   :  { %3407 = vadd.xlane.f32.xlu1 %v3406_v35  ;;  %3404 = vadd.xlane.f32.xlu0 %v3403_v31  ;;  %v10295_v35 = vld [vmem:[%s19005_s0 + $0x48] sm:$0xff] }
 0x826   :  { %v16523_v34 = vpop.xlane.xlu1 %3197  ;;  %v16525_v51 = vpop.xlane.xlu0 %3194 }
 0x829   :  { %3413 = vadd.xlane.f32.xlu1 %v3412_v39  ;;  %3410 = vadd.xlane.f32.xlu0 %v3409_v20  ;;  %v10297_v39 = vld [vmem:[%s19005_s0 + $0x58] sm:$0xff] }
 0x82a   :  { %v16531_v11 = vpop.xlane.xlu1 %3203  ;;  %v16533_v30 = vpop.xlane.xlu0 %3200 }
 0x82e   :  { %v16535_v37 = vpop.xlane.xlu1 %3209  ;;  %v16537_v1 = vpop.xlane.xlu0 %3206 }
 0x832   :  { %v16539_v33 = vpop.xlane.xlu1 %3215  ;;  %v16541_v44 = vpop.xlane.xlu0 %3212 }
 0x836   :  { %v16543_v56 = vpop.xlane.xlu1 %3221  ;;  %v16545_v61 = vpop.xlane.xlu0 %3218 }
 0x83a   :  { %3417 = vrot.lane.b32.xlu1 %v10286_v48, %s10488_s9  ;;  %v16551_v50 = vpop.xlane.xlu1 %3227  ;;  %v16553_v63 = vpop.xlane.xlu0 %3224  ;;  %v10298_v48 = vld [vmem:[%s19005_s0 + $0x60] sm:$0xff] }
 0x83e   :  { %3419 = vrot.lane.b32.xlu1 %v10287_v41, %s10488_s9  ;;  %v16559_v12 = vpop.xlane.xlu1 %3233  ;;  %v16561_v52 = vpop.xlane.xlu0 %3230  ;;  %v10299_v41 = vld [vmem:[%s19005_s0 + $0x68] sm:$0xff] }
 0x83f   :  { %20169 = vst [vmem:[#allocation70_spill] sm:$0xff] %v16559_v12  ;;  %3415 = vrot.lane.b32.xlu0 %v10288_v25, %s10488_s9 }
 0x842   :  { %3421 = vrot.lane.b32.xlu1 %v10289_v19, %s10488_s9  ;;  %v16571_v26 = vpop.xlane.xlu1 %3239  ;;  %v16573_v62 = vpop.xlane.xlu0 %3236 }
 0x843   :  { %20170 = vst [vmem:[#allocation71_spill] sm:$0xff] %v16573_v62  ;;  %3423 = vrot.lane.b32.xlu0 %v10290_v4, %s10488_s9  ;;  %v10300_v4 = vld [vmem:[%s19005_s0 + $0x70] sm:$0xff] }
 0x846   :  { %3425 = vrot.lane.b32.xlu1 %v10291_v45, %s10488_s9  ;;  %v16583_v18 = vpop.xlane.xlu1 %3245  ;;  %v16585_v21 = vpop.xlane.xlu0 %3242  ;;  %v10301_v45 = vld [vmem:[%s19005_s0 + $0x78] sm:$0xff] }
 0x847   :  { %3427 = vrot.lane.b32.xlu0 %v10292_v46, %s10488_s9 }
 0x84a   :  { %3429 = vrot.lane.b32.xlu1 %v10293_v38, %s10488_s9  ;;  %v16595_v29 = vpop.xlane.xlu1 %3251  ;;  %v16597_v17 = vpop.xlane.xlu0 %3248 }
 0x84b   :  { %3431 = vrot.lane.b32.xlu0 %v10294_v2, %s10488_s9  ;;  %v10302_v2 = vld [vmem:[%s19005_s0 + $0x80] sm:$0xff] }
 0x84e   :  { %3433 = vrot.lane.b32.xlu1 %v10295_v35, %s10488_s9  ;;  %v16607_v55 = vpop.xlane.xlu1 %3257  ;;  %v16609_v31 = vpop.xlane.xlu0 %3254  ;;  %v10303_v35 = vld [vmem:[%s19005_s0 + $0x88] sm:$0xff] }
 0x84f   :  { %3435 = vrot.lane.b32.xlu0 %v10296_v36, %s10488_s9 }
 0x852   :  { %3437 = vrot.lane.b32.xlu1 %v10297_v39, %s10488_s9  ;;  %v16619_v27 = vpop.xlane.xlu1 %3263  ;;  %v16621_v20 = vpop.xlane.xlu0 %3260 }
 0x853   :  { %20171 = vst [vmem:[#allocation72_spill] sm:$0xff] %v16619_v27  ;;  %20172 = vst [vmem:[#allocation73_spill] sm:$0xff] %v16621_v20  ;;  %3439 = vrot.lane.b32.xlu0 %v10298_v48, %s10488_s9  ;;  %v10304_v48 = vld [vmem:[%s19005_s0 + $0x90] sm:$0xff] }
 0x856   :  { %3441 = vrot.lane.b32.xlu1 %v10299_v41, %s10488_s9  ;;  %v16631_v25 = vpop.xlane.xlu1 %3269  ;;  %v16633_v19 = vpop.xlane.xlu0 %3266  ;;  %v10305_v41 = vld [vmem:[%s19005_s0 + $0x98] sm:$0xff] }
 0x857   :  { %3443 = vrot.lane.b32.xlu0 %v10300_v4, %s10488_s9 }
 0x85a   :  { %3445 = vrot.lane.b32.xlu1 %v10301_v45, %s10488_s9  ;;  %v16643_v46 = vpop.xlane.xlu1 %3275  ;;  %v16645_v38 = vpop.xlane.xlu0 %3272 }
 0x85b   :  { %3447 = vrot.lane.b32.xlu0 %v10302_v2, %s10488_s9  ;;  %v10306_v2 = vld [vmem:[%s19005_s0 + $0xa0] sm:$0xff] }
 0x85e   :  { %3449 = vrot.lane.b32.xlu1 %v10303_v35, %s10488_s9  ;;  %v16655_v36 = vpop.xlane.xlu1 %3281  ;;  %v16657_v39 = vpop.xlane.xlu0 %3278  ;;  %v10307_v35 = vld [vmem:[%s19005_s0 + $0xa8] sm:$0xff] }
 0x85f   :  { %3451 = vrot.lane.b32.xlu0 %v10304_v48, %s10488_s9 }
 0x862   :  { %3453 = vrot.lane.b32.xlu1 %v10305_v41, %s10488_s9  ;;  %v16667_v4 = vpop.xlane.xlu1 %3287  ;;  %v16669_v45 = vpop.xlane.xlu0 %3284  ;;  %v10308_v41 = vld [vmem:[%s19005_s0 + $0xb0] sm:$0xff] }
 0x863   :  { %3455 = vrot.lane.b32.xlu0 %v10306_v2, %s10488_s9  ;;  %v10309_v2 = vld [vmem:[%s19005_s0 + $0xb8] sm:$0xff] }
 0x866   :  { %3457 = vrot.lane.b32.xlu1 %v10307_v35, %s10488_s9  ;;  %v16679_v48 = vpop.xlane.xlu1 %3293  ;;  %v16681_v22 = vpop.xlane.xlu0 %3290  ;;  %v10310_v35 = vld [vmem:[%s19005_s0 + $0xc0] sm:$0xff] }
 0x867   :  { %3459 = vrot.lane.b32.xlu0 %v10308_v41, %s10488_s9  ;;  %v10311_v41 = vld [vmem:[%s19005_s0 + $0xc8] sm:$0xff] }
 0x86a   :  { %3461 = vrot.lane.b32.xlu1 %v10309_v2, %s10488_s9  ;;  %v16691_v47 = vpop.xlane.xlu1 %3299  ;;  %v16693_v20 = vpop.xlane.xlu0 %3296  ;;  %v10312_v2 = vld [vmem:[%s19005_s0 + $0xd0] sm:$0xff] }
 0x86b   :  { %20173 = vst [vmem:[#allocation2_spill] sm:$0xff] %v16691_v47  ;;  %20174 = vst [vmem:[#allocation78_spill] sm:$0xff] %v16693_v20  ;;  %3463 = vrot.lane.b32.xlu0 %v10310_v35, %s10488_s9  ;;  %v10313_v35 = vld [vmem:[%s19005_s0 + $0xd8] sm:$0xff] }
 0x86e   :  { %3465 = vrot.lane.b32.xlu1 %v10311_v41, %s10488_s9  ;;  %v16703_v27 = vpop.xlane.xlu1 %3305  ;;  %v16705_v62 = vpop.xlane.xlu0 %3302  ;;  %v10314_v41 = vld [vmem:[%s19005_s0 + $0xe0] sm:$0xff] }
 0x86f   :  { %20175 = vst [vmem:[#allocation77_spill] sm:$0xff] %v16703_v27  ;;  %20176 = vst [vmem:[#allocation81_spill] sm:$0xff] %v16705_v62  ;;  %3467 = vrot.lane.b32.xlu0 %v10312_v2, %s10488_s9  ;;  %v10315_v2 = vld [vmem:[%s19005_s0 + $0xe8] sm:$0xff] }
 0x872   :  { %3469 = vrot.lane.b32.xlu1 %v10313_v35, %s10488_s9  ;;  %v16715_v47 = vpop.xlane.xlu1 %3311  ;;  %v16717_v0 = vpop.xlane.xlu0 %3308  ;;  %v10316_v35 = vld [vmem:[%s19005_s0 + $0xf0] sm:$0xff] }
 0x873   :  { %20177 = vst [vmem:[#allocation74_spill] sm:$0xff] %v16715_v47  ;;  %20178 = vst [vmem:[#allocation82_spill] sm:$0xff] %v16717_v0  ;;  %3471 = vrot.lane.b32.xlu0 %v10314_v41, %s10488_s9  ;;  %v10317_v41 = vld [vmem:[%s19005_s0 + $0xf8] sm:$0xff] }
 0x876   :  { %3473 = vrot.lane.b32.xlu1 %v10315_v2, %s10488_s9  ;;  %v16727_v27 = vpop.xlane.xlu1 %3317  ;;  %v16729_v62 = vpop.xlane.xlu0 %3314  ;;  %v10318_v2 = vld [vmem:[%s19005_s0 + $0x100] sm:$0xff] }
 0x877   :  { %20179 = vst [vmem:[#allocation83_spill] sm:$0xff] %v16727_v27  ;;  %20180 = vst [vmem:[#allocation84_spill] sm:$0xff] %v16729_v62  ;;  %3475 = vrot.lane.b32.xlu0 %v10316_v35, %s10488_s9  ;;  %v10319_v35 = vld [vmem:[%s19005_s0 + $0x108] sm:$0xff] }
 0x87a   :  { %3477 = vrot.lane.b32.xlu1 %v10317_v41, %s10488_s9  ;;  %v16739_v47 = vpop.xlane.xlu1 %3323  ;;  %v16741_v0 = vpop.xlane.xlu0 %3320  ;;  %v10320_v41 = vld [vmem:[%s19005_s0 + $0x110] sm:$0xff] }
 0x87b   :  { %20181 = vst [vmem:[#allocation85_spill] sm:$0xff] %v16739_v47  ;;  %20182 = vst [vmem:[#allocation86_spill] sm:$0xff] %v16741_v0  ;;  %3479 = vrot.lane.b32.xlu0 %v10318_v2, %s10488_s9  ;;  %v10321_v2 = vld [vmem:[%s19005_s0 + $0x118] sm:$0xff] }
 0x87e   :  { %3481 = vrot.lane.b32.xlu1 %v10319_v35, %s10488_s9  ;;  %v16751_v12 = vpop.xlane.xlu1 %3329  ;;  %v16753_v6 = vpop.xlane.xlu0 %3326  ;;  %v10322_v35 = vld [vmem:[%s19005_s0 + $0x120] sm:$0xff] }
 0x87f   :  { %20183 = vst [vmem:[#allocation87_spill] sm:$0xff] %v16751_v12  ;;  %20184 = vst [vmem:[#allocation88_spill] sm:$0xff] %v16753_v6  ;;  %3483 = vrot.lane.b32.xlu0 %v10320_v41, %s10488_s9  ;;  %v7874_v12 = vrot.slane %v16525_v51, %v19910_v24  ;;  %v10323_v41 = vld [vmem:[%s19005_s0 + $0x128] sm:$0xff]  ;;  %v7879_v51 = vrot.slane %v16523_v34, %v19911_v13  ;;  %v7826_v34 = vrot.slane %v16481_v16, %v19909_v14 }
 0x880   :  { %v10327_v16 = vld [vmem:[%s19005_s0 + $0x148] sm:$0xff] }
 0x882   :  { %3485 = vrot.lane.b32.xlu1 %v10321_v2, %s10488_s9  ;;  %v16763_v47 = vpop.xlane.xlu1 %3335  ;;  %v16765_v0 = vpop.xlane.xlu0 %3332 }
 0x883   :  { %20185 = vst [vmem:[#allocation89_spill] sm:$0xff] %v16763_v47  ;;  %20186 = vst [vmem:[#allocation90_spill] sm:$0xff] %v16765_v0  ;;  %3487 = vrot.lane.b32.xlu0 %v10322_v35, %s10488_s9  ;;  %v10324_v0 = vld [vmem:[%s19005_s0 + $0x130] sm:$0xff]  ;;  %v7870_v35 = vrot.slane %v16515_v3, %v19909_v14  ;;  %v7830_v3 = vrot.slane %v16479_v58, %v19910_v24  ;;  %v7894_v58 = vrot.slane %v16537_v1, %v19917_v10 }
 0x885   :  { %v7875_v6 = vsel %vm4826_vm1, %v7874_v12, %v7870_v35  ;;  %v7835_v12 = vrot.slane %v16493_v54, %v19911_v13  ;;  %v7831_v54 = vsel %vm4826_vm1, %v7830_v3, %v7826_v34  ;;  %v10329_v34 = vld [vmem:[%s19005_s0 + $0x158] sm:$0xff] }
 0x886   :  { %3489 = vrot.lane.b32.xlu1 %v10323_v41, %s10488_s9  ;;  %v16777_v2 = vpop.xlane.xlu1 %3341  ;;  %v16779_v47 = vpop.xlane.xlu0 %3338  ;;  %v7884_v41 = vrot.slane %v16533_v30, %v19916_v8  ;;  %v10326_v30 = vld [vmem:[%s19005_s0 + $0x140] sm:$0xff]  ;;  %v7880_v35 = vsel %vm4833_vm2, %v7879_v51, %v7875_v6  ;;  %v7840_v6 = vrot.slane %v16491_v7, %v19916_v8  ;;  %v7845_v51 = vrot.slane %v16501_v59, %v19918_v9 }
 0x887   :  { %20187 = vst [vmem:[#allocation91_spill] sm:$0xff] %v16779_v47  ;;  %3491 = vrot.lane.b32.xlu0 %v10324_v0, %s10488_s9  ;;  %v10325_v47 = vld [vmem:[%s19005_s0 + $0x138] sm:$0xff]  ;;  %v7836_v1 = vsel %vm4833_vm2, %v7835_v12, %v7831_v54  ;;  %v7904_v7 = vrot.slane %v16541_v44, %v19922_v40  ;;  %v7850_v44 = vrot.slane %v16499_v15, %v19917_v10  ;;  %v10331_v15 = vld [vmem:[%s19005_s0 + $0x168] sm:$0xff] }
 0x888   :  { %v7885_v27 = vsel %vm4840_vm3, %v7884_v41, %v7880_v35  ;;  %v7899_v41 = vrot.slane %v16535_v37, %v19923_v23  ;;  %v7841_v59 = vsel %vm4840_vm3, %v7840_v6, %v7836_v1  ;;  %v10330_v37 = vld [vmem:[%s19005_s0 + $0x160] sm:$0xff]  ;;  %v7997_v54 = vrot.slane %v16631_v25, %v19910_v24 }
 0x889   :  { %v7993_v6 = vrot.slane %v16633_v19, %v19909_v14  ;;  %v8002_v1 = vrot.slane %v16645_v38, %v19911_v13  ;;  %v7914_v25 = vrot.slane %v16545_v61, %v19928_v5  ;;  %v10332_v19 = vld [vmem:[%s19005_s0 + $0x170] sm:$0xff]  ;;  %v8007_v61 = vrot.slane %v16643_v46, %v19916_v8 }
 0x88a   :  { %3493 = vrot.lane.b32.xlu1 %v10325_v47, %s10488_s9  ;;  %v16796_v62 = vpop.xlane.xlu1 %3347  ;;  %v16798_v0 = vpop.xlane.xlu0 %3344  ;;  %v7889_v47 = vrot.slane %v16531_v11, %v19918_v9  ;;  %v10328_v11 = vld [vmem:[%s19005_s0 + $0x150] sm:$0xff] }
 0x88b   :  { %3495 = vrot.lane.b32.xlu0 %v10326_v30, %s10488_s9 }
 0x88c   :  { %v7890_v35 = vsel %vm4847_vm4, %v7889_v47, %v7885_v27  ;;  %v7846_v27 = vsel %vm4847_vm4, %v7845_v51, %v7841_v59  ;;  %v7909_v47 = vrot.slane %v16539_v33, %v19929_v28  ;;  %v7919_v59 = vrot.slane %v16543_v56, %v19936_v43 }
 0x88d   :  { %v7895_v3 = vsel %vm4854_vm5, %v7894_v58, %v7890_v35  ;;  %v7851_v38 = vsel %vm4854_vm5, %v7850_v44, %v7846_v27  ;;  %v7953_v35 = vrot.slane %v16585_v21, %v19910_v24  ;;  %v8012_v21 = vrot.slane %v16657_v39, %v19918_v9  ;;  %v10333_v44 = vld [vmem:[%s19005_s0 + $0x178] sm:$0xff] }
 0x88e   :  { %3497 = vrot.lane.b32.xlu1 %v10327_v16, %s10488_s9  ;;  %v16820_v30 = vpop.xlane.xlu1 %3353  ;;  %v16822_v20 = vpop.xlane.xlu0 %3350  ;;  %v7900_v58 = vsel %vm4861_vm6, %v7899_v41, %v7895_v3  ;;  %v7855_v41 = vrot.slane %v16509_v42, %v19923_v23  ;;  %v7958_v27 = vrot.slane %v16583_v18, %v19911_v13  ;;  %v8116_v39 = vrot.slane %v16777_v2, %v19909_v14 }
 0x88f   :  { %3499 = vrot.lane.b32.xlu0 %v10328_v11, %s10488_s9  ;;  %v7905_v11 = vsel %vm4868_vm7, %v7904_v7, %v7900_v58  ;;  %v7998_v7 = vsel %vm4826_vm1, %v7997_v54, %v7993_v6  ;;  %v7860_v58 = vrot.slane %v16507_v53, %v19922_v40  ;;  %v8125_v18 = vrot.slane %v16796_v62, %v19911_v13  ;;  %v10335_v62 = vld [vmem:[%s19005_s0 + $0x188] sm:$0xff] }
 0x890   :  { %v7910_v3 = vsel %vm4875_vm8, %v7909_v47, %v7905_v11  ;;  %v8003_v42 = vsel %vm4833_vm2, %v8002_v1, %v7998_v7  ;;  %v10334_v47 = vld [vmem:[%s19005_s0 + $0x180] sm:$0xff]  ;;  %v8017_v2 = vrot.slane %v16655_v36, %v19917_v10  ;;  %v8130_v1 = vrot.slane %v16822_v20, %v19916_v8 }
 0x891   :  { %v7915_v56 = vsel %vm20188_vm0, %v7914_v25, %v7910_v3  ;;  %v8008_v6 = vsel %vm4840_vm3, %v8007_v61, %v8003_v42  ;;  %v7856_v53 = vsel %vm4861_vm6, %v7855_v41, %v7851_v38  ;;  %v7929_v20 = vrot.slane %v16551_v50, %v19942_v57  ;;  %vm20211_vm0 = vmmov %vm20190_vm14 }
 0x892   :  { %3501 = vrot.lane.b32.xlu1 %v10329_v34, %s10488_s9  ;;  %v16844_v12 = vpop.xlane.xlu1 %3359  ;;  %v16846_v16 = vpop.xlane.xlu0 %3356  ;;  %v8120_v34 = vrot.slane %v16798_v0, %v19910_v24  ;;  %v8013_v25 = vsel %vm4847_vm4, %v8012_v21, %v8008_v6  ;;  %v7968_v41 = vrot.slane %v16595_v29, %v19918_v9  ;;  %v7973_v7 = vrot.slane %v16609_v31, %v19917_v10 }
 0x893   :  { %3503 = vrot.lane.b32.xlu0 %v10330_v37, %s10488_s9  ;;  %v7949_v37 = vrot.slane %v16571_v26, %v19909_v14  ;;  %v7924_v26 = vrot.slane %v16553_v63, %v19935_v32  ;;  %v7963_v63 = vrot.slane %v16597_v17, %v19916_v8  ;;  %v8022_v17 = vrot.slane %v16669_v45, %v19923_v23 }
 0x894   :  { %v8121_v11 = vsel %vm4826_vm1, %v8120_v34, %v8116_v39  ;;  %v8135_v50 = vrot.slane %v16820_v30, %v19918_v9  ;;  %v8027_v29 = vrot.slane %v16667_v4, %v19922_v40  ;;  %v8018_v34 = vsel %vm4854_vm5, %v8017_v2, %v8013_v25  ;;  %v10337_v30 = vld [vmem:[%s19005_s0 + $0x198] sm:$0xff] }
 0x895   :  { %v7954_v54 = vsel %vm4826_vm1, %v7953_v35, %v7949_v37  ;;  %v10336_v35 = vld [vmem:[%s19005_s0 + $0x190] sm:$0xff]  ;;  %v8126_v61 = vsel %vm4833_vm2, %v8125_v18, %v8121_v11  ;;  %v8140_v37 = vrot.slane %v16846_v16, %v19917_v10  ;;  %v7861_v42 = vsel %vm4868_vm7, %v7860_v58, %v7856_v53  ;;  %v20192_v11 = vld [vmem:[#allocation83_spill] sm:$0xff] }
 0x896   :  { %3505 = vrot.lane.b32.xlu1 %v10331_v15, %s10488_s9  ;;  %v16870_v33 = vpop.xlane.xlu1 %3365  ;;  %v16872_v51 = vpop.xlane.xlu0 %3362  ;;  %v7920_v15 = vsel %vm4889_vm10, %v7919_v59, %v7915_v56  ;;  %v7959_v45 = vsel %vm4833_vm2, %v7958_v27, %v7954_v54  ;;  %v8131_v59 = vsel %vm4840_vm3, %v8130_v1, %v8126_v61  ;;  %v8023_v21 = vsel %vm4861_vm6, %v8022_v17, %v8018_v34  ;;  %v10338_v27 = vld [vmem:[%s19005_s0 + $0x1a0] sm:$0xff]  ;;  %v20193_v1 = vld [vmem:[#allocation84_spill] sm:$0xff] }
 0x897   :  { %3507 = vrot.lane.b32.xlu0 %v10332_v19, %s10488_s9  ;;  %v7925_v38 = vsel %vm20189_vm13, %v7924_v26, %v7920_v15  ;;  %v7964_v3 = vsel %vm4840_vm3, %v7963_v63, %v7959_v45  ;;  %v8032_v31 = vrot.slane %v16681_v22, %v19929_v28  ;;  %v7865_v16 = vrot.slane %v16517_v49, %v19929_v28  ;;  %v20194_v17 = vld [vmem:[#allocation18_spill] sm:$0xff]  ;;  %vm20214_vm13 = vmmov %vm20209_vm11 }
 0x898   :  { %v7930_v56 = vsel %vm20190_vm14, %v7929_v20, %v7925_v38  ;;  %v7934_v26 = vrot.slane %v16561_v52, %v19941_v60  ;;  %v7969_v22 = vsel %vm4847_vm4, %v7968_v41, %v7964_v3  ;;  %v7978_v39 = vrot.slane %v16607_v55, %v19923_v23  ;;  %v20191_v55 = vld [vmem:[#allocation78_spill] sm:$0xff]  ;;  %v20198_v3 = vld [vmem:[#allocation17_spill] sm:$0xff]  ;;  %vm20215_vm14 = vmmov %vm20196_vm15 }
 0x899   :  { %v8145_v49 = vrot.slane %v16844_v12, %v19923_v23  ;;  %v8136_v58 = vsel %vm4847_vm4, %v8135_v50, %v8131_v59  ;;  %v8037_v52 = vrot.slane %v16679_v48, %v19928_v5  ;;  %v8028_v54 = vsel %vm4868_vm7, %v8027_v29, %v8023_v21  ;;  %v10339_v48 = vld [vmem:[%s19005_s0 + $0x1a8] sm:$0xff]  ;;  %v20197_v41 = vld [vmem:[#allocation86_spill] sm:$0xff] }
 0x89a   :  { %3509 = vrot.lane.b32.xlu1 %v10333_v44, %s10488_s9  ;;  %v16902_v46 = vpop.xlane.xlu1 %3371  ;;  %v16904_v0 = vpop.xlane.xlu0 %3368  ;;  %v8141_v63 = vsel %vm4854_vm5, %v8140_v37, %v8136_v58  ;;  %v8150_v18 = vrot.slane %v16872_v51, %v19922_v40  ;;  %v8033_v2 = vsel %vm4875_vm8, %v8032_v31, %v8028_v54  ;;  %v8042_v6 = vrot.slane %v20191_v55, %v19936_v43  ;;  %v20200_v59 = vld [vmem:[#allocation2_spill] sm:$0xff] }
 0x89b   :  { %3511 = vrot.lane.b32.xlu0 %v10334_v47, %s10488_s9  ;;  %v7974_v47 = vsel %vm4854_vm5, %v7973_v7, %v7969_v22  ;;  %v8076_v12 = vrot.slane %v20192_v11, %v19910_v24  ;;  %v8072_v53 = vrot.slane %v20193_v1, %v19909_v14  ;;  %v17013_v51 = vsel %vm4875_vm8, %v7865_v16, %v7861_v42  ;;  %v20199_v7 = vld [vmem:[#allocation71_spill] sm:$0xff]  ;;  %v20202_v16 = vld [vmem:[#allocation81_spill] sm:$0xff] }
 0x89c   :  { %v17018_v38 = vsel %vm20196_vm15, %v7934_v26, %v7930_v56  ;;  %v8081_v45 = vrot.slane %v20197_v41, %v19911_v13  ;;  %v7944_v50 = vrot.slane %v20199_v7, %v20198_v3  ;;  %v7979_v61 = vsel %vm4861_vm6, %v7978_v39, %v7974_v47  ;;  %v20208_v41 = vld [vmem:[#allocation77_spill] sm:$0xff]  ;;  %vm20219_vm15 = vmmov %vm20211_vm0 }
 0x89d   :  { %v8155_v29 = vrot.slane %v16870_v33, %v19929_v28  ;;  %v8146_v34 = vsel %vm4861_vm6, %v8145_v49, %v8141_v63  ;;  %v8047_v37 = vrot.slane %v20200_v59, %v19935_v32  ;;  %v8038_v42 = vsel %vm20201_vm9, %v8037_v52, %v8033_v2  ;;  %v20203_v33 = vld [vmem:[#allocation85_spill] sm:$0xff]  ;;  %v20204_v49 = vld [vmem:[#allocation88_spill] sm:$0xff]  ;;  %v10342_v63 = vld [vmem:[%s19005_s0 + $0x1c0] sm:$0xff] }
 0x89e   :  { %3513 = vrot.lane.b32.xlu1 %v10335_v62, %s10488_s9  ;;  %v16939_v36 = vpop.xlane.xlu1 %3377  ;;  %v16941_v19 = vpop.xlane.xlu0 %3374  ;;  %v20195_v62 = vld [vmem:[#allocation70_spill] sm:$0xff]  ;;  %v8151_v21 = vsel %vm4868_vm7, %v8150_v18, %v8146_v34  ;;  %v8160_v31 = vrot.slane %v16904_v0, %v19928_v5  ;;  %v8052_v56 = vrot.slane %v20202_v16, %v19942_v57  ;;  %v8077_v26 = vsel %vm4826_vm1, %v8076_v12, %v8072_v53  ;;  %v20205_v18 = vld [vmem:[#allocation72_spill] sm:$0xff]  ;;  %v20206_v12 = vld [vmem:[#allocation73_spill] sm:$0xff] }
 0x89f   :  { %3515 = vrot.lane.b32.xlu0 %v10336_v35, %s10488_s9  ;;  %v7939_v20 = vrot.slane %v20195_v62, %v20194_v17  ;;  %v10340_v35 = vld [vmem:[%s19005_s0 + $0x1b0] sm:$0xff]  ;;  %v8086_v22 = vrot.slane %v20203_v33, %v19916_v8  ;;  %v8082_v0 = vsel %vm4833_vm2, %v8081_v45, %v8077_v26  ;;  %v8091_v58 = vrot.slane %v20204_v49, %v19918_v9  ;;  %v10343_v59 = vld [vmem:[%s19005_s0 + $0x1c8] sm:$0xff]  ;;  %v20212_v16 = vld [vmem:[#allocation90_spill] sm:$0xff] }
 0x8a0   :  { %v7988_v2 = vrot.slane %v20205_v18, %v19929_v28  ;;  %v8165_v55 = vrot.slane %v16902_v46, %v19936_v43  ;;  %v7983_v1 = vrot.slane %v20206_v12, %v19922_v40  ;;  %v8057_v45 = vrot.slane %v20208_v41, %v19941_v60  ;;  %v20210_v46 = vld [vmem:[#allocation87_spill] sm:$0xff]  ;;  %v10344_v26 = vld [vmem:[%s19005_s0 + $0x1d0] sm:$0xff] }
 0x8a1   :  { %v8087_v34 = vsel %vm4840_vm3, %v8086_v22, %v8082_v0  ;;  %v8175_v33 = vrot.slane %v16939_v36, %v19942_v57  ;;  %vm20220_vm9 = vcmask 982912  }
 0x8a2   :  { %3517 = vrot.lane.b32.xlu1 %v10337_v30, %s10488_s9  ;;  %v16973_v4 = vpop.xlane.xlu1 %3383  ;;  %v16975_v44 = vpop.xlane.xlu0 %3380  ;;  %v8043_v30 = vsel %vm4889_vm10, %v8042_v6, %v8038_v42  ;;  %v8156_v6 = vsel %vm4875_vm8, %v8155_v29, %v8151_v21  ;;  %v8096_v29 = vrot.slane %v20210_v46, %v19917_v10 }
 0x8a3   :  { %3519 = vrot.lane.b32.xlu0 %v10338_v27, %s10488_s9  ;;  %v10341_v27 = vld [vmem:[%s19005_s0 + $0x1b8] sm:$0xff]  ;;  %v8161_v53 = vsel %vm20207_vm12, %v8160_v31, %v8156_v6  ;;  %v8092_v31 = vsel %vm4847_vm4, %v8091_v58, %v8087_v34  ;;  %v8180_v49 = vrot.slane %v16975_v44, %v19941_v60  ;;  %v20217_v44 = vld [vmem:[#allocation74_spill] sm:$0xff]  ;;  %v8185_v41 = vrot.slane %v16973_v4, %v20194_v17  ;;  %vm20221_vm12 = vmmov %vm20215_vm14 }
 0x8a4   :  { %v8166_v22 = vsel %vm4889_vm10, %v8165_v55, %v8161_v53  ;;  %v8097_v18 = vsel %vm4854_vm5, %v8096_v29, %v8092_v31  ;;  %v10345_v55 = vld [vmem:[%s19005_s0 + $0x1d8] sm:$0xff]  ;;  %v8067_v12 = vrot.slane %v20217_v44, %v20198_v3  ;;  %v10347_v31 = vld [vmem:[%s19005_s0 + $0x1e8] sm:$0xff]  ;;  %v10352_v44 = vld [vmem:[%s19005_s0 + $0x210] sm:$0xff] }
 0x8a6   :  { %3521 = vrot.lane.b32.xlu1 %v10339_v48, %s10488_s9  ;;  %v3390_v15 = vpop.xlane.xlu1 %3389  ;;  %v17010_v25 = vpop.xlane.xlu0 %3386  ;;  %v8170_v48 = vrot.slane %v16941_v19, %v19935_v32 }
 0x8a7   :  { %3523 = vrot.lane.b32.xlu0 %v10340_v35, %s10488_s9  ;;  %v8195_v52 = vrot.slane %v3390_v15, %v19909_v14  ;;  %v8048_v35 = vsel %vm20209_vm11, %v8047_v37, %v8043_v30  ;;  %v8101_v37 = vrot.slane %v20212_v16, %v19923_v23  ;;  %vm20222_vm11 = vmmov %vm20220_vm9 }
 0x8a8   :  { %v8053_v21 = vsel %vm20211_vm0, %v8052_v56, %v8048_v35  ;;  %v8171_v0 = vsel %vm20214_vm13, %v8170_v48, %v8166_v22  ;;  %v7940_v4 = vsel %vm20222_vm11, %v7939_v20, %v17018_v38  ;;  %vm20223_vm0 = vcmask 1048512  }
 0x8a9   :  { %v8058_v36 = vsel %vm20215_vm14, %v8057_v45, %v8053_v21  ;;  %v8176_v45 = vsel %vm20219_vm15, %v8175_v33, %v8171_v0  ;;  %vm20225_vm13 = vcmask 1044484   ;;  %vm20226_vm14 = vmmov %vm20223_vm0  ;;  %vm20230_vm11 = vcmask 1046534  }
 0x8aa   :  { %3525 = vrot.lane.b32.xlu1 %v10341_v27, %s10488_s9  ;;  %v3396_v39 = vpop.xlane.xlu1 %3395  ;;  %v3393_v47 = vpop.xlane.xlu0 %3392  ;;  %v8181_v34 = vsel %vm20221_vm12, %v8180_v49, %v8176_v45  ;;  %vm20227_vm15 = vmmov %vm20220_vm9  ;;  %v10356_v45 = vld [vmem:[%s19005_s0 + $0x230] sm:$0xff] }
 0x8ab   :  { %v8199_v54 = vrot.slane %v3393_v47, %v19910_v24  ;;  %3527 = vrot.lane.b32.xlu0 %v10342_v63, %s10488_s9  ;;  %v8204_v11 = vrot.slane %v3396_v39, %v19911_v13  ;;  %v20213_v39 = vld [vmem:[#allocation82_spill] sm:$0xff]  ;;  %v8186_v33 = vsel %vm20227_vm15, %v8185_v41, %v8181_v34  ;;  %vm20229_vm12 = vmmov %vm20223_vm0  ;;  %vm20235_vm15 = vcmask 588800  }
 0x8ac   :  { %v8062_v47 = vrot.slane %v20213_v39, %v20194_v17  ;;  %v10349_v39 = vld [vmem:[%s19005_s0 + $0x1f8] sm:$0xff]  ;;  %v10358_v34 = vld [vmem:[%s19005_s0 + $0x240] sm:$0xff] }
 0x8ad   :  { %v8200_v15 = vsel %vm4826_vm1, %v8199_v54, %v8195_v52  ;;  %v7984_v52 = vsel %vm4868_vm7, %v7983_v1, %v7979_v61  ;;  %v20216_v54 = vld [vmem:[#allocation89_spill] sm:$0xff]  ;;  %v8102_v61 = vsel %vm4861_vm6, %v8101_v37, %v8097_v18  ;;  %v20218_v1 = vld [vmem:[#allocation91_spill] sm:$0xff]  ;;  %v7945_v37 = vsel %vm20223_vm0, %v7944_v50, %v7940_v4 }
 0x8ae   :  { %3529 = vrot.lane.b32.xlu1 %v10343_v59, %s10488_s9  ;;  %v3402_v42 = vpop.xlane.xlu1 %3401  ;;  %v3399_v19 = vpop.xlane.xlu0 %3398  ;;  %v8205_v27 = vsel %vm4833_vm2, %v8204_v11, %v8200_v15  ;;  %v8106_v63 = vrot.slane %v20216_v54, %v19922_v40  ;;  %v8111_v53 = vrot.slane %v20218_v1, %v19929_v28  ;;  %v10346_v15 = vld [vmem:[%s19005_s0 + $0x1e0] sm:$0xff]  ;;  %v8063_v29 = vsel %vm20220_vm9, %v8062_v47, %v8058_v36 }
 0x8af   :  { %v8209_v30 = vrot.slane %v3399_v19, %v19916_v8  ;;  %3531 = vrot.lane.b32.xlu0 %v10344_v26, %s10488_s9  ;;  %v8214_v56 = vrot.slane %v3402_v42, %v19918_v9  ;;  %v8190_v59 = vrot.slane %v17010_v25, %v20198_v3  ;;  %v7989_v19 = vsel %vm4875_vm8, %v7988_v2, %v7984_v52  ;;  %v10348_v2 = vld [vmem:[%s19005_s0 + $0x1f0] sm:$0xff]  ;;  %v10350_v36 = vld [vmem:[%s19005_s0 + $0x200] sm:$0xff] }
 0x8b0   :  { %v8107_v21 = vsel %vm4868_vm7, %v8106_v63, %v8102_v61  ;;  %v8068_v50 = vsel %vm20226_vm14, %v8067_v12, %v8063_v29  ;;  %vm20228_vm9 = vcmask 1045509   ;;  %vm20234_vm14 = vmmov %vm20230_vm11  ;;  %v10353_v12 = vld [vmem:[%s19005_s0 + $0x218] sm:$0xff] }
 0x8b1   :  { %v8210_v58 = vsel %vm4840_vm3, %v8209_v30, %v8205_v27  ;;  %v8112_v62 = vsel %vm4875_vm8, %v8111_v53, %v8107_v21  ;;  %v20224_v30 = vld [vmem:[#allocation68_spill] sm:$0xff]  ;;  %v8191_v27 = vsel %vm20229_vm12, %v8190_v59, %v8186_v33  ;;  %vm20232_vm0 = vmmov %vm20228_vm9  ;;  %v10354_v53 = vld [vmem:[%s19005_s0 + $0x220] sm:$0xff] }
 0x8b2   :  { %3533 = vrot.lane.b32.xlu1 %v10345_v55, %s10488_s9  ;;  %v3408_v6 = vpop.xlane.xlu1 %3407  ;;  %v3405_v11 = vpop.xlane.xlu0 %3404  ;;  %v8215_v46 = vsel %vm4847_vm4, %v8214_v56, %v8210_v58  ;;  %v8246_v26 = vsel %vm20225_vm13, %v17013_v51, %v20224_v30  ;;  %v20231_v58 = vld [vmem:[#allocation69_spill] sm:$0xff]  ;;  %vm20233_vm13 = vcmask 1047559   ;;  %v10351_v55 = vld [vmem:[%s19005_s0 + $0x208] sm:$0xff] }
 0x8b3   :  { %v8219_v48 = vrot.slane %v3405_v11, %v19917_v10  ;;  %3535 = vrot.lane.b32.xlu0 %v10346_v15, %s10488_s9  ;;  %v8224_v35 = vrot.slane %v3408_v6, %v19923_v23  ;;  %v8247_v56 = vsel %vm20228_vm9, %v7989_v19, %v8246_v26  ;;  %v8240_v52 = vsel %vm20232_vm0, %v7945_v37, %v20231_v58  ;;  %vm20236_vm9 = vmmov %vm20235_vm15  ;;  %v10359_v59 = vld [vmem:[%s19005_s0 + $0x248] sm:$0xff]  ;;  %v10360_v19 = vld [vmem:[%s19005_s0 + $0x250] sm:$0xff] }
 0x8b4   :  { %v8248_v49 = vsel %vm20230_vm11, %v8112_v62, %v8247_v56  ;;  %v8241_v63 = vsel %vm20234_vm14, %v8068_v50, %v8240_v52  ;;  %vm20237_vm12 = vmmov %vm20233_vm13  ;;  %v10361_v21 = vld [vmem:[%s19005_s0 + $0x258] sm:$0xff]  ;;  %v10363_v37 = vld [vmem:[%s19005_s0 + $0x268] sm:$0xff]  ;;  %vm20336_vm11 = vcmask 31744  }
 0x8b5   :  { %v8220_v42 = vsel %vm4854_vm5, %v8219_v48, %v8215_v46  ;;  %v8242_v18 = vsel %vm20237_vm12, %v8191_v27, %v8241_v63  ;;  %v10355_v48 = vld [vmem:[%s19005_s0 + $0x228] sm:$0xff]  ;;  %v10368_v56 = vld [vmem:[%s19005_s0 + $0x290] sm:$0xff]  ;;  %v10369_v27 = vld [vmem:[%s19005_s0 + $0x298] sm:$0xff] }
 0x8b6   :  { %3537 = vrot.lane.b32.xlu1 %v10347_v31, %s10488_s9  ;;  %v3414_v16 = vpop.xlane.xlu1 %3413  ;;  %v3411_v25 = vpop.xlane.xlu0 %3410  ;;  %v8225_v7 = vsel %vm4861_vm6, %v8224_v35, %v8220_v42  ;;  %v10357_v35 = vld [vmem:[%s19005_s0 + $0x238] sm:$0xff]  ;;  %v10367_v50 = vld [vmem:[%s19005_s0 + $0x288] sm:$0xff]  ;;  %vm20338_vm0 = vmmov %vm20336_vm11 }
 0x8b7   :  { %v8234_v20 = vrot.slane %v3414_v16, %v19929_v28  ;;  %v8229_v38 = vrot.slane %v3411_v25, %v19922_v40  ;;  %3539 = vrot.lane.b32.xlu0 %v10348_v2, %s10488_s9  ;;  %v10362_v25 = vld [vmem:[%s19005_s0 + $0x260] sm:$0xff]  ;;  %v10365_v2 = vld [vmem:[%s19005_s0 + $0x278] sm:$0xff]  ;;  %v10371_v58 = vld [vmem:[%s19005_s0 + $0x2a8] sm:$0xff] }
 0x8b8   :  { %v10373_v63 = vld [vmem:[%s19005_s0 + $0x2b8] sm:$0xff]  ;;  %vm20340_vm14 = vmmov %vm20338_vm0 }
 0x8b9   :  { %v8230_v22 = vsel %vm4868_vm7, %v8229_v38, %v8225_v7  ;;  %v10364_v38 = vld [vmem:[%s19005_s0 + $0x270] sm:$0xff]  ;;  %v10366_v7 = vld [vmem:[%s19005_s0 + $0x280] sm:$0xff]  ;;  %vm20343_vm12 = vmmov %vm20338_vm0 }
 0x8ba   :  { %3541 = vrot.lane.b32.xlu1 %v10349_v39, %s10488_s9  ;;  %v17163_v47 = vpop.permute.xlu1 %3417  ;;  %v17165_v51 = vpop.permute.xlu0 %3415  ;;  %v8235_v0 = vsel %vm4875_vm8, %v8234_v20, %v8230_v22 }
 0x8bb   :  { %3543 = vrot.lane.b32.xlu0 %v10350_v36, %s10488_s9  ;;  %v8249_v54 = vsel %vm20233_vm13, %v8235_v0, %v8248_v49  ;;  %v10370_v49 = vld [vmem:[%s19005_s0 + $0x2a0] sm:$0xff]  ;;  %vm20339_vm13 = vmmov %vm20338_vm0 }
 0x8bc   :  { %9781 = vmatprep.mubr.msk.f32.mxu0 %vm20235_vm15, %v8249_v54  ;;  %9785 = vmatprep.mubr.msk.f32.mxu1 %vm20236_vm9, %v8249_v54  ;;  %v10372_v54 = vld [vmem:[%s19005_s0 + $0x2b0] sm:$0xff]  ;;  %vm20341_vm15 = vmmov %vm20338_vm0 }
 0x8bd   :  { %9658 = vmatmul.mubr.f32.gmra.mrb[4].mxu0 %v8242_v18  ;;  %9747 = vmatmul.mubr.f32.gmra.mrb[4].mxu1 %v8242_v18  ;;  %vm20342_vm9 = vmmov %vm20338_vm0 }
 0x8be   :  { %3545 = vrot.lane.b32.xlu1 %v10351_v55, %s10488_s9  ;;  %v17184_v6 = vpop.permute.xlu1 %3419  ;;  %v17186_v11 = vpop.permute.xlu0 %3423 }
 0x8bf   :  { %3547 = vrot.lane.b32.xlu0 %v10352_v44, %s10488_s9  ;;  %v10374_v44 = vld [vmem:[%s19005_s0 + $0x2c0] sm:$0xff] }
 0x8c2   :  { %3549 = vrot.lane.b32.xlu1 %v10353_v12, %s10488_s9  ;;  %v17196_v61 = vpop.permute.xlu1 %3421  ;;  %v17198_v1 = vpop.permute.xlu0 %3427  ;;  %v10375_v12 = vld [vmem:[%s19005_s0 + $0x2c8] sm:$0xff] }
 0x8c3   :  { %3551 = vrot.lane.b32.xlu0 %v10354_v53, %s10488_s9 }
 0x8c6   :  { %3553 = vrot.lane.b32.xlu1 %v10355_v48, %s10488_s9  ;;  %v17208_v15 = vpop.permute.xlu1 %3425  ;;  %v17210_v41 = vpop.permute.xlu0 %3431 }
 0x8c7   :  { %3555 = vrot.lane.b32.xlu0 %v10356_v45, %s10488_s9  ;;  %v10376_v45 = vld [vmem:[%s19005_s0 + $0x2d0] sm:$0xff] }
 0x8ca   :  { %3557 = vrot.lane.b32.xlu1 %v10357_v35, %s10488_s9  ;;  %v17220_v46 = vpop.permute.xlu1 %3429  ;;  %v17222_v29 = vpop.permute.xlu0 %3435  ;;  %v10377_v35 = vld [vmem:[%s19005_s0 + $0x2d8] sm:$0xff] }
 0x8cb   :  { %3559 = vrot.lane.b32.xlu0 %v10358_v34, %s10488_s9 }
 0x8ce   :  { %3561 = vrot.lane.b32.xlu1 %v10359_v59, %s10488_s9  ;;  %v17232_v42 = vpop.permute.xlu1 %3433  ;;  %v17234_v4 = vpop.permute.xlu0 %3439 }
 0x8cf   :  { %3563 = vrot.lane.b32.xlu0 %v10360_v19, %s10488_s9  ;;  %v10378_v19 = vld [vmem:[%s19005_s0 + $0x2e0] sm:$0xff] }
 0x8d2   :  { %3565 = vrot.lane.b32.xlu1 %v10361_v21, %s10488_s9  ;;  %v17244_v31 = vpop.permute.xlu1 %3437  ;;  %v17246_v16 = vpop.permute.xlu0 %3443  ;;  %v10379_v21 = vld [vmem:[%s19005_s0 + $0x2e8] sm:$0xff] }
 0x8d3   :  { %3567 = vrot.lane.b32.xlu0 %v10362_v25, %s10488_s9 }
 0x8d6   :  { %3569 = vrot.lane.b32.xlu1 %v10363_v37, %s10488_s9  ;;  %v17256_v62 = vpop.permute.xlu1 %3441  ;;  %v17258_v20 = vpop.permute.xlu0 %3447 }
 0x8d7   :  { %3571 = vrot.lane.b32.xlu0 %v10364_v38, %s10488_s9  ;;  %v10380_v38 = vld [vmem:[%s19005_s0 + $0x2f0] sm:$0xff] }
 0x8da   :  { %3573 = vrot.lane.b32.xlu1 %v10365_v2, %s10488_s9  ;;  %v17268_v30 = vpop.permute.xlu1 %3445  ;;  %v17270_v26 = vpop.permute.xlu0 %3451  ;;  %v10381_v2 = vld [vmem:[%s19005_s0 + $0x2f8] sm:$0xff] }
 0x8db   :  { %3575 = vrot.lane.b32.xlu0 %v10366_v7, %s10488_s9 }
 0x8de   :  { %3577 = vrot.lane.b32.xlu1 %v10367_v50, %s10488_s9  ;;  %v17280_v33 = vpop.permute.xlu1 %3449  ;;  %v17282_v22 = vpop.permute.xlu0 %3455 }
 0x8df   :  { %3579 = vrot.lane.b32.xlu0 %v10368_v56, %s10488_s9  ;;  %v10382_v56 = vld [vmem:[%s19005_s0 + $0x300] sm:$0xff] }
 0x8e2   :  { %3581 = vrot.lane.b32.xlu1 %v10369_v27, %s10488_s9  ;;  %v17292_v39 = vpop.permute.xlu1 %3453  ;;  %v17294_v0 = vpop.permute.xlu0 %3459  ;;  %v10383_v27 = vld [vmem:[%s19005_s0 + $0x308] sm:$0xff] }
 0x8e3   :  { %3583 = vrot.lane.b32.xlu0 %v10370_v49, %s10488_s9 }
 0x8e6   :  { %3585 = vrot.lane.b32.xlu1 %v10371_v58, %s10488_s9  ;;  %v17304_v52 = vpop.permute.xlu1 %3457  ;;  %v17306_v36 = vpop.permute.xlu0 %3463 }
 0x8e7   :  { %3587 = vrot.lane.b32.xlu0 %v10372_v54, %s10488_s9  ;;  %v10384_v54 = vld [vmem:[%s19005_s0 + $0x310] sm:$0xff] }
 0x8ea   :  { %3589 = vrot.lane.b32.xlu1 %v10373_v63, %s10488_s9  ;;  %v17316_v18 = vpop.permute.xlu1 %3461  ;;  %v17318_v55 = vpop.permute.xlu0 %3467  ;;  %v10385_v63 = vld [vmem:[%s19005_s0 + $0x318] sm:$0xff] }
 0x8eb   :  { %3591 = vrot.lane.b32.xlu0 %v10374_v44, %s10488_s9 }
 0x8ee   :  { %3593 = vrot.lane.b32.xlu1 %v10375_v12, %s10488_s9  ;;  %v17328_v53 = vpop.permute.xlu1 %3465  ;;  %v17330_v48 = vpop.permute.xlu0 %3471 }
 0x8ef   :  { %3595 = vrot.lane.b32.xlu0 %v10376_v45, %s10488_s9  ;;  %v10386_v45 = vld [vmem:[%s19005_s0 + $0x320] sm:$0xff] }
 0x8f2   :  { %3597 = vrot.lane.b32.xlu1 %v10377_v35, %s10488_s9  ;;  %v17340_v34 = vpop.permute.xlu1 %3469  ;;  %v17342_v59 = vpop.permute.xlu0 %3475  ;;  %v10387_v35 = vld [vmem:[%s19005_s0 + $0x328] sm:$0xff] }
 0x8f3   :  { %3599 = vrot.lane.b32.xlu0 %v10378_v19, %s10488_s9 }
 0x8f6   :  { %3601 = vrot.lane.b32.xlu1 %v10379_v21, %s10488_s9  ;;  %v17352_v25 = vpop.permute.xlu1 %3473  ;;  %v17354_v37 = vpop.permute.xlu0 %3479 }
 0x8f7   :  { %3603 = vrot.lane.b32.xlu0 %v10380_v38, %s10488_s9  ;;  %v10388_v38 = vld [vmem:[%s19005_s0 + $0x330] sm:$0xff] }
 0x8fa   :  { %3605 = vrot.lane.b32.xlu1 %v10381_v2, %s10488_s9  ;;  %v17364_v7 = vpop.permute.xlu1 %3477  ;;  %v17366_v50 = vpop.permute.xlu0 %3483  ;;  %v10389_v2 = vld [vmem:[%s19005_s0 + $0x338] sm:$0xff] }
 0x8fb   :  { %3607 = vrot.lane.b32.xlu0 %v10382_v56, %s10488_s9 }
 0x8fe   :  { %3609 = vrot.lane.b32.xlu1 %v10383_v27, %s10488_s9  ;;  %v17376_v49 = vpop.permute.xlu1 %3481  ;;  %v17378_v58 = vpop.permute.xlu0 %3487 }
 0x8ff   :  { %3611 = vrot.lane.b32.xlu0 %v10384_v54, %s10488_s9  ;;  %v10390_v54 = vld [vmem:[%s19005_s0 + $0x340] sm:$0xff] }
 0x902   :  { %3613 = vrot.lane.b32.xlu1 %v10385_v63, %s10488_s9  ;;  %v17388_v44 = vpop.permute.xlu1 %3485  ;;  %v17390_v12 = vpop.permute.xlu0 %3491  ;;  %v10391_v63 = vld [vmem:[%s19005_s0 + $0x348] sm:$0xff] }
 0x903   :  { %3615 = vrot.lane.b32.xlu0 %v10386_v45, %s10488_s9 }
 0x906   :  { %3617 = vrot.lane.b32.xlu1 %v10387_v35, %s10488_s9  ;;  %v17400_v19 = vpop.permute.xlu1 %3489  ;;  %v17402_v21 = vpop.permute.xlu0 %3495 }
 0x907   :  { %3619 = vrot.lane.b32.xlu0 %v10388_v38, %s10488_s9  ;;  %v10392_v38 = vld [vmem:[%s19005_s0 + $0x350] sm:$0xff] }
 0x90a   :  { %3621 = vrot.lane.b32.xlu1 %v10389_v2, %s10488_s9  ;;  %v17412_v56 = vpop.permute.xlu1 %3493  ;;  %v17414_v27 = vpop.permute.xlu0 %3499  ;;  %v10393_v2 = vld [vmem:[%s19005_s0 + $0x358] sm:$0xff] }
 0x90b   :  { %3623 = vrot.lane.b32.xlu0 %v10390_v54, %s10488_s9 }
 0x90e   :  { %3625 = vrot.lane.b32.xlu1 %v10391_v63, %s10488_s9  ;;  %v17424_v45 = vpop.permute.xlu1 %3497  ;;  %v17426_v35 = vpop.permute.xlu0 %3503  ;;  %v10394_v63 = vld [vmem:[%s19005_s0 + $0x360] sm:$0xff] }
 0x90f   :  { %3627 = vrot.lane.b32.xlu0 %v10392_v38, %s10488_s9  ;;  %v10395_v38 = vld [vmem:[%s19005_s0 + $0x368] sm:$0xff] }
 0x912   :  { %3629 = vrot.lane.b32.xlu1 %v10393_v2, %s10488_s9  ;;  %v17436_v54 = vpop.permute.xlu1 %3501  ;;  %v17438_v17 = vpop.permute.xlu0 %3507  ;;  %v10396_v2 = vld [vmem:[%s19005_s0 + $0x370] sm:$0xff] }
 0x913   :  { %20238 = vst [vmem:[#allocation92_spill] sm:$0xff] %v17438_v17  ;;  %3631 = vrot.lane.b32.xlu0 %v10394_v63, %s10488_s9  ;;  %v10397_v63 = vld [vmem:[%s19005_s0 + $0x378] sm:$0xff] }
 0x916   :  { %3633 = vrot.lane.b32.xlu1 %v10395_v38, %s10488_s9  ;;  %v17448_v3 = vpop.permute.xlu1 %3505  ;;  %v17450_v57 = vpop.permute.xlu0 %3511  ;;  %v10398_v38 = vld [vmem:[%s19005_s0 + $0x380] sm:$0xff] }
 0x917   :  { %20239 = vst [vmem:[#allocation93_spill] sm:$0xff] %v17448_v3  ;;  %20240 = vst [vmem:[#allocation94_spill] sm:$0xff] %v17450_v57  ;;  %3635 = vrot.lane.b32.xlu0 %v10396_v2, %s10488_s9  ;;  %v10399_v2 = vld [vmem:[%s19005_s0 + $0x388] sm:$0xff] }
 0x91a   :  { %3637 = vrot.lane.b32.xlu1 %v10397_v63, %s10488_s9  ;;  %v17460_v17 = vpop.permute.xlu1 %3509  ;;  %v17462_v60 = vpop.permute.xlu0 %3515  ;;  %v10400_v63 = vld [vmem:[%s19005_s0 + $0x390] sm:$0xff] }
 0x91b   :  { %20241 = vst [vmem:[#allocation95_spill] sm:$0xff] %v17460_v17  ;;  %3639 = vrot.lane.b32.xlu0 %v10398_v38, %s10488_s9  ;;  %v10401_v38 = vld [vmem:[%s19005_s0 + $0x398] sm:$0xff] }
 0x91e   :  { %3641 = vrot.lane.b32.xlu1 %v10399_v2, %s10488_s9  ;;  %v17472_v57 = vpop.permute.xlu1 %3513  ;;  %v17474_v3 = vpop.permute.xlu0 %3519  ;;  %v10402_v2 = vld [vmem:[%s19005_s0 + $0x3a0] sm:$0xff] }
 0x91f   :  { %20242 = vst [vmem:[#allocation96_spill] sm:$0xff] %v17472_v57  ;;  %3643 = vrot.lane.b32.xlu0 %v10400_v63, %s10488_s9  ;;  %v10403_v63 = vld [vmem:[%s19005_s0 + $0x3a8] sm:$0xff] }
 0x922   :  { %3645 = vrot.lane.b32.xlu1 %v10401_v38, %s10488_s9  ;;  %v17484_v17 = vpop.permute.xlu1 %3517  ;;  %v17486_v43 = vpop.permute.xlu0 %3523  ;;  %v10404_v38 = vld [vmem:[%s19005_s0 + $0x3b0] sm:$0xff] }
 0x923   :  { %20243 = vst [vmem:[#allocation97_spill] sm:$0xff] %v17486_v43  ;;  %3647 = vrot.lane.b32.xlu0 %v10402_v2, %s10488_s9  ;;  %v10405_v2 = vld [vmem:[%s19005_s0 + $0x3b8] sm:$0xff]  ;;  %v20298_v43 = vld [vmem:[#allocation76_spill] sm:$0xff] }
 0x926   :  { %3649 = vrot.lane.b32.xlu1 %v10403_v63, %s10488_s9  ;;  %v17496_v57 = vpop.permute.xlu1 %3521  ;;  %v17498_v32 = vpop.permute.xlu0 %3527  ;;  %v10406_v63 = vld [vmem:[%s19005_s0 + $0x3c0] sm:$0xff] }
 0x927   :  { %20244 = vst [vmem:[#allocation98_spill] sm:$0xff] %v17496_v57  ;;  %20245 = vst [vmem:[#allocation99_spill] sm:$0xff] %v17498_v32  ;;  %3651 = vrot.lane.b32.xlu0 %v10404_v38, %s10488_s9  ;;  %v10407_v38 = vld [vmem:[%s19005_s0 + $0x3c8] sm:$0xff] }
 0x928   :  { %v20299_v57 = vld [vmem:[#allocation79_spill] sm:$0xff] }
 0x92a   :  { %3653 = vrot.lane.b32.xlu1 %v10405_v2, %s10488_s9  ;;  %v17508_v28 = vpop.permute.xlu1 %3525  ;;  %v17510_v5 = vpop.permute.xlu0 %3531  ;;  %v10408_v2 = vld [vmem:[%s19005_s0 + $0x3d0] sm:$0xff] }
 0x92b   :  { %20246 = vst [vmem:[#allocation100_spill] sm:$0xff] %v17508_v28  ;;  %20247 = vst [vmem:[#allocation101_spill] sm:$0xff] %v17510_v5  ;;  %3655 = vrot.lane.b32.xlu0 %v10406_v63, %s10488_s9  ;;  %v10409_v63 = vld [vmem:[%s19005_s0 + $0x3d8] sm:$0xff] }
 0x92e   :  { %3657 = vrot.lane.b32.xlu1 %v10407_v38, %s10488_s9  ;;  %v17520_v23 = vpop.permute.xlu1 %3529  ;;  %v17522_v40 = vpop.permute.xlu0 %3535  ;;  %v10410_v38 = vld [vmem:[%s19005_s0 + $0x3e0] sm:$0xff] }
 0x92f   :  { %20248 = vst [vmem:[#allocation102_spill] sm:$0xff] %v17520_v23  ;;  %20249 = vst [vmem:[#allocation103_spill] sm:$0xff] %v17522_v40  ;;  %3659 = vrot.lane.b32.xlu0 %v10408_v2, %s10488_s9  ;;  %v10411_v2 = vld [vmem:[%s19005_s0 + $0x3e8] sm:$0xff] }
 0x932   :  { %3661 = vrot.lane.b32.xlu1 %v10409_v63, %s10488_s9  ;;  %v17532_v5 = vpop.permute.xlu1 %3533  ;;  %v17534_v9 = vpop.permute.xlu0 %3539  ;;  %v10412_v63 = vld [vmem:[%s19005_s0 + $0x3f0] sm:$0xff] }
 0x933   :  { %20250 = vst [vmem:[#allocation104_spill] sm:$0xff] %v17532_v5  ;;  %20251 = vst [vmem:[#allocation105_spill] sm:$0xff] %v17534_v9  ;;  %3663 = vrot.lane.b32.xlu0 %v10410_v38, %s10488_s9  ;;  %v10413_v38 = vld [vmem:[%s19005_s0 + $0x3f8] sm:$0xff] }
 0x936   :  { %3665 = vrot.lane.b32.xlu1 %v10411_v2, %s10488_s9  ;;  %v17544_v40 = vpop.permute.xlu1 %3537  ;;  %v17546_v10 = vpop.permute.xlu0 %3543  ;;  %v10414_v2 = vld [vmem:[%s19005_s0 + $0x400] sm:$0xff] }
 0x937   :  { %20252 = vst [vmem:[#allocation110_spill] sm:$0xff] %v17544_v40  ;;  %20253 = vst [vmem:[#allocation107_spill] sm:$0xff] %v17546_v10  ;;  %3667 = vrot.lane.b32.xlu0 %v10412_v63, %s10488_s9  ;;  %v10415_v63 = vld [vmem:[%s19005_s0 + $0x408] sm:$0xff] }
 0x93a   :  { %3669 = vrot.lane.b32.xlu1 %v10413_v38, %s10488_s9  ;;  %v17556_v9 = vpop.permute.xlu1 %3541  ;;  %v17558_v5 = vpop.permute.xlu0 %3547  ;;  %v10416_v38 = vld [vmem:[%s19005_s0 + $0x410] sm:$0xff] }
 0x93b   :  { %20254 = vst [vmem:[#allocation109_spill] sm:$0xff] %v17556_v9  ;;  %20255 = vst [vmem:[#allocation106_spill] sm:$0xff] %v17558_v5  ;;  %3671 = vrot.lane.b32.xlu0 %v10414_v2, %s10488_s9  ;;  %v10417_v2 = vld [vmem:[%s19005_s0 + $0x418] sm:$0xff] }
 0x93e   :  { %3673 = vrot.lane.b32.xlu1 %v10415_v63, %s10488_s9  ;;  %v17568_v10 = vpop.permute.xlu1 %3545  ;;  %v17570_v40 = vpop.permute.xlu0 %3551  ;;  %v10418_v63 = vld [vmem:[%s19005_s0 + $0x420] sm:$0xff] }
 0x93f   :  { %20256 = vst [vmem:[#allocation111_spill] sm:$0xff] %v17568_v10  ;;  %20257 = vst [vmem:[#allocation108_spill] sm:$0xff] %v17570_v40  ;;  %3675 = vrot.lane.b32.xlu0 %v10416_v38, %s10488_s9  ;;  %v10419_v38 = vld [vmem:[%s19005_s0 + $0x428] sm:$0xff] }
 0x942   :  { %3677 = vrot.lane.b32.xlu1 %v10417_v2, %s10488_s9  ;;  %v17580_v9 = vpop.permute.xlu1 %3549  ;;  %v17582_v8 = vpop.permute.xlu0 %3555  ;;  %v10420_v2 = vld [vmem:[%s19005_s0 + $0x430] sm:$0xff] }
 0x943   :  { %20258 = vst [vmem:[#allocation114_spill] sm:$0xff] %v17580_v9  ;;  %20259 = vst [vmem:[#allocation113_spill] sm:$0xff] %v17582_v8  ;;  %3679 = vrot.lane.b32.xlu0 %v10418_v63, %s10488_s9  ;;  %v10421_v63 = vld [vmem:[%s19005_s0 + $0x438] sm:$0xff] }
 0x946   :  { %3681 = vrot.lane.b32.xlu1 %v10419_v38, %s10488_s9  ;;  %v17592_v10 = vpop.permute.xlu1 %3553  ;;  %v17594_v40 = vpop.permute.xlu0 %3559  ;;  %v10422_v38 = vld [vmem:[%s19005_s0 + $0x440] sm:$0xff] }
 0x947   :  { %20260 = vst [vmem:[#allocation112_spill] sm:$0xff] %v17592_v10  ;;  %20261 = vst [vmem:[#allocation115_spill] sm:$0xff] %v17594_v40  ;;  %3683 = vrot.lane.b32.xlu0 %v10420_v2, %s10488_s9  ;;  %v10423_v2 = vld [vmem:[%s19005_s0 + $0x448] sm:$0xff] }
 0x94a   :  { %3685 = vrot.lane.b32.xlu1 %v10421_v63, %s10488_s9  ;;  %v17604_v8 = vpop.permute.xlu1 %3557  ;;  %v17606_v9 = vpop.permute.xlu0 %3563  ;;  %v10424_v63 = vld [vmem:[%s19005_s0 + $0x450] sm:$0xff] }
 0x94b   :  { %20262 = vst [vmem:[#allocation117_spill] sm:$0xff] %v17604_v8  ;;  %20263 = vst [vmem:[#allocation116_spill] sm:$0xff] %v17606_v9  ;;  %3687 = vrot.lane.b32.xlu0 %v10422_v38, %s10488_s9  ;;  %v10425_v38 = vld [vmem:[%s19005_s0 + $0x458] sm:$0xff] }
 0x94e   :  { %3689 = vrot.lane.b32.xlu1 %v10423_v2, %s10488_s9  ;;  %v17616_v40 = vpop.permute.xlu1 %3561  ;;  %v17618_v10 = vpop.permute.xlu0 %3567  ;;  %v10426_v2 = vld [vmem:[%s19005_s0 + $0x460] sm:$0xff] }
 0x94f   :  { %20264 = vst [vmem:[#allocation118_spill] sm:$0xff] %v17616_v40  ;;  %3691 = vrot.lane.b32.xlu0 %v10424_v63, %s10488_s9  ;;  %v10427_v63 = vld [vmem:[%s19005_s0 + $0x468] sm:$0xff] }
 0x952   :  { %3693 = vrot.lane.b32.xlu1 %v10425_v38, %s10488_s9  ;;  %v17628_v9 = vpop.permute.xlu1 %3565  ;;  %v17630_v8 = vpop.permute.xlu0 %3571  ;;  %v10428_v38 = vld [vmem:[%s19005_s0 + $0x470] sm:$0xff] }
 0x953   :  { %20265 = vst [vmem:[#allocation119_spill] sm:$0xff] %v17628_v9  ;;  %20266 = vst [vmem:[#allocation120_spill] sm:$0xff] %v17630_v8  ;;  %3695 = vrot.lane.b32.xlu0 %v10426_v2, %s10488_s9  ;;  %v10429_v2 = vld [vmem:[%s19005_s0 + $0x478] sm:$0xff] }
 0x956   :  { %3697 = vrot.lane.b32.xlu1 %v10427_v63, %s10488_s9  ;;  %v17640_v40 = vpop.permute.xlu1 %3569  ;;  %v17642_v13 = vpop.permute.xlu0 %3575  ;;  %v10430_v63 = vld [vmem:[%s19005_s0 + $0x480] sm:$0xff] }
 0x957   :  { %20267 = vst [vmem:[#allocation121_spill] sm:$0xff] %v17640_v40  ;;  %20268 = vst [vmem:[#allocation122_spill] sm:$0xff] %v17642_v13  ;;  %3699 = vrot.lane.b32.xlu0 %v10428_v38, %s10488_s9  ;;  %v10431_v38 = vld [vmem:[%s19005_s0 + $0x488] sm:$0xff]  ;;  %v20300_v40 = vld [vmem:[#allocation80_spill] sm:$0xff] }
 0x95a   :  { %3701 = vrot.lane.b32.xlu1 %v10429_v2, %s10488_s9  ;;  %v17652_v24 = vpop.permute.xlu1 %3573  ;;  %v17654_v14 = vpop.permute.xlu0 %3579  ;;  %v10432_v2 = vld [vmem:[%s19005_s0 + $0x490] sm:$0xff] }
 0x95b   :  { %20269 = vst [vmem:[#allocation123_spill] sm:$0xff] %v17652_v24  ;;  %20270 = vst [vmem:[#allocation124_spill] sm:$0xff] %v17654_v14  ;;  %3703 = vrot.lane.b32.xlu0 %v10430_v63, %s10488_s9  ;;  %v10433_v63 = vld [vmem:[%s19005_s0 + $0x498] sm:$0xff] }
 0x95e   :  { %3705 = vrot.lane.b32.xlu1 %v10431_v38, %s10488_s9  ;;  %v17664_v23 = vpop.permute.xlu1 %3577  ;;  %v17666_v5 = vpop.permute.xlu0 %3583  ;;  %v10434_v38 = vld [vmem:[%s19005_s0 + $0x4a0] sm:$0xff] }
 0x95f   :  { %20271 = vst [vmem:[#allocation125_spill] sm:$0xff] %v17664_v23  ;;  %20272 = vst [vmem:[#allocation126_spill] sm:$0xff] %v17666_v5  ;;  %3707 = vrot.lane.b32.xlu0 %v10432_v2, %s10488_s9  ;;  %v10435_v2 = vld [vmem:[%s19005_s0 + $0x4a8] sm:$0xff] }
 0x962   :  { %3709 = vrot.lane.b32.xlu1 %v10433_v63, %s10488_s9  ;;  %v17676_v14 = vpop.permute.xlu1 %3581  ;;  %v17678_v13 = vpop.permute.xlu0 %3587  ;;  %v10436_v63 = vld [vmem:[%s19005_s0 + $0x4b0] sm:$0xff] }
 0x963   :  { %20273 = vst [vmem:[#allocation127_spill] sm:$0xff] %v17676_v14  ;;  %20274 = vst [vmem:[#allocation26_spill] sm:$0xff] %v17678_v13  ;;  %3711 = vrot.lane.b32.xlu0 %v10434_v38, %s10488_s9  ;;  %v10437_v38 = vld [vmem:[%s19005_s0 + $0x4b8] sm:$0xff] }
 0x966   :  { %3713 = vrot.lane.b32.xlu1 %v10435_v2, %s10488_s9  ;;  %v17688_v5 = vpop.permute.xlu1 %3585  ;;  %v17690_v23 = vpop.permute.xlu0 %3591  ;;  %v10438_v2 = vld [vmem:[%s19005_s0 + $0x4c0] sm:$0xff] }
 0x967   :  { %20275 = vst [vmem:[#allocation128_spill] sm:$0xff] %v17688_v5  ;;  %20276 = vst [vmem:[#allocation21_spill] sm:$0xff] %v17690_v23  ;;  %3715 = vrot.lane.b32.xlu0 %v10436_v63, %s10488_s9  ;;  %v10439_v63 = vld [vmem:[%s19005_s0 + $0x4c8] sm:$0xff] }
 0x96a   :  { %3717 = vrot.lane.b32.xlu1 %v10437_v38, %s10488_s9  ;;  %v17700_v13 = vpop.permute.xlu1 %3589  ;;  %v17702_v14 = vpop.permute.xlu0 %3595  ;;  %v10440_v38 = vld [vmem:[%s19005_s0 + $0x4d0] sm:$0xff] }
 0x96b   :  { %20277 = vst [vmem:[#allocation31_spill] sm:$0xff] %v17700_v13  ;;  %20278 = vst [vmem:[#allocation22_spill] sm:$0xff] %v17702_v14  ;;  %3719 = vrot.lane.b32.xlu0 %v10438_v2, %s10488_s9  ;;  %v10441_v2 = vld [vmem:[%s19005_s0 + $0x4d8] sm:$0xff] }
 0x96e   :  { %3721 = vrot.lane.b32.xlu1 %v10439_v63, %s10488_s9  ;;  %v17712_v23 = vpop.permute.xlu1 %3593  ;;  %v17714_v5 = vpop.permute.xlu0 %3599  ;;  %v10442_v63 = vld [vmem:[%s19005_s0 + $0x4e0] sm:$0xff] }
 0x96f   :  { %20279 = vst [vmem:[#allocation32_spill] sm:$0xff] %v17712_v23  ;;  %20280 = vst [vmem:[#allocation28_spill] sm:$0xff] %v17714_v5  ;;  %3723 = vrot.lane.b32.xlu0 %v10440_v38, %s10488_s9  ;;  %v10443_v38 = vld [vmem:[%s19005_s0 + $0x4e8] sm:$0xff] }
 0x972   :  { %3725 = vrot.lane.b32.xlu1 %v10441_v2, %s10488_s9  ;;  %v17724_v14 = vpop.permute.xlu1 %3597  ;;  %v17726_v13 = vpop.permute.xlu0 %3603  ;;  %v10444_v2 = vld [vmem:[%s19005_s0 + $0x4f0] sm:$0xff] }
 0x973   :  { %20281 = vst [vmem:[#allocation34_spill] sm:$0xff] %v17724_v14  ;;  %20282 = vst [vmem:[#allocation36_spill] sm:$0xff] %v17726_v13  ;;  %3727 = vrot.lane.b32.xlu0 %v10442_v63, %s10488_s9  ;;  %v10445_v63 = vld [vmem:[%s19005_s0 + $0x4f8] sm:$0xff] }
 0x976   :  { %3729 = vrot.lane.b32.xlu1 %v10443_v38, %s10488_s9  ;;  %v17736_v23 = vpop.permute.xlu1 %3601  ;;  %v17738_v5 = vpop.permute.xlu0 %3607  ;;  %v10446_v38 = vld [vmem:[%s19005_s0 + $0x500] sm:$0xff] }
 0x977   :  { %20283 = vst [vmem:[#allocation25_spill] sm:$0xff] %v17736_v23  ;;  %20284 = vst [vmem:[#allocation24_spill] sm:$0xff] %v17738_v5  ;;  %3731 = vrot.lane.b32.xlu0 %v10444_v2, %s10488_s9  ;;  %v10447_v2 = vld [vmem:[%s19005_s0 + $0x508] sm:$0xff] }
 0x97a   :  { %3733 = vrot.lane.b32.xlu1 %v10445_v63, %s10488_s9  ;;  %v17748_v13 = vpop.permute.xlu1 %3605  ;;  %v17750_v14 = vpop.permute.xlu0 %3611  ;;  %v10448_v63 = vld [vmem:[%s19005_s0 + $0x510] sm:$0xff] }
 0x97b   :  { %20285 = vst [vmem:[#allocation33_spill] sm:$0xff] %v17748_v13  ;;  %20286 = vst [vmem:[#allocation35_spill] sm:$0xff] %v17750_v14  ;;  %3735 = vrot.lane.b32.xlu0 %v10446_v38, %s10488_s9  ;;  %v10449_v38 = vld [vmem:[%s19005_s0 + $0x518] sm:$0xff] }
 0x97e   :  { %3737 = vrot.lane.b32.xlu1 %v10447_v2, %s10488_s9  ;;  %v17760_v5 = vpop.permute.xlu1 %3609  ;;  %v17762_v23 = vpop.permute.xlu0 %3615  ;;  %v10450_v2 = vld [vmem:[%s19005_s0 + $0x520] sm:$0xff] }
 0x97f   :  { %20287 = vst [vmem:[#allocation23_spill] sm:$0xff] %v17760_v5  ;;  %20288 = vst [vmem:[#allocation30_spill] sm:$0xff] %v17762_v23  ;;  %3739 = vrot.lane.b32.xlu0 %v10448_v63, %s10488_s9  ;;  %v10451_v63 = vld [vmem:[%s19005_s0 + $0x528] sm:$0xff] }
 0x982   :  { %3741 = vrot.lane.b32.xlu1 %v10449_v38, %s10488_s9  ;;  %v17772_v14 = vpop.permute.xlu1 %3613  ;;  %v17774_v13 = vpop.permute.xlu0 %3619  ;;  %v10452_v38 = vld [vmem:[%s19005_s0 + $0x530] sm:$0xff] }
 0x983   :  { %20289 = vst [vmem:[#allocation48_spill] sm:$0xff] %v17772_v14  ;;  %20290 = vst [vmem:[#allocation42_spill] sm:$0xff] %v17774_v13  ;;  %3743 = vrot.lane.b32.xlu0 %v10450_v2, %s10488_s9  ;;  %v10453_v2 = vld [vmem:[%s19005_s0 + $0x538] sm:$0xff]  ;;  %v20297_v13 = vld [vmem:[#allocation75_spill] sm:$0xff] }
 0x986   :  { %3745 = vrot.lane.b32.xlu1 %v10451_v63, %s10488_s9  ;;  %v17784_v5 = vpop.permute.xlu1 %3617  ;;  %v17786_v32 = vpop.permute.xlu0 %3623  ;;  %v10454_v63 = vld [vmem:[%s19005_s0 + $0x540] sm:$0xff] }
 0x987   :  { %20291 = vst [vmem:[#allocation43_spill] sm:$0xff] %v17784_v5  ;;  %20292 = vst [vmem:[#allocation19_spill] sm:$0xff] %v17786_v32  ;;  %3747 = vrot.lane.b32.xlu0 %v10452_v38, %s10488_s9  ;;  %v10455_v38 = vld [vmem:[%s19005_s0 + $0x548] sm:$0xff] }
 0x98a   :  { %3749 = vrot.lane.b32.xlu1 %v10453_v2, %s10488_s9  ;;  %v17796_v14 = vpop.permute.xlu1 %3621  ;;  %v17798_v24 = vpop.permute.xlu0 %3627  ;;  %v10456_v2 = vld [vmem:[%s19005_s0 + $0x550] sm:$0xff] }
 0x98b   :  { %20293 = vst [vmem:[#allocation38_spill] sm:$0xff] %v17796_v14  ;;  %20294 = vst [vmem:[#allocation50_spill] sm:$0xff] %v17798_v24  ;;  %3751 = vrot.lane.b32.xlu0 %v10454_v63, %s10488_s9 }
 0x98e   :  { %3753 = vrot.lane.b32.xlu1 %v10455_v38, %s10488_s9  ;;  %v17808_v32 = vpop.permute.xlu1 %3625  ;;  %v17810_v28 = vpop.permute.xlu0 %3631 }
 0x98f   :  { %20295 = vst [vmem:[#allocation39_spill] sm:$0xff] %v17808_v32  ;;  %20296 = vst [vmem:[#allocation44_spill] sm:$0xff] %v17810_v28  ;;  %3755 = vrot.lane.b32.xlu0 %v10456_v2, %s10488_s9  ;;  %v10457_v28 = vld [vmem:[%s19005_s0 + $0x558] sm:$0xff] }
 0x990   :  { %v9659_v24 = vpop.f32.mrb[4].mxu0  ;;  %v9748_v14 = vpop.f32.mrb[4].mxu1 }
 0x991   :  { %v9660_v63 = vadd.f32 %v9659_v24, %v20297_v13  ;;  %v9749_v8 = vadd.f32 %v9748_v14, %v20298_v43  ;;  %v9661_v23 = vpop.f32.mrb[5].mxu0  ;;  %v9750_v5 = vpop.f32.mrb[5].mxu1  ;;  %v10458_v24 = vld [vmem:[%s19005_s0 + $0x560] sm:$0xff]  ;;  %v10459_v14 = vld [vmem:[%s19005_s0 + $0x568] sm:$0xff] }
 0x992   :  { %v9662_v38 = vadd.f32 %v9661_v23, %v20299_v57  ;;  %v9751_v32 = vadd.f32 %v9750_v5, %v20300_v40  ;;  %3757 = vrot.lane.b32.xlu1 %v10457_v28, %s10488_s9  ;;  %v17824_v9 = vpop.permute.xlu1 %3629  ;;  %v17826_v2 = vpop.permute.xlu0 %3635  ;;  %v10460_v5 = vld [vmem:[%s19005_s0 + $0x570] sm:$0xff]  ;;  %v10461_v28 = vld [vmem:[%s19005_s0 + $0x578] sm:$0xff] }
 0x993   :  { %20301 = vst [vmem:[#allocation45_spill] sm:$0xff] %v17824_v9  ;;  %20302 = vst [vmem:[#allocation40_spill] sm:$0xff] %v17826_v2  ;;  %3759 = vrot.lane.b32.xlu0 %v10458_v24, %s10488_s9  ;;  %v10463_v24 = vld [vmem:[%s19005_s0 + $0x588] sm:$0xff] }
 0x994   :  { %9767 = vst [vmem:[%s19008_s3 + $0x40] sm:$0xff] %v9660_v63  ;;  %9769 = vst [vmem:[%s19008_s3 + $0x50] sm:$0xff] %v9749_v8 }
 0x995   :  { %9768 = vst [vmem:[%s19008_s3 + $0x48] sm:$0xff] %v9662_v38  ;;  %9770 = vst [vmem:[%s19008_s3 + $0x58] sm:$0xff] %v9751_v32  ;;  %v10462_v38 = vld [vmem:[%s19005_s0 + $0x580] sm:$0xff] }
 0x996   :  { %3761 = vrot.lane.b32.xlu1 %v10459_v14, %s10488_s9  ;;  %v17848_v8 = vpop.permute.xlu1 %3633  ;;  %v17850_v23 = vpop.permute.xlu0 %3639 }
 0x997   :  { %20303 = vst [vmem:[#allocation52_spill] sm:$0xff] %v17848_v8  ;;  %20304 = vst [vmem:[#allocation47_spill] sm:$0xff] %v17850_v23  ;;  %3763 = vrot.lane.b32.xlu0 %v10460_v5, %s10488_s9 }
 0x99a   :  { %3765 = vrot.lane.b32.xlu1 %v10461_v28, %s10488_s9  ;;  %v17860_v32 = vpop.permute.xlu1 %3637  ;;  %v17862_v63 = vpop.permute.xlu0 %3643  ;;  %v10464_v28 = vld [vmem:[%s19005_s0 + $0x590] sm:$0xff] }
 0x99b   :  { %20305 = vst [vmem:[#allocation37_spill] sm:$0xff] %v17860_v32  ;;  %20306 = vst [vmem:[#allocation46_spill] sm:$0xff] %v17862_v63  ;;  %3767 = vrot.lane.b32.xlu0 %v10462_v38, %s10488_s9  ;;  %v10465_v38 = vld [vmem:[%s19005_s0 + $0x598] sm:$0xff] }
 0x99e   :  { %3769 = vrot.lane.b32.xlu1 %v10463_v24, %s10488_s9  ;;  %v17872_v14 = vpop.permute.xlu1 %3641  ;;  %v17874_v5 = vpop.permute.xlu0 %3647  ;;  %v10466_v24 = vld [vmem:[%s19005_s0 + $0x5a0] sm:$0xff] }
 0x99f   :  { %20307 = vst [vmem:[#allocation20_spill] sm:$0xff] %v17872_v14  ;;  %20308 = vst [vmem:[#allocation41_spill] sm:$0xff] %v17874_v5  ;;  %3771 = vrot.lane.b32.xlu0 %v10464_v28, %s10488_s9  ;;  %v10467_v28 = vld [vmem:[%s19005_s0 + $0x5a8] sm:$0xff] }
 0x9a2   :  { %3773 = vrot.lane.b32.xlu1 %v10465_v38, %s10488_s9  ;;  %v17884_v40 = vpop.permute.xlu1 %3645  ;;  %v17886_v57 = vpop.permute.xlu0 %3651  ;;  %v10468_v38 = vld [vmem:[%s19005_s0 + $0x5b0] sm:$0xff] }
 0x9a3   :  { %20309 = vst [vmem:[#allocation54_spill] sm:$0xff] %v17884_v40  ;;  %20310 = vst [vmem:[#allocation27_spill] sm:$0xff] %v17886_v57  ;;  %3775 = vrot.lane.b32.xlu0 %v10466_v24, %s10488_s9  ;;  %v10469_v24 = vld [vmem:[%s19005_s0 + $0x5b8] sm:$0xff] }
 0x9a6   :  { %3777 = vrot.lane.b32.xlu1 %v10467_v28, %s10488_s9  ;;  %v17896_v43 = vpop.permute.xlu1 %3649  ;;  %v17898_v13 = vpop.permute.xlu0 %3655  ;;  %v10470_v28 = vld [vmem:[%s19005_s0 + $0x5c0] sm:$0xff] }
 0x9a7   :  { %20311 = vst [vmem:[#allocation49_spill] sm:$0xff] %v17896_v43  ;;  %20312 = vst [vmem:[#allocation56_spill] sm:$0xff] %v17898_v13  ;;  %3779 = vrot.lane.b32.xlu0 %v10468_v38, %s10488_s9  ;;  %v10471_v38 = vld [vmem:[%s19005_s0 + $0x5c8] sm:$0xff] }
 0x9aa   :  { %3781 = vrot.lane.b32.xlu1 %v10469_v24, %s10488_s9  ;;  %v17908_v40 = vpop.permute.xlu1 %3653  ;;  %v17910_v63 = vpop.permute.xlu0 %3659  ;;  %v10472_v24 = vld [vmem:[%s19005_s0 + $0x5d0] sm:$0xff] }
 0x9ab   :  { %20313 = vst [vmem:[#allocation51_spill] sm:$0xff] %v17908_v40  ;;  %20314 = vst [vmem:[#allocation53_spill] sm:$0xff] %v17910_v63  ;;  %3783 = vrot.lane.b32.xlu0 %v10470_v28, %s10488_s9  ;;  %v10473_v28 = vld [vmem:[%s19005_s0 + $0x5d8] sm:$0xff] }
 0x9ae   :  { %3785 = vrot.lane.b32.xlu1 %v10471_v38, %s10488_s9  ;;  %v17920_v14 = vpop.permute.xlu1 %3657  ;;  %v17922_v23 = vpop.permute.xlu0 %3663  ;;  %v10474_v38 = vld [vmem:[%s19005_s0 + $0x5e0] sm:$0xff] }
 0x9af   :  { %20315 = vst [vmem:[#allocation29_spill] sm:$0xff] %v17920_v14  ;;  %20316 = vst [vmem:[#allocation58_spill] sm:$0xff] %v17922_v23  ;;  %3787 = vrot.lane.b32.xlu0 %v10472_v24, %s10488_s9  ;;  %v10475_v24 = vld [vmem:[%s19005_s0 + $0x5e8] sm:$0xff] }
 0x9b2   :  { %3789 = vrot.lane.b32.xlu1 %v10473_v28, %s10488_s9  ;;  %v17932_v63 = vpop.permute.xlu1 %3661  ;;  %v17934_v32 = vpop.permute.xlu0 %3667  ;;  %v10476_v28 = vld [vmem:[%s19005_s0 + $0x5f0] sm:$0xff] }
 0x9b3   :  { %20317 = vst [vmem:[#allocation55_spill] sm:$0xff] %v17932_v63  ;;  %3791 = vrot.lane.b32.xlu0 %v10474_v38, %s10488_s9  ;;  %v10477_v38 = vld [vmem:[%s19005_s0 + $0x5f8] sm:$0xff] }
 0x9b6   :  { %3793 = vrot.lane.b32.xlu1 %v10475_v24, %s10488_s9  ;;  %v17944_v23 = vpop.permute.xlu1 %3665  ;;  %v17946_v14 = vpop.permute.xlu0 %3671  ;;  %v10478_v24 = vld [vmem:[%s19005_s0 + $0x600] sm:$0xff] }
 0x9b7   :  { %3795 = vrot.lane.b32.xlu0 %v10476_v28, %s10488_s9  ;;  %v10479_v28 = vld [vmem:[%s19005_s0 + $0x608] sm:$0xff] }
 0x9ba   :  { %3797 = vrot.lane.b32.xlu1 %v10477_v38, %s10488_s9  ;;  %v17956_v63 = vpop.permute.xlu1 %3669  ;;  %v17958_v2 = vpop.permute.xlu0 %3675  ;;  %v10480_v38 = vld [vmem:[%s19005_s0 + $0x610] sm:$0xff] }
 0x9bb   :  { %20318 = vst [vmem:[#allocation60_spill] sm:$0xff] %v17958_v2  ;;  %3799 = vrot.lane.b32.xlu0 %v10478_v24, %s10488_s9  ;;  %v10481_v24 = vld [vmem:[%s19005_s0 + $0x618] sm:$0xff] }
 0x9be   :  { %3801 = vrot.lane.b32.xlu1 %v10479_v28, %s10488_s9  ;;  %v17968_v13 = vpop.permute.xlu1 %3673  ;;  %v17970_v40 = vpop.permute.xlu0 %3679  ;;  %v10482_v28 = vld [vmem:[%s19005_s0 + $0x620] sm:$0xff] }
 0x9bf   :  { %20319 = vst [vmem:[#allocation57_spill] sm:$0xff] %v17968_v13  ;;  %20320 = vst [vmem:[#allocation62_spill] sm:$0xff] %v17970_v40  ;;  %3803 = vrot.lane.b32.xlu0 %v10480_v38, %s10488_s9  ;;  %v10483_v38 = vld [vmem:[%s19005_s0 + $0x628] sm:$0xff] }
 0x9c2   :  { %3805 = vrot.lane.b32.xlu1 %v10481_v24, %s10488_s9  ;;  %v17980_v8 = vpop.permute.xlu1 %3677  ;;  %v17982_v57 = vpop.permute.xlu0 %3683  ;;  %v10484_v24 = vld [vmem:[%s19005_s0 + $0x630] sm:$0xff] }
 0x9c3   :  { %20321 = vst [vmem:[#allocation59_spill] sm:$0xff] %v17980_v8  ;;  %20322 = vst [vmem:[#allocation64_spill] sm:$0xff] %v17982_v57  ;;  %3807 = vrot.lane.b32.xlu0 %v10482_v28, %s10488_s9  ;;  %v10485_v28 = vld [vmem:[%s19005_s0 + $0x638] sm:$0xff] }
 0x9c6   :  { %3809 = vrot.lane.b32.xlu1 %v10483_v38, %s10488_s9  ;;  %v17992_v40 = vpop.permute.xlu1 %3681  ;;  %v17994_v43 = vpop.permute.xlu0 %3687 }
 0x9c7   :  { %20323 = vst [vmem:[#allocation61_spill] sm:$0xff] %v17992_v40  ;;  %20324 = vst [vmem:[#allocation66_spill] sm:$0xff] %v17994_v43  ;;  %3811 = vrot.lane.b32.xlu0 %v10484_v24, %s10488_s9 }
 0x9ca   :  { %3813 = vrot.lane.b32.xlu1 %v10485_v28, %s10488_s9  ;;  %v18004_v57 = vpop.permute.xlu1 %3685  ;;  %v18006_v8 = vpop.permute.xlu0 %3691 }
 0x9cb   :  { %20325 = vst [vmem:[#allocation63_spill] sm:$0xff] %v18004_v57  ;;  %20326 = vst [vmem:[#allocation67_spill] sm:$0xff] %v18006_v8 }
 0x9ce   :  { %v18008_v38 = vpop.permute.xlu1 %3689  ;;  %v18010_v40 = vpop.permute.xlu0 %3695 }
 0x9cf   :  { %20327 = vst [vmem:[#allocation65_spill] sm:$0xff] %v18008_v38  ;;  %20328 = vst [vmem:[#allocation78_spill] sm:$0xff] %v18010_v40  ;;  %v4015_v40 = vsel %vm20336_vm11, %v17165_v51, 0.0 }
 0x9d0   :  { %vm20344_vm11 = vmmov %vm20338_vm0 }
 0x9d2   :  { %v18012_v43 = vpop.permute.xlu1 %3693  ;;  %v18014_v9 = vpop.permute.xlu0 %3699 }
 0x9d3   :  { %20329 = vst [vmem:[#allocation83_spill] sm:$0xff] %v18012_v43 }
 0x9d6   :  { %v18016_v5 = vpop.permute.xlu1 %3697  ;;  %v18018_v24 = vpop.permute.xlu0 %3703 }
 0x9d7   :  { %20330 = vst [vmem:[#allocation84_spill] sm:$0xff] %v18016_v5  ;;  %20331 = vst [vmem:[#allocation70_spill] sm:$0xff] %v18018_v24  ;;  %v4021_v24 = vsel %vm20338_vm0, %v17184_v6, 0.0  ;;  %v4030_v6 = vsel %vm20341_vm15, %v17208_v15, 0.0  ;;  %v4042_v15 = vsel %vm20338_vm0, %v17232_v42, 0.0 }
 0x9d8   :  { %vm20347_vm15 = vmmov %vm20338_vm0 }
 0x9da   :  { %v18020_v2 = vpop.permute.xlu1 %3701  ;;  %v18022_v13 = vpop.permute.xlu0 %3707 }
 0x9db   :  { %20332 = vst [vmem:[#allocation86_spill] sm:$0xff] %v18022_v13 }
 0x9de   :  { %v18024_v28 = vpop.permute.xlu1 %3705  ;;  %v18026_v57 = vpop.permute.xlu0 %3711 }
 0x9df   :  { %20333 = vst [vmem:[#allocation71_spill] sm:$0xff] %v18024_v28  ;;  %20334 = vst [vmem:[#allocation2_spill] sm:$0xff] %v18026_v57  ;;  %v4018_v57 = vsel %vm20339_vm13, %v17163_v47, 0.0  ;;  %v4036_v47 = vsel %vm20343_vm12, %v17220_v46, 0.0 }
 0x9e0   :  { %vm20345_vm13 = vmmov %vm20338_vm0 }
 0x9e1   :  { %vm20349_vm12 = vmmov %vm20338_vm0 }
 0x9e2   :  { %v18028_v8 = vpop.permute.xlu1 %3709  ;;  %v18030_v38 = vpop.permute.xlu0 %3715 }
 0x9e3   :  { %20335 = vst [vmem:[#allocation81_spill] sm:$0xff] %v18028_v8  ;;  %v4024_v8 = vsel %vm20340_vm14, %v17196_v61, 0.0  ;;  %vm20346_vm14 = vmmov %vm20338_vm0 }
 0x9e4   :  { %v4048_v46 = vsel %vm20346_vm14, %v17244_v31, 0.0  ;;  %vm20353_vm14 = vmmov %vm20338_vm0 }
 0x9e6   :  { %v18034_v43 = vpop.permute.xlu1 %3713  ;;  %4016 = vadd.xlane.f32.xlu0 %v4015_v40  ;;  %v18036_v5 = vpop.permute.xlu0 %3719 }
 0x9e7   :  { %20337 = vst [vmem:[#allocation85_spill] sm:$0xff] %v18034_v43 }
 0x9ea   :  { %v18040_v13 = vpop.permute.xlu1 %3717  ;;  %4022 = vadd.xlane.f32.xlu0 %v4021_v24  ;;  %v18042_v28 = vpop.permute.xlu0 %3723  ;;  %v4027_v24 = vsel %vm20342_vm9, %v17186_v11, 0.0  ;;  %v4039_v11 = vsel %vm20345_vm13, %v17210_v41, 0.0  ;;  %vm20348_vm9 = vmmov %vm20338_vm0  ;;  %v4051_v41 = vsel %vm20349_vm12, %v17234_v4, 0.0  ;;  %v4063_v4 = vsel %vm20353_vm14, %v17258_v20, 0.0 }
 0x9eb   :  { %v4054_v42 = vsel %vm20348_vm9, %v17256_v62, 0.0  ;;  %vm20352_vm13 = vmmov %vm20338_vm0 }
 0x9ec   :  { %v4066_v62 = vsel %vm20352_vm13, %v17280_v33, 0.0  ;;  %vm20356_vm9 = vmmov %vm20338_vm0 }
 0x9ed   :  { %vm20358_vm12 = vmmov %vm20338_vm0 }
 0x9ee   :  { %4019 = vadd.xlane.f32.xlu1 %v4018_v57  ;;  %v18048_v51 = vpop.permute.xlu1 %3721  ;;  %4025 = vadd.xlane.f32.xlu0 %v4024_v8  ;;  %v18050_v40 = vpop.permute.xlu0 %3727  ;;  %v4033_v57 = vsel %vm20344_vm11, %v17198_v1, 0.0  ;;  %v4045_v1 = vsel %vm20347_vm15, %v17222_v29, 0.0  ;;  %vm20350_vm11 = vmmov %vm20338_vm0  ;;  %v4057_v29 = vsel %vm20338_vm0, %v17246_v16, 0.0  ;;  %v4069_v16 = vsel %vm20356_vm9, %v17270_v26, 0.0 }
 0x9ef   :  { %v4060_v31 = vsel %vm20350_vm11, %v17268_v30, 0.0  ;;  %vm20355_vm15 = vmmov %vm20338_vm0  ;;  %v4078_v33 = vsel %vm20358_vm12, %v17304_v52, 0.0 }
 0x9f0   :  { %v4072_v30 = vsel %vm20355_vm15, %v17292_v39, 0.0  ;;  %vm20359_vm11 = vmmov %vm20338_vm0  ;;  %v4084_v39 = vsel %vm20338_vm0, %v17316_v18, 0.0 }
 0x9f1   :  { %v4075_v20 = vsel %vm20359_vm11, %v17282_v22, 0.0  ;;  %vm20360_vm13 = vmmov %vm20338_vm0 }
 0x9f2   :  { %4031 = vadd.xlane.f32.xlu1 %v4030_v6  ;;  %4028 = vadd.xlane.f32.xlu0 %v4027_v24  ;;  %v18056_v43 = vpop.permute.xlu1 %3725  ;;  %v18062_v61 = vpop.permute.xlu0 %3731  ;;  %v4081_v26 = vsel %vm20360_vm13, %v17294_v0, 0.0  ;;  %vm20361_vm14 = vmmov %vm20338_vm0 }
 0x9f3   :  { %v4090_v52 = vsel %vm20361_vm14, %v17328_v53, 0.0  ;;  %vm20362_vm15 = vmmov %vm20338_vm0 }
 0x9f4   :  { %v4087_v22 = vsel %vm20362_vm15, %v17306_v36, 0.0  ;;  %vm20363_vm9 = vmmov %vm20338_vm0  ;;  %v4099_v36 = vsel %vm20338_vm0, %v17330_v48, 0.0 }
 0x9f5   :  { %v4096_v18 = vsel %vm20363_vm9, %v17340_v34, 0.0  ;;  %vm20364_vm12 = vmmov %vm20338_vm0 }
 0x9f6   :  { %4037 = vadd.xlane.f32.xlu1 %v4036_v47  ;;  %4034 = vadd.xlane.f32.xlu0 %v4033_v57  ;;  %v18064_v8 = vpop.permute.xlu1 %3729  ;;  %v18070_v6 = vpop.permute.xlu0 %3735  ;;  %v4093_v0 = vsel %vm20364_vm12, %v17318_v55, 0.0  ;;  %vm20365_vm11 = vmmov %vm20338_vm0 }
 0x9f7   :  { %v4102_v53 = vsel %vm20365_vm11, %v17352_v25, 0.0  ;;  %vm20366_vm13 = vmmov %vm20338_vm0 }
 0x9f8   :  { %v4108_v34 = vsel %vm20366_vm13, %v17364_v7, 0.0  ;;  %vm20367_vm14 = vmmov %vm20338_vm0 }
 0x9f9   :  { %v4105_v55 = vsel %vm20367_vm14, %v17342_v59, 0.0  ;;  %vm20370_vm15 = vmmov %vm20338_vm0 }
 0x9fa   :  { %4043 = vadd.xlane.f32.xlu1 %v4042_v15  ;;  %4040 = vadd.xlane.f32.xlu0 %v4039_v11  ;;  %v18076_v24 = vpop.permute.xlu1 %3733  ;;  %v18082_v47 = vpop.permute.xlu0 %3739  ;;  %v4114_v25 = vsel %vm20370_vm15, %v17376_v49, 0.0  ;;  %vm20371_vm9 = vmmov %vm20338_vm0  ;;  %v4126_v49 = vsel %vm20338_vm0, %v17400_v19, 0.0 }
 0x9fb   :  { %v4111_v48 = vsel %vm20371_vm9, %v17354_v37, 0.0  ;;  %vm20372_vm12 = vmmov %vm20338_vm0 }
 0x9fc   :  { %v4120_v7 = vsel %vm20372_vm12, %v17388_v44, 0.0  ;;  %vm20373_vm11 = vmmov %vm20338_vm0 }
 0x9fd   :  { %v4117_v59 = vsel %vm20373_vm11, %v17366_v50, 0.0  ;;  %vm20374_vm13 = vmmov %vm20338_vm0 }
 0x9fe   :  { %4049 = vadd.xlane.f32.xlu1 %v4048_v46  ;;  %4046 = vadd.xlane.f32.xlu0 %v4045_v1  ;;  %v18084_v57 = vpop.permute.xlu1 %3737  ;;  %v18090_v15 = vpop.permute.xlu0 %3743  ;;  %v4123_v37 = vsel %vm20374_vm13, %v17378_v58, 0.0  ;;  %vm20375_vm14 = vmmov %vm20338_vm0 }
 0x9ff   :  { %20351 = vst [vmem:[#allocation88_spill] sm:$0xff] %v18090_v15  ;;  %v4132_v44 = vsel %vm20375_vm14, %v17412_v56, 0.0  ;;  %vm20376_vm15 = vmmov %vm20338_vm0  ;;  %v20450_v15 = vld [vmem:[#allocation101_spill] sm:$0xff] }
 0xa00   :  { %v4129_v50 = vsel %vm20376_vm15, %v17390_v12, 0.0  ;;  %vm20377_vm9 = vmmov %vm20338_vm0  ;;  %v4141_v12 = vsel %vm20338_vm0, %v17414_v27, 0.0 }
 0xa01   :  { %v4138_v19 = vsel %vm20377_vm9, %v17424_v45, 0.0  ;;  %vm20378_vm12 = vmmov %vm20338_vm0 }
 0xa02   :  { %4055 = vadd.xlane.f32.xlu1 %v4054_v42  ;;  %4052 = vadd.xlane.f32.xlu0 %v4051_v41  ;;  %v18096_v11 = vpop.permute.xlu1 %3741  ;;  %v18102_v46 = vpop.permute.xlu0 %3747  ;;  %v4135_v58 = vsel %vm20378_vm12, %v17402_v21, 0.0  ;;  %vm20379_vm11 = vmmov %vm20338_vm0 }
 0xa03   :  { %20354 = vst [vmem:[#allocation72_spill] sm:$0xff] %v18096_v11  ;;  %v4144_v56 = vsel %vm20379_vm11, %v17436_v54, 0.0  ;;  %vm20380_vm13 = vmmov %vm20338_vm0  ;;  %v20471_v11 = vld [vmem:[#allocation60_spill] sm:$0xff] }
 0xa04   :  { %v4165_v45 = vsel %vm20380_vm13, %v17462_v60, 0.0  ;;  %vm20381_vm14 = vmmov %vm20338_vm0 }
 0xa05   :  { %v4147_v21 = vsel %vm20381_vm14, %v17426_v35, 0.0  ;;  %vm20382_vm15 = vmmov %vm20338_vm0 }
 0xa06   :  { %4061 = vadd.xlane.f32.xlu1 %v4060_v31  ;;  %4058 = vadd.xlane.f32.xlu0 %v4057_v29  ;;  %v18104_v1 = vpop.permute.xlu1 %3745  ;;  %v18110_v42 = vpop.permute.xlu0 %3751  ;;  %v4171_v54 = vsel %vm20382_vm15, %v17474_v3, 0.0  ;;  %vm20383_vm9 = vmmov %vm20338_vm0  ;;  %v20387_v3 = vld [vmem:[#allocation121_spill] sm:$0xff] }
 0xa07   :  { %20357 = vst [vmem:[#allocation73_spill] sm:$0xff] %v18104_v1  ;;  %v4168_v27 = vsel %vm20383_vm9, %v17484_v17, 0.0  ;;  %vm20384_vm12 = vmmov %vm20338_vm0  ;;  %v20388_v17 = vld [vmem:[#allocation98_spill] sm:$0xff]  ;;  %v20437_v1 = vld [vmem:[#allocation7_spill] sm:$0xff] }
 0xa08   :  { %v4243_v60 = vsel %vm20384_vm12, %v17618_v10, 0.0  ;;  %vm20386_vm11 = vmmov %vm20338_vm0  ;;  %v20391_v10 = vld [vmem:[#allocation43_spill] sm:$0xff] }
 0xa09   :  { %vm20389_vm13 = vmmov %vm20338_vm0 }
 0xa0a   :  { %4067 = vadd.xlane.f32.xlu1 %v4066_v62  ;;  %4064 = vadd.xlane.f32.xlu0 %v4063_v4  ;;  %v18116_v41 = vpop.permute.xlu1 %3749  ;;  %v18122_v31 = vpop.permute.xlu0 %3755  ;;  %vm20392_vm14 = vmmov %vm20338_vm0 }
 0xa0b   :  { %vm20394_vm15 = vmmov %vm20338_vm0 }
 0xa0c   :  { %vm20397_vm9 = vmmov %vm20338_vm0 }
 0xa0d   :  { %vm20399_vm12 = vmmov %vm20338_vm0 }
 0xa0e   :  { %4073 = vadd.xlane.f32.xlu1 %v4072_v30  ;;  %4070 = vadd.xlane.f32.xlu0 %v4069_v16  ;;  %v18124_v29 = vpop.permute.xlu1 %3753  ;;  %v18130_v62 = vpop.permute.xlu0 %3759 }
 0xa12   :  { %4079 = vadd.xlane.f32.xlu1 %v4078_v33  ;;  %4076 = vadd.xlane.f32.xlu0 %v4075_v20  ;;  %v18136_v4 = vpop.permute.xlu1 %3757  ;;  %v18142_v30 = vpop.permute.xlu0 %3763 }
 0xa13   :  { %20368 = vst [vmem:[#allocation77_spill] sm:$0xff] %v18142_v30  ;;  %v20455_v30 = vld [vmem:[#allocation34_spill] sm:$0xff] }
 0xa16   :  { %4085 = vadd.xlane.f32.xlu1 %v4084_v39  ;;  %4082 = vadd.xlane.f32.xlu0 %v4081_v26  ;;  %v18144_v16 = vpop.permute.xlu1 %3761  ;;  %v18150_v33 = vpop.permute.xlu0 %3767 }
 0xa17   :  { %20369 = vst [vmem:[#allocation87_spill] sm:$0xff] %v18144_v16  ;;  %v20462_v16 = vld [vmem:[#allocation50_spill] sm:$0xff] }
 0xa1a   :  { %4091 = vadd.xlane.f32.xlu1 %v4090_v52  ;;  %4088 = vadd.xlane.f32.xlu0 %v4087_v22  ;;  %v18156_v20 = vpop.permute.xlu1 %3765  ;;  %v18162_v39 = vpop.permute.xlu0 %3771 }
 0xa1e   :  { %4097 = vadd.xlane.f32.xlu1 %v4096_v18  ;;  %4094 = vadd.xlane.f32.xlu0 %v4093_v0  ;;  %v18164_v26 = vpop.permute.xlu1 %3769  ;;  %v18170_v52 = vpop.permute.xlu0 %3775 }
 0xa22   :  { %4103 = vadd.xlane.f32.xlu1 %v4102_v53  ;;  %4100 = vadd.xlane.f32.xlu0 %v4099_v36  ;;  %v18176_v22 = vpop.permute.xlu1 %3773  ;;  %v18182_v18 = vpop.permute.xlu0 %3779 }
 0xa26   :  { %4109 = vadd.xlane.f32.xlu1 %v4108_v34  ;;  %4106 = vadd.xlane.f32.xlu0 %v4105_v55  ;;  %v18184_v0 = vpop.permute.xlu1 %3777  ;;  %v18190_v53 = vpop.permute.xlu0 %3783  ;;  %v20385_v34 = vld [vmem:[#allocation119_spill] sm:$0xff] }
 0xa27   :  { %v4240_v35 = vsel %vm20386_vm11, %v20385_v34, 0.0  ;;  %vm20402_vm11 = vmmov %vm20338_vm0 }
 0xa2a   :  { %4115 = vadd.xlane.f32.xlu1 %v4114_v25  ;;  %4112 = vadd.xlane.f32.xlu0 %v4111_v48  ;;  %v18196_v36 = vpop.permute.xlu1 %3781  ;;  %v18202_v55 = vpop.permute.xlu0 %3787  ;;  %v4246_v48 = vsel %vm20338_vm0, %v20387_v3, 0.0 }
 0xa2e   :  { %4121 = vadd.xlane.f32.xlu1 %v4120_v7  ;;  %4118 = vadd.xlane.f32.xlu0 %v4117_v59  ;;  %v18204_v25 = vpop.permute.xlu1 %3785  ;;  %v4174_v7 = vsel %vm20389_vm13, %v20388_v17, 0.0  ;;  %v18210_v59 = vpop.permute.xlu0 %3791  ;;  %vm20405_vm13 = vmmov %vm20338_vm0 }
 0xa2f   :  { %20390 = vst [vmem:[#allocation90_spill] sm:$0xff] %v18210_v59 }
 0xa32   :  { %4127 = vadd.xlane.f32.xlu1 %v4126_v49  ;;  %4124 = vadd.xlane.f32.xlu0 %v4123_v37  ;;  %v4318_v49 = vsel %vm20392_vm14, %v20391_v10, 0.0  ;;  %v20393_v37 = vld [vmem:[#allocation30_spill] sm:$0xff]  ;;  %vm20406_vm14 = vmmov %vm20338_vm0  ;;  %v20409_v10 = vld [vmem:[#allocation123_spill] sm:$0xff] }
 0xa36   :  { %4133 = vadd.xlane.f32.xlu1 %v4132_v44  ;;  %4130 = vadd.xlane.f32.xlu0 %v4129_v50  ;;  %v4315_v44 = vsel %vm20394_vm15, %v20393_v37, 0.0  ;;  %v18216_v50 = vpop.permute.xlu1 %3789  ;;  %vm20408_vm15 = vmmov %vm20338_vm0 }
 0xa37   :  { %20395 = vst [vmem:[#allocation82_spill] sm:$0xff] %v18216_v50  ;;  %v20464_v50 = vld [vmem:[#allocation28_spill] sm:$0xff] }
 0xa3a   :  { %4139 = vadd.xlane.f32.xlu1 %v4138_v19  ;;  %4136 = vadd.xlane.f32.xlu0 %v4135_v58  ;;  %v20396_v19 = vld [vmem:[#allocation120_spill] sm:$0xff] }
 0xa3b   :  { %v4249_v58 = vsel %vm20397_vm9, %v20396_v19, 0.0  ;;  %vm20410_vm9 = vmmov %vm20338_vm0 }
 0xa3e   :  { %4145 = vadd.xlane.f32.xlu1 %v4144_v56  ;;  %4142 = vadd.xlane.f32.xlu0 %v4141_v12  ;;  %v20398_v56 = vld [vmem:[#allocation97_spill] sm:$0xff] }
 0xa3f   :  { %v4177_v12 = vsel %vm20399_vm12, %v20398_v56, 0.0  ;;  %vm20411_vm12 = vmmov %vm20338_vm0  ;;  %v20413_v56 = vld [vmem:[#allocation99_spill] sm:$0xff] }
 0xa40   :  { %v4465_v19 = vsel %vm20411_vm12, %v18030_v38, 0.0  ;;  %vm20422_vm12 = vmmov %vm20338_vm0 }
 0xa42   :  { %4166 = vadd.xlane.f32.xlu1 %v4165_v45  ;;  %4148 = vadd.xlane.f32.xlu0 %v4147_v21  ;;  %v18222_v45 = vpop.permute.xlu0 %3795  ;;  %v18224_v21 = vpop.permute.xlu1 %3793 }
 0xa43   :  { %20400 = vst [vmem:[#allocation89_spill] sm:$0xff] %v18222_v45  ;;  %20401 = vst [vmem:[#allocation74_spill] sm:$0xff] %v18224_v21  ;;  %v20436_v45 = vld [vmem:[#allocation4_spill] sm:$0xff] }
 0xa44   :  { %v20438_v21 = vld [vmem:[#allocation8_spill] sm:$0xff] }
 0xa46   :  { %4172 = vadd.xlane.f32.xlu1 %v4171_v54  ;;  %4169 = vadd.xlane.f32.xlu0 %v4168_v27  ;;  %v4390_v54 = vsel %vm20402_vm11, %v17944_v23, 0.0  ;;  %v20403_v27 = vld [vmem:[#allocation42_spill] sm:$0xff]  ;;  %v18230_v34 = vpop.permute.xlu0 %3799  ;;  %v18236_v17 = vpop.permute.xlu1 %3797  ;;  %vm20412_vm11 = vmmov %vm20338_vm0 }
 0xa4a   :  { %4244 = vadd.xlane.f32.xlu1 %v4243_v60  ;;  %4241 = vadd.xlane.f32.xlu0 %v4240_v35  ;;  %v4321_v60 = vsel %vm20338_vm0, %v20403_v27, 0.0  ;;  %v20404_v35 = vld [vmem:[#allocation100_spill] sm:$0xff]  ;;  %v18242_v37 = vpop.permute.xlu0 %3803 }
 0xa4b   :  { %v4180_v3 = vsel %vm20405_vm13, %v20404_v35, 0.0  ;;  %vm20414_vm13 = vmmov %vm20338_vm0  ;;  %v20417_v35 = vld [vmem:[#allocation122_spill] sm:$0xff] }
 0xa4e   :  { %4247 = vadd.xlane.f32.xlu1 %v4246_v48  ;;  %4175 = vadd.xlane.f32.xlu0 %v4174_v7  ;;  %v4393_v48 = vsel %vm20406_vm14, %v17934_v32, 0.0  ;;  %v20407_v7 = vld [vmem:[#allocation38_spill] sm:$0xff]  ;;  %v4396_v32 = vsel %vm20412_vm11, %v17956_v63, 0.0  ;;  %vm20416_vm14 = vmmov %vm20338_vm0 }
 0xa4f   :  { %v4324_v23 = vsel %vm20408_vm15, %v20407_v7, 0.0  ;;  %vm20418_vm15 = vmmov %vm20338_vm0 }
 0xa50   :  { %v4255_v63 = vsel %vm20418_vm15, %v20417_v35, 0.0  ;;  %vm20423_vm11 = vmmov %vm20338_vm0  ;;  %v20430_v35 = vld [vmem:[#allocation5_spill] sm:$0xff] }
 0xa51   :  { %vm20433_vm15 = vmmov %vm20338_vm0 }
 0xa52   :  { %4319 = vadd.xlane.f32.xlu1 %v4318_v49  ;;  %4316 = vadd.xlane.f32.xlu0 %v4315_v44  ;;  %v4252_v49 = vsel %vm20410_vm9, %v20409_v10, 0.0  ;;  %v18244_v44 = vpop.permute.xlu1 %3801  ;;  %vm20421_vm9 = vmmov %vm20338_vm0  ;;  %v4540_v10 = vsel %vm20423_vm11, %v18156_v20, 0.0 }
 0xa53   :  { %v4471_v7 = vsel %vm20421_vm9, %v18036_v5, 0.0  ;;  %vm20435_vm9 = vmmov %vm20338_vm0 }
 0xa54   :  { %vm20442_vm11 = vmmov %vm20338_vm0 }
 0xa56   :  { %4250 = vadd.xlane.f32.xlu1 %v4249_v58  ;;  %4178 = vadd.xlane.f32.xlu0 %v4177_v12  ;;  %v18250_v58 = vpop.permute.xlu0 %3807  ;;  %v4183_v12 = vsel %vm20338_vm0, %v20413_v56, 0.0  ;;  %v18256_v27 = vpop.permute.xlu1 %3805  ;;  %v20425_v56 = vld [vmem:[#allocation106_spill] sm:$0xff] }
 0xa5a   :  { %4391 = vadd.xlane.f32.xlu1 %v4390_v54  ;;  %4322 = vadd.xlane.f32.xlu0 %v4321_v60  ;;  %v4468_v54 = vsel %vm20414_vm13, %v18040_v13, 0.0  ;;  %v20415_v60 = vld [vmem:[#allocation19_spill] sm:$0xff]  ;;  %v4399_v13 = vsel %vm20422_vm12, %v17946_v14, 0.0  ;;  %vm20426_vm13 = vmmov %vm20338_vm0 }
 0xa5b   :  { %v4327_v38 = vsel %vm20416_vm14, %v20415_v60, 0.0  ;;  %v4213_v5 = vsel %vm20426_vm13, %v20425_v56, 0.0  ;;  %vm20428_vm14 = vmmov %vm20338_vm0 }
 0xa5c   :  { %vm20440_vm12 = vmmov %vm20338_vm0 }
 0xa5d   :  { %vm20445_vm13 = vmmov %vm20338_vm0 }
 0xa5e   :  { %4181 = vadd.xlane.f32.xlu1 %v4180_v3  ;;  %4394 = vadd.xlane.f32.xlu0 %v4393_v48  ;;  %v18262_v3 = vpop.permute.xlu0 %3811  ;;  %v18264_v48 = vpop.permute.xlu1 %3809 }
 0xa5f   :  { %20419 = vst [vmem:[#allocation91_spill] sm:$0xff] %v18262_v3  ;;  %20420 = vst [vmem:[#allocation68_spill] sm:$0xff] %v18264_v48  ;;  %v20457_v48 = vld [vmem:[#allocation124_spill] sm:$0xff] }
 0xa62   :  { %4325 = vadd.xlane.f32.xlu1 %v4324_v23  ;;  %4253 = vadd.xlane.f32.xlu0 %v4252_v49  ;;  %v4543_v49 = vsel %vm20338_vm0, %v18150_v33, 0.0  ;;  %v20431_v33 = vld [vmem:[#allocation6_spill] sm:$0xff] }
 0xa66   :  { %4466 = vadd.xlane.f32.xlu1 %v4465_v19  ;;  %4397 = vadd.xlane.f32.xlu0 %v4396_v32  ;;  %v18274_v19 = vpop.permute.xlu1 %3813 }
 0xa67   :  { %20424 = vst [vmem:[#allocation69_spill] sm:$0xff] %v18274_v19 }
 0xa6a   :  { %4184 = vadd.xlane.f32.xlu1 %v4183_v12  ;;  %4469 = vadd.xlane.f32.xlu0 %v4468_v54  ;;  %v20427_v12 = vld [vmem:[#allocation102_spill] sm:$0xff] }
 0xa6b   :  { %v4186_v14 = vsel %vm20428_vm14, %v20427_v12, 0.0  ;;  %vm20449_vm14 = vmmov %vm20338_vm0 }
 0xa6e   :  { %4328 = vadd.xlane.f32.xlu1 %v4327_v38  ;;  %4256 = vadd.xlane.f32.xlu0 %v4255_v63  ;;  %v20429_v38 = vld [vmem:[#allocation3_spill] sm:$0xff] }
 0xa72   :  { %4472 = vadd.xlane.f32.xlu1 %v4471_v7  ;;  %4400 = vadd.xlane.f32.xlu0 %v4399_v13  ;;  %v20432_v13 = vld [vmem:[#allocation125_spill] sm:$0xff] }
 0xa73   :  { %v4017_v23 = vpop.xlane.xlu0 %4016 }
 0xa74   :  { %v8454_v20 = vrot.slane %v4017_v23, %v20429_v38 }
 0xa76   :  { %4541 = vadd.xlane.f32.xlu0 %v4540_v10  ;;  %4544 = vadd.xlane.f32.xlu1 %v4543_v49  ;;  %v4258_v10 = vsel %vm20433_vm15, %v20432_v13, 0.0  ;;  %v20434_v49 = vld [vmem:[#allocation114_spill] sm:$0xff]  ;;  %v20439_v13 = vld [vmem:[#allocation57_spill] sm:$0xff]  ;;  %vm20451_vm15 = vmmov %vm20338_vm0 }
 0xa77   :  { %v4023_v32 = vpop.xlane.xlu0 %4022  ;;  %v4216_v19 = vsel %vm20435_vm9, %v20434_v49, 0.0  ;;  %v4402_v3 = vsel %vm20440_vm12, %v20439_v13, 0.0  ;;  %v20441_v49 = vld [vmem:[#allocation39_spill] sm:$0xff]  ;;  %vm20452_vm9 = vcmask 654912   ;;  %vm20456_vm12 = vmmov %vm20338_vm0 }
 0xa78   :  { %v8463_v7 = vrot.slane %v4023_v32, %v20431_v33 }
 0xa7a   :  { %4214 = vadd.xlane.f32.xlu1 %v4213_v5  ;;  %4187 = vadd.xlane.f32.xlu0 %v4186_v14 }
 0xa7b   :  { %v4020_v54 = vpop.xlane.xlu1 %4019  ;;  %v4026_v60 = vpop.xlane.xlu0 %4025 }
 0xa7c   :  { %v8458_v63 = vrot.slane %v4020_v54, %v20430_v35  ;;  %v8468_v12 = vrot.slane %v4026_v60, %v20436_v45 }
 0xa7e   :  { %v8459_v56 = vsel %vm4826_vm1, %v8458_v63, %v8454_v20  ;;  %4259 = vadd.xlane.f32.xlu1 %v4258_v10  ;;  %4217 = vadd.xlane.f32.xlu0 %v4216_v19  ;;  %v4330_v20 = vsel %vm20442_vm11, %v20441_v49, 0.0  ;;  %v20443_v10 = vld [vmem:[#allocation9_spill] sm:$0xff]  ;;  %vm20458_vm11 = vmmov %vm20338_vm0 }
 0xa7f   :  { %v8464_v5 = vsel %vm4833_vm2, %v8463_v7, %v8459_v56  ;;  %v4032_v14 = vpop.xlane.xlu1 %4031  ;;  %v4029_v23 = vpop.xlane.xlu0 %4028 }
 0xa80   :  { %v8469_v54 = vsel %vm4840_vm3, %v8468_v12, %v8464_v5  ;;  %v8478_v32 = vrot.slane %v4032_v14, %v20437_v1  ;;  %v8473_v59 = vrot.slane %v4029_v23, %v20438_v21  ;;  %v20444_v12 = vld [vmem:[#allocation10_spill] sm:$0xff]  ;;  %v4546_v14 = vsel %vm20338_vm0, %v18164_v26, 0.0 }
 0xa81   :  { %v4474_v23 = vsel %vm20445_vm13, %v18048_v51, 0.0  ;;  %v4189_v26 = vsel %vm20451_vm15, %v20450_v15, 0.0  ;;  %vm20459_vm0 = vcmask 786112   ;;  %vm20463_vm13 = vmmov %vm20458_vm11  ;;  %vm20466_vm15 = vcmask 851712  }
 0xa82   :  { %v8474_v60 = vsel %vm4847_vm4, %v8473_v59, %v8469_v54  ;;  %4403 = vadd.xlane.f32.xlu1 %v4402_v3  ;;  %4331 = vadd.xlane.f32.xlu0 %v4330_v20  ;;  %v20447_v20 = vld [vmem:[#allocation12_spill] sm:$0xff] }
 0xa83   :  { %v4038_v19 = vpop.xlane.xlu1 %4037  ;;  %v8479_v63 = vsel %vm4854_vm5, %v8478_v32, %v8474_v60  ;;  %v4035_v7 = vpop.xlane.xlu0 %4034  ;;  %v20446_v32 = vld [vmem:[#allocation11_spill] sm:$0xff] }
 0xa84   :  { %v8488_v56 = vrot.slane %v4038_v19, %v20443_v10  ;;  %v8483_v5 = vrot.slane %v4035_v7, %v20444_v12  ;;  %v20448_v19 = vld [vmem:[#allocation108_spill] sm:$0xff] }
 0xa85   :  { %v4219_v7 = vsel %vm20449_vm14, %v20448_v19, 0.0  ;;  %v4261_v19 = vsel %vm20458_vm11, %v20457_v48, 0.0  ;;  %vm20465_vm14 = vmmov %vm20458_vm11 }
 0xa86   :  { %v8484_v13 = vsel %vm4861_vm6, %v8483_v5, %v8479_v63  ;;  %4547 = vadd.xlane.f32.xlu1 %v4546_v14  ;;  %4475 = vadd.xlane.f32.xlu0 %v4474_v23 }
 0xa87   :  { %v4044_v59 = vpop.xlane.xlu1 %4043  ;;  %v8489_v3 = vsel %vm4868_vm7, %v8488_v56, %v8484_v13  ;;  %v4041_v54 = vpop.xlane.xlu0 %4040  ;;  %v20453_v56 = vld [vmem:[#allocation13_spill] sm:$0xff]  ;;  %v20454_v13 = vld [vmem:[#allocation14_spill] sm:$0xff] }
 0xa88   :  { %v8498_v49 = vrot.slane %v4044_v59, %v20446_v32  ;;  %v8493_v60 = vrot.slane %v4041_v54, %v20447_v20  ;;  %v4288_v54 = vsel %vm20456_vm12, %v20455_v30, 0.0  ;;  %v4291_v30 = vsel %vm20465_vm14, %v20464_v50, 0.0  ;;  %vm20470_vm12 = vmmov %vm20458_vm11 }
 0xa89   :  { %vm20475_vm14 = vmmov %vm20458_vm11 }
 0xa8a   :  { %v8494_v51 = vsel %vm4875_vm8, %v8493_v60, %v8489_v3  ;;  %4220 = vadd.xlane.f32.xlu1 %v4219_v7  ;;  %4190 = vadd.xlane.f32.xlu0 %v4189_v26 }
 0xa8b   :  { %v4050_v63 = vpop.xlane.xlu1 %4049  ;;  %v8499_v5 = vsel %vm20452_vm9, %v8498_v49, %v8494_v51  ;;  %v4047_v14 = vpop.xlane.xlu0 %4046  ;;  %v20460_v49 = vld [vmem:[#allocation15_spill] sm:$0xff]  ;;  %v20461_v51 = vld [vmem:[#allocation16_spill] sm:$0xff]  ;;  %vm20467_vm9 = vcmask 917312  }
 0xa8c   :  { %v8508_v23 = vrot.slane %v4050_v63, %v20453_v56  ;;  %v8503_v59 = vrot.slane %v4047_v14, %v20454_v13  ;;  %v4333_v14 = vsel %vm20463_vm13, %v20462_v16, 0.0  ;;  %v4405_v16 = vsel %vm20458_vm11, %v20471_v11, 0.0 }
 0xa8d   :  { %vm20473_vm13 = vcmask 1048512  }
 0xa8e   :  { %v8504_v15 = vsel %vm4889_vm10, %v8503_v59, %v8499_v5  ;;  %4289 = vadd.xlane.f32.xlu1 %v4288_v54  ;;  %4262 = vadd.xlane.f32.xlu0 %v4261_v19 }
 0xa8f   :  { %v4056_v3 = vpop.xlane.xlu1 %4055  ;;  %v8509_v60 = vsel %vm20459_vm0, %v8508_v23, %v8504_v15  ;;  %v4053_v7 = vpop.xlane.xlu0 %4052  ;;  %v20468_v23 = vld [vmem:[#allocation17_spill] sm:$0xff]  ;;  %v20469_v15 = vld [vmem:[#allocation18_spill] sm:$0xff]  ;;  %vm20472_vm0 = vcmask 982912  }
 0xa90   :  { %v8518_v26 = vrot.slane %v4056_v3, %v20460_v49  ;;  %v8513_v63 = vrot.slane %v4053_v7, %v20461_v51  ;;  %v4477_v7 = vsel %vm20470_vm12, %v18042_v28, 0.0 }
 0xa92   :  { %v8514_v48 = vsel %vm20466_vm15, %v8513_v63, %v8509_v60  ;;  %4334 = vadd.xlane.f32.xlu1 %v4333_v14  ;;  %4292 = vadd.xlane.f32.xlu0 %v4291_v30  ;;  %vm20476_vm15 = vmmov %vm20458_vm11 }
 0xa93   :  { %v4062_v5 = vpop.xlane.xlu1 %4061  ;;  %v8519_v59 = vsel %vm20467_vm9, %v8518_v26, %v8514_v48  ;;  %v4059_v54 = vpop.xlane.xlu0 %4058  ;;  %v20474_v48 = vld [vmem:[#allocation93_spill] sm:$0xff]  ;;  %v4549_v28 = vsel %vm20476_vm15, %v18162_v39, 0.0  ;;  %vm20478_vm9 = vmmov %vm20458_vm11 }
 0xa94   :  { %v8528_v19 = vrot.slane %v4062_v5, %v20468_v23  ;;  %v8523_v3 = vrot.slane %v4059_v54, %v20469_v15  ;;  %v4150_v5 = vsel %vm20475_vm14, %v20474_v48, 0.0  ;;  %vm20480_vm12 = vmmov %vm20478_vm9 }
 0xa95   :  { %vm20482_vm11 = vmmov %vm20478_vm9 }
 0xa96   :  { %v8524_v50 = vsel %vm20472_vm0, %v8523_v3, %v8519_v59  ;;  %4478 = vadd.xlane.f32.xlu1 %v4477_v7  ;;  %4406 = vadd.xlane.f32.xlu0 %v4405_v16  ;;  %v20477_v7 = vld [vmem:[#allocation112_spill] sm:$0xff]  ;;  %vm20484_vm0 = vmmov %vm20478_vm9 }
 0xa97   :  { %v18339_v60 = vsel %vm20473_vm13, %v8528_v19, %v8524_v50  ;;  %v4068_v63 = vpop.xlane.xlu1 %4067  ;;  %v4065_v26 = vpop.xlane.xlu0 %4064  ;;  %v4222_v16 = vsel %vm20478_vm9, %v20477_v7, 0.0  ;;  %v20479_v50 = vld [vmem:[#allocation104_spill] sm:$0xff]  ;;  %vm20486_vm13 = vmmov %vm20484_vm0 }
 0xa98   :  { %v8537_v14 = vrot.slane %v4068_v63, %v20430_v35  ;;  %v8533_v30 = vrot.slane %v4065_v26, %v20429_v38  ;;  %v4192_v63 = vsel %vm20480_vm12, %v20479_v50, 0.0  ;;  %vm20488_vm14 = vmmov %vm20484_vm0 }
 0xa99   :  { %vm20490_vm15 = vmmov %vm20484_vm0 }
 0xa9a   :  { %v8538_v11 = vsel %vm4826_vm1, %v8537_v14, %v8533_v30  ;;  %4151 = vadd.xlane.f32.xlu1 %v4150_v5  ;;  %4550 = vadd.xlane.f32.xlu0 %v4549_v28  ;;  %v20481_v28 = vld [vmem:[#allocation25_spill] sm:$0xff]  ;;  %vm20492_vm9 = vmmov %vm20484_vm0 }
 0xa9b   :  { %v4074_v59 = vpop.xlane.xlu1 %4073  ;;  %v4071_v54 = vpop.xlane.xlu0 %4070  ;;  %vm20493_vm12 = vmmov %vm20484_vm0 }
 0xa9c   :  { %v8547_v19 = vrot.slane %v4074_v59, %v20436_v45  ;;  %v8542_v3 = vrot.slane %v4071_v54, %v20431_v33  ;;  %v4294_v59 = vsel %vm20482_vm11, %v20481_v28, 0.0  ;;  %v20483_v54 = vld [vmem:[#allocation127_spill] sm:$0xff]  ;;  %vm20494_vm11 = vmmov %vm20484_vm0 }
 0xa9d   :  { %v4264_v7 = vsel %vm20484_vm0, %v20483_v54, 0.0 }
 0xa9e   :  { %v8543_v26 = vsel %vm4833_vm2, %v8542_v3, %v8538_v11  ;;  %4223 = vadd.xlane.f32.xlu1 %v4222_v16  ;;  %4193 = vadd.xlane.f32.xlu0 %v4192_v63 }
 0xa9f   :  { %v4080_v39 = vpop.xlane.xlu1 %4079  ;;  %v8548_v14 = vsel %vm4840_vm3, %v8547_v19, %v8543_v26  ;;  %v4077_v30 = vpop.xlane.xlu0 %4076  ;;  %v20485_v26 = vld [vmem:[#allocation41_spill] sm:$0xff] }
 0xaa0   :  { %v8557_v48 = vrot.slane %v4080_v39, %v20437_v1  ;;  %v8552_v5 = vrot.slane %v4077_v30, %v20438_v21  ;;  %v4363_v39 = vsel %vm20486_vm13, %v20485_v26, 0.0  ;;  %v20487_v30 = vld [vmem:[#allocation45_spill] sm:$0xff]  ;;  %vm20497_vm13 = vmmov %vm20484_vm0 }
 0xaa1   :  { %v4336_v28 = vsel %vm20488_vm14, %v20487_v30, 0.0  ;;  %vm20499_vm14 = vmmov %vm20484_vm0 }
 0xaa2   :  { %v8553_v50 = vsel %vm4847_vm4, %v8552_v5, %v8548_v14  ;;  %4295 = vadd.xlane.f32.xlu1 %v4294_v59  ;;  %4265 = vadd.xlane.f32.xlu0 %v4264_v7  ;;  %v20489_v7 = vld [vmem:[#allocation59_spill] sm:$0xff] }
 0xaa3   :  { %v4086_v11 = vpop.xlane.xlu1 %4085  ;;  %v8558_v3 = vsel %vm4854_vm5, %v8557_v48, %v8553_v50  ;;  %v4083_v16 = vpop.xlane.xlu0 %4082  ;;  %v4408_v50 = vsel %vm20490_vm15, %v20489_v7, 0.0  ;;  %vm20501_vm15 = vmmov %vm20484_vm0 }
 0xaa4   :  { %v8567_v19 = vrot.slane %v4086_v11, %v20443_v10  ;;  %v8562_v63 = vrot.slane %v4083_v16, %v20444_v12  ;;  %v20491_v11 = vld [vmem:[#allocation49_spill] sm:$0xff] }
 0xaa5   :  { %v4366_v16 = vsel %vm20492_vm9, %v20491_v11, 0.0  ;;  %v20495_v11 = vld [vmem:[#allocation103_spill] sm:$0xff]  ;;  %vm20503_vm9 = vmmov %vm20484_vm0 }
 0xaa6   :  { %v8563_v54 = vsel %vm4861_vm6, %v8562_v63, %v8558_v3  ;;  %4364 = vadd.xlane.f32.xlu1 %v4363_v39  ;;  %4337 = vadd.xlane.f32.xlu0 %v4336_v28  ;;  %v4552_v28 = vsel %vm20493_vm12, %v18176_v22, 0.0  ;;  %vm20505_vm12 = vmmov %vm20484_vm0 }
 0xaa7   :  { %v4092_v14 = vpop.xlane.xlu1 %4091  ;;  %v8568_v5 = vsel %vm4868_vm7, %v8567_v19, %v8563_v54  ;;  %v4089_v59 = vpop.xlane.xlu0 %4088  ;;  %v4480_v54 = vsel %vm20494_vm11, %v18056_v43, 0.0  ;;  %vm20507_vm11 = vmmov %vm20484_vm0 }
 0xaa8   :  { %v8572_v48 = vrot.slane %v4089_v59, %v20447_v20  ;;  %v8577_v39 = vrot.slane %v4092_v14, %v20429_v38 }
 0xaaa   :  { %v18378_v26 = vsel %vm4875_vm8, %v8572_v48, %v8568_v5  ;;  %4409 = vadd.xlane.f32.xlu1 %v4408_v50  ;;  %4367 = vadd.xlane.f32.xlu0 %v4366_v16  ;;  %v4195_v16 = vsel %vm20484_vm0, %v20495_v11, 0.0 }
 0xaab   :  { %v4098_v3 = vpop.xlane.xlu1 %4097  ;;  %v4095_v63 = vpop.xlane.xlu0 %4094 }
 0xaac   :  { %v8586_v19 = vrot.slane %v4098_v3, %v20431_v33  ;;  %v8581_v30 = vrot.slane %v4095_v63, %v20430_v35  ;;  %v20496_v3 = vld [vmem:[#allocation92_spill] sm:$0xff] }
 0xaad   :  { %v4153_v22 = vsel %vm20497_vm13, %v20496_v3, 0.0  ;;  %vm20509_vm13 = vcmask 654912  }
 0xaae   :  { %v8582_v59 = vsel %vm4826_vm1, %v8581_v30, %v8577_v39  ;;  %4553 = vadd.xlane.f32.xlu1 %v4552_v28  ;;  %4481 = vadd.xlane.f32.xlu0 %v4480_v54  ;;  %v20498_v54 = vld [vmem:[#allocation126_spill] sm:$0xff] }
 0xaaf   :  { %v4104_v5 = vpop.xlane.xlu1 %4103  ;;  %v8587_v48 = vsel %vm4833_vm2, %v8586_v19, %v8582_v59  ;;  %v4101_v7 = vpop.xlane.xlu0 %4100  ;;  %v4267_v59 = vsel %vm20499_vm14, %v20498_v54, 0.0  ;;  %vm20510_vm14 = vmmov %vm20484_vm0 }
 0xab0   :  { %v8596_v14 = vrot.slane %v4104_v5, %v20438_v21  ;;  %v8591_v50 = vrot.slane %v4101_v7, %v20436_v45  ;;  %v20500_v5 = vld [vmem:[#allocation113_spill] sm:$0xff] }
 0xab1   :  { %v4225_v7 = vsel %vm20501_vm15, %v20500_v5, 0.0  ;;  %vm20512_vm15 = vmmov %vm20484_vm0 }
 0xab2   :  { %v8592_v43 = vsel %vm4840_vm3, %v8591_v50, %v8587_v48  ;;  %4196 = vadd.xlane.f32.xlu1 %v4195_v16  ;;  %4154 = vadd.xlane.f32.xlu0 %v4153_v22  ;;  %v20502_v22 = vld [vmem:[#allocation44_spill] sm:$0xff] }
 0xab3   :  { %v4110_v63 = vpop.xlane.xlu1 %4109  ;;  %v8597_v39 = vsel %vm4847_vm4, %v8596_v14, %v8592_v43  ;;  %v4107_v30 = vpop.xlane.xlu0 %4106  ;;  %v4339_v43 = vsel %vm20503_vm9, %v20502_v22, 0.0  ;;  %vm20513_vm9 = vcmask 786112  }
 0xab4   :  { %v8606_v19 = vrot.slane %v4110_v63, %v20444_v12  ;;  %v8601_v28 = vrot.slane %v4107_v30, %v20437_v1  ;;  %v20504_v63 = vld [vmem:[#allocation36_spill] sm:$0xff] }
 0xab5   :  { %v4297_v30 = vsel %vm20505_vm12, %v20504_v63, 0.0  ;;  %vm20514_vm12 = vcmask 851712  }
 0xab6   :  { %v8602_v11 = vsel %vm4854_vm5, %v8601_v28, %v8597_v39  ;;  %4268 = vadd.xlane.f32.xlu1 %v4267_v59  ;;  %4226 = vadd.xlane.f32.xlu0 %v4225_v7  ;;  %v20506_v7 = vld [vmem:[#allocation62_spill] sm:$0xff] }
 0xab7   :  { %v4116_v48 = vpop.xlane.xlu1 %4115  ;;  %v8607_v50 = vsel %vm4861_vm6, %v8606_v19, %v8602_v11  ;;  %v4113_v16 = vpop.xlane.xlu0 %4112  ;;  %v4411_v11 = vsel %vm20507_vm11, %v20506_v7, 0.0  ;;  %vm20515_vm11 = vmmov %vm20484_vm0 }
 0xab8   :  { %v8616_v14 = vrot.slane %v4116_v48, %v20447_v20  ;;  %v8611_v3 = vrot.slane %v4113_v16, %v20443_v10  ;;  %v20508_v48 = vld [vmem:[#allocation27_spill] sm:$0xff] }
 0xab9   :  { %v4369_v16 = vsel %vm20484_vm0, %v20508_v48, 0.0  ;;  %v4555_v48 = vsel %vm20515_vm11, %v18170_v52, 0.0  ;;  %vm20523_vm11 = vcmask 1041409  }
 0xaba   :  { %v8612_v54 = vsel %vm4868_vm7, %v8611_v3, %v8607_v50  ;;  %4340 = vadd.xlane.f32.xlu1 %v4339_v43  ;;  %4298 = vadd.xlane.f32.xlu0 %v4297_v30  ;;  %v4441_v30 = vsel %vm20510_vm14, %v18014_v9, 0.0  ;;  %v4483_v9 = vsel %vm20484_vm0, %v18050_v40, 0.0  ;;  %vm20517_vm14 = vcmask 982912  }
 0xabb   :  { %v4122_v39 = vpop.xlane.xlu1 %4121  ;;  %v8617_v28 = vsel %vm4875_vm8, %v8616_v14, %v8612_v54  ;;  %v4119_v59 = vpop.xlane.xlu0 %4118  ;;  %v20511_v54 = vld [vmem:[#allocation84_spill] sm:$0xff] }
 0xabc   :  { %v8626_v19 = vrot.slane %v4122_v39, %v20454_v13  ;;  %v8621_v5 = vrot.slane %v4119_v59, %v20446_v32  ;;  %v4438_v39 = vsel %vm20512_vm15, %v20511_v54, 0.0  ;;  %vm20519_vm15 = vmmov %vm20484_vm0 }
 0xabe   :  { %v8622_v22 = vsel %vm20509_vm13, %v8621_v5, %v8617_v28  ;;  %4412 = vadd.xlane.f32.xlu1 %v4411_v11  ;;  %4370 = vadd.xlane.f32.xlu0 %v4369_v16  ;;  %vm20516_vm13 = vcmask 917312  }
 0xabf   :  { %v4128_v50 = vpop.xlane.xlu1 %4127  ;;  %v8627_v3 = vsel %vm4889_vm10, %v8626_v19, %v8622_v22  ;;  %v4125_v43 = vpop.xlane.xlu0 %4124 }
 0xac0   :  { %v8636_v14 = vrot.slane %v4128_v50, %v20461_v51  ;;  %v8631_v63 = vrot.slane %v4125_v43, %v20453_v56 }
 0xac2   :  { %v8632_v59 = vsel %vm20513_vm9, %v8631_v63, %v8627_v3  ;;  %4442 = vadd.xlane.f32.xlu1 %v4441_v30  ;;  %4439 = vadd.xlane.f32.xlu0 %v4438_v39  ;;  %v20520_v30 = vld [vmem:[#allocation95_spill] sm:$0xff]  ;;  %vm20521_vm9 = vmmov %vm20484_vm0 }
 0xac3   :  { %v4134_v28 = vpop.xlane.xlu1 %4133  ;;  %v8637_v5 = vsel %vm20514_vm12, %v8636_v14, %v8632_v59  ;;  %v4131_v7 = vpop.xlane.xlu0 %4130  ;;  %v20518_v14 = vld [vmem:[#allocation110_spill] sm:$0xff]  ;;  %v4156_v54 = vsel %vm20521_vm9, %v20520_v30, 0.0  ;;  %vm20522_vm12 = vcmask 1048512   ;;  %vm20532_vm9 = vmmov %vm20484_vm0 }
 0xac4   :  { %v8646_v19 = vrot.slane %v4134_v28, %v20469_v15  ;;  %v8641_v11 = vrot.slane %v4131_v7, %v20460_v49  ;;  %v4198_v63 = vsel %vm20519_vm15, %v20518_v14, 0.0  ;;  %vm20530_vm15 = vmmov %vm20484_vm0 }
 0xac6   :  { %v8642_v16 = vsel %vm20516_vm13, %v8641_v11, %v8637_v5  ;;  %4556 = vadd.xlane.f32.xlu1 %v4555_v48  ;;  %4484 = vadd.xlane.f32.xlu0 %v4483_v9  ;;  %v20525_v48 = vld [vmem:[#allocation117_spill] sm:$0xff]  ;;  %vm20526_vm13 = vmmov %vm20484_vm0 }
 0xac7   :  { %v4140_v22 = vpop.xlane.xlu1 %4139  ;;  %v8647_v50 = vsel %vm20517_vm14, %v8646_v19, %v8642_v16  ;;  %v4137_v3 = vpop.xlane.xlu0 %4136  ;;  %v20524_v19 = vld [vmem:[#allocation128_spill] sm:$0xff]  ;;  %v4228_v9 = vsel %vm20526_vm13, %v20525_v48, 0.0  ;;  %vm20528_vm14 = vmmov %vm20484_vm0 }
 0xac8   :  { %v8651_v43 = vrot.slane %v4137_v3, %v20468_v23  ;;  %v8656_v28 = vrot.slane %v4140_v22, %v20429_v38  ;;  %v4270_v11 = vsel %vm20484_vm0, %v20524_v19, 0.0  ;;  %vm20536_vm13 = vmmov %vm20484_vm0 }
 0xaca   :  { %v8652_v52 = vsel %vm20522_vm12, %v8651_v43, %v8647_v50  ;;  %4199 = vadd.xlane.f32.xlu1 %v4198_v63  ;;  %4157 = vadd.xlane.f32.xlu0 %v4156_v54  ;;  %v20527_v43 = vld [vmem:[#allocation52_spill] sm:$0xff]  ;;  %v20529_v63 = vld [vmem:[#allocation33_spill] sm:$0xff]  ;;  %vm20534_vm12 = vmmov %vm20484_vm0 }
 0xacb   :  { %v18445_v40 = vsel %vm20523_vm11, %v8652_v52, %v18339_v60  ;;  %v4146_v39 = vpop.xlane.xlu1 %4145  ;;  %v4143_v59 = vpop.xlane.xlu0 %4142  ;;  %v4342_v14 = vsel %vm20528_vm14, %v20527_v43, 0.0  ;;  %v4300_v30 = vsel %vm20530_vm15, %v20529_v63, 0.0  ;;  %vm20535_vm11 = vmmov %vm20484_vm0 }
 0xacc   :  { %v8665_v5 = vrot.slane %v4146_v39, %v20431_v33  ;;  %v8660_v7 = vrot.slane %v4143_v59, %v20430_v35  ;;  %v4486_v43 = vsel %vm20535_vm11, %v18064_v8, 0.0  ;;  %vm20537_vm14 = vmmov %vm20484_vm0 }
 0xacd   :  { %vm20539_vm15 = vmmov %vm20484_vm0 }
 0xace   :  { %v8661_v16 = vsel %vm4826_vm1, %v8660_v7, %v8656_v28  ;;  %4271 = vadd.xlane.f32.xlu1 %v4270_v11  ;;  %4229 = vadd.xlane.f32.xlu0 %v4228_v9  ;;  %v20531_v7 = vld [vmem:[#allocation61_spill] sm:$0xff]  ;;  %v20533_v11 = vld [vmem:[#allocation51_spill] sm:$0xff]  ;;  %vm20544_vm11 = vmmov %vm20484_vm0 }
 0xacf   :  { %v4167_v60 = vpop.xlane.xlu1 %4166  ;;  %v8666_v50 = vsel %vm4833_vm2, %v8665_v5, %v8661_v16  ;;  %v4149_v3 = vpop.xlane.xlu0 %4148  ;;  %v4414_v19 = vsel %vm20532_vm9, %v20531_v7, 0.0  ;;  %v4372_v48 = vsel %vm20534_vm12, %v20533_v11, 0.0  ;;  %vm20540_vm9 = vmmov %vm20484_vm0 }
 0xad0   :  { %v8670_v22 = vrot.slane %v4149_v3, %v20436_v45  ;;  %v8700_v59 = vrot.slane %v4167_v60, %v20429_v38  ;;  %vm20542_vm12 = vmmov %vm20484_vm0 }
 0xad2   :  { %v18462_v54 = vsel %vm4840_vm3, %v8670_v22, %v8666_v50  ;;  %4343 = vadd.xlane.f32.xlu1 %v4342_v14  ;;  %4301 = vadd.xlane.f32.xlu0 %v4300_v30  ;;  %v4444_v14 = vsel %vm20484_vm0, %v18020_v2, 0.0 }
 0xad3   :  { %v4173_v52 = vpop.xlane.xlu1 %4172  ;;  %v4170_v39 = vpop.xlane.xlu0 %4169 }
 0xad4   :  { %v8709_v28 = vrot.slane %v4173_v52, %v20431_v33  ;;  %v8704_v5 = vrot.slane %v4170_v39, %v20430_v35 }
 0xad6   :  { %v8705_v9 = vsel %vm4826_vm1, %v8704_v5, %v8700_v59  ;;  %4415 = vadd.xlane.f32.xlu1 %v4414_v19  ;;  %4373 = vadd.xlane.f32.xlu0 %v4372_v48  ;;  %v4513_v5 = vsel %vm20537_vm14, %v18102_v46, 0.0  ;;  %vm20549_vm14 = vmmov %vm20484_vm0 }
 0xad7   :  { %v4245_v16 = vpop.xlane.xlu1 %4244  ;;  %v4242_v50 = vpop.xlane.xlu0 %4241  ;;  %v8710_v3 = vsel %vm4833_vm2, %v8709_v28, %v8705_v9  ;;  %v4516_v28 = vsel %vm20536_vm13, %v18116_v41, 0.0  ;;  %v20538_v9 = vld [vmem:[#allocation94_spill] sm:$0xff]  ;;  %v4558_v41 = vsel %vm20540_vm9, %v18184_v0, 0.0  ;;  %vm20547_vm13 = vmmov %vm20484_vm0 }
 0xad8   :  { %v8827_v60 = vrot.slane %v4245_v16, %v20430_v35  ;;  %v8823_v22 = vrot.slane %v4242_v50, %v20429_v38  ;;  %v4159_v16 = vsel %vm20539_vm15, %v20538_v9, 0.0  ;;  %vm20551_vm15 = vmmov %vm20484_vm0 }
 0xad9   :  { %vm20553_vm9 = vmmov %vm20484_vm0 }
 0xada   :  { %v8828_v63 = vsel %vm4826_vm1, %v8827_v60, %v8823_v22  ;;  %4487 = vadd.xlane.f32.xlu1 %v4486_v43  ;;  %4445 = vadd.xlane.f32.xlu0 %v4444_v14  ;;  %v20541_v43 = vld [vmem:[#allocation115_spill] sm:$0xff] }
 0xadb   :  { %v4248_v30 = vpop.xlane.xlu1 %4247  ;;  %v4176_v52 = vpop.xlane.xlu0 %4175  ;;  %v4231_v14 = vsel %vm20542_vm12, %v20541_v43, 0.0  ;;  %vm20555_vm12 = vmmov %vm20484_vm0 }
 0xadc   :  { %v8832_v39 = vrot.slane %v4248_v30, %v20431_v33  ;;  %v8714_v59 = vrot.slane %v4176_v52, %v20436_v45 }
 0xade   :  { %v8833_v8 = vsel %vm4833_vm2, %v8832_v39, %v8828_v63  ;;  %v8715_v2 = vsel %vm4840_vm3, %v8714_v59, %v8710_v3  ;;  %4517 = vadd.xlane.f32.xlu1 %v4516_v28  ;;  %4514 = vadd.xlane.f32.xlu0 %v4513_v5  ;;  %v20543_v63 = vld [vmem:[#allocation105_spill] sm:$0xff]  ;;  %v20545_v5 = vld [vmem:[#allocation24_spill] sm:$0xff] }
 0xadf   :  { %v4320_v7 = vpop.xlane.xlu1 %4319  ;;  %v4317_v19 = vpop.xlane.xlu0 %4316  ;;  %v4201_v30 = vsel %vm20544_vm11, %v20543_v63, 0.0  ;;  %vm20556_vm11 = vmmov %vm20484_vm0 }
 0xae0   :  { %v8950_v11 = vrot.slane %v4320_v7, %v20430_v35  ;;  %v8946_v48 = vrot.slane %v4317_v19, %v20429_v38  ;;  %v4303_v7 = vsel %vm20484_vm0, %v20545_v5, 0.0  ;;  %v20546_v19 = vld [vmem:[#allocation26_spill] sm:$0xff]  ;;  %v20554_v5 = vld [vmem:[#allocation64_spill] sm:$0xff] }
 0xae2   :  { %v8951_v46 = vsel %vm4826_vm1, %v8950_v11, %v8946_v48  ;;  %4160 = vadd.xlane.f32.xlu1 %v4159_v16  ;;  %4559 = vadd.xlane.f32.xlu0 %v4558_v41  ;;  %v4273_v11 = vsel %vm20547_vm13, %v20546_v19, 0.0  ;;  %vm20557_vm13 = vmmov %vm20484_vm0 }
 0xae3   :  { %v4251_v50 = vpop.xlane.xlu1 %4250  ;;  %v4179_v3 = vpop.xlane.xlu0 %4178 }
 0xae4   :  { %v8837_v60 = vrot.slane %v4251_v50, %v20436_v45  ;;  %v8719_v22 = vrot.slane %v4179_v3, %v20438_v21  ;;  %v20548_v50 = vld [vmem:[#allocation56_spill] sm:$0xff] }
 0xae5   :  { %v4375_v3 = vsel %vm20549_vm14, %v20548_v50, 0.0  ;;  %vm20558_vm14 = vmmov %vm20484_vm0 }
 0xae6   :  { %v8838_v52 = vsel %vm4840_vm3, %v8837_v60, %v8833_v8  ;;  %v8720_v0 = vsel %vm4847_vm4, %v8719_v22, %v8715_v2  ;;  %4232 = vadd.xlane.f32.xlu1 %v4231_v14  ;;  %4202 = vadd.xlane.f32.xlu0 %v4201_v30  ;;  %v20550_v60 = vld [vmem:[#allocation40_spill] sm:$0xff] }
 0xae7   :  { %v4392_v39 = vpop.xlane.xlu1 %4391  ;;  %v4323_v59 = vpop.xlane.xlu0 %4322  ;;  %v4345_v22 = vsel %vm20551_vm15, %v20550_v60, 0.0  ;;  %vm20560_vm15 = vmmov %vm20484_vm0 }
 0xae8   :  { %v8955_v28 = vrot.slane %v4323_v59, %v20431_v33  ;;  %v9069_v2 = vrot.slane %v4392_v39, %v20429_v38  ;;  %v20552_v59 = vld [vmem:[#allocation70_spill] sm:$0xff] }
 0xaea   :  { %v8956_v48 = vsel %vm4833_vm2, %v8955_v28, %v8951_v46  ;;  %4304 = vadd.xlane.f32.xlu1 %v4303_v7  ;;  %4274 = vadd.xlane.f32.xlu0 %v4273_v11  ;;  %v4447_v28 = vsel %vm20553_vm9, %v20552_v59, 0.0  ;;  %v4417_v7 = vsel %vm20555_vm12, %v20554_v5, 0.0  ;;  %v20559_v59 = vld [vmem:[#allocation96_spill] sm:$0xff]  ;;  %vm20561_vm9 = vmmov %vm20484_vm0 }
 0xaeb   :  { %v4182_v9 = vpop.xlane.xlu1 %4181  ;;  %v4395_v8 = vpop.xlane.xlu0 %4394  ;;  %vm20563_vm12 = vmmov %vm20484_vm0 }
 0xaec   :  { %v8724_v16 = vrot.slane %v4182_v9, %v20437_v1  ;;  %v9073_v41 = vrot.slane %v4395_v8, %v20430_v35 }
 0xaee   :  { %v8725_v43 = vsel %vm4854_vm5, %v8724_v16, %v8720_v0  ;;  %v9074_v46 = vsel %vm4826_vm1, %v9073_v41, %v9069_v2  ;;  %4376 = vadd.xlane.f32.xlu1 %v4375_v3  ;;  %4346 = vadd.xlane.f32.xlu0 %v4345_v22  ;;  %v4519_v2 = vsel %vm20556_vm11, %v18110_v42, 0.0  ;;  %v4489_v16 = vsel %vm20484_vm0, %v18062_v61, 0.0  ;;  %vm20565_vm11 = vmmov %vm20484_vm0 }
 0xaef   :  { %v4326_v14 = vpop.xlane.xlu1 %4325  ;;  %v4254_v63 = vpop.xlane.xlu0 %4253  ;;  %v4588_v22 = vsel %vm20557_vm13, %v18236_v17, 0.0  ;;  %v4561_v42 = vsel %vm20558_vm14, %v18182_v18, 0.0  ;;  %v4591_v17 = vsel %vm20561_vm9, %v18230_v34, 0.0  ;;  %vm20568_vm13 = vmmov %vm20484_vm0 }
 0xaf0   :  { %v8960_v30 = vrot.slane %v4326_v14, %v20436_v45  ;;  %v8842_v39 = vrot.slane %v4254_v63, %v20438_v21  ;;  %vm20570_vm14 = vmmov %vm20484_vm0 }
 0xaf1   :  { %vm20574_vm9 = vmmov %vm20484_vm0 }
 0xaf2   :  { %v8961_v19 = vsel %vm4840_vm3, %v8960_v30, %v8956_v48  ;;  %v8843_v0 = vsel %vm4847_vm4, %v8842_v39, %v8838_v52  ;;  %4448 = vadd.xlane.f32.xlu1 %v4447_v28  ;;  %4418 = vadd.xlane.f32.xlu0 %v4417_v7  ;;  %v4162_v28 = vsel %vm20560_vm15, %v20559_v59, 0.0  ;;  %vm20572_vm15 = vmmov %vm20484_vm0 }
 0xaf3   :  { %v4467_v11 = vpop.xlane.xlu1 %4466  ;;  %v4398_v9 = vpop.xlane.xlu0 %4397 }
 0xaf4   :  { %v9078_v8 = vrot.slane %v4398_v9, %v20431_v33  ;;  %v9192_v52 = vrot.slane %v4467_v11, %v20429_v38 }
 0xaf6   :  { %v9079_v41 = vsel %vm4833_vm2, %v9078_v8, %v9074_v46  ;;  %4520 = vadd.xlane.f32.xlu1 %v4519_v2  ;;  %4490 = vadd.xlane.f32.xlu0 %v4489_v16  ;;  %v20562_v8 = vld [vmem:[#allocation118_spill] sm:$0xff]  ;;  %v20564_v16 = vld [vmem:[#allocation109_spill] sm:$0xff] }
 0xaf7   :  { %v4185_v50 = vpop.xlane.xlu1 %4184  ;;  %v4470_v48 = vpop.xlane.xlu0 %4469  ;;  %v4234_v2 = vsel %vm20563_vm12, %v20562_v8, 0.0  ;;  %vm20576_vm12 = vmmov %vm20484_vm0 }
 0xaf8   :  { %v8729_v3 = vrot.slane %v4185_v50, %v20444_v12  ;;  %v9196_v60 = vrot.slane %v4470_v48, %v20430_v35  ;;  %v4204_v50 = vsel %vm20565_vm11, %v20564_v16, 0.0  ;;  %v20573_v16 = vld [vmem:[#allocation71_spill] sm:$0xff]  ;;  %vm20577_vm11 = vmmov %vm20484_vm0 }
 0xafa   :  { %v8730_v61 = vsel %vm4861_vm6, %v8729_v3, %v8725_v43  ;;  %v9197_v46 = vsel %vm4826_vm1, %v9196_v60, %v9192_v52  ;;  %4589 = vadd.xlane.f32.xlu1 %v4588_v22  ;;  %4562 = vadd.xlane.f32.xlu0 %v4561_v42  ;;  %v20566_v60 = vld [vmem:[#allocation23_spill] sm:$0xff] }
 0xafb   :  { %v4329_v14 = vpop.xlane.xlu1 %4328  ;;  %v4257_v63 = vpop.xlane.xlu0 %4256  ;;  %v4306_v22 = vsel %vm20484_vm0, %v20566_v60, 0.0  ;;  %v20567_v42 = vld [vmem:[#allocation31_spill] sm:$0xff] }
 0xafc   :  { %v8965_v30 = vrot.slane %v4329_v14, %v20438_v21  ;;  %v8847_v39 = vrot.slane %v4257_v63, %v20437_v1  ;;  %v4276_v14 = vsel %vm20568_vm13, %v20567_v42, 0.0  ;;  %vm20578_vm13 = vmmov %vm20484_vm0 }
 0xafe   :  { %v8966_v18 = vsel %vm4847_vm4, %v8965_v30, %v8961_v19  ;;  %v8848_v43 = vsel %vm4854_vm5, %v8847_v39, %v8843_v0  ;;  %4163 = vadd.xlane.f32.xlu1 %v4162_v28  ;;  %4592 = vadd.xlane.f32.xlu0 %v4591_v17  ;;  %v20569_v39 = vld [vmem:[#allocation29_spill] sm:$0xff] }
 0xaff   :  { %v4473_v5 = vpop.xlane.xlu1 %4472  ;;  %v4401_v7 = vpop.xlane.xlu0 %4400  ;;  %v4378_v59 = vsel %vm20570_vm14, %v20569_v39, 0.0  ;;  %v20571_v28 = vld [vmem:[#allocation37_spill] sm:$0xff]  ;;  %vm20579_vm14 = vmmov %vm20484_vm0 }
 0xb00   :  { %v9201_v11 = vrot.slane %v4473_v5, %v20431_v33  ;;  %v9083_v9 = vrot.slane %v4401_v7, %v20436_v45  ;;  %v4348_v17 = vsel %vm20572_vm15, %v20571_v28, 0.0  ;;  %vm20581_vm15 = vmmov %vm20484_vm0 }
 0xb02   :  { %v9202_v34 = vsel %vm4833_vm2, %v9201_v11, %v9197_v46  ;;  %v9084_v19 = vsel %vm4840_vm3, %v9083_v9, %v9079_v41  ;;  %4235 = vadd.xlane.f32.xlu1 %v4234_v2  ;;  %4205 = vadd.xlane.f32.xlu0 %v4204_v50  ;;  %v4450_v50 = vsel %vm20574_vm9, %v20573_v16, 0.0  ;;  %v20582_v16 = vld [vmem:[#allocation107_spill] sm:$0xff]  ;;  %vm20583_vm9 = vmmov %vm20484_vm0 }
 0xb03   :  { %v4545_v0 = vpop.xlane.xlu1 %4544  ;;  %v4542_v48 = vpop.xlane.xlu0 %4541 }
 0xb04   :  { %v9319_v52 = vrot.slane %v4545_v0, %v20430_v35  ;;  %v9315_v3 = vrot.slane %v4542_v48, %v20429_v38  ;;  %v20575_v0 = vld [vmem:[#allocation63_spill] sm:$0xff] }
 0xb05   :  { %v4420_v48 = vsel %vm20576_vm12, %v20575_v0, 0.0  ;;  %vm20585_vm12 = vmmov %vm20484_vm0 }
 0xb06   :  { %v9320_v63 = vsel %vm4826_vm1, %v9319_v52, %v9315_v3  ;;  %4307 = vadd.xlane.f32.xlu1 %v4306_v22  ;;  %4277 = vadd.xlane.f32.xlu0 %v4276_v14  ;;  %v4522_v14 = vsel %vm20577_vm11, %v18124_v29, 0.0  ;;  %v4564_v29 = vsel %vm20579_vm14, %v18196_v36, 0.0  ;;  %vm20587_vm11 = vmmov %vm20484_vm0 }
 0xb07   :  { %v4215_v46 = vpop.xlane.xlu1 %4214  ;;  %v4188_v41 = vpop.xlane.xlu0 %4187  ;;  %vm20592_vm14 = vmmov %vm20484_vm0 }
 0xb08   :  { %v8734_v30 = vrot.slane %v4188_v41, %v20443_v10  ;;  %v8779_v9 = vrot.slane %v4215_v46, %v20429_v38  ;;  %v4492_v46 = vsel %vm20484_vm0, %v18076_v24, 0.0 }
 0xb0a   :  { %v8735_v5 = vsel %vm4868_vm7, %v8734_v30, %v8730_v61  ;;  %4379 = vadd.xlane.f32.xlu1 %v4378_v59  ;;  %4349 = vadd.xlane.f32.xlu0 %v4348_v17  ;;  %v4594_v17 = vsel %vm20578_vm13, %v18244_v44, 0.0  ;;  %v4207_v44 = vsel %vm20583_vm9, %v20582_v16, 0.0  ;;  %vm20590_vm13 = vmmov %vm20484_vm0  ;;  %v20593_v16 = vld [vmem:[#allocation66_spill] sm:$0xff] }
 0xb0b   :  { %v4260_v7 = vpop.xlane.xlu1 %4259  ;;  %v4218_v11 = vpop.xlane.xlu0 %4217  ;;  %vm20595_vm9 = vmmov %vm20484_vm0 }
 0xb0c   :  { %v8852_v8 = vrot.slane %v4260_v7, %v20444_v12  ;;  %v8783_v2 = vrot.slane %v4218_v11, %v20430_v35 }
 0xb0e   :  { %v8853_v52 = vsel %vm4861_vm6, %v8852_v8, %v8848_v43  ;;  %v8784_v61 = vsel %vm4826_vm1, %v8783_v2, %v8779_v9  ;;  %4451 = vadd.xlane.f32.xlu1 %v4450_v50  ;;  %4421 = vadd.xlane.f32.xlu0 %v4420_v48  ;;  %v20580_v8 = vld [vmem:[#allocation116_spill] sm:$0xff]  ;;  %v20584_v48 = vld [vmem:[#allocation35_spill] sm:$0xff] }
 0xb0f   :  { %v4404_v3 = vpop.xlane.xlu1 %4403  ;;  %v4332_v60 = vpop.xlane.xlu0 %4331  ;;  %v4237_v2 = vsel %vm20581_vm15, %v20580_v8, 0.0  ;;  %v20591_v8 = vld [vmem:[#allocation86_spill] sm:$0xff]  ;;  %vm20594_vm15 = vmmov %vm20484_vm0 }
 0xb10   :  { %v9088_v22 = vrot.slane %v4404_v3, %v20438_v21  ;;  %v8970_v42 = vrot.slane %v4332_v60, %v20437_v1  ;;  %v4309_v3 = vsel %vm20585_vm12, %v20584_v48, 0.0  ;;  %v20586_v60 = vld [vmem:[#allocation21_spill] sm:$0xff]  ;;  %vm20596_vm12 = vmmov %vm20484_vm0 }
 0xb12   :  { %v9089_v41 = vsel %vm4847_vm4, %v9088_v22, %v9084_v19  ;;  %v8971_v43 = vsel %vm4854_vm5, %v8970_v42, %v8966_v18  ;;  %4523 = vadd.xlane.f32.xlu1 %v4522_v14  ;;  %4493 = vadd.xlane.f32.xlu0 %v4492_v46  ;;  %v4279_v22 = vsel %vm20587_vm11, %v20586_v60, 0.0  ;;  %v4525_v60 = vsel %vm20595_vm9, %v18122_v31, 0.0  ;;  %vm20597_vm11 = vmmov %vm20484_vm0 }
 0xb13   :  { %v4548_v30 = vpop.xlane.xlu1 %4547  ;;  %v4476_v39 = vpop.xlane.xlu0 %4475  ;;  %v4567_v31 = vsel %vm20484_vm0, %v18190_v53, 0.0  ;;  %vm20604_vm9 = vmmov %vm20484_vm0 }
 0xb14   :  { %v9324_v59 = vrot.slane %v4548_v30, %v20431_v33  ;;  %v9206_v28 = vrot.slane %v4476_v39, %v20436_v45  ;;  %v20588_v39 = vld [vmem:[#allocation53_spill] sm:$0xff] }
 0xb16   :  { %v9325_v24 = vsel %vm4833_vm2, %v9324_v59, %v9320_v63  ;;  %v9207_v19 = vsel %vm4840_vm3, %v9206_v28, %v9202_v34  ;;  %4595 = vadd.xlane.f32.xlu1 %v4594_v17  ;;  %4565 = vadd.xlane.f32.xlu0 %v4564_v29  ;;  %v4381_v59 = vsel %vm20484_vm0, %v20588_v39, 0.0  ;;  %v20589_v28 = vld [vmem:[#allocation47_spill] sm:$0xff] }
 0xb17   :  { %v4221_v18 = vpop.xlane.xlu1 %4220  ;;  %v4191_v7 = vpop.xlane.xlu0 %4190  ;;  %v4351_v17 = vsel %vm20590_vm13, %v20589_v28, 0.0  ;;  %vm20598_vm13 = vcmask 654912  }
 0xb18   :  { %v8788_v11 = vrot.slane %v4221_v18, %v20431_v33  ;;  %v8739_v9 = vrot.slane %v4191_v7, %v20447_v20 }
 0xb1a   :  { %v8789_v36 = vsel %vm4833_vm2, %v8788_v11, %v8784_v61  ;;  %v8740_v63 = vsel %vm4875_vm8, %v8739_v9, %v8735_v5  ;;  %4238 = vadd.xlane.f32.xlu1 %v4237_v2  ;;  %4208 = vadd.xlane.f32.xlu0 %v4207_v44  ;;  %v4453_v2 = vsel %vm20592_vm14, %v20591_v8, 0.0  ;;  %v4423_v44 = vsel %vm20594_vm15, %v20593_v16, 0.0  ;;  %vm20600_vm14 = vmmov %vm20484_vm0  ;;  %v20603_v8 = vld [vmem:[#allocation20_spill] sm:$0xff] }
 0xb1b   :  { %v4290_v34 = vpop.xlane.xlu1 %4289  ;;  %v4263_v50 = vpop.xlane.xlu0 %4262  ;;  %vm20602_vm15 = vmmov %vm20484_vm0  ;;  %v20605_v16 = vld [vmem:[#allocation48_spill] sm:$0xff] }
 0xb1c   :  { %v8857_v0 = vrot.slane %v4263_v50, %v20443_v10  ;;  %v8902_v5 = vrot.slane %v4290_v34, %v20429_v38 }
 0xb1e   :  { %v8858_v42 = vsel %vm4868_vm7, %v8857_v0, %v8853_v52  ;;  %4310 = vadd.xlane.f32.xlu1 %v4309_v3  ;;  %4280 = vadd.xlane.f32.xlu0 %v4279_v22  ;;  %v4495_v22 = vsel %vm20596_vm12, %v18070_v6, 0.0  ;;  %vm20606_vm12 = vmmov %vm20484_vm0 }
 0xb1f   :  { %v4335_v14 = vpop.xlane.xlu1 %4334  ;;  %v4293_v61 = vpop.xlane.xlu0 %4292 }
 0xb20   :  { %v8975_v46 = vrot.slane %v4335_v14, %v20444_v12  ;;  %v8906_v30 = vrot.slane %v4293_v61, %v20430_v35 }
 0xb22   :  { %v8976_v29 = vsel %vm4861_vm6, %v8975_v46, %v8971_v43  ;;  %v8907_v52 = vsel %vm4826_vm1, %v8906_v30, %v8902_v5  ;;  %4382 = vadd.xlane.f32.xlu1 %v4381_v59  ;;  %4352 = vadd.xlane.f32.xlu0 %v4351_v17  ;;  %v4597_v30 = vsel %vm20597_vm11, %v18242_v37, 0.0  ;;  %v20599_v17 = vld [vmem:[#allocation32_spill] sm:$0xff]  ;;  %vm20608_vm11 = vmmov %vm20484_vm0 }
 0xb23   :  { %v4479_v18 = vpop.xlane.xlu1 %4478  ;;  %v4407_v7 = vpop.xlane.xlu0 %4406 }
 0xb24   :  { %v9211_v11 = vrot.slane %v4479_v18, %v20438_v21  ;;  %v9093_v9 = vrot.slane %v4407_v7, %v20437_v1  ;;  %v4282_v18 = vsel %vm20600_vm14, %v20599_v17, 0.0  ;;  %v20601_v7 = vld [vmem:[#allocation111_spill] sm:$0xff]  ;;  %vm20612_vm14 = vmmov %vm20484_vm0 }
 0xb25   :  { %v4210_v37 = vsel %vm20602_vm15, %v20601_v7, 0.0  ;;  %vm20613_vm15 = vmmov %vm20484_vm0 }
 0xb26   :  { %v9212_v34 = vsel %vm4847_vm4, %v9211_v11, %v9207_v19  ;;  %v9094_v43 = vsel %vm4854_vm5, %v9093_v9, %v9089_v41  ;;  %4454 = vadd.xlane.f32.xlu1 %v4453_v2  ;;  %4424 = vadd.xlane.f32.xlu0 %v4423_v44  ;;  %v4354_v2 = vsel %vm20604_vm9, %v20603_v8, 0.0  ;;  %v4312_v44 = vsel %vm20606_vm12, %v20605_v16, 0.0  ;;  %vm20614_vm9 = vmmov %vm20484_vm0 }
 0xb27   :  { %v4152_v50 = vpop.xlane.xlu1 %4151  ;;  %v4551_v0 = vpop.xlane.xlu0 %4550  ;;  %vm20616_vm12 = vmmov %vm20484_vm0 }
 0xb28   :  { %v8675_v48 = vrot.slane %v4152_v50, %v20438_v21  ;;  %v9329_v3 = vrot.slane %v4551_v0, %v20436_v45 }
 0xb2a   :  { %v8676_v14 = vsel %vm4847_vm4, %v8675_v48, %v18462_v54  ;;  %v9330_v19 = vsel %vm4840_vm3, %v9329_v3, %v9325_v24  ;;  %4526 = vadd.xlane.f32.xlu1 %v4525_v60  ;;  %4496 = vadd.xlane.f32.xlu0 %v4495_v22  ;;  %v20607_v60 = vld [vmem:[#allocation65_spill] sm:$0xff] }
 0xb2b   :  { %v4224_v41 = vpop.xlane.xlu1 %4223  ;;  %v4194_v61 = vpop.xlane.xlu0 %4193  ;;  %v4426_v22 = vsel %vm20608_vm11, %v20607_v60, 0.0  ;;  %vm20617_vm11 = vmmov %vm20484_vm0 }
 0xb2c   :  { %v8793_v5 = vrot.slane %v4224_v41, %v20436_v45  ;;  %v8744_v46 = vrot.slane %v4194_v61, %v20446_v32  ;;  %v20609_v41 = vld [vmem:[#allocation55_spill] sm:$0xff] }
 0xb2d   :  { %v4384_v61 = vsel %vm20484_vm0, %v20609_v41, 0.0 }
 0xb2e   :  { %v8794_v6 = vsel %vm4840_vm3, %v8793_v5, %v8789_v36  ;;  %v8745_v54 = vsel %vm20598_vm13, %v8744_v46, %v8740_v63  ;;  %4598 = vadd.xlane.f32.xlu1 %v4597_v30  ;;  %4568 = vadd.xlane.f32.xlu0 %v4567_v31  ;;  %vm20610_vm13 = vmmov %vm20484_vm0  ;;  %vm20618_vm0 = vcmask 654912  }
 0xb2f   :  { %v4296_v24 = vpop.xlane.xlu1 %4295  ;;  %v4266_v39 = vpop.xlane.xlu0 %4265 }
 0xb30   :  { %v8911_v59 = vrot.slane %v4296_v24, %v20431_v33  ;;  %v8862_v28 = vrot.slane %v4266_v39, %v20447_v20  ;;  %v4498_v39 = vsel %vm20610_vm13, %v18084_v57, 0.0  ;;  %v4528_v57 = vsel %vm20614_vm9, %v18136_v4, 0.0  ;;  %vm20620_vm13 = vmmov %vm20614_vm9 }
 0xb32   :  { %v8912_v53 = vsel %vm4833_vm2, %v8911_v59, %v8907_v52  ;;  %v8863_v36 = vsel %vm4875_vm8, %v8862_v28, %v8858_v42  ;;  %4283 = vadd.xlane.f32.xlu1 %v4282_v18  ;;  %4211 = vadd.xlane.f32.xlu0 %v4210_v37  ;;  %v20611_v59 = vld [vmem:[#allocation81_spill] sm:$0xff] }
 0xb33   :  { %v4365_v63 = vpop.xlane.xlu1 %4364  ;;  %v4338_v11 = vpop.xlane.xlu0 %4337  ;;  %v4456_v28 = vsel %vm20612_vm14, %v20611_v59, 0.0  ;;  %vm20622_vm14 = vmmov %vm20614_vm9 }
 0xb34   :  { %v8980_v9 = vrot.slane %v4338_v11, %v20443_v10  ;;  %v9025_v42 = vrot.slane %v4365_v63, %v20429_v38  ;;  %v4570_v11 = vsel %vm20613_vm15, %v18204_v25, 0.0  ;;  %v4600_v25 = vsel %vm20617_vm11, %v18256_v27, 0.0  ;;  %vm20624_vm15 = vmmov %vm20614_vm9 }
 0xb35   :  { %vm20627_vm11 = vmmov %vm20614_vm9 }
 0xb36   :  { %v8981_v50 = vsel %vm4868_vm7, %v8980_v9, %v8976_v29  ;;  %4355 = vadd.xlane.f32.xlu1 %v4354_v2  ;;  %4313 = vadd.xlane.f32.xlu0 %v4312_v44  ;;  %v20615_v44 = vld [vmem:[#allocation22_spill] sm:$0xff] }
 0xb37   :  { %v4410_v0 = vpop.xlane.xlu1 %4409  ;;  %v4368_v52 = vpop.xlane.xlu0 %4367 }
 0xb38   :  { %v9098_v48 = vrot.slane %v4410_v0, %v20444_v12  ;;  %v9029_v3 = vrot.slane %v4368_v52, %v20430_v35  ;;  %v4285_v0 = vsel %vm20616_vm12, %v20615_v44, 0.0  ;;  %vm20626_vm12 = vmmov %vm20614_vm9 }
 0xb3a   :  { %v9099_v5 = vsel %vm4861_vm6, %v9098_v48, %v9094_v43  ;;  %v9030_v29 = vsel %vm4826_vm1, %v9029_v3, %v9025_v42  ;;  %4427 = vadd.xlane.f32.xlu1 %v4426_v22  ;;  %4385 = vadd.xlane.f32.xlu0 %v4384_v61  ;;  %v20619_v3 = vld [vmem:[#allocation58_spill] sm:$0xff] }
 0xb3b   :  { %v4554_v46 = vpop.xlane.xlu1 %4553  ;;  %v4482_v30 = vpop.xlane.xlu0 %4481  ;;  %v4387_v60 = vsel %vm20620_vm13, %v20619_v3, 0.0  ;;  %v20621_v22 = vld [vmem:[#allocation46_spill] sm:$0xff] }
 0xb3c   :  { %v9334_v31 = vrot.slane %v4554_v46, %v20438_v21  ;;  %v9216_v24 = vrot.slane %v4482_v30, %v20437_v1  ;;  %v4357_v41 = vsel %vm20622_vm14, %v20621_v22, 0.0 }
 0xb3e   :  { %v9335_v17 = vsel %vm4847_vm4, %v9334_v31, %v9330_v19  ;;  %v9217_v43 = vsel %vm4854_vm5, %v9216_v24, %v9212_v34  ;;  %4499 = vadd.xlane.f32.xlu1 %v4498_v39  ;;  %4457 = vadd.xlane.f32.xlu0 %v4456_v28  ;;  %v20623_v31 = vld [vmem:[#allocation2_spill] sm:$0xff]  ;;  %v20625_v39 = vld [vmem:[#allocation67_spill] sm:$0xff] }
 0xb3f   :  { %v4197_v18 = vpop.xlane.xlu1 %4196  ;;  %v4155_v7 = vpop.xlane.xlu0 %4154  ;;  %v4459_v24 = vsel %vm20624_vm15, %v20623_v31, 0.0  ;;  %v4429_v59 = vsel %vm20614_vm9, %v20625_v39, 0.0 }
 0xb40   :  { %v8749_v37 = vrot.slane %v4197_v18, %v20454_v13  ;;  %v8680_v63 = vrot.slane %v4155_v7, %v20437_v1 }
 0xb42   :  { %v8750_v9 = vsel %vm4889_vm10, %v8749_v37, %v8745_v54  ;;  %v8681_v19 = vsel %vm4854_vm5, %v8680_v63, %v8676_v14  ;;  %4571 = vadd.xlane.f32.xlu1 %v4570_v11  ;;  %4529 = vadd.xlane.f32.xlu0 %v4528_v57  ;;  %v4531_v63 = vsel %vm20626_vm12, %v18130_v62, 0.0  ;;  %v4501_v11 = vsel %vm20627_vm11, %v18082_v47, 0.0 }
 0xb43   :  { %v4269_v34 = vpop.xlane.xlu1 %4268  ;;  %v4227_v8 = vpop.xlane.xlu0 %4226 }
 0xb44   :  { %v8867_v2 = vrot.slane %v4269_v34, %v20446_v32  ;;  %v8798_v16 = vrot.slane %v4227_v8, %v20438_v21 }
 0xb46   :  { %v8868_v4 = vsel %vm20618_vm0, %v8867_v2, %v8863_v36  ;;  %v8799_v54 = vsel %vm4847_vm4, %v8798_v16, %v8794_v6  ;;  %4286 = vadd.xlane.f32.xlu1 %v4285_v0  ;;  %4601 = vadd.xlane.f32.xlu0 %v4600_v25  ;;  %vm20628_vm0 = vmmov %vm20614_vm9  ;;  %vm20634_vm9 = vcmask 786112  }
 0xb47   :  { %v4341_v14 = vpop.xlane.xlu1 %4340  ;;  %v4299_v52 = vpop.xlane.xlu0 %4298  ;;  %v4603_v2 = vsel %vm20628_vm0, %v18250_v58, 0.0  ;;  %vm20629_vm13 = vmmov %vm20628_vm0  ;;  %v20632_v58 = vld [vmem:[#allocation54_spill] sm:$0xff] }
 0xb48   :  { %v8985_v42 = vrot.slane %v4341_v14, %v20447_v20  ;;  %v8916_v48 = vrot.slane %v4299_v52, %v20436_v45  ;;  %v4573_v16 = vsel %vm20629_vm13, %v18202_v55, 0.0  ;;  %v20630_v52 = vld [vmem:[#allocation83_spill] sm:$0xff]  ;;  %vm20631_vm14 = vmmov %vm20628_vm0 }
 0xb49   :  { %vm20633_vm15 = vmmov %vm20628_vm0 }
 0xb4a   :  { %v8986_v27 = vsel %vm4875_vm8, %v8985_v42, %v8981_v50  ;;  %v8917_v36 = vsel %vm4840_vm3, %v8916_v48, %v8912_v53  ;;  %4388 = vadd.xlane.f32.xlu1 %v4387_v60  ;;  %4358 = vadd.xlane.f32.xlu0 %v4357_v41  ;;  %v4432_v42 = vsel %vm20631_vm14, %v20630_v52, 0.0  ;;  %v4360_v48 = vsel %vm20633_vm15, %v20632_v58, 0.0  ;;  %v20635_v41 = vld [vmem:[#allocation72_spill] sm:$0xff]  ;;  %vm20636_vm12 = vmmov %vm20628_vm0 }
 0xb4b   :  { %v4413_v6 = vpop.xlane.xlu1 %4412  ;;  %v4371_v61 = vpop.xlane.xlu0 %4370  ;;  %vm20638_vm11 = vmmov %vm20628_vm0  ;;  %vm20642_vm14 = vcmask 654912  }
 0xb4c   :  { %v9103_v46 = vrot.slane %v4413_v6, %v20443_v10  ;;  %v9034_v30 = vrot.slane %v4371_v61, %v20431_v33  ;;  %v4504_v6 = vsel %vm20636_vm12, %v20635_v41, 0.0  ;;  %v20637_v61 = vld [vmem:[#allocation85_spill] sm:$0xff]  ;;  %vm20641_vm13 = vmmov %vm20628_vm0 }
 0xb4d   :  { %vm20644_vm15 = vmmov %vm20628_vm0 }
 0xb4e   :  { %v9104_v28 = vsel %vm4868_vm7, %v9103_v46, %v9099_v5  ;;  %v9035_v50 = vsel %vm4833_vm2, %v9034_v30, %v9030_v29  ;;  %4460 = vadd.xlane.f32.xlu1 %v4459_v24  ;;  %4430 = vadd.xlane.f32.xlu0 %v4429_v59  ;;  %v4462_v46 = vsel %vm20638_vm11, %v20637_v61, 0.0  ;;  %v20639_v59 = vld [vmem:[#allocation82_spill] sm:$0xff]  ;;  %vm20648_vm12 = vmmov %vm20628_vm0 }
 0xb4f   :  { %v4443_v53 = vpop.xlane.xlu1 %4442  ;;  %v4440_v18 = vpop.xlane.xlu0 %4439  ;;  %vm20650_vm11 = vmmov %vm20628_vm0 }
 0xb50   :  { %v9152_v7 = vrot.slane %v4443_v53, %v20430_v35  ;;  %v9148_v37 = vrot.slane %v4440_v18, %v20429_v38  ;;  %v4576_v53 = vsel %vm20628_vm0, %v20639_v59, 0.0  ;;  %v20640_v18 = vld [vmem:[#allocation87_spill] sm:$0xff]  ;;  %v20656_v59 = vld [vmem:[#allocation73_spill] sm:$0xff] }
 0xb52   :  { %v9153_v57 = vsel %vm4826_vm1, %v9152_v7, %v9148_v37  ;;  %4532 = vadd.xlane.f32.xlu1 %v4531_v63  ;;  %4502 = vadd.xlane.f32.xlu0 %v4501_v11  ;;  %v4534_v7 = vsel %vm20641_vm13, %v20640_v18, 0.0  ;;  %vm20653_vm13 = vmmov %vm20628_vm0 }
 0xb53   :  { %v4557_v5 = vpop.xlane.xlu1 %4556  ;;  %v4485_v29 = vpop.xlane.xlu0 %4484 }
 0xb54   :  { %v9339_v34 = vrot.slane %v4557_v5, %v20437_v1  ;;  %v9221_v8 = vrot.slane %v4485_v29, %v20444_v12  ;;  %v20643_v29 = vld [vmem:[#allocation78_spill] sm:$0xff] }
 0xb56   :  { %v18720_v62 = vsel %vm4854_vm5, %v9339_v34, %v9335_v17  ;;  %v9222_v47 = vsel %vm4861_vm6, %v9221_v8, %v9217_v43  ;;  %4604 = vadd.xlane.f32.xlu1 %v4603_v2  ;;  %4574 = vadd.xlane.f32.xlu0 %v4573_v16  ;;  %v4435_v34 = vsel %vm20644_vm15, %v20643_v29, 0.0  ;;  %v20645_v8 = vld [vmem:[#allocation68_spill] sm:$0xff]  ;;  %vm20657_vm15 = vmmov %vm20628_vm0  ;;  %v20658_v29 = vld [vmem:[#allocation89_spill] sm:$0xff] }
 0xb57   :  { %v4200_v44 = vpop.xlane.xlu1 %4199  ;;  %v4158_v0 = vpop.xlane.xlu0 %4157 }
 0xb58   :  { %v8754_v25 = vrot.slane %v4200_v44, %v20453_v56  ;;  %v8685_v14 = vrot.slane %v4158_v0, %v20444_v12 }
 0xb5a   :  { %v18730_v55 = vsel %vm20634_vm9, %v8754_v25, %v8750_v9  ;;  %v8686_v17 = vsel %vm4861_vm6, %v8685_v14, %v8681_v19  ;;  %4433 = vadd.xlane.f32.xlu1 %v4432_v42  ;;  %4361 = vadd.xlane.f32.xlu0 %v4360_v48  ;;  %vm20646_vm9 = vmmov %vm20628_vm0  ;;  %v20647_v14 = vld [vmem:[#allocation77_spill] sm:$0xff]  ;;  %v20649_v42 = vld [vmem:[#allocation88_spill] sm:$0xff] }
 0xb5b   :  { %v4272_v43 = vpop.xlane.xlu1 %4271  ;;  %v4230_v3 = vpop.xlane.xlu0 %4229  ;;  %v4606_v2 = vsel %vm20646_vm9, %v20645_v8, 0.0  ;;  %v4537_v52 = vsel %vm20648_vm12, %v20647_v14, 0.0  ;;  %v4507_v58 = vsel %vm20650_vm11, %v20649_v42, 0.0  ;;  %vm20659_vm9 = vmmov %vm20628_vm0  ;;  %v20660_v8 = vld [vmem:[#allocation69_spill] sm:$0xff]  ;;  %vm20662_vm11 = vcmask 851712  }
 0xb5c   :  { %v8872_v60 = vrot.slane %v4272_v43, %v20454_v13  ;;  %v8803_v22 = vrot.slane %v4230_v3, %v20437_v1  ;;  %vm20661_vm12 = vmmov %vm20628_vm0 }
 0xb5e   :  { %v18740_v30 = vsel %vm4889_vm10, %v8872_v60, %v8868_v4  ;;  %v8804_v9 = vsel %vm4854_vm5, %v8803_v22, %v8799_v54  ;;  %4505 = vadd.xlane.f32.xlu1 %v4504_v6  ;;  %4463 = vadd.xlane.f32.xlu0 %v4462_v46  ;;  %v20651_v22 = vld [vmem:[#allocation91_spill] sm:$0xff]  ;;  %v20652_v6 = vld [vmem:[#allocation90_spill] sm:$0xff] }
 0xb5f   :  { %v4344_v19 = vpop.xlane.xlu1 %4343  ;;  %v4302_v31 = vpop.xlane.xlu0 %4301  ;;  %v4609_v41 = vsel %vm20628_vm0, %v20651_v22, 0.0  ;;  %v4579_v61 = vsel %vm20653_vm13, %v20652_v6, 0.0  ;;  %vm20664_vm13 = vcmask 654912  }
 0xb60   :  { %v8990_v24 = vrot.slane %v4344_v19, %v20446_v32  ;;  %v8921_v39 = vrot.slane %v4302_v31, %v20438_v21 }
 0xb62   :  { %v18750_v37 = vsel %vm20642_vm14, %v8990_v24, %v8986_v27  ;;  %v8922_v4 = vsel %vm4847_vm4, %v8921_v39, %v8917_v36  ;;  %4577 = vadd.xlane.f32.xlu1 %v4576_v53  ;;  %4535 = vadd.xlane.f32.xlu0 %v4534_v7  ;;  %v20654_v24 = vld [vmem:[#allocation74_spill] sm:$0xff]  ;;  %vm20655_vm14 = vmmov %vm20628_vm0  ;;  %v4510_v53 = vsel %vm20657_vm15, %v20656_v59, 0.0  ;;  %vm20663_vm0 = vcmask 786112  }
 0xb63   :  { %v4416_v54 = vpop.xlane.xlu1 %4415  ;;  %v4374_v63 = vpop.xlane.xlu0 %4373  ;;  %v4582_v39 = vsel %vm20655_vm14, %v20654_v24, 0.0  ;;  %vm20665_vm14 = vcmask 1041409   ;;  %vm20666_vm15 = vcmask 917312  }
 0xb64   :  { %v9108_v11 = vrot.slane %v4416_v54, %v20447_v20  ;;  %v9039_v5 = vrot.slane %v4374_v63, %v20436_v45 }
 0xb66   :  { %v9109_v16 = vsel %vm4875_vm8, %v9108_v11, %v9104_v28  ;;  %v9040_v27 = vsel %vm4840_vm3, %v9039_v5, %v9035_v50  ;;  %4436 = vadd.xlane.f32.xlu1 %v4435_v34  ;;  %4607 = vadd.xlane.f32.xlu0 %v4606_v2  ;;  %v4585_v34 = vsel %vm20659_vm9, %v20658_v29, 0.0  ;;  %v4612_v2 = vsel %vm20661_vm12, %v20660_v8, 0.0  ;;  %vm20668_vm9 = vmmov %vm20663_vm0 }
 0xb67   :  { %v4488_v36 = vpop.xlane.xlu1 %4487  ;;  %v4446_v44 = vpop.xlane.xlu0 %4445  ;;  %vm20669_vm12 = vmmov %vm20664_vm13 }
 0xb68   :  { %v9226_v0 = vrot.slane %v4488_v36, %v20443_v10  ;;  %v9157_v25 = vrot.slane %v4446_v44, %v20431_v33 }
 0xb6a   :  { %v9227_v48 = vsel %vm4868_vm7, %v9226_v0, %v9222_v47  ;;  %v9158_v28 = vsel %vm4833_vm2, %v9157_v25, %v9153_v57  ;;  %4538 = vadd.xlane.f32.xlu1 %v4537_v52  ;;  %4508 = vadd.xlane.f32.xlu0 %v4507_v58 }
 0xb6b   :  { %v4518_v50 = vpop.xlane.xlu1 %4517  ;;  %v4515_v43 = vpop.xlane.xlu0 %4514 }
 0xb6c   :  { %v9275_v3 = vrot.slane %v4518_v50, %v20430_v35  ;;  %v9271_v60 = vrot.slane %v4515_v43, %v20429_v38 }
 0xb6e   :  { %v9276_v46 = vsel %vm4826_vm1, %v9275_v3, %v9271_v60  ;;  %4610 = vadd.xlane.f32.xlu1 %v4609_v41  ;;  %4580 = vadd.xlane.f32.xlu0 %v4579_v61 }
 0xb6f   :  { %v4161_v47 = vpop.xlane.xlu1 %4160  ;;  %v4560_v57 = vpop.xlane.xlu0 %4559 }
 0xb70   :  { %v8690_v19 = vrot.slane %v4161_v47, %v20443_v10  ;;  %v9344_v31 = vrot.slane %v4560_v57, %v20444_v12 }
 0xb72   :  { %v8691_v18 = vsel %vm4868_vm7, %v8690_v19, %v8686_v17  ;;  %v9345_v7 = vsel %vm4861_vm6, %v9344_v31, %v18720_v62  ;;  %4583 = vadd.xlane.f32.xlu1 %v4582_v39  ;;  %4511 = vadd.xlane.f32.xlu0 %v4510_v53 }
 0xb73   :  { %v4233_v54 = vpop.xlane.xlu1 %4232  ;;  %v4203_v63 = vpop.xlane.xlu0 %4202 }
 0xb74   :  { %v8808_v11 = vrot.slane %v4233_v54, %v20444_v12  ;;  %v8759_v5 = vrot.slane %v4203_v63, %v20461_v51 }
 0xb76   :  { %v8809_v36 = vsel %vm4861_vm6, %v8808_v11, %v8804_v9  ;;  %v8760_v17 = vsel %vm20662_vm11, %v8759_v5, %v18730_v55  ;;  %4586 = vadd.xlane.f32.xlu1 %v4585_v34  ;;  %4613 = vadd.xlane.f32.xlu0 %v4612_v2 }
 0xb77   :  { %v4305_v62 = vpop.xlane.xlu1 %4304  ;;  %v4275_v44 = vpop.xlane.xlu0 %4274 }
 0xb78   :  { %v8926_v0 = vrot.slane %v4305_v62, %v20437_v1  ;;  %v8877_v25 = vrot.slane %v4275_v44, %v20453_v56 }
 0xb7a   :  { %v8927_v14 = vsel %vm4854_vm5, %v8926_v0, %v8922_v4  ;;  %v8878_v52 = vsel %vm20663_vm0, %v8877_v25, %v18740_v30  ;;  %vm20671_vm0 = vcmask 1042434  }
 0xb7b   :  { %v4377_v42 = vpop.xlane.xlu1 %4376  ;;  %v4347_v58 = vpop.xlane.xlu0 %4346 }
 0xb7c   :  { %v9044_v9 = vrot.slane %v4377_v42, %v20438_v21  ;;  %v8995_v50 = vrot.slane %v4347_v58, %v20454_v13 }
 0xb7e   :  { %v9045_v55 = vsel %vm4847_vm4, %v9044_v9, %v9040_v27  ;;  %v8996_v43 = vsel %vm4889_vm10, %v8995_v50, %v18750_v37 }
 0xb7f   :  { %v4449_v3 = vpop.xlane.xlu1 %4448  ;;  %v4419_v60 = vpop.xlane.xlu0 %4418 }
 0xb80   :  { %v9162_v22 = vrot.slane %v4449_v3, %v20436_v45  ;;  %v9113_v4 = vrot.slane %v4419_v60, %v20446_v32 }
 0xb82   :  { %v9163_v41 = vsel %vm4840_vm3, %v9162_v22, %v9158_v28  ;;  %v9114_v30 = vsel %vm20664_vm13, %v9113_v4, %v9109_v16 }
 0xb83   :  { %v4521_v6 = vpop.xlane.xlu1 %4520  ;;  %v4491_v61 = vpop.xlane.xlu0 %4490 }
 0xb84   :  { %v9280_v47 = vrot.slane %v4521_v6, %v20431_v33  ;;  %v9231_v57 = vrot.slane %v4491_v61, %v20447_v20 }
 0xb86   :  { %v9281_v27 = vsel %vm4833_vm2, %v9280_v47, %v9276_v46  ;;  %v9232_v37 = vsel %vm4875_vm8, %v9231_v57, %v9227_v48 }
 0xb87   :  { %v4590_v19 = vpop.xlane.xlu1 %4589  ;;  %v4563_v31 = vpop.xlane.xlu0 %4562 }
 0xb88   :  { %v9349_v24 = vrot.slane %v4563_v31, %v20443_v10  ;;  %v9394_v16 = vrot.slane %v4590_v19, %v20429_v38 }
 0xb8a   :  { %v9350_v39 = vsel %vm4868_vm7, %v9349_v24, %v9345_v7 }
 0xb8b   :  { %v4164_v59 = vpop.xlane.xlu1 %4163  ;;  %v4593_v28 = vpop.xlane.xlu0 %4592 }
 0xb8c   :  { %v8695_v53 = vrot.slane %v4164_v59, %v20447_v20  ;;  %v9398_v54 = vrot.slane %v4593_v28, %v20430_v35 }
 0xb8e   :  { %v8696_v63 = vsel %vm4875_vm8, %v8695_v53, %v8691_v18  ;;  %v9399_v46 = vsel %vm4826_vm1, %v9398_v54, %v9394_v16  ;;  %vm20667_vm1 = vmmov %vm20662_vm11  ;;  %vm20670_vm11 = vcmask 982912  }
 0xb8f   :  { %v9442_v48 = vsel %vm20665_vm14, %v8696_v63, %v18378_v26  ;;  %v4236_v11 = vpop.xlane.xlu1 %4235  ;;  %v4206_v5 = vpop.xlane.xlu0 %4205  ;;  %vm20673_vm13 = vmmov %vm20667_vm1 }
 0xb90   :  { %v8813_v29 = vrot.slane %v4236_v11, %v20443_v10  ;;  %v8764_v7 = vrot.slane %v4206_v5, %v20460_v49  ;;  %vm20674_vm14 = vmmov %vm20668_vm9 }
 0xb92   :  { %v8814_v34 = vsel %vm4868_vm7, %v8813_v29, %v8809_v36  ;;  %v8765_v38 = vsel %vm20666_vm15, %v8764_v7, %v8760_v17 }
 0xb93   :  { %v4308_v8 = vpop.xlane.xlu1 %4307  ;;  %v4278_v2 = vpop.xlane.xlu0 %4277 }
 0xb94   :  { %v8931_v35 = vrot.slane %v4308_v8, %v20444_v12  ;;  %v8882_v18 = vrot.slane %v4278_v2, %v20461_v51 }
 0xb96   :  { %v8932_v62 = vsel %vm4861_vm6, %v8931_v35, %v8927_v14  ;;  %v8883_v26 = vsel %vm20667_vm1, %v8882_v18, %v8878_v52  ;;  %vm20676_vm1 = vcmask 1048512  }
 0xb97   :  { %v4380_v44 = vpop.xlane.xlu1 %4379  ;;  %v4350_v0 = vpop.xlane.xlu0 %4349 }
 0xb98   :  { %v9049_v25 = vrot.slane %v4380_v44, %v20437_v1  ;;  %v9000_v42 = vrot.slane %v4350_v0, %v20453_v56 }
 0xb9a   :  { %v9050_v36 = vsel %vm4854_vm5, %v9049_v25, %v9045_v55  ;;  %v9001_v17 = vsel %vm20668_vm9, %v9000_v42, %v8996_v43  ;;  %vm20677_vm9 = vmmov %vm20671_vm0 }
 0xb9b   :  { %v4452_v58 = vpop.xlane.xlu1 %4451  ;;  %v4422_v9 = vpop.xlane.xlu0 %4421 }
 0xb9c   :  { %v9167_v50 = vrot.slane %v4452_v58, %v20438_v21  ;;  %v9118_v3 = vrot.slane %v4422_v9, %v20454_v13 }
 0xb9e   :  { %v9168_v14 = vsel %vm4847_vm4, %v9167_v50, %v9163_v41  ;;  %v9119_v52 = vsel %vm4889_vm10, %v9118_v3, %v9114_v30 }
 0xb9f   :  { %v4524_v60 = vpop.xlane.xlu1 %4523  ;;  %v4494_v22 = vpop.xlane.xlu0 %4493 }
 0xba0   :  { %v9285_v4 = vrot.slane %v4524_v60, %v20436_v45  ;;  %v9236_v6 = vrot.slane %v4494_v22, %v20446_v32 }
 0xba2   :  { %v9286_v55 = vsel %vm4840_vm3, %v9285_v4, %v9281_v27  ;;  %v9237_v43 = vsel %vm20669_vm12, %v9236_v6, %v9232_v37 }
 0xba3   :  { %v4596_v61 = vpop.xlane.xlu1 %4595  ;;  %v4566_v47 = vpop.xlane.xlu0 %4565 }
 0xba4   :  { %v9403_v57 = vrot.slane %v4596_v61, %v20431_v33  ;;  %v9354_v19 = vrot.slane %v4566_v47, %v20447_v20 }
 0xba6   :  { %v9404_v41 = vsel %vm4833_vm2, %v9403_v57, %v9399_v46  ;;  %v9355_v30 = vsel %vm4875_vm8, %v9354_v19, %v9350_v39  ;;  %vm20672_vm2 = vmmov %vm20666_vm15 }
 0xba7   :  { %v4239_v31 = vpop.xlane.xlu1 %4238  ;;  %v4209_v24 = vpop.xlane.xlu0 %4208  ;;  %vm20675_vm15 = vmmov %vm20669_vm12 }
 0xba8   :  { %v8818_v59 = vrot.slane %v4239_v31, %v20447_v20  ;;  %v8769_v28 = vrot.slane %v4209_v24, %v20469_v15  ;;  %vm20679_vm12 = vmmov %vm20670_vm11 }
 0xbaa   :  { %v8819_v27 = vsel %vm4875_vm8, %v8818_v59, %v8814_v34  ;;  %v8770_v37 = vsel %vm20670_vm11, %v8769_v28, %v8765_v38  ;;  %vm20680_vm11 = vmmov %vm20676_vm1 }
 0xbab   :  { %v9443_v16 = vsel %vm20671_vm0, %v8819_v27, %v9442_v48  ;;  %v4311_v53 = vpop.xlane.xlu1 %4310  ;;  %v4281_v33 = vpop.xlane.xlu0 %4280 }
 0xbac   :  { %v8936_v54 = vrot.slane %v4311_v53, %v20443_v10  ;;  %v8887_v63 = vrot.slane %v4281_v33, %v20460_v49 }
 0xbae   :  { %v8937_v39 = vsel %vm4868_vm7, %v8936_v54, %v8932_v62  ;;  %v8888_v46 = vsel %vm20672_vm2, %v8887_v63, %v8883_v26  ;;  %vm20682_vm2 = vcmask 1044484  }
 0xbaf   :  { %v4383_v11 = vpop.xlane.xlu1 %4382  ;;  %v4353_v5 = vpop.xlane.xlu0 %4352 }
 0xbb0   :  { %v9054_v29 = vrot.slane %v4383_v11, %v20444_v12  ;;  %v9005_v7 = vrot.slane %v4353_v5, %v20461_v51 }
 0xbb2   :  { %v9055_v34 = vsel %vm4861_vm6, %v9054_v29, %v9050_v36  ;;  %v9006_v48 = vsel %vm20673_vm13, %v9005_v7, %v9001_v17  ;;  %vm20683_vm13 = vcmask 917312  }
 0xbb3   :  { %v4455_v38 = vpop.xlane.xlu1 %4454  ;;  %v4425_v8 = vpop.xlane.xlu0 %4424 }
 0xbb4   :  { %v9172_v2 = vrot.slane %v4455_v38, %v20437_v1  ;;  %v9123_v35 = vrot.slane %v4425_v8, %v20453_v56 }
 0xbb6   :  { %v18861_v18 = vsel %vm4854_vm5, %v9172_v2, %v9168_v14  ;;  %v18864_v62 = vsel %vm20674_vm14, %v9123_v35, %v9119_v52  ;;  %vm20684_vm14 = vmmov %vm20679_vm12 }
 0xbb7   :  { %v4527_v26 = vpop.xlane.xlu1 %4526  ;;  %v4497_v44 = vpop.xlane.xlu0 %4496 }
 0xbb8   :  { %v9290_v0 = vrot.slane %v4527_v26, %v20438_v21  ;;  %v9241_v25 = vrot.slane %v4497_v44, %v20454_v13 }
 0xbba   :  { %v18869_v42 = vsel %vm4847_vm4, %v9290_v0, %v9286_v55  ;;  %v18872_v36 = vsel %vm4889_vm10, %v9241_v25, %v9237_v43 }
 0xbbb   :  { %v4599_v17 = vpop.xlane.xlu1 %4598  ;;  %v4569_v58 = vpop.xlane.xlu0 %4568 }
 0xbbc   :  { %v9408_v9 = vrot.slane %v4599_v17, %v20436_v45  ;;  %v9359_v50 = vrot.slane %v4569_v58, %v20446_v32 }
 0xbbe   :  { %v18877_v3 = vsel %vm4840_vm3, %v9408_v9, %v9404_v41  ;;  %v18880_v14 = vsel %vm20675_vm15, %v9359_v50, %v9355_v30  ;;  %vm20678_vm3 = vcmask 1043459   ;;  %vm20685_vm15 = vmmov %vm20676_vm1 }
 0xbbf   :  { %v4284_v52 = vpop.xlane.xlu1 %4283  ;;  %v4212_v60 = vpop.xlane.xlu0 %4211  ;;  %vm20681_vm0 = vmmov %vm20678_vm3 }
 0xbc0   :  { %v8774_v22 = vrot.slane %v4212_v60, %v20468_v23  ;;  %v8892_v24 = vrot.slane %v4284_v52, %v20469_v15 }
 0xbc2   :  { %v8775_v4 = vsel %vm20676_vm1, %v8774_v22, %v8770_v37  ;;  %v8893_v27 = vsel %vm20679_vm12, %v8892_v24, %v8888_v46  ;;  %vm20686_vm1 = vmmov %vm20682_vm2 }
 0xbc3   :  { %v9436_v6 = vsel %vm20677_vm9, %v8775_v4, %v18445_v40  ;;  %v4356_v55 = vpop.xlane.xlu1 %4355  ;;  %v4314_v43 = vpop.xlane.xlu0 %4313  ;;  %vm20687_vm9 = vcmask 1045509   ;;  %vm20689_vm12 = vmmov %vm20683_vm13 }
 0xbc4   :  { %v8941_v45 = vrot.slane %v4314_v43, %v20447_v20  ;;  %v9010_v35 = vrot.slane %v4356_v55, %v20460_v49 }
 0xbc6   :  { %v8942_v32 = vsel %vm4875_vm8, %v8941_v45, %v8937_v39 }
 0xbc7   :  { %v9444_v61 = vsel %vm20678_vm3, %v8942_v32, %v9443_v16  ;;  %v4428_v47 = vpop.xlane.xlu1 %4427  ;;  %v4386_v57 = vpop.xlane.xlu0 %4385  ;;  %vm20688_vm3 = vcmask 851712  }
 0xbc8   :  { %v9059_v37 = vrot.slane %v4386_v57, %v20443_v10  ;;  %v9128_v43 = vrot.slane %v4428_v47, %v20461_v51 }
 0xbca   :  { %v9060_v39 = vsel %vm4868_vm7, %v9059_v37, %v9055_v34  ;;  %v9011_v34 = vsel %vm20683_vm13, %v9010_v35, %v9006_v48  ;;  %v9129_v24 = vsel %vm20688_vm3, %v9128_v43, %v18864_v62  ;;  %vm20693_vm13 = vcmask 1046534  }
 0xbcb   :  { %v18889_v19 = vpop.xlane.xlu1 %4499  ;;  %v4458_v41 = vpop.xlane.xlu0 %4457 }
 0xbcc   :  { %v9177_v25 = vrot.slane %v4458_v41, %v20444_v12 }
 0xbce   :  { %v9178_v4 = vsel %vm4861_vm6, %v9177_v25, %v18861_v18 }
 0xbcf   :  { %v18891_v30 = vpop.xlane.xlu1 %4571  ;;  %v4530_v31 = vpop.xlane.xlu0 %4529 }
 0xbd0   :  { %v9295_v18 = vrot.slane %v4530_v31, %v20437_v1 }
 0xbd3   :  { %v4287_v59 = vpop.xlane.xlu1 %4286  ;;  %v18894_v40 = vpop.xlane.xlu0 %4601 }
 0xbd4   :  { %v8897_v28 = vrot.slane %v4287_v59, %v20468_v23 }
 0xbd6   :  { %v8898_v16 = vsel %vm20680_vm11, %v8897_v28, %v8893_v27  ;;  %vm20690_vm11 = vmmov %vm20684_vm14 }
 0xbd7   :  { %v9437_v53 = vsel %vm20681_vm0, %v8898_v16, %v9436_v6  ;;  %v4389_v33 = vpop.xlane.xlu1 %4388  ;;  %v4359_v54 = vpop.xlane.xlu0 %4358  ;;  %vm20691_vm0 = vmmov %vm20685_vm15 }
 0xbd8   :  { %v9064_v63 = vrot.slane %v4389_v33, %v20447_v20  ;;  %v9015_v26 = vrot.slane %v4359_v54, %v20469_v15  ;;  %v9296_v54 = vsel %vm4854_vm5, %v9295_v18, %v18869_v42 }
 0xbda   :  { %v9065_v11 = vsel %vm4875_vm8, %v9064_v63, %v9060_v39  ;;  %v9016_v58 = vsel %vm20684_vm14, %v9015_v26, %v9011_v34  ;;  %vm20694_vm14 = vcmask 786112  }
 0xbdb   :  { %v9445_v5 = vsel %vm20682_vm2, %v9065_v11, %v9444_v61  ;;  %v4461_v29 = vpop.xlane.xlu1 %4460  ;;  %v4431_v7 = vpop.xlane.xlu0 %4430  ;;  %vm20692_vm2 = vmmov %vm20687_vm9 }
 0xbdc   :  { %v9182_v9 = vrot.slane %v4461_v29, %v20443_v10  ;;  %v9133_v57 = vrot.slane %v4431_v7, %v20460_v49  ;;  %v9246_v29 = vrot.slane %v18889_v19, %v20453_v56  ;;  %v9413_v19 = vrot.slane %v18894_v40, %v20438_v21 }
 0xbde   :  { %v9183_v48 = vsel %vm4868_vm7, %v9182_v9, %v9178_v4  ;;  %v9134_v27 = vsel %vm20689_vm12, %v9133_v57, %v9129_v24  ;;  %v9247_v25 = vsel %vm20694_vm14, %v9246_v29, %v18872_v36  ;;  %v20709_v57 = vld [vmem:[#allocation75_spill] sm:$0xff]  ;;  %v20710_v24 = vld [vmem:[#allocation76_spill] sm:$0xff] }
 0xbdf   :  { %v4533_v38 = vpop.xlane.xlu1 %4532  ;;  %v4503_v46 = vpop.xlane.xlu0 %4502 }
 0xbe0   :  { %v9300_v37 = vrot.slane %v4533_v38, %v20444_v12  ;;  %v9251_v38 = vrot.slane %v4503_v46, %v20461_v51 }
 0xbe2   :  { %v9301_v39 = vsel %vm4861_vm6, %v9300_v37, %v9296_v54 }
 0xbe3   :  { %v18905_v8 = vpop.xlane.xlu1 %4604  ;;  %v18907_v2 = vpop.xlane.xlu0 %4574 }
 0xbe4   :  { %v9369_v46 = vrot.slane %v18907_v2, %v20453_v56 }
 0xbe7   :  { %v4434_v44 = vpop.xlane.xlu1 %4433  ;;  %v4362_v0 = vpop.xlane.xlu0 %4361 }
 0xbe8   :  { %v9020_v17 = vrot.slane %v4362_v0, %v20468_v23  ;;  %v9138_v41 = vrot.slane %v4434_v44, %v20469_v15  ;;  %v9364_v0 = vrot.slane %v18891_v30, %v20454_v13 }
 0xbea   :  { %v9021_v50 = vsel %vm20685_vm15, %v9020_v17, %v9016_v58  ;;  %v9139_v16 = vsel %vm20690_vm11, %v9138_v41, %v9134_v27  ;;  %vm20695_vm15 = vmmov %vm20688_vm3  ;;  %v9418_v58 = vrot.slane %v18905_v8, %v20437_v1  ;;  %v9365_v56 = vsel %vm4889_vm10, %v9364_v0, %v18880_v14  ;;  %v20711_v27 = vld [vmem:[#allocation79_spill] sm:$0xff] }
 0xbeb   :  { %v9438_v52 = vsel %vm20686_vm1, %v9021_v50, %v9437_v53  ;;  %v4506_v60 = vpop.xlane.xlu1 %4505  ;;  %v4464_v22 = vpop.xlane.xlu0 %4463  ;;  %v9252_v17 = vsel %vm20695_vm15, %v9251_v38, %v9247_v25  ;;  %vm20696_vm1 = vmmov %vm20689_vm12 }
 0xbec   :  { %v9187_v6 = vrot.slane %v4464_v22, %v20447_v20  ;;  %v9256_v44 = vrot.slane %v4506_v60, %v20460_v49  ;;  %vm20698_vm3 = vmmov %vm20694_vm14  ;;  %vm20707_vm14 = vcmask 588800  }
 0xbed   :  { %v9370_v8 = vsel %vm20698_vm3, %v9369_v46, %v9365_v56  ;;  %vm20699_vm12 = vmmov %vm20691_vm0 }
 0xbee   :  { %v9188_v55 = vsel %vm4875_vm8, %v9187_v6, %v9183_v48  ;;  %v9257_v30 = vsel %vm20696_vm1, %v9256_v44, %v9252_v17  ;;  %vm20701_vm10 = vmmov %vm20693_vm13 }
 0xbef   :  { %v9446_v45 = vsel %vm20687_vm9, %v9188_v55, %v9445_v5  ;;  %v4578_v32 = vpop.xlane.xlu1 %4577  ;;  %v4536_v61 = vpop.xlane.xlu0 %4535  ;;  %vm20697_vm9 = vmmov %vm20690_vm11 }
 0xbf0   :  { %v9305_v53 = vrot.slane %v4536_v61, %v20443_v10  ;;  %v9374_v9 = vrot.slane %v4578_v32, %v20461_v51  ;;  %v9414_v51 = vsel %vm4847_vm4, %v9413_v19, %v18877_v3  ;;  %vm20700_vm11 = vmmov %vm20695_vm15 }
 0xbf1   :  { %vm20703_vm4 = vmmov %vm20697_vm9 }
 0xbf2   :  { %v9306_v5 = vsel %vm4868_vm7, %v9305_v53, %v9301_v39  ;;  %v9375_v60 = vsel %vm20700_vm11, %v9374_v9, %v9370_v8 }
 0xbf3   :  { %v4437_v59 = vpop.xlane.xlu1 %4436  ;;  %v4608_v28 = vpop.xlane.xlu0 %4607 }
 0xbf4   :  { %v9143_v47 = vrot.slane %v4437_v59, %v20468_v23 }
 0xbf6   :  { %v9144_v33 = vsel %vm20691_vm0, %v9143_v47, %v9139_v16  ;;  %vm20702_vm0 = vmmov %vm20696_vm1  ;;  %v20712_v47 = vld [vmem:[#allocation80_spill] sm:$0xff] }
 0xbf7   :  { %v4539_v62 = vpop.xlane.xlu1 %4538  ;;  %v4509_v63 = vpop.xlane.xlu0 %4508  ;;  %v9439_v31 = vsel %vm20692_vm2, %v9144_v33, %v9438_v52  ;;  %v9423_v52 = vrot.slane %v4608_v28, %v20444_v12  ;;  %vm20705_vm2 = vcmask 1047559  }
 0xbf8   :  { %v9310_v11 = vrot.slane %v4539_v62, %v20447_v20  ;;  %v9261_v34 = vrot.slane %v4509_v63, %v20469_v15 }
 0xbfa   :  { %v9311_v7 = vsel %vm4875_vm8, %v9310_v11, %v9306_v5  ;;  %v9262_v40 = vsel %vm20697_vm9, %v9261_v34, %v9257_v30 }
 0xbfb   :  { %v4611_v35 = vpop.xlane.xlu1 %4610  ;;  %v4581_v26 = vpop.xlane.xlu0 %4580  ;;  %v9447_v42 = vsel %vm20693_vm13, %v9311_v7, %v9446_v45  ;;  %vm20706_vm13 = vmmov %vm20705_vm2 }
 0xbfc   :  { %v9379_v36 = vrot.slane %v4581_v26, %v20460_v49  ;;  %v9428_v2 = vrot.slane %v4611_v35, %v20443_v10  ;;  %v9419_v49 = vsel %vm4854_vm5, %v9418_v58, %v9414_v51  ;;  %vm20704_vm5 = vmmov %vm20699_vm12 }
 0xbfd   :  { %v9424_v6 = vsel %vm4861_vm6, %v9423_v52, %v9419_v49  ;;  %vm20708_vm6 = vmmov %vm20707_vm14 }
 0xbfe   :  { %v9380_v10 = vsel %vm20702_vm0, %v9379_v36, %v9375_v60  ;;  %v9429_v48 = vsel %vm4868_vm7, %v9428_v2, %v9424_v6 }
 0xbff   :  { %v4584_v50 = vpop.xlane.xlu1 %4583  ;;  %v4512_v13 = vpop.xlane.xlu0 %4511 }
 0xc00   :  { %v9266_v21 = vrot.slane %v4512_v13, %v20468_v23  ;;  %v9384_v1 = vrot.slane %v4584_v50, %v20469_v15 }
 0xc02   :  { %v9267_v12 = vsel %vm20699_vm12, %v9266_v21, %v9262_v40  ;;  %v9385_v55 = vsel %vm20703_vm4, %v9384_v1, %v9380_v10 }
 0xc03   :  { %v4587_v22 = vpop.xlane.xlu1 %4586  ;;  %v4614_v4 = vpop.xlane.xlu0 %4613  ;;  %v9440_v14 = vsel %vm20701_vm10, %v9267_v12, %v9439_v31 }
 0xc04   :  { %v9389_v15 = vrot.slane %v4587_v22, %v20468_v23  ;;  %v9433_v3 = vrot.slane %v4614_v4, %v20447_v20 }
 0xc06   :  { %v9434_v43 = vsel %vm4875_vm8, %v9433_v3, %v9429_v48  ;;  %v9390_v45 = vsel %vm20704_vm5, %v9389_v15, %v9385_v55 }
 0xc07   :  { %v9448_v32 = vsel %vm20705_vm2, %v9434_v43, %v9447_v42  ;;  %v9441_v61 = vsel %vm20706_vm13, %v9390_v45, %v9440_v14 }
 0xc08   :  { %9782 = vmatprep.mubr.msk.f32.mxu0 %vm20707_vm14, %v9448_v32  ;;  %9786 = vmatprep.mubr.msk.f32.mxu1 %vm20708_vm6, %v9448_v32 }
 0xc09   :  { %9664 = vmatmul.mubr.f32.gmra.mrb[6].mxu0 %v9441_v61  ;;  %9753 = vmatmul.mubr.f32.gmra.mrb[6].mxu1 %v9441_v61 }
 0xcdc   :  { %v9665_v23 = vpop.f32.mrb[6].mxu0  ;;  %v9754_v20 = vpop.f32.mrb[6].mxu1 }
 0xcdd   :  { %v9666_v41 = vadd.f32 %v9665_v23, %v20709_v57  ;;  %v9755_v18 = vadd.f32 %v9754_v20, %v20710_v24  ;;  %v9667_v59 = vpop.f32.mrb[7].mxu0  ;;  %v9756_v28 = vpop.f32.mrb[7].mxu1 }
 0xcde   :  { %v9668_v37 = vadd.f32 %v9667_v59, %v20711_v27  ;;  %v9757_v16 = vadd.f32 %v9756_v28, %v20712_v47 }
 0xcdf   :  { %9771 = vst [vmem:[%s19008_s3 + $0x60] sm:$0xff] %v9666_v41  ;;  %9773 = vst [vmem:[%s19008_s3 + $0x70] sm:$0xff] %v9755_v18 }
 0xce0   :  { %9772 = vst [vmem:[%s19008_s3 + $0x68] sm:$0xff] %v9668_v37  ;;  %9774 = vst [vmem:[%s19008_s3 + $0x78] sm:$0xff] %v9757_v16 }

</bundles_post_ra>
